<compile_context>
chip_gen: v5e
topology: v5e:2x2
jax: 0.10.0
libtpu: 0.0.40
codegen_flags: <defaults>
</compile_context>

<pallas_src>
import functools

import jax
import jax.numpy as jnp
from jax.experimental import pallas as pl
from jax.experimental.pallas import tpu as pltpu

_LANE = 128                      # channel padding granularity (use 256 on v6e)
_VMEM_LIMIT = 32 * 1024 * 1024   # explicit scoped-VMEM budget (fits v7x 64 MiB)


def _rup(c):
    return ((c + _LANE - 1) // _LANE) * _LANE


def _pick_tile(total, target):
    """Largest multiple-of-8 divisor of `total` <= target (else full)."""
    if total <= target:
        return total
    t = (target // 8) * 8
    while t >= 8:
        if total % t == 0:
            return t
        t -= 8
    return total   # TODO(synk): guard VMEM for huge prime-ish dims


# ---------------------------------------------------------------------------
# Pallas kernels
# ---------------------------------------------------------------------------

def _proj_in_gap_kernel(x_ref, w_ref, s_ref, b_ref, wg_ref, sg_ref, bg_ref,
                        out_ref, glob_ref, acc_ref, *, inv_hw):
    """1x1 conv + BN + ReLU, fused with GAP + 'global' 1x1 conv + BN.

    Grid = (N, HW//TS).  The GAP sum accumulates in VMEM scratch over the
    'arbitrary' spatial axis; the tiny global matmul runs on the last step, so
    proj_in's activation never makes an extra HBM round trip.
    """
    j = pl.program_id(1)

    @pl.when(j == 0)
    def _():
        acc_ref[...] = jnp.zeros_like(acc_ref)

    acc = jnp.dot(x_ref[0], w_ref[...], preferred_element_type=jnp.float32)
    out = jnp.maximum(acc * s_ref[...] + b_ref[...], 0.0)          # (TS, Ch) f32
    out_ref[0] = out.astype(out_ref.dtype)
    acc_ref[...] += jnp.sum(out, axis=0, keepdims=True)            # GAP partial

    @pl.when(j == pl.num_programs(1) - 1)
    def _():
        pooled = (acc_ref[...] * inv_hw).astype(jnp.bfloat16)      # (1, Ch)
        g = jnp.dot(pooled, wg_ref[...], preferred_element_type=jnp.float32)
        glob_ref[0] = (g * sg_ref[...] + bg_ref[...]).astype(glob_ref.dtype)


def _conv3x3_kernel(x_ref, w_ref, s_ref, b_ref, glob_ref, o_ref,
                    pad_ref, col_ref, *, stride, ho, wo, c):
    """3x3 conv (dense per-tap weight) + BN + broadcast add + ReLU.

    In-kernel im2col: zero-pad into a VMEM phase scratch, copy the 9 shifted
    windows (one copy per tap) into a (Ho,Wo,9C) scratch, then one long-K
    (Ho*Wo, 9C) @ (9C, Cout) matmul.  Stride-2 phases arrive on the lane axis /
    a tiny middle dim via the wrapper's free reshape, so no strided loads and
    no HBM phase copy are needed.
    """
    pad_ref[...] = jnp.zeros_like(pad_ref)
    for p in range(stride):
        for q in range(stride):
            pad_ref[p, q, 1:1 + ho, 1:1 + wo, :] = (
                x_ref[0, :, p, :, q * c:(q + 1) * c])
    for dy in range(3):
        for dx in range(3):
            t = dy * 3 + dx
            p = (dy - 1) % stride
            q = (dx - 1) % stride
            oy = (dy - 1 - p) // stride + 1
            ox = (dx - 1 - q) // stride + 1
            col_ref[:, :, t * c:(t + 1) * c] = pad_ref[p, q, oy:oy + ho,
                                                       ox:ox + wo, :]
    col = col_ref[...].reshape(ho * wo, 9 * c)
    acc = jnp.dot(col, w_ref[...], preferred_element_type=jnp.float32)
    out = acc * s_ref[...] + b_ref[...] + glob_ref[0]
    o_ref[0] = jnp.maximum(out, 0.0).astype(o_ref.dtype)


def _matmul_bn_res_kernel(x_ref, w_ref, s_ref, b_ref, res_ref, o_ref):
    """1x1 conv + folded BN (no act) with fused residual add (proj_out + skip)."""
    acc = jnp.dot(x_ref[0], w_ref[...], preferred_element_type=jnp.float32)
    out = acc * s_ref[...] + b_ref[...] + res_ref[0].astype(jnp.float32)
    o_ref[0] = out.astype(o_ref.dtype)


# ---------------------------------------------------------------------------
# Kernel wrappers
# ---------------------------------------------------------------------------

def proj_in_gap(x_nhwc, p_in, p_glob):
    N, H, W, Cin = x_nhwc.shape
    Ch = p_in["w"].shape[1]
    HW = H * W
    TS = _pick_tile(HW, 256)
    x3 = x_nhwc.reshape(N, HW, Cin)
    kern = functools.partial(_proj_in_gap_kernel, inv_hw=1.0 / HW)
    out, glob = pl.pallas_call(
        kern,
        out_shape=(jax.ShapeDtypeStruct((N, HW, Ch), jnp.bfloat16),
                   jax.ShapeDtypeStruct((N, 1, Ch), jnp.float32)),
        grid=(N, HW // TS),
        in_specs=[
            pl.BlockSpec((1, TS, Cin), lambda n, j: (n, j, 0)),
            pl.BlockSpec((Cin, Ch), lambda n, j: (0, 0)),
            pl.BlockSpec((1, Ch), lambda n, j: (0, 0)),
            pl.BlockSpec((1, Ch), lambda n, j: (0, 0)),
            pl.BlockSpec((Ch, Ch), lambda n, j: (0, 0)),
            pl.BlockSpec((1, Ch), lambda n, j: (0, 0)),
            pl.BlockSpec((1, Ch), lambda n, j: (0, 0)),
        ],
        out_specs=(pl.BlockSpec((1, TS, Ch), lambda n, j: (n, j, 0)),
                   pl.BlockSpec((1, 1, Ch), lambda n, j: (n, 0, 0))),
        scratch_shapes=[pltpu.VMEM((1, Ch), jnp.float32)],
        compiler_params=pltpu.CompilerParams(
            dimension_semantics=("parallel", "arbitrary"),
            vmem_limit_bytes=_VMEM_LIMIT),
    )(x3, p_in["w"], p_in["scale"], p_in["bias"],
      p_glob["w"], p_glob["scale"], p_glob["bias"])
    return out.reshape(N, H, W, Ch), glob


def conv3x3_bn_act(x_nhwc, p, glob, stride):
    """3x3 conv + BN + broadcast-add(glob) + ReLU (local path / folded skip)."""
    N, H, W, C = x_nhwc.shape
    Cout = p["w"].shape[1]
    assert p["w"].shape[0] == 9 * C and H % stride == 0 and W % stride == 0
    Ho, Wo = H // stride, W // stride
    ph_h = Ho + (2 if stride == 1 else 1)
    ph_w = Wo + (2 if stride == 1 else 1)
    # Free metadata reshape: stride phases land on the lane axis / a tiny
    # middle dim instead of an HBM phase-decompose copy or strided loads.
    x5 = x_nhwc.reshape(N, Ho, stride, Wo, stride * C)
    kern = functools.partial(_conv3x3_kernel, stride=stride, ho=Ho, wo=Wo, c=C)
    # TODO(synk): add an output-row tile axis for production resolutions
    #             (whole image per step is fine at these sizes).
    out = pl.pallas_call(
        kern,
        out_shape=jax.ShapeDtypeStruct((N, Ho * Wo, Cout), jnp.bfloat16),
        grid=(N,),
        in_specs=[
            pl.BlockSpec((1, Ho, stride, Wo, stride * C),
                         lambda n: (n, 0, 0, 0, 0)),
            pl.BlockSpec((9 * C, Cout), lambda n: (0, 0)),
            pl.BlockSpec((1, Cout), lambda n: (0, 0)),
            pl.BlockSpec((1, Cout), lambda n: (0, 0)),
            pl.BlockSpec((1, 1, Cout), lambda n: (n, 0, 0)),
        ],
        out_specs=pl.BlockSpec((1, Ho * Wo, Cout), lambda n: (n, 0, 0)),
        scratch_shapes=[
            pltpu.VMEM((stride, stride, ph_h, ph_w, C), jnp.bfloat16),
            pltpu.VMEM((Ho, Wo, 9 * C), jnp.bfloat16),
        ],
        compiler_params=pltpu.CompilerParams(
            dimension_semantics=("parallel",),
            vmem_limit_bytes=_VMEM_LIMIT),
    )(x5, p["w"], p["scale"], p["bias"], glob)
    return out.reshape(N, Ho, Wo, Cout)


def conv1x1_bn_res(x_nhwc, p, res_nhwc):
    N, H, W, Cin = x_nhwc.shape
    Cout = p["w"].shape[1]
    HW = H * W
    TS = _pick_tile(HW, 256)
    out = pl.pallas_call(
        _matmul_bn_res_kernel,
        out_shape=jax.ShapeDtypeStruct((N, HW, Cout), jnp.bfloat16),
        grid=(N, HW // TS),
        in_specs=[
            pl.BlockSpec((1, TS, Cin), lambda n, j: (n, j, 0)),
            pl.BlockSpec((Cin, Cout), lambda n, j: (0, 0)),
            pl.BlockSpec((1, Cout), lambda n, j: (0, 0)),
            pl.BlockSpec((1, Cout), lambda n, j: (0, 0)),
            pl.BlockSpec((1, TS, Cout), lambda n, j: (n, j, 0)),
        ],
        out_specs=pl.BlockSpec((1, TS, Cout), lambda n, j: (n, j, 0)),
        compiler_params=pltpu.CompilerParams(
            dimension_semantics=("parallel", "parallel"),
            vmem_limit_bytes=_VMEM_LIMIT),
    )(x_nhwc.reshape(N, HW, Cin), p["w"], p["scale"], p["bias"],
      res_nhwc.reshape(N, HW, Cout))
    return out.reshape(N, H, W, Cout)


# ---------------------------------------------------------------------------
# Parameter construction (deterministic, synthetic; BN folded, lane-padded)
# ---------------------------------------------------------------------------

def _bn_fold(key, cout):
    k1, k2, k3, k4 = jax.random.split(key, 4)
    gamma = 1.0 + 0.1 * jax.random.normal(k1, (cout,), jnp.float32)
    beta = 0.1 * jax.random.normal(k2, (cout,), jnp.float32)
    mean = 0.1 * jax.random.normal(k3, (cout,), jnp.float32)
    var = 0.5 + 0.1 * jnp.abs(jax.random.normal(k4, (cout,), jnp.float32))
    scale = gamma / jnp.sqrt(var + 1e-5)
    bias = beta - mean * scale
    return scale, bias


def _pack_scale_bias(scale, bias, cout_p):
    cout = scale.shape[0]
    s = jnp.ones((cout_p,), jnp.float32).at[:cout].set(scale)
    b = jnp.zeros((cout_p,), jnp.float32).at[:cout].set(bias)
    return s.reshape(1, cout_p), b.reshape(1, cout_p)


def init_conv1x1(key, cin, cout):
    kw, kbn = jax.random.split(key)
    w = 0.1 * jax.random.normal(kw, (cout, cin), jnp.float32)
    cin_p, cout_p = _rup(cin), _rup(cout)
    dense = jnp.zeros((cin_p, cout_p), jnp.float32).at[:cin, :cout].set(w.T)
    s, b = _pack_scale_bias(*_bn_fold(kbn, cout), cout_p)
    return {"w": dense.astype(jnp.bfloat16), "scale": s, "bias": b}


def init_conv3x3_grouped(key, cin, cout, groups):
    kw, kbn = jax.random.split(key)
    w = 0.1 * jax.random.normal(kw, (cout, cin // groups, 3, 3), jnp.float32)
    og, ig = cout // groups, cin // groups
    dense = jnp.zeros((3, 3, cin, cout), jnp.float32)
    for g in range(groups):
        blk = jnp.transpose(w[g * og:(g + 1) * og], (2, 3, 1, 0))   # (3,3,ig,og)
        dense = dense.at[:, :, g * ig:(g + 1) * ig,
                         g * og:(g + 1) * og].set(blk)
    cin_p, cout_p = _rup(cin), _rup(cout)
    wp = jnp.zeros((3, 3, cin_p, cout_p),
                   jnp.float32).at[:, :, :cin, :cout].set(dense)
    s, b = _pack_scale_bias(*_bn_fold(kbn, cout), cout_p)
    return {"w": wp.reshape(9 * cin_p, cout_p).astype(jnp.bfloat16),
            "scale": s, "bias": b}


def init_skip_fused(key, cin, cout):
    """Depthwise 3x3 + BN and 1x1 conv + BN (+ReLU), folded (inference-form BN)
    into one (9*cin, cout) im2col weight so the skip path reuses the 3x3
    kernel with no per-tap VPU work at all."""
    kdw, kbdw, kpw, kbpw = jax.random.split(key, 4)
    wdw = 0.1 * jax.random.normal(kdw, (cin, 1, 3, 3), jnp.float32)
    s_dw, b_dw = _bn_fold(kbdw, cin)
    wpw = 0.1 * jax.random.normal(kpw, (cout, cin), jnp.float32)
    s_pw, b_pw = _bn_fold(kbpw, cout)
    wdw9 = jnp.transpose(wdw[:, 0].reshape(cin, 9), (1, 0))          # (9, cin)
    # W_eff[t,c,o] = wdw[t,c] * scale_dw[c] * wpw[o,c] ; b_eff folds bias_dw.
    w_eff = wdw9[:, :, None] * (s_dw[None, :, None] * wpw.T[None, :, :])
    b_eff = b_pw + s_pw * (b_dw @ wpw.T)
    cin_p, cout_p = _rup(cin), _rup(cout)
    wp = jnp.zeros((9, cin_p, cout_p),
                   jnp.float32).at[:, :cin, :cout].set(w_eff)
    s, b = _pack_scale_bias(s_pw, b_eff, cout_p)
    return {"w": wp.reshape(9 * cin_p, cout_p).astype(jnp.bfloat16),
            "scale": s, "bias": b}


def init_block(key, in_dim, h_dim, out_dim, group_width, stride):
    if stride == 1:
        assert in_dim == out_dim, "identity skip requires in_dim == out_dim"
    keys = jax.random.split(key, 5)
    p = {
        "stride": stride,
        "proj_in": init_conv1x1(keys[0], in_dim, h_dim),
        "global": init_conv1x1(keys[1], h_dim, h_dim),
        "local": init_conv3x3_grouped(keys[2], h_dim, h_dim,
                                      h_dim // group_width),
        "proj_out": init_conv1x1(keys[3], h_dim, out_dim),
    }
    if stride != 1:
        p["skip"] = init_skip_fused(keys[4], in_dim, out_dim)
    return p


def init_stage(key, layers, dim, out_dim, mlp_ratio=1.0, group_width=4):
    keys = jax.random.split(key, layers)
    params = []
    for idx in range(layers):
        in_dim = dim if idx == 0 else out_dim
        stride = 2 if idx == 0 else 1
        params.append(init_block(keys[idx], in_dim, int(mlp_ratio * out_dim),
                                 out_dim, group_width, stride))
    return params


# ---------------------------------------------------------------------------
# Forward pass (Block / StageModule)
# ---------------------------------------------------------------------------

def block_forward(x, p):
    stride = p["stride"]
    # proj_in (1x1+BN+ReLU) fused with GAP + global 1x1+BN  -> out, glob
    out, glob = proj_in_gap(x, p["proj_in"], p["global"])
    # main_local grouped 3x3 + BN, fused broadcast-add(glob) + ReLU
    out = conv3x3_bn_act(out, p["local"], glob, stride)
    # skip connection
    if stride == 1:
        skip = x                                     # identity (in_dim == out_dim)
    else:
        zeros = jnp.zeros((x.shape[0], 1, p["skip"]["w"].shape[1]), jnp.float32)
        skip = conv3x3_bn_act(x, p["skip"], zeros, stride)
    # proj_out 1x1 + BN with fused residual add
    return conv1x1_bn_res(out, p["proj_out"], skip)


def stage_forward(x, params):
    for p in params:
        x = block_forward(x, p)
    return x


# ---------------------------------------------------------------------------
# Main
# ---------------------------------------------------------------------------

if __name__ == "__main__":
    key = jax.random.PRNGKey(0)
    kp, kx = jax.random.split(key)

    LAYERS, DIM, OUT_DIM = 2, 4, 8                   # StageModule(2, 4, 8)
    params = init_stage(kp, LAYERS, DIM, OUT_DIM, mlp_ratio=1.0, group_width=4)

    # PyTorch-style NCHW input
    x_nchw = jax.random.normal(kx, (2, DIM, 16, 16), jnp.float32)

    @jax.jit
    def run(x_in):
        x = jnp.transpose(x_in, (0, 2, 3, 1)).astype(jnp.bfloat16)    # NHWC bf16
        cp = _rup(x.shape[-1])
        x = jnp.pad(x, ((0, 0), (0, 0), (0, 0), (0, cp - x.shape[-1])))
        y = stage_forward(x, params)
        y = y[..., :OUT_DIM].astype(jnp.float32)                      # drop pad lanes
        return jnp.transpose(y, (0, 3, 1, 2))                         # back to NCHW

    y_nchw = run(x_nchw)
    jax.block_until_ready(y_nchw)

    assert y_nchw.shape == (2, OUT_DIM, 8, 8), y_nchw.shape
    assert bool(jnp.all(jnp.isfinite(y_nchw)))
    print("KERNEL_OK")
</pallas_src>

<mosaic_0001>
module attributes {stable_mosaic.version = 11 : i64} {
  func.func @_proj_in_gap_kernel(%arg0: i32, %arg1: i32, %arg2: memref<1x256x128xbf16, #tpu.memory_space<vmem>>, %arg3: memref<128x128xbf16, #tpu.memory_space<vmem>>, %arg4: memref<1x128xf32, #tpu.memory_space<vmem>>, %arg5: memref<1x128xf32, #tpu.memory_space<vmem>>, %arg6: memref<128x128xbf16, #tpu.memory_space<vmem>>, %arg7: memref<1x128xf32, #tpu.memory_space<vmem>>, %arg8: memref<1x128xf32, #tpu.memory_space<vmem>>, %arg9: memref<1x256x128xbf16, #tpu.memory_space<vmem>>, %arg10: memref<1x1x128xf32, #tpu.memory_space<vmem>>, %arg11: memref<1x128xf32, #tpu.memory_space<vmem>>) attributes {dimension_semantics = [#tpu.dimension_semantics<parallel>, #tpu.dimension_semantics<arbitrary>], iteration_bounds = array<i64: 2, 1>, scalar_prefetch = 0 : i64, scratch_operands = 1 : i64, tpu.core_type = #tpu.core_type<tc>, window_params = [{transform_indices = @transform_0, window_bounds = array<i64: 1, 256, 128>}, {pipeline_mode = #tpu.pipeline_mode<synchronous>, transform_indices = @transform_1, window_bounds = array<i64: 128, 128>}, {pipeline_mode = #tpu.pipeline_mode<synchronous>, transform_indices = @transform_2, window_bounds = array<i64: 1, 128>}, {pipeline_mode = #tpu.pipeline_mode<synchronous>, transform_indices = @transform_3, window_bounds = array<i64: 1, 128>}, {pipeline_mode = #tpu.pipeline_mode<synchronous>, transform_indices = @transform_4, window_bounds = array<i64: 128, 128>}, {pipeline_mode = #tpu.pipeline_mode<synchronous>, transform_indices = @transform_5, window_bounds = array<i64: 1, 128>}, {pipeline_mode = #tpu.pipeline_mode<synchronous>, transform_indices = @transform_6, window_bounds = array<i64: 1, 128>}, {transform_indices = @transform_7, window_bounds = array<i64: 1, 256, 128>}, {transform_indices = @transform_8, window_bounds = array<i64: 1, 1, 128>}]} {
    %c0_i32 = arith.constant 0 : i32
    %0 = arith.cmpi eq, %arg1, %c0_i32 : i32
    %1 = arith.extui %0 : i1 to i32
    %c0_i32_0 = arith.constant 0 : i32
    %2 = arith.cmpi ne, %1, %c0_i32_0 : i32
    scf.if %2 {
      %cst_20 = arith.constant 0.000000e+00 : f32
      %27 = vector.broadcast %cst_20 : f32 to vector<1x128xf32>
      %c0_21 = arith.constant 0 : index
      %c0_22 = arith.constant 0 : index
      %28 = vector.load %arg11[%c0_21, %c0_22] : memref<1x128xf32, #tpu.memory_space<vmem>>, vector<1x128xf32>
      tpu.vector_store %arg11[%c0_21, %c0_22], %27 {strides = array<i32>} : memref<1x128xf32, #tpu.memory_space<vmem>>, vector<1x128xf32>,
    } else {
    }
    %c0 = arith.constant 0 : index
    %c0_1 = arith.constant 0 : index
    %c0_2 = arith.constant 0 : index
    %3 = vector.load %arg2[%c0, %c0_1, %c0_2] : memref<1x256x128xbf16, #tpu.memory_space<vmem>>, vector<1x256x128xbf16>
    %4 = vector.shape_cast %3 : vector<1x256x128xbf16> to vector<256x128xbf16>
    %c0_3 = arith.constant 0 : index
    %c0_4 = arith.constant 0 : index
    %5 = vector.load %arg3[%c0_3, %c0_4] : memref<128x128xbf16, #tpu.memory_space<vmem>>, vector<128x128xbf16>
    %cst = arith.constant dense<0.000000e+00> : vector<256x128xf32>
    %6 = tpu.matmul %4, %5, %cst {dimension_numbers = #tpu.dot_dimension_numbers<[1], [0], [0], [1], [0, 0, 1, 1], [], []>} : vector<256x128xbf16>, vector<128x128xbf16>, vector<256x128xf32> -> vector<256x128xf32>
    %c0_5 = arith.constant 0 : index
    %c0_6 = arith.constant 0 : index
    %7 = vector.load %arg4[%c0_5, %c0_6] : memref<1x128xf32, #tpu.memory_space<vmem>>, vector<1x128xf32>
    %8 = vector.broadcast %7 : vector<1x128xf32> to vector<256x128xf32>
    %9 = arith.mulf %6, %8 : vector<256x128xf32>
    %c0_7 = arith.constant 0 : index
    %c0_8 = arith.constant 0 : index
    %10 = vector.load %arg5[%c0_7, %c0_8] : memref<1x128xf32, #tpu.memory_space<vmem>>, vector<1x128xf32>
    %11 = vector.broadcast %10 : vector<1x128xf32> to vector<256x128xf32>
    %12 = arith.addf %9, %11 : vector<256x128xf32>
    %cst_9 = arith.constant 0.000000e+00 : f32
    %13 = vector.broadcast %cst_9 : f32 to vector<256x128xf32>
    %14 = arith.maximumf %12, %13 : vector<256x128xf32>
    %15 = arith.truncf %14 : vector<256x128xf32> to vector<256x128xbf16>
    %c0_10 = arith.constant 0 : index
    %c0_11 = arith.constant 0 : index
    %c0_12 = arith.constant 0 : index
    %16 = vector.load %arg9[%c0_10, %c0_11, %c0_12] : memref<1x256x128xbf16, #tpu.memory_space<vmem>>, vector<1x256x128xbf16>
    %17 = vector.shape_cast %16 : vector<1x256x128xbf16> to vector<256x128xbf16>
    %18 = vector.shape_cast %15 : vector<256x128xbf16> to vector<1x256x128xbf16>
    tpu.vector_store %arg9[%c0_10, %c0_11, %c0_12], %18 {strides = array<i32>} : memref<1x256x128xbf16, #tpu.memory_space<vmem>>, vector<1x256x128xbf16>,
    %c0_13 = arith.constant 0 : index
    %c0_14 = arith.constant 0 : index
    %19 = vector.load %arg11[%c0_13, %c0_14] : memref<1x128xf32, #tpu.memory_space<vmem>>, vector<1x128xf32>
    %cst_15 = arith.constant dense<0.000000e+00> : vector<128xf32>
    %20 = vector.multi_reduction <add>, %14, %cst_15 [0] : vector<256x128xf32> to vector<128xf32>
    %21 = vector.shape_cast %20 : vector<128xf32> to vector<1x128xf32>
    %22 = arith.addf %19, %21 : vector<1x128xf32>
    %c0_16 = arith.constant 0 : index
    %c0_17 = arith.constant 0 : index
    %23 = vector.load %arg11[%c0_16, %c0_17] : memref<1x128xf32, #tpu.memory_space<vmem>>, vector<1x128xf32>
    tpu.vector_store %arg11[%c0_16, %c0_17], %22 {strides = array<i32>} : memref<1x128xf32, #tpu.memory_space<vmem>>, vector<1x128xf32>,
    %c0_i32_18 = arith.constant 0 : i32
    %24 = arith.cmpi eq, %arg1, %c0_i32_18 : i32
    %25 = arith.extui %24 : i1 to i32
    %c0_i32_19 = arith.constant 0 : i32
    %26 = arith.cmpi ne, %25, %c0_i32_19 : i32
    scf.if %26 {
      %c0_20 = arith.constant 0 : index
      %c0_21 = arith.constant 0 : index
      %27 = vector.load %arg11[%c0_20, %c0_21] : memref<1x128xf32, #tpu.memory_space<vmem>>, vector<1x128xf32>
      %cst_22 = arith.constant 3.906250e-03 : f32
      %28 = vector.broadcast %cst_22 : f32 to vector<1x128xf32>
      %29 = arith.mulf %27, %28 : vector<1x128xf32>
      %30 = arith.truncf %29 : vector<1x128xf32> to vector<1x128xbf16>
      %c0_23 = arith.constant 0 : index
      %c0_24 = arith.constant 0 : index
      %31 = vector.load %arg6[%c0_23, %c0_24] : memref<128x128xbf16, #tpu.memory_space<vmem>>, vector<128x128xbf16>
      %cst_25 = arith.constant dense<0.000000e+00> : vector<1x128xf32>
      %32 = tpu.matmul %30, %31, %cst_25 {dimension_numbers = #tpu.dot_dimension_numbers<[1], [0], [0], [1], [0, 0, 1, 1], [], []>} : vector<1x128xbf16>, vector<128x128xbf16>, vector<1x128xf32> -> vector<1x128xf32>
      %c0_26 = arith.constant 0 : index
      %c0_27 = arith.constant 0 : index
      %33 = vector.load %arg7[%c0_26, %c0_27] : memref<1x128xf32, #tpu.memory_space<vmem>>, vector<1x128xf32>
      %34 = arith.mulf %32, %33 : vector<1x128xf32>
      %c0_28 = arith.constant 0 : index
      %c0_29 = arith.constant 0 : index
      %35 = vector.load %arg8[%c0_28, %c0_29] : memref<1x128xf32, #tpu.memory_space<vmem>>, vector<1x128xf32>
      %36 = arith.addf %34, %35 : vector<1x128xf32>
      %c0_30 = arith.constant 0 : index
      %c0_31 = arith.constant 0 : index
      %c0_32 = arith.constant 0 : index
      %37 = vector.load %arg10[%c0_30, %c0_31, %c0_32] : memref<1x1x128xf32, #tpu.memory_space<vmem>>, vector<1x1x128xf32>
      %38 = vector.shape_cast %37 : vector<1x1x128xf32> to vector<1x128xf32>
      %39 = vector.shape_cast %36 : vector<1x128xf32> to vector<1x1x128xf32>
      tpu.vector_store %arg10[%c0_30, %c0_31, %c0_32], %39 {strides = array<i32>} : memref<1x1x128xf32, #tpu.memory_space<vmem>>, vector<1x1x128xf32>,
    } else {
    }
    return
  }
  func.func @transform_0(%arg0: i32, %arg1: i32) -> (i32, i32, i32) {
    %c0_i32 = arith.constant 0 : i32
    %c0_i32_0 = arith.constant 0 : i32
    return %arg0, %arg1, %c0_i32 : i32, i32, i32
  }
  func.func @transform_1(%arg0: i32, %arg1: i32) -> (i32, i32) {
    %c0_i32 = arith.constant 0 : i32
    %c0_i32_0 = arith.constant 0 : i32
    %c0_i32_1 = arith.constant 0 : i32
    return %c0_i32, %c0_i32_0 : i32, i32
  }
  func.func @transform_2(%arg0: i32, %arg1: i32) -> (i32, i32) {
    %c0_i32 = arith.constant 0 : i32
    %c0_i32_0 = arith.constant 0 : i32
    %c0_i32_1 = arith.constant 0 : i32
    return %c0_i32, %c0_i32_0 : i32, i32
  }
  func.func @transform_3(%arg0: i32, %arg1: i32) -> (i32, i32) {
    %c0_i32 = arith.constant 0 : i32
    %c0_i32_0 = arith.constant 0 : i32
    %c0_i32_1 = arith.constant 0 : i32
    return %c0_i32, %c0_i32_0 : i32, i32
  }
  func.func @transform_4(%arg0: i32, %arg1: i32) -> (i32, i32) {
    %c0_i32 = arith.constant 0 : i32
    %c0_i32_0 = arith.constant 0 : i32
    %c0_i32_1 = arith.constant 0 : i32
    return %c0_i32, %c0_i32_0 : i32, i32
  }
  func.func @transform_5(%arg0: i32, %arg1: i32) -> (i32, i32) {
    %c0_i32 = arith.constant 0 : i32
    %c0_i32_0 = arith.constant 0 : i32
    %c0_i32_1 = arith.constant 0 : i32
    return %c0_i32, %c0_i32_0 : i32, i32
  }
  func.func @transform_6(%arg0: i32, %arg1: i32) -> (i32, i32) {
    %c0_i32 = arith.constant 0 : i32
    %c0_i32_0 = arith.constant 0 : i32
    %c0_i32_1 = arith.constant 0 : i32
    return %c0_i32, %c0_i32_0 : i32, i32
  }
  func.func @transform_7(%arg0: i32, %arg1: i32) -> (i32, i32, i32) {
    %c0_i32 = arith.constant 0 : i32
    %c0_i32_0 = arith.constant 0 : i32
    return %arg0, %arg1, %c0_i32 : i32, i32, i32
  }
  func.func @transform_8(%arg0: i32, %arg1: i32) -> (i32, i32, i32) {
    %c0_i32 = arith.constant 0 : i32
    %c0_i32_0 = arith.constant 0 : i32
    %c0_i32_1 = arith.constant 0 : i32
    return %arg0, %c0_i32, %c0_i32_0 : i32, i32, i32
  }
}

module attributes {stable_mosaic.version = 11 : i64} {
  func.func @_conv3x3_kernel(%arg0: i32, %arg1: memref<1x8x2x8x256xbf16, #tpu.memory_space<vmem>>, %arg2: memref<1152x128xbf16, #tpu.memory_space<vmem>>, %arg3: memref<1x128xf32, #tpu.memory_space<vmem>>, %arg4: memref<1x128xf32, #tpu.memory_space<vmem>>, %arg5: memref<1x1x128xf32, #tpu.memory_space<vmem>>, %arg6: memref<1x64x128xbf16, #tpu.memory_space<vmem>>, %arg7: memref<2x2x9x9x128xbf16, #tpu.memory_space<vmem>>, %arg8: memref<8x8x1152xbf16, #tpu.memory_space<vmem>>) attributes {dimension_semantics = [#tpu.dimension_semantics<parallel>], iteration_bounds = array<i64: 2>, scalar_prefetch = 0 : i64, scratch_operands = 2 : i64, tpu.core_type = #tpu.core_type<tc>, window_params = [{transform_indices = @transform_0, window_bounds = array<i64: 1, 8, 2, 8, 256>}, {pipeline_mode = #tpu.pipeline_mode<synchronous>, transform_indices = @transform_1, window_bounds = array<i64: 1152, 128>}, {pipeline_mode = #tpu.pipeline_mode<synchronous>, transform_indices = @transform_2, window_bounds = array<i64: 1, 128>}, {pipeline_mode = #tpu.pipeline_mode<synchronous>, transform_indices = @transform_3, window_bounds = array<i64: 1, 128>}, {transform_indices = @transform_4, window_bounds = array<i64: 1, 1, 128>}, {transform_indices = @transform_5, window_bounds = array<i64: 1, 64, 128>}]} {
    %cst = arith.constant 0.000000e+00 : bf16
    %0 = vector.broadcast %cst : bf16 to vector<2x2x9x9x128xbf16>
    %c0 = arith.constant 0 : index
    %c0_0 = arith.constant 0 : index
    %c0_1 = arith.constant 0 : index
    %c0_2 = arith.constant 0 : index
    %c0_3 = arith.constant 0 : index
    %1 = vector.load %arg7[%c0, %c0_0, %c0_1, %c0_2, %c0_3] : memref<2x2x9x9x128xbf16, #tpu.memory_space<vmem>>, vector<2x2x9x9x128xbf16>
    tpu.vector_store %arg7[%c0, %c0_0, %c0_1, %c0_2, %c0_3], %0 {strides = array<i32>} : memref<2x2x9x9x128xbf16, #tpu.memory_space<vmem>>, vector<2x2x9x9x128xbf16>,
    %c0_4 = arith.constant 0 : index
    %c0_5 = arith.constant 0 : index
    %c0_6 = arith.constant 0 : index
    %c0_7 = arith.constant 0 : index
    %c0_8 = arith.constant 0 : index
    %2 = vector.load %arg1[%c0_4, %c0_5, %c0_6, %c0_7, %c0_8] : memref<1x8x2x8x256xbf16, #tpu.memory_space<vmem>>, vector<1x8x1x8x128xbf16>
    %3 = vector.shape_cast %2 : vector<1x8x1x8x128xbf16> to vector<8x8x128xbf16>
    %c0_9 = arith.constant 0 : index
    %c0_10 = arith.constant 0 : index
    %c1 = arith.constant 1 : index
    %c1_11 = arith.constant 1 : index
    %c0_12 = arith.constant 0 : index
    %4 = vector.load %arg7[%c0_9, %c0_10, %c1, %c1_11, %c0_12] : memref<2x2x9x9x128xbf16, #tpu.memory_space<vmem>>, vector<1x1x8x8x128xbf16>
    %5 = vector.shape_cast %4 : vector<1x1x8x8x128xbf16> to vector<8x8x128xbf16>
    %6 = vector.shape_cast %3 : vector<8x8x128xbf16> to vector<1x1x8x8x128xbf16>
    tpu.vector_store %arg7[%c0_9, %c0_10, %c1, %c1_11, %c0_12], %6 {strides = array<i32>} : memref<2x2x9x9x128xbf16, #tpu.memory_space<vmem>>, vector<1x1x8x8x128xbf16>,
    %c0_13 = arith.constant 0 : index
    %c0_14 = arith.constant 0 : index
    %c0_15 = arith.constant 0 : index
    %c0_16 = arith.constant 0 : index
    %c128 = arith.constant 128 : index
    %7 = vector.load %arg1[%c0_13, %c0_14, %c0_15, %c0_16, %c128] : memref<1x8x2x8x256xbf16, #tpu.memory_space<vmem>>, vector<1x8x1x8x128xbf16>
    %8 = vector.shape_cast %7 : vector<1x8x1x8x128xbf16> to vector<8x8x128xbf16>
    %c0_17 = arith.constant 0 : index
    %c1_18 = arith.constant 1 : index
    %c1_19 = arith.constant 1 : index
    %c1_20 = arith.constant 1 : index
    %c0_21 = arith.constant 0 : index
    %9 = vector.load %arg7[%c0_17, %c1_18, %c1_19, %c1_20, %c0_21] : memref<2x2x9x9x128xbf16, #tpu.memory_space<vmem>>, vector<1x1x8x8x128xbf16>
    %10 = vector.shape_cast %9 : vector<1x1x8x8x128xbf16> to vector<8x8x128xbf16>
    %11 = vector.shape_cast %8 : vector<8x8x128xbf16> to vector<1x1x8x8x128xbf16>
    tpu.vector_store %arg7[%c0_17, %c1_18, %c1_19, %c1_20, %c0_21], %11 {strides = array<i32>} : memref<2x2x9x9x128xbf16, #tpu.memory_space<vmem>>, vector<1x1x8x8x128xbf16>,
    %c0_22 = arith.constant 0 : index
    %c0_23 = arith.constant 0 : index
    %c1_24 = arith.constant 1 : index
    %c0_25 = arith.constant 0 : index
    %c0_26 = arith.constant 0 : index
    %12 = vector.load %arg1[%c0_22, %c0_23, %c1_24, %c0_25, %c0_26] : memref<1x8x2x8x256xbf16, #tpu.memory_space<vmem>>, vector<1x8x1x8x128xbf16>
    %13 = vector.shape_cast %12 : vector<1x8x1x8x128xbf16> to vector<8x8x128xbf16>
    %c1_27 = arith.constant 1 : index
    %c0_28 = arith.constant 0 : index
    %c1_29 = arith.constant 1 : index
    %c1_30 = arith.constant 1 : index
    %c0_31 = arith.constant 0 : index
    %14 = vector.load %arg7[%c1_27, %c0_28, %c1_29, %c1_30, %c0_31] : memref<2x2x9x9x128xbf16, #tpu.memory_space<vmem>>, vector<1x1x8x8x128xbf16>
    %15 = vector.shape_cast %14 : vector<1x1x8x8x128xbf16> to vector<8x8x128xbf16>
    %16 = vector.shape_cast %13 : vector<8x8x128xbf16> to vector<1x1x8x8x128xbf16>
    tpu.vector_store %arg7[%c1_27, %c0_28, %c1_29, %c1_30, %c0_31], %16 {strides = array<i32>} : memref<2x2x9x9x128xbf16, #tpu.memory_space<vmem>>, vector<1x1x8x8x128xbf16>,
    %c0_32 = arith.constant 0 : index
    %c0_33 = arith.constant 0 : index
    %c1_34 = arith.constant 1 : index
    %c0_35 = arith.constant 0 : index
    %c128_36 = arith.constant 128 : index
    %17 = vector.load %arg1[%c0_32, %c0_33, %c1_34, %c0_35, %c128_36] : memref<1x8x2x8x256xbf16, #tpu.memory_space<vmem>>, vector<1x8x1x8x128xbf16>
    %18 = vector.shape_cast %17 : vector<1x8x1x8x128xbf16> to vector<8x8x128xbf16>
    %c1_37 = arith.constant 1 : index
    %c1_38 = arith.constant 1 : index
    %c1_39 = arith.constant 1 : index
    %c1_40 = arith.constant 1 : index
    %c0_41 = arith.constant 0 : index
    %19 = vector.load %arg7[%c1_37, %c1_38, %c1_39, %c1_40, %c0_41] : memref<2x2x9x9x128xbf16, #tpu.memory_space<vmem>>, vector<1x1x8x8x128xbf16>
    %20 = vector.shape_cast %19 : vector<1x1x8x8x128xbf16> to vector<8x8x128xbf16>
    %21 = vector.shape_cast %18 : vector<8x8x128xbf16> to vector<1x1x8x8x128xbf16>
    tpu.vector_store %arg7[%c1_37, %c1_38, %c1_39, %c1_40, %c0_41], %21 {strides = array<i32>} : memref<2x2x9x9x128xbf16, #tpu.memory_space<vmem>>, vector<1x1x8x8x128xbf16>,
    %c1_42 = arith.constant 1 : index
    %c1_43 = arith.constant 1 : index
    %c0_44 = arith.constant 0 : index
    %c0_45 = arith.constant 0 : index
    %c0_46 = arith.constant 0 : index
    %22 = vector.load %arg7[%c1_42, %c1_43, %c0_44, %c0_45, %c0_46] : memref<2x2x9x9x128xbf16, #tpu.memory_space<vmem>>, vector<1x1x8x8x128xbf16>
    %23 = vector.shape_cast %22 : vector<1x1x8x8x128xbf16> to vector<8x8x128xbf16>
    %c0_47 = arith.constant 0 : index
    %c0_48 = arith.constant 0 : index
    %c0_49 = arith.constant 0 : index
    %24 = vector.load %arg8[%c0_47, %c0_48, %c0_49] : memref<8x8x1152xbf16, #tpu.memory_space<vmem>>, vector<8x8x128xbf16>
    tpu.vector_store %arg8[%c0_47, %c0_48, %c0_49], %23 {strides = array<i32>} : memref<8x8x1152xbf16, #tpu.memory_space<vmem>>, vector<8x8x128xbf16>,
    %c1_50 = arith.constant 1 : index
    %c0_51 = arith.constant 0 : index
    %c0_52 = arith.constant 0 : index
    %c1_53 = arith.constant 1 : index
    %c0_54 = arith.constant 0 : index
    %25 = vector.load %arg7[%c1_50, %c0_51, %c0_52, %c1_53, %c0_54] : memref<2x2x9x9x128xbf16, #tpu.memory_space<vmem>>, vector<1x1x8x8x128xbf16>
    %26 = vector.shape_cast %25 : vector<1x1x8x8x128xbf16> to vector<8x8x128xbf16>
    %c0_55 = arith.constant 0 : index
    %c0_56 = arith.constant 0 : index
    %c128_57 = arith.constant 128 : index
    %27 = vector.load %arg8[%c0_55, %c0_56, %c128_57] : memref<8x8x1152xbf16, #tpu.memory_space<vmem>>, vector<8x8x128xbf16>
    tpu.vector_store %arg8[%c0_55, %c0_56, %c128_57], %26 {strides = array<i32>} : memref<8x8x1152xbf16, #tpu.memory_space<vmem>>, vector<8x8x128xbf16>,
    %c1_58 = arith.constant 1 : index
    %c1_59 = arith.constant 1 : index
    %c0_60 = arith.constant 0 : index
    %c1_61 = arith.constant 1 : index
    %c0_62 = arith.constant 0 : index
    %28 = vector.load %arg7[%c1_58, %c1_59, %c0_60, %c1_61, %c0_62] : memref<2x2x9x9x128xbf16, #tpu.memory_space<vmem>>, vector<1x1x8x8x128xbf16>
    %29 = vector.shape_cast %28 : vector<1x1x8x8x128xbf16> to vector<8x8x128xbf16>
    %c0_63 = arith.constant 0 : index
    %c0_64 = arith.constant 0 : index
    %c256 = arith.constant 256 : index
    %30 = vector.load %arg8[%c0_63, %c0_64, %c256] : memref<8x8x1152xbf16, #tpu.memory_space<vmem>>, vector<8x8x128xbf16>
    tpu.vector_store %arg8[%c0_63, %c0_64, %c256], %29 {strides = array<i32>} : memref<8x8x1152xbf16, #tpu.memory_space<vmem>>, vector<8x8x128xbf16>,
    %c0_65 = arith.constant 0 : index
    %c1_66 = arith.constant 1 : index
    %c1_67 = arith.constant 1 : index
    %c0_68 = arith.constant 0 : index
    %c0_69 = arith.constant 0 : index
    %31 = vector.load %arg7[%c0_65, %c1_66, %c1_67, %c0_68, %c0_69] : memref<2x2x9x9x128xbf16, #tpu.memory_space<vmem>>, vector<1x1x8x8x128xbf16>
    %32 = vector.shape_cast %31 : vector<1x1x8x8x128xbf16> to vector<8x8x128xbf16>
    %c0_70 = arith.constant 0 : index
    %c0_71 = arith.constant 0 : index
    %c384 = arith.constant 384 : index
    %33 = vector.load %arg8[%c0_70, %c0_71, %c384] : memref<8x8x1152xbf16, #tpu.memory_space<vmem>>, vector<8x8x128xbf16>
    tpu.vector_store %arg8[%c0_70, %c0_71, %c384], %32 {strides = array<i32>} : memref<8x8x1152xbf16, #tpu.memory_space<vmem>>, vector<8x8x128xbf16>,
    %c0_72 = arith.constant 0 : index
    %c0_73 = arith.constant 0 : index
    %c1_74 = arith.constant 1 : index
    %c1_75 = arith.constant 1 : index
    %c0_76 = arith.constant 0 : index
    %34 = vector.load %arg7[%c0_72, %c0_73, %c1_74, %c1_75, %c0_76] : memref<2x2x9x9x128xbf16, #tpu.memory_space<vmem>>, vector<1x1x8x8x128xbf16>
    %35 = vector.shape_cast %34 : vector<1x1x8x8x128xbf16> to vector<8x8x128xbf16>
    %c0_77 = arith.constant 0 : index
    %c0_78 = arith.constant 0 : index
    %c512 = arith.constant 512 : index
    %36 = vector.load %arg8[%c0_77, %c0_78, %c512] : memref<8x8x1152xbf16, #tpu.memory_space<vmem>>, vector<8x8x128xbf16>
    tpu.vector_store %arg8[%c0_77, %c0_78, %c512], %35 {strides = array<i32>} : memref<8x8x1152xbf16, #tpu.memory_space<vmem>>, vector<8x8x128xbf16>,
    %c0_79 = arith.constant 0 : index
    %c1_80 = arith.constant 1 : index
    %c1_81 = arith.constant 1 : index
    %c1_82 = arith.constant 1 : index
    %c0_83 = arith.constant 0 : index
    %37 = vector.load %arg7[%c0_79, %c1_80, %c1_81, %c1_82, %c0_83] : memref<2x2x9x9x128xbf16, #tpu.memory_space<vmem>>, vector<1x1x8x8x128xbf16>
    %38 = vector.shape_cast %37 : vector<1x1x8x8x128xbf16> to vector<8x8x128xbf16>
    %c0_84 = arith.constant 0 : index
    %c0_85 = arith.constant 0 : index
    %c640 = arith.constant 640 : index
    %39 = vector.load %arg8[%c0_84, %c0_85, %c640] : memref<8x8x1152xbf16, #tpu.memory_space<vmem>>, vector<8x8x128xbf16>
    tpu.vector_store %arg8[%c0_84, %c0_85, %c640], %38 {strides = array<i32>} : memref<8x8x1152xbf16, #tpu.memory_space<vmem>>, vector<8x8x128xbf16>,
    %c1_86 = arith.constant 1 : index
    %c1_87 = arith.constant 1 : index
    %c1_88 = arith.constant 1 : index
    %c0_89 = arith.constant 0 : index
    %c0_90 = arith.constant 0 : index
    %40 = vector.load %arg7[%c1_86, %c1_87, %c1_88, %c0_89, %c0_90] : memref<2x2x9x9x128xbf16, #tpu.memory_space<vmem>>, vector<1x1x8x8x128xbf16>
    %41 = vector.shape_cast %40 : vector<1x1x8x8x128xbf16> to vector<8x8x128xbf16>
    %c0_91 = arith.constant 0 : index
    %c0_92 = arith.constant 0 : index
    %c768 = arith.constant 768 : index
    %42 = vector.load %arg8[%c0_91, %c0_92, %c768] : memref<8x8x1152xbf16, #tpu.memory_space<vmem>>, vector<8x8x128xbf16>
    tpu.vector_store %arg8[%c0_91, %c0_92, %c768], %41 {strides = array<i32>} : memref<8x8x1152xbf16, #tpu.memory_space<vmem>>, vector<8x8x128xbf16>,
    %c1_93 = arith.constant 1 : index
    %c0_94 = arith.constant 0 : index
    %c1_95 = arith.constant 1 : index
    %c1_96 = arith.constant 1 : index
    %c0_97 = arith.constant 0 : index
    %43 = vector.load %arg7[%c1_93, %c0_94, %c1_95, %c1_96, %c0_97] : memref<2x2x9x9x128xbf16, #tpu.memory_space<vmem>>, vector<1x1x8x8x128xbf16>
    %44 = vector.shape_cast %43 : vector<1x1x8x8x128xbf16> to vector<8x8x128xbf16>
    %c0_98 = arith.constant 0 : index
    %c0_99 = arith.constant 0 : index
    %c896 = arith.constant 896 : index
    %45 = vector.load %arg8[%c0_98, %c0_99, %c896] : memref<8x8x1152xbf16, #tpu.memory_space<vmem>>, vector<8x8x128xbf16>
    tpu.vector_store %arg8[%c0_98, %c0_99, %c896], %44 {strides = array<i32>} : memref<8x8x1152xbf16, #tpu.memory_space<vmem>>, vector<8x8x128xbf16>,
    %c1_100 = arith.constant 1 : index
    %c1_101 = arith.constant 1 : index
    %c1_102 = arith.constant 1 : index
    %c1_103 = arith.constant 1 : index
    %c0_104 = arith.constant 0 : index
    %46 = vector.load %arg7[%c1_100, %c1_101, %c1_102, %c1_103, %c0_104] : memref<2x2x9x9x128xbf16, #tpu.memory_space<vmem>>, vector<1x1x8x8x128xbf16>
    %47 = vector.shape_cast %46 : vector<1x1x8x8x128xbf16> to vector<8x8x128xbf16>
    %c0_105 = arith.constant 0 : index
    %c0_106 = arith.constant 0 : index
    %c1024 = arith.constant 1024 : index
    %48 = vector.load %arg8[%c0_105, %c0_106, %c1024] : memref<8x8x1152xbf16, #tpu.memory_space<vmem>>, vector<8x8x128xbf16>
    tpu.vector_store %arg8[%c0_105, %c0_106, %c1024], %47 {strides = array<i32>} : memref<8x8x1152xbf16, #tpu.memory_space<vmem>>, vector<8x8x128xbf16>,
    %c0_107 = arith.constant 0 : index
    %c0_108 = arith.constant 0 : index
    %c0_109 = arith.constant 0 : index
    %49 = vector.load %arg8[%c0_107, %c0_108, %c0_109] : memref<8x8x1152xbf16, #tpu.memory_space<vmem>>, vector<8x8x1152xbf16>
    %50 = vector.shape_cast %49 : vector<8x8x1152xbf16> to vector<64x1152xbf16>
    %c0_110 = arith.constant 0 : index
    %c0_111 = arith.constant 0 : index
    %51 = vector.load %arg2[%c0_110, %c0_111] : memref<1152x128xbf16, #tpu.memory_space<vmem>>, vector<1152x128xbf16>
    %cst_112 = arith.constant dense<0.000000e+00> : vector<64x128xf32>
    %52 = tpu.matmul %50, %51, %cst_112 {dimension_numbers = #tpu.dot_dimension_numbers<[1], [0], [0], [1], [0, 0, 1, 1], [], []>} : vector<64x1152xbf16>, vector<1152x128xbf16>, vector<64x128xf32> -> vector<64x128xf32>
    %c0_113 = arith.constant 0 : index
    %c0_114 = arith.constant 0 : index
    %53 = vector.load %arg3[%c0_113, %c0_114] : memref<1x128xf32, #tpu.memory_space<vmem>>, vector<1x128xf32>
    %54 = vector.broadcast %53 : vector<1x128xf32> to vector<64x128xf32>
    %55 = arith.mulf %52, %54 : vector<64x128xf32>
    %c0_115 = arith.constant 0 : index
    %c0_116 = arith.constant 0 : index
    %56 = vector.load %arg4[%c0_115, %c0_116] : memref<1x128xf32, #tpu.memory_space<vmem>>, vector<1x128xf32>
    %57 = vector.broadcast %56 : vector<1x128xf32> to vector<64x128xf32>
    %58 = arith.addf %55, %57 : vector<64x128xf32>
    %c0_117 = arith.constant 0 : index
    %c0_118 = arith.constant 0 : index
    %c0_119 = arith.constant 0 : index
    %59 = vector.load %arg5[%c0_117, %c0_118, %c0_119] : memref<1x1x128xf32, #tpu.memory_space<vmem>>, vector<1x1x128xf32>
    %60 = vector.shape_cast %59 : vector<1x1x128xf32> to vector<1x128xf32>
    %61 = vector.broadcast %60 : vector<1x128xf32> to vector<64x128xf32>
    %62 = arith.addf %58, %61 : vector<64x128xf32>
    %cst_120 = arith.constant 0.000000e+00 : f32
    %63 = vector.broadcast %cst_120 : f32 to vector<64x128xf32>
    %64 = arith.maximumf %62, %63 : vector<64x128xf32>
    %65 = arith.truncf %64 : vector<64x128xf32> to vector<64x128xbf16>
    %c0_121 = arith.constant 0 : index
    %c0_122 = arith.constant 0 : index
    %c0_123 = arith.constant 0 : index
    %66 = vector.load %arg6[%c0_121, %c0_122, %c0_123] : memref<1x64x128xbf16, #tpu.memory_space<vmem>>, vector<1x64x128xbf16>
    %67 = vector.shape_cast %66 : vector<1x64x128xbf16> to vector<64x128xbf16>
    %68 = vector.shape_cast %65 : vector<64x128xbf16> to vector<1x64x128xbf16>
    tpu.vector_store %arg6[%c0_121, %c0_122, %c0_123], %68 {strides = array<i32>} : memref<1x64x128xbf16, #tpu.memory_space<vmem>>, vector<1x64x128xbf16>,
    return
  }
  func.func @transform_0(%arg0: i32) -> (i32, i32, i32, i32, i32) {
    %c0_i32 = arith.constant 0 : i32
    %c0_i32_0 = arith.constant 0 : i32
    %c0_i32_1 = arith.constant 0 : i32
    %c0_i32_2 = arith.constant 0 : i32
    %c0_i32_3 = arith.constant 0 : i32
    return %arg0, %c0_i32, %c0_i32_0, %c0_i32_1, %c0_i32_2 : i32, i32, i32, i32, i32
  }
  func.func @transform_1(%arg0: i32) -> (i32, i32) {
    %c0_i32 = arith.constant 0 : i32
    %c0_i32_0 = arith.constant 0 : i32
    %c0_i32_1 = arith.constant 0 : i32
    return %c0_i32, %c0_i32_0 : i32, i32
  }
  func.func @transform_2(%arg0: i32) -> (i32, i32) {
    %c0_i32 = arith.constant 0 : i32
    %c0_i32_0 = arith.constant 0 : i32
    %c0_i32_1 = arith.constant 0 : i32
    return %c0_i32, %c0_i32_0 : i32, i32
  }
  func.func @transform_3(%arg0: i32) -> (i32, i32) {
    %c0_i32 = arith.constant 0 : i32
    %c0_i32_0 = arith.constant 0 : i32
    %c0_i32_1 = arith.constant 0 : i32
    return %c0_i32, %c0_i32_0 : i32, i32
  }
  func.func @transform_4(%arg0: i32) -> (i32, i32, i32) {
    %c0_i32 = arith.constant 0 : i32
    %c0_i32_0 = arith.constant 0 : i32
    %c0_i32_1 = arith.constant 0 : i32
    return %arg0, %c0_i32, %c0_i32_0 : i32, i32, i32
  }
  func.func @transform_5(%arg0: i32) -> (i32, i32, i32) {
    %c0_i32 = arith.constant 0 : i32
    %c0_i32_0 = arith.constant 0 : i32
    %c0_i32_1 = arith.constant 0 : i32
    return %arg0, %c0_i32, %c0_i32_0 : i32, i32, i32
  }
}

module attributes {stable_mosaic.version = 11 : i64} {
  func.func @_conv3x3_kernel(%arg0: i32, %arg1: memref<1x8x2x8x256xbf16, #tpu.memory_space<vmem>>, %arg2: memref<1152x128xbf16, #tpu.memory_space<vmem>>, %arg3: memref<1x128xf32, #tpu.memory_space<vmem>>, %arg4: memref<1x128xf32, #tpu.memory_space<vmem>>, %arg5: memref<1x1x128xf32, #tpu.memory_space<vmem>>, %arg6: memref<1x64x128xbf16, #tpu.memory_space<vmem>>, %arg7: memref<2x2x9x9x128xbf16, #tpu.memory_space<vmem>>, %arg8: memref<8x8x1152xbf16, #tpu.memory_space<vmem>>) attributes {dimension_semantics = [#tpu.dimension_semantics<parallel>], iteration_bounds = array<i64: 2>, scalar_prefetch = 0 : i64, scratch_operands = 2 : i64, tpu.core_type = #tpu.core_type<tc>, window_params = [{transform_indices = @transform_0, window_bounds = array<i64: 1, 8, 2, 8, 256>}, {pipeline_mode = #tpu.pipeline_mode<synchronous>, transform_indices = @transform_1, window_bounds = array<i64: 1152, 128>}, {pipeline_mode = #tpu.pipeline_mode<synchronous>, transform_indices = @transform_2, window_bounds = array<i64: 1, 128>}, {pipeline_mode = #tpu.pipeline_mode<synchronous>, transform_indices = @transform_3, window_bounds = array<i64: 1, 128>}, {transform_indices = @transform_4, window_bounds = array<i64: 1, 1, 128>}, {transform_indices = @transform_5, window_bounds = array<i64: 1, 64, 128>}]} {
    %cst = arith.constant 0.000000e+00 : bf16
    %0 = vector.broadcast %cst : bf16 to vector<2x2x9x9x128xbf16>
    %c0 = arith.constant 0 : index
    %c0_0 = arith.constant 0 : index
    %c0_1 = arith.constant 0 : index
    %c0_2 = arith.constant 0 : index
    %c0_3 = arith.constant 0 : index
    %1 = vector.load %arg7[%c0, %c0_0, %c0_1, %c0_2, %c0_3] : memref<2x2x9x9x128xbf16, #tpu.memory_space<vmem>>, vector<2x2x9x9x128xbf16>
    tpu.vector_store %arg7[%c0, %c0_0, %c0_1, %c0_2, %c0_3], %0 {strides = array<i32>} : memref<2x2x9x9x128xbf16, #tpu.memory_space<vmem>>, vector<2x2x9x9x128xbf16>,
    %c0_4 = arith.constant 0 : index
    %c0_5 = arith.constant 0 : index
    %c0_6 = arith.constant 0 : index
    %c0_7 = arith.constant 0 : index
    %c0_8 = arith.constant 0 : index
    %2 = vector.load %arg1[%c0_4, %c0_5, %c0_6, %c0_7, %c0_8] : memref<1x8x2x8x256xbf16, #tpu.memory_space<vmem>>, vector<1x8x1x8x128xbf16>
    %3 = vector.shape_cast %2 : vector<1x8x1x8x128xbf16> to vector<8x8x128xbf16>
    %c0_9 = arith.constant 0 : index
    %c0_10 = arith.constant 0 : index
    %c1 = arith.constant 1 : index
    %c1_11 = arith.constant 1 : index
    %c0_12 = arith.constant 0 : index
    %4 = vector.load %arg7[%c0_9, %c0_10, %c1, %c1_11, %c0_12] : memref<2x2x9x9x128xbf16, #tpu.memory_space<vmem>>, vector<1x1x8x8x128xbf16>
    %5 = vector.shape_cast %4 : vector<1x1x8x8x128xbf16> to vector<8x8x128xbf16>
    %6 = vector.shape_cast %3 : vector<8x8x128xbf16> to vector<1x1x8x8x128xbf16>
    tpu.vector_store %arg7[%c0_9, %c0_10, %c1, %c1_11, %c0_12], %6 {strides = array<i32>} : memref<2x2x9x9x128xbf16, #tpu.memory_space<vmem>>, vector<1x1x8x8x128xbf16>,
    %c0_13 = arith.constant 0 : index
    %c0_14 = arith.constant 0 : index
    %c0_15 = arith.constant 0 : index
    %c0_16 = arith.constant 0 : index
    %c128 = arith.constant 128 : index
    %7 = vector.load %arg1[%c0_13, %c0_14, %c0_15, %c0_16, %c128] : memref<1x8x2x8x256xbf16, #tpu.memory_space<vmem>>, vector<1x8x1x8x128xbf16>
    %8 = vector.shape_cast %7 : vector<1x8x1x8x128xbf16> to vector<8x8x128xbf16>
    %c0_17 = arith.constant 0 : index
    %c1_18 = arith.constant 1 : index
    %c1_19 = arith.constant 1 : index
    %c1_20 = arith.constant 1 : index
    %c0_21 = arith.constant 0 : index
    %9 = vector.load %arg7[%c0_17, %c1_18, %c1_19, %c1_20, %c0_21] : memref<2x2x9x9x128xbf16, #tpu.memory_space<vmem>>, vector<1x1x8x8x128xbf16>
    %10 = vector.shape_cast %9 : vector<1x1x8x8x128xbf16> to vector<8x8x128xbf16>
    %11 = vector.shape_cast %8 : vector<8x8x128xbf16> to vector<1x1x8x8x128xbf16>
    tpu.vector_store %arg7[%c0_17, %c1_18, %c1_19, %c1_20, %c0_21], %11 {strides = array<i32>} : memref<2x2x9x9x128xbf16, #tpu.memory_space<vmem>>, vector<1x1x8x8x128xbf16>,
    %c0_22 = arith.constant 0 : index
    %c0_23 = arith.constant 0 : index
    %c1_24 = arith.constant 1 : index
    %c0_25 = arith.constant 0 : index
    %c0_26 = arith.constant 0 : index
    %12 = vector.load %arg1[%c0_22, %c0_23, %c1_24, %c0_25, %c0_26] : memref<1x8x2x8x256xbf16, #tpu.memory_space<vmem>>, vector<1x8x1x8x128xbf16>
    %13 = vector.shape_cast %12 : vector<1x8x1x8x128xbf16> to vector<8x8x128xbf16>
    %c1_27 = arith.constant 1 : index
    %c0_28 = arith.constant 0 : index
    %c1_29 = arith.constant 1 : index
    %c1_30 = arith.constant 1 : index
    %c0_31 = arith.constant 0 : index
    %14 = vector.load %arg7[%c1_27, %c0_28, %c1_29, %c1_30, %c0_31] : memref<2x2x9x9x128xbf16, #tpu.memory_space<vmem>>, vector<1x1x8x8x128xbf16>
    %15 = vector.shape_cast %14 : vector<1x1x8x8x128xbf16> to vector<8x8x128xbf16>
    %16 = vector.shape_cast %13 : vector<8x8x128xbf16> to vector<1x1x8x8x128xbf16>
    tpu.vector_store %arg7[%c1_27, %c0_28, %c1_29, %c1_30, %c0_31], %16 {strides = array<i32>} : memref<2x2x9x9x128xbf16, #tpu.memory_space<vmem>>, vector<1x1x8x8x128xbf16>,
    %c0_32 = arith.constant 0 : index
    %c0_33 = arith.constant 0 : index
    %c1_34 = arith.constant 1 : index
    %c0_35 = arith.constant 0 : index
    %c128_36 = arith.constant 128 : index
    %17 = vector.load %arg1[%c0_32, %c0_33, %c1_34, %c0_35, %c128_36] : memref<1x8x2x8x256xbf16, #tpu.memory_space<vmem>>, vector<1x8x1x8x128xbf16>
    %18 = vector.shape_cast %17 : vector<1x8x1x8x128xbf16> to vector<8x8x128xbf16>
    %c1_37 = arith.constant 1 : index
    %c1_38 = arith.constant 1 : index
    %c1_39 = arith.constant 1 : index
    %c1_40 = arith.constant 1 : index
    %c0_41 = arith.constant 0 : index
    %19 = vector.load %arg7[%c1_37, %c1_38, %c1_39, %c1_40, %c0_41] : memref<2x2x9x9x128xbf16, #tpu.memory_space<vmem>>, vector<1x1x8x8x128xbf16>
    %20 = vector.shape_cast %19 : vector<1x1x8x8x128xbf16> to vector<8x8x128xbf16>
    %21 = vector.shape_cast %18 : vector<8x8x128xbf16> to vector<1x1x8x8x128xbf16>
    tpu.vector_store %arg7[%c1_37, %c1_38, %c1_39, %c1_40, %c0_41], %21 {strides = array<i32>} : memref<2x2x9x9x128xbf16, #tpu.memory_space<vmem>>, vector<1x1x8x8x128xbf16>,
    %c1_42 = arith.constant 1 : index
    %c1_43 = arith.constant 1 : index
    %c0_44 = arith.constant 0 : index
    %c0_45 = arith.constant 0 : index
    %c0_46 = arith.constant 0 : index
    %22 = vector.load %arg7[%c1_42, %c1_43, %c0_44, %c0_45, %c0_46] : memref<2x2x9x9x128xbf16, #tpu.memory_space<vmem>>, vector<1x1x8x8x128xbf16>
    %23 = vector.shape_cast %22 : vector<1x1x8x8x128xbf16> to vector<8x8x128xbf16>
    %c0_47 = arith.constant 0 : index
    %c0_48 = arith.constant 0 : index
    %c0_49 = arith.constant 0 : index
    %24 = vector.load %arg8[%c0_47, %c0_48, %c0_49] : memref<8x8x1152xbf16, #tpu.memory_space<vmem>>, vector<8x8x128xbf16>
    tpu.vector_store %arg8[%c0_47, %c0_48, %c0_49], %23 {strides = array<i32>} : memref<8x8x1152xbf16, #tpu.memory_space<vmem>>, vector<8x8x128xbf16>,
    %c1_50 = arith.constant 1 : index
    %c0_51 = arith.constant 0 : index
    %c0_52 = arith.constant 0 : index
    %c1_53 = arith.constant 1 : index
    %c0_54 = arith.constant 0 : index
    %25 = vector.load %arg7[%c1_50, %c0_51, %c0_52, %c1_53, %c0_54] : memref<2x2x9x9x128xbf16, #tpu.memory_space<vmem>>, vector<1x1x8x8x128xbf16>
    %26 = vector.shape_cast %25 : vector<1x1x8x8x128xbf16> to vector<8x8x128xbf16>
    %c0_55 = arith.constant 0 : index
    %c0_56 = arith.constant 0 : index
    %c128_57 = arith.constant 128 : index
    %27 = vector.load %arg8[%c0_55, %c0_56, %c128_57] : memref<8x8x1152xbf16, #tpu.memory_space<vmem>>, vector<8x8x128xbf16>
    tpu.vector_store %arg8[%c0_55, %c0_56, %c128_57], %26 {strides = array<i32>} : memref<8x8x1152xbf16, #tpu.memory_space<vmem>>, vector<8x8x128xbf16>,
    %c1_58 = arith.constant 1 : index
    %c1_59 = arith.constant 1 : index
    %c0_60 = arith.constant 0 : index
    %c1_61 = arith.constant 1 : index
    %c0_62 = arith.constant 0 : index
    %28 = vector.load %arg7[%c1_58, %c1_59, %c0_60, %c1_61, %c0_62] : memref<2x2x9x9x128xbf16, #tpu.memory_space<vmem>>, vector<1x1x8x8x128xbf16>
    %29 = vector.shape_cast %28 : vector<1x1x8x8x128xbf16> to vector<8x8x128xbf16>
    %c0_63 = arith.constant 0 : index
    %c0_64 = arith.constant 0 : index
    %c256 = arith.constant 256 : index
    %30 = vector.load %arg8[%c0_63, %c0_64, %c256] : memref<8x8x1152xbf16, #tpu.memory_space<vmem>>, vector<8x8x128xbf16>
    tpu.vector_store %arg8[%c0_63, %c0_64, %c256], %29 {strides = array<i32>} : memref<8x8x1152xbf16, #tpu.memory_space<vmem>>, vector<8x8x128xbf16>,
    %c0_65 = arith.constant 0 : index
    %c1_66 = arith.constant 1 : index
    %c1_67 = arith.constant 1 : index
    %c0_68 = arith.constant 0 : index
    %c0_69 = arith.constant 0 : index
    %31 = vector.load %arg7[%c0_65, %c1_66, %c1_67, %c0_68, %c0_69] : memref<2x2x9x9x128xbf16, #tpu.memory_space<vmem>>, vector<1x1x8x8x128xbf16>
    %32 = vector.shape_cast %31 : vector<1x1x8x8x128xbf16> to vector<8x8x128xbf16>
    %c0_70 = arith.constant 0 : index
    %c0_71 = arith.constant 0 : index
    %c384 = arith.constant 384 : index
    %33 = vector.load %arg8[%c0_70, %c0_71, %c384] : memref<8x8x1152xbf16, #tpu.memory_space<vmem>>, vector<8x8x128xbf16>
    tpu.vector_store %arg8[%c0_70, %c0_71, %c384], %32 {strides = array<i32>} : memref<8x8x1152xbf16, #tpu.memory_space<vmem>>, vector<8x8x128xbf16>,
    %c0_72 = arith.constant 0 : index
    %c0_73 = arith.constant 0 : index
    %c1_74 = arith.constant 1 : index
    %c1_75 = arith.constant 1 : index
    %c0_76 = arith.constant 0 : index
    %34 = vector.load %arg7[%c0_72, %c0_73, %c1_74, %c1_75, %c0_76] : memref<2x2x9x9x128xbf16, #tpu.memory_space<vmem>>, vector<1x1x8x8x128xbf16>
    %35 = vector.shape_cast %34 : vector<1x1x8x8x128xbf16> to vector<8x8x128xbf16>
    %c0_77 = arith.constant 0 : index
    %c0_78 = arith.constant 0 : index
    %c512 = arith.constant 512 : index
    %36 = vector.load %arg8[%c0_77, %c0_78, %c512] : memref<8x8x1152xbf16, #tpu.memory_space<vmem>>, vector<8x8x128xbf16>
    tpu.vector_store %arg8[%c0_77, %c0_78, %c512], %35 {strides = array<i32>} : memref<8x8x1152xbf16, #tpu.memory_space<vmem>>, vector<8x8x128xbf16>,
    %c0_79 = arith.constant 0 : index
    %c1_80 = arith.constant 1 : index
    %c1_81 = arith.constant 1 : index
    %c1_82 = arith.constant 1 : index
    %c0_83 = arith.constant 0 : index
    %37 = vector.load %arg7[%c0_79, %c1_80, %c1_81, %c1_82, %c0_83] : memref<2x2x9x9x128xbf16, #tpu.memory_space<vmem>>, vector<1x1x8x8x128xbf16>
    %38 = vector.shape_cast %37 : vector<1x1x8x8x128xbf16> to vector<8x8x128xbf16>
    %c0_84 = arith.constant 0 : index
    %c0_85 = arith.constant 0 : index
    %c640 = arith.constant 640 : index
    %39 = vector.load %arg8[%c0_84, %c0_85, %c640] : memref<8x8x1152xbf16, #tpu.memory_space<vmem>>, vector<8x8x128xbf16>
    tpu.vector_store %arg8[%c0_84, %c0_85, %c640], %38 {strides = array<i32>} : memref<8x8x1152xbf16, #tpu.memory_space<vmem>>, vector<8x8x128xbf16>,
    %c1_86 = arith.constant 1 : index
    %c1_87 = arith.constant 1 : index
    %c1_88 = arith.constant 1 : index
    %c0_89 = arith.constant 0 : index
    %c0_90 = arith.constant 0 : index
    %40 = vector.load %arg7[%c1_86, %c1_87, %c1_88, %c0_89, %c0_90] : memref<2x2x9x9x128xbf16, #tpu.memory_space<vmem>>, vector<1x1x8x8x128xbf16>
    %41 = vector.shape_cast %40 : vector<1x1x8x8x128xbf16> to vector<8x8x128xbf16>
    %c0_91 = arith.constant 0 : index
    %c0_92 = arith.constant 0 : index
    %c768 = arith.constant 768 : index
    %42 = vector.load %arg8[%c0_91, %c0_92, %c768] : memref<8x8x1152xbf16, #tpu.memory_space<vmem>>, vector<8x8x128xbf16>
    tpu.vector_store %arg8[%c0_91, %c0_92, %c768], %41 {strides = array<i32>} : memref<8x8x1152xbf16, #tpu.memory_space<vmem>>, vector<8x8x128xbf16>,
    %c1_93 = arith.constant 1 : index
    %c0_94 = arith.constant 0 : index
    %c1_95 = arith.constant 1 : index
    %c1_96 = arith.constant 1 : index
    %c0_97 = arith.constant 0 : index
    %43 = vector.load %arg7[%c1_93, %c0_94, %c1_95, %c1_96, %c0_97] : memref<2x2x9x9x128xbf16, #tpu.memory_space<vmem>>, vector<1x1x8x8x128xbf16>
    %44 = vector.shape_cast %43 : vector<1x1x8x8x128xbf16> to vector<8x8x128xbf16>
    %c0_98 = arith.constant 0 : index
    %c0_99 = arith.constant 0 : index
    %c896 = arith.constant 896 : index
    %45 = vector.load %arg8[%c0_98, %c0_99, %c896] : memref<8x8x1152xbf16, #tpu.memory_space<vmem>>, vector<8x8x128xbf16>
    tpu.vector_store %arg8[%c0_98, %c0_99, %c896], %44 {strides = array<i32>} : memref<8x8x1152xbf16, #tpu.memory_space<vmem>>, vector<8x8x128xbf16>,
    %c1_100 = arith.constant 1 : index
    %c1_101 = arith.constant 1 : index
    %c1_102 = arith.constant 1 : index
    %c1_103 = arith.constant 1 : index
    %c0_104 = arith.constant 0 : index
    %46 = vector.load %arg7[%c1_100, %c1_101, %c1_102, %c1_103, %c0_104] : memref<2x2x9x9x128xbf16, #tpu.memory_space<vmem>>, vector<1x1x8x8x128xbf16>
    %47 = vector.shape_cast %46 : vector<1x1x8x8x128xbf16> to vector<8x8x128xbf16>
    %c0_105 = arith.constant 0 : index
    %c0_106 = arith.constant 0 : index
    %c1024 = arith.constant 1024 : index
    %48 = vector.load %arg8[%c0_105, %c0_106, %c1024] : memref<8x8x1152xbf16, #tpu.memory_space<vmem>>, vector<8x8x128xbf16>
    tpu.vector_store %arg8[%c0_105, %c0_106, %c1024], %47 {strides = array<i32>} : memref<8x8x1152xbf16, #tpu.memory_space<vmem>>, vector<8x8x128xbf16>,
    %c0_107 = arith.constant 0 : index
    %c0_108 = arith.constant 0 : index
    %c0_109 = arith.constant 0 : index
    %49 = vector.load %arg8[%c0_107, %c0_108, %c0_109] : memref<8x8x1152xbf16, #tpu.memory_space<vmem>>, vector<8x8x1152xbf16>
    %50 = vector.shape_cast %49 : vector<8x8x1152xbf16> to vector<64x1152xbf16>
    %c0_110 = arith.constant 0 : index
    %c0_111 = arith.constant 0 : index
    %51 = vector.load %arg2[%c0_110, %c0_111] : memref<1152x128xbf16, #tpu.memory_space<vmem>>, vector<1152x128xbf16>
    %cst_112 = arith.constant dense<0.000000e+00> : vector<64x128xf32>
    %52 = tpu.matmul %50, %51, %cst_112 {dimension_numbers = #tpu.dot_dimension_numbers<[1], [0], [0], [1], [0, 0, 1, 1], [], []>} : vector<64x1152xbf16>, vector<1152x128xbf16>, vector<64x128xf32> -> vector<64x128xf32>
    %c0_113 = arith.constant 0 : index
    %c0_114 = arith.constant 0 : index
    %53 = vector.load %arg3[%c0_113, %c0_114] : memref<1x128xf32, #tpu.memory_space<vmem>>, vector<1x128xf32>
    %54 = vector.broadcast %53 : vector<1x128xf32> to vector<64x128xf32>
    %55 = arith.mulf %52, %54 : vector<64x128xf32>
    %c0_115 = arith.constant 0 : index
    %c0_116 = arith.constant 0 : index
    %56 = vector.load %arg4[%c0_115, %c0_116] : memref<1x128xf32, #tpu.memory_space<vmem>>, vector<1x128xf32>
    %57 = vector.broadcast %56 : vector<1x128xf32> to vector<64x128xf32>
    %58 = arith.addf %55, %57 : vector<64x128xf32>
    %c0_117 = arith.constant 0 : index
    %c0_118 = arith.constant 0 : index
    %c0_119 = arith.constant 0 : index
    %59 = vector.load %arg5[%c0_117, %c0_118, %c0_119] : memref<1x1x128xf32, #tpu.memory_space<vmem>>, vector<1x1x128xf32>
    %60 = vector.shape_cast %59 : vector<1x1x128xf32> to vector<1x128xf32>
    %61 = vector.broadcast %60 : vector<1x128xf32> to vector<64x128xf32>
    %62 = arith.addf %58, %61 : vector<64x128xf32>
    %cst_120 = arith.constant 0.000000e+00 : f32
    %63 = vector.broadcast %cst_120 : f32 to vector<64x128xf32>
    %64 = arith.maximumf %62, %63 : vector<64x128xf32>
    %65 = arith.truncf %64 : vector<64x128xf32> to vector<64x128xbf16>
    %c0_121 = arith.constant 0 : index
    %c0_122 = arith.constant 0 : index
    %c0_123 = arith.constant 0 : index
    %66 = vector.load %arg6[%c0_121, %c0_122, %c0_123] : memref<1x64x128xbf16, #tpu.memory_space<vmem>>, vector<1x64x128xbf16>
    %67 = vector.shape_cast %66 : vector<1x64x128xbf16> to vector<64x128xbf16>
    %68 = vector.shape_cast %65 : vector<64x128xbf16> to vector<1x64x128xbf16>
    tpu.vector_store %arg6[%c0_121, %c0_122, %c0_123], %68 {strides = array<i32>} : memref<1x64x128xbf16, #tpu.memory_space<vmem>>, vector<1x64x128xbf16>,
    return
  }
  func.func @transform_0(%arg0: i32) -> (i32, i32, i32, i32, i32) {
    %c0_i32 = arith.constant 0 : i32
    %c0_i32_0 = arith.constant 0 : i32
    %c0_i32_1 = arith.constant 0 : i32
    %c0_i32_2 = arith.constant 0 : i32
    %c0_i32_3 = arith.constant 0 : i32
    return %arg0, %c0_i32, %c0_i32_0, %c0_i32_1, %c0_i32_2 : i32, i32, i32, i32, i32
  }
  func.func @transform_1(%arg0: i32) -> (i32, i32) {
    %c0_i32 = arith.constant 0 : i32
    %c0_i32_0 = arith.constant 0 : i32
    %c0_i32_1 = arith.constant 0 : i32
    return %c0_i32, %c0_i32_0 : i32, i32
  }
  func.func @transform_2(%arg0: i32) -> (i32, i32) {
    %c0_i32 = arith.constant 0 : i32
    %c0_i32_0 = arith.constant 0 : i32
    %c0_i32_1 = arith.constant 0 : i32
    return %c0_i32, %c0_i32_0 : i32, i32
  }
  func.func @transform_3(%arg0: i32) -> (i32, i32) {
    %c0_i32 = arith.constant 0 : i32
    %c0_i32_0 = arith.constant 0 : i32
    %c0_i32_1 = arith.constant 0 : i32
    return %c0_i32, %c0_i32_0 : i32, i32
  }
  func.func @transform_4(%arg0: i32) -> (i32, i32, i32) {
    %c0_i32 = arith.constant 0 : i32
    %c0_i32_0 = arith.constant 0 : i32
    %c0_i32_1 = arith.constant 0 : i32
    return %arg0, %c0_i32, %c0_i32_0 : i32, i32, i32
  }
  func.func @transform_5(%arg0: i32) -> (i32, i32, i32) {
    %c0_i32 = arith.constant 0 : i32
    %c0_i32_0 = arith.constant 0 : i32
    %c0_i32_1 = arith.constant 0 : i32
    return %arg0, %c0_i32, %c0_i32_0 : i32, i32, i32
  }
}

module attributes {stable_mosaic.version = 11 : i64} {
  func.func @_matmul_bn_res_kernel(%arg0: i32, %arg1: i32, %arg2: memref<1x64x128xbf16, #tpu.memory_space<vmem>>, %arg3: memref<128x128xbf16, #tpu.memory_space<vmem>>, %arg4: memref<1x128xf32, #tpu.memory_space<vmem>>, %arg5: memref<1x128xf32, #tpu.memory_space<vmem>>, %arg6: memref<1x64x128xbf16, #tpu.memory_space<vmem>>, %arg7: memref<1x64x128xbf16, #tpu.memory_space<vmem>>) attributes {dimension_semantics = [#tpu.dimension_semantics<parallel>, #tpu.dimension_semantics<parallel>], iteration_bounds = array<i64: 2, 1>, scalar_prefetch = 0 : i64, scratch_operands = 0 : i64, tpu.core_type = #tpu.core_type<tc>, window_params = [{transform_indices = @transform_0, window_bounds = array<i64: 1, 64, 128>}, {pipeline_mode = #tpu.pipeline_mode<synchronous>, transform_indices = @transform_1, window_bounds = array<i64: 128, 128>}, {pipeline_mode = #tpu.pipeline_mode<synchronous>, transform_indices = @transform_2, window_bounds = array<i64: 1, 128>}, {pipeline_mode = #tpu.pipeline_mode<synchronous>, transform_indices = @transform_3, window_bounds = array<i64: 1, 128>}, {transform_indices = @transform_4, window_bounds = array<i64: 1, 64, 128>}, {transform_indices = @transform_5, window_bounds = array<i64: 1, 64, 128>}]} {
    %c0 = arith.constant 0 : index
    %c0_0 = arith.constant 0 : index
    %c0_1 = arith.constant 0 : index
    %0 = vector.load %arg2[%c0, %c0_0, %c0_1] : memref<1x64x128xbf16, #tpu.memory_space<vmem>>, vector<1x64x128xbf16>
    %1 = vector.shape_cast %0 : vector<1x64x128xbf16> to vector<64x128xbf16>
    %c0_2 = arith.constant 0 : index
    %c0_3 = arith.constant 0 : index
    %2 = vector.load %arg3[%c0_2, %c0_3] : memref<128x128xbf16, #tpu.memory_space<vmem>>, vector<128x128xbf16>
    %cst = arith.constant dense<0.000000e+00> : vector<64x128xf32>
    %3 = tpu.matmul %1, %2, %cst {dimension_numbers = #tpu.dot_dimension_numbers<[1], [0], [0], [1], [0, 0, 1, 1], [], []>} : vector<64x128xbf16>, vector<128x128xbf16>, vector<64x128xf32> -> vector<64x128xf32>
    %c0_4 = arith.constant 0 : index
    %c0_5 = arith.constant 0 : index
    %4 = vector.load %arg4[%c0_4, %c0_5] : memref<1x128xf32, #tpu.memory_space<vmem>>, vector<1x128xf32>
    %5 = vector.broadcast %4 : vector<1x128xf32> to vector<64x128xf32>
    %6 = arith.mulf %3, %5 : vector<64x128xf32>
    %c0_6 = arith.constant 0 : index
    %c0_7 = arith.constant 0 : index
    %7 = vector.load %arg5[%c0_6, %c0_7] : memref<1x128xf32, #tpu.memory_space<vmem>>, vector<1x128xf32>
    %8 = vector.broadcast %7 : vector<1x128xf32> to vector<64x128xf32>
    %9 = arith.addf %6, %8 : vector<64x128xf32>
    %c0_8 = arith.constant 0 : index
    %c0_9 = arith.constant 0 : index
    %c0_10 = arith.constant 0 : index
    %10 = vector.load %arg6[%c0_8, %c0_9, %c0_10] : memref<1x64x128xbf16, #tpu.memory_space<vmem>>, vector<1x64x128xbf16>
    %11 = vector.shape_cast %10 : vector<1x64x128xbf16> to vector<64x128xbf16>
    %12 = arith.extf %11 : vector<64x128xbf16> to vector<64x128xf32>
    %13 = arith.addf %9, %12 : vector<64x128xf32>
    %14 = arith.truncf %13 : vector<64x128xf32> to vector<64x128xbf16>
    %c0_11 = arith.constant 0 : index
    %c0_12 = arith.constant 0 : index
    %c0_13 = arith.constant 0 : index
    %15 = vector.load %arg7[%c0_11, %c0_12, %c0_13] : memref<1x64x128xbf16, #tpu.memory_space<vmem>>, vector<1x64x128xbf16>
    %16 = vector.shape_cast %15 : vector<1x64x128xbf16> to vector<64x128xbf16>
    %17 = vector.shape_cast %14 : vector<64x128xbf16> to vector<1x64x128xbf16>
    tpu.vector_store %arg7[%c0_11, %c0_12, %c0_13], %17 {strides = array<i32>} : memref<1x64x128xbf16, #tpu.memory_space<vmem>>, vector<1x64x128xbf16>,
    return
  }
  func.func @transform_0(%arg0: i32, %arg1: i32) -> (i32, i32, i32) {
    %c0_i32 = arith.constant 0 : i32
    %c0_i32_0 = arith.constant 0 : i32
    return %arg0, %arg1, %c0_i32 : i32, i32, i32
  }
  func.func @transform_1(%arg0: i32, %arg1: i32) -> (i32, i32) {
    %c0_i32 = arith.constant 0 : i32
    %c0_i32_0 = arith.constant 0 : i32
    %c0_i32_1 = arith.constant 0 : i32
    return %c0_i32, %c0_i32_0 : i32, i32
  }
  func.func @transform_2(%arg0: i32, %arg1: i32) -> (i32, i32) {
    %c0_i32 = arith.constant 0 : i32
    %c0_i32_0 = arith.constant 0 : i32
    %c0_i32_1 = arith.constant 0 : i32
    return %c0_i32, %c0_i32_0 : i32, i32
  }
  func.func @transform_3(%arg0: i32, %arg1: i32) -> (i32, i32) {
    %c0_i32 = arith.constant 0 : i32
    %c0_i32_0 = arith.constant 0 : i32
    %c0_i32_1 = arith.constant 0 : i32
    return %c0_i32, %c0_i32_0 : i32, i32
  }
  func.func @transform_4(%arg0: i32, %arg1: i32) -> (i32, i32, i32) {
    %c0_i32 = arith.constant 0 : i32
    %c0_i32_0 = arith.constant 0 : i32
    return %arg0, %arg1, %c0_i32 : i32, i32, i32
  }
  func.func @transform_5(%arg0: i32, %arg1: i32) -> (i32, i32, i32) {
    %c0_i32 = arith.constant 0 : i32
    %c0_i32_0 = arith.constant 0 : i32
    return %arg0, %arg1, %c0_i32 : i32, i32, i32
  }
}

module attributes {stable_mosaic.version = 11 : i64} {
  func.func @_conv3x3_kernel(%arg0: i32, %arg1: memref<1x8x1x8x128xbf16, #tpu.memory_space<vmem>>, %arg2: memref<1152x128xbf16, #tpu.memory_space<vmem>>, %arg3: memref<1x128xf32, #tpu.memory_space<vmem>>, %arg4: memref<1x128xf32, #tpu.memory_space<vmem>>, %arg5: memref<1x1x128xf32, #tpu.memory_space<vmem>>, %arg6: memref<1x64x128xbf16, #tpu.memory_space<vmem>>, %arg7: memref<1x1x10x10x128xbf16, #tpu.memory_space<vmem>>, %arg8: memref<8x8x1152xbf16, #tpu.memory_space<vmem>>) attributes {dimension_semantics = [#tpu.dimension_semantics<parallel>], iteration_bounds = array<i64: 2>, scalar_prefetch = 0 : i64, scratch_operands = 2 : i64, tpu.core_type = #tpu.core_type<tc>, window_params = [{transform_indices = @transform_0, window_bounds = array<i64: 1, 8, 1, 8, 128>}, {pipeline_mode = #tpu.pipeline_mode<synchronous>, transform_indices = @transform_1, window_bounds = array<i64: 1152, 128>}, {pipeline_mode = #tpu.pipeline_mode<synchronous>, transform_indices = @transform_2, window_bounds = array<i64: 1, 128>}, {pipeline_mode = #tpu.pipeline_mode<synchronous>, transform_indices = @transform_3, window_bounds = array<i64: 1, 128>}, {transform_indices = @transform_4, window_bounds = array<i64: 1, 1, 128>}, {transform_indices = @transform_5, window_bounds = array<i64: 1, 64, 128>}]} {
    %cst = arith.constant 0.000000e+00 : bf16
    %0 = vector.broadcast %cst : bf16 to vector<1x1x10x10x128xbf16>
    %c0 = arith.constant 0 : index
    %c0_0 = arith.constant 0 : index
    %c0_1 = arith.constant 0 : index
    %c0_2 = arith.constant 0 : index
    %c0_3 = arith.constant 0 : index
    %1 = vector.load %arg7[%c0, %c0_0, %c0_1, %c0_2, %c0_3] : memref<1x1x10x10x128xbf16, #tpu.memory_space<vmem>>, vector<1x1x10x10x128xbf16>
    tpu.vector_store %arg7[%c0, %c0_0, %c0_1, %c0_2, %c0_3], %0 {strides = array<i32>} : memref<1x1x10x10x128xbf16, #tpu.memory_space<vmem>>, vector<1x1x10x10x128xbf16>,
    %c0_4 = arith.constant 0 : index
    %c0_5 = arith.constant 0 : index
    %c0_6 = arith.constant 0 : index
    %c0_7 = arith.constant 0 : index
    %c0_8 = arith.constant 0 : index
    %2 = vector.load %arg1[%c0_4, %c0_5, %c0_6, %c0_7, %c0_8] : memref<1x8x1x8x128xbf16, #tpu.memory_space<vmem>>, vector<1x8x1x8x128xbf16>
    %3 = vector.shape_cast %2 : vector<1x8x1x8x128xbf16> to vector<8x8x128xbf16>
    %c0_9 = arith.constant 0 : index
    %c0_10 = arith.constant 0 : index
    %c1 = arith.constant 1 : index
    %c1_11 = arith.constant 1 : index
    %c0_12 = arith.constant 0 : index
    %4 = vector.load %arg7[%c0_9, %c0_10, %c1, %c1_11, %c0_12] : memref<1x1x10x10x128xbf16, #tpu.memory_space<vmem>>, vector<1x1x8x8x128xbf16>
    %5 = vector.shape_cast %4 : vector<1x1x8x8x128xbf16> to vector<8x8x128xbf16>
    %6 = vector.shape_cast %3 : vector<8x8x128xbf16> to vector<1x1x8x8x128xbf16>
    tpu.vector_store %arg7[%c0_9, %c0_10, %c1, %c1_11, %c0_12], %6 {strides = array<i32>} : memref<1x1x10x10x128xbf16, #tpu.memory_space<vmem>>, vector<1x1x8x8x128xbf16>,
    %c0_13 = arith.constant 0 : index
    %c0_14 = arith.constant 0 : index
    %c0_15 = arith.constant 0 : index
    %c0_16 = arith.constant 0 : index
    %c0_17 = arith.constant 0 : index
    %7 = vector.load %arg7[%c0_13, %c0_14, %c0_15, %c0_16, %c0_17] : memref<1x1x10x10x128xbf16, #tpu.memory_space<vmem>>, vector<1x1x8x8x128xbf16>
    %8 = vector.shape_cast %7 : vector<1x1x8x8x128xbf16> to vector<8x8x128xbf16>
    %c0_18 = arith.constant 0 : index
    %c0_19 = arith.constant 0 : index
    %c0_20 = arith.constant 0 : index
    %9 = vector.load %arg8[%c0_18, %c0_19, %c0_20] : memref<8x8x1152xbf16, #tpu.memory_space<vmem>>, vector<8x8x128xbf16>
    tpu.vector_store %arg8[%c0_18, %c0_19, %c0_20], %8 {strides = array<i32>} : memref<8x8x1152xbf16, #tpu.memory_space<vmem>>, vector<8x8x128xbf16>,
    %c0_21 = arith.constant 0 : index
    %c0_22 = arith.constant 0 : index
    %c0_23 = arith.constant 0 : index
    %c1_24 = arith.constant 1 : index
    %c0_25 = arith.constant 0 : index
    %10 = vector.load %arg7[%c0_21, %c0_22, %c0_23, %c1_24, %c0_25] : memref<1x1x10x10x128xbf16, #tpu.memory_space<vmem>>, vector<1x1x8x8x128xbf16>
    %11 = vector.shape_cast %10 : vector<1x1x8x8x128xbf16> to vector<8x8x128xbf16>
    %c0_26 = arith.constant 0 : index
    %c0_27 = arith.constant 0 : index
    %c128 = arith.constant 128 : index
    %12 = vector.load %arg8[%c0_26, %c0_27, %c128] : memref<8x8x1152xbf16, #tpu.memory_space<vmem>>, vector<8x8x128xbf16>
    tpu.vector_store %arg8[%c0_26, %c0_27, %c128], %11 {strides = array<i32>} : memref<8x8x1152xbf16, #tpu.memory_space<vmem>>, vector<8x8x128xbf16>,
    %c0_28 = arith.constant 0 : index
    %c0_29 = arith.constant 0 : index
    %c0_30 = arith.constant 0 : index
    %c2 = arith.constant 2 : index
    %c0_31 = arith.constant 0 : index
    %13 = vector.load %arg7[%c0_28, %c0_29, %c0_30, %c2, %c0_31] : memref<1x1x10x10x128xbf16, #tpu.memory_space<vmem>>, vector<1x1x8x8x128xbf16>
    %14 = vector.shape_cast %13 : vector<1x1x8x8x128xbf16> to vector<8x8x128xbf16>
    %c0_32 = arith.constant 0 : index
    %c0_33 = arith.constant 0 : index
    %c256 = arith.constant 256 : index
    %15 = vector.load %arg8[%c0_32, %c0_33, %c256] : memref<8x8x1152xbf16, #tpu.memory_space<vmem>>, vector<8x8x128xbf16>
    tpu.vector_store %arg8[%c0_32, %c0_33, %c256], %14 {strides = array<i32>} : memref<8x8x1152xbf16, #tpu.memory_space<vmem>>, vector<8x8x128xbf16>,
    %c0_34 = arith.constant 0 : index
    %c0_35 = arith.constant 0 : index
    %c1_36 = arith.constant 1 : index
    %c0_37 = arith.constant 0 : index
    %c0_38 = arith.constant 0 : index
    %16 = vector.load %arg7[%c0_34, %c0_35, %c1_36, %c0_37, %c0_38] : memref<1x1x10x10x128xbf16, #tpu.memory_space<vmem>>, vector<1x1x8x8x128xbf16>
    %17 = vector.shape_cast %16 : vector<1x1x8x8x128xbf16> to vector<8x8x128xbf16>
    %c0_39 = arith.constant 0 : index
    %c0_40 = arith.constant 0 : index
    %c384 = arith.constant 384 : index
    %18 = vector.load %arg8[%c0_39, %c0_40, %c384] : memref<8x8x1152xbf16, #tpu.memory_space<vmem>>, vector<8x8x128xbf16>
    tpu.vector_store %arg8[%c0_39, %c0_40, %c384], %17 {strides = array<i32>} : memref<8x8x1152xbf16, #tpu.memory_space<vmem>>, vector<8x8x128xbf16>,
    %c0_41 = arith.constant 0 : index
    %c0_42 = arith.constant 0 : index
    %c1_43 = arith.constant 1 : index
    %c1_44 = arith.constant 1 : index
    %c0_45 = arith.constant 0 : index
    %19 = vector.load %arg7[%c0_41, %c0_42, %c1_43, %c1_44, %c0_45] : memref<1x1x10x10x128xbf16, #tpu.memory_space<vmem>>, vector<1x1x8x8x128xbf16>
    %20 = vector.shape_cast %19 : vector<1x1x8x8x128xbf16> to vector<8x8x128xbf16>
    %c0_46 = arith.constant 0 : index
    %c0_47 = arith.constant 0 : index
    %c512 = arith.constant 512 : index
    %21 = vector.load %arg8[%c0_46, %c0_47, %c512] : memref<8x8x1152xbf16, #tpu.memory_space<vmem>>, vector<8x8x128xbf16>
    tpu.vector_store %arg8[%c0_46, %c0_47, %c512], %20 {strides = array<i32>} : memref<8x8x1152xbf16, #tpu.memory_space<vmem>>, vector<8x8x128xbf16>,
    %c0_48 = arith.constant 0 : index
    %c0_49 = arith.constant 0 : index
    %c1_50 = arith.constant 1 : index
    %c2_51 = arith.constant 2 : index
    %c0_52 = arith.constant 0 : index
    %22 = vector.load %arg7[%c0_48, %c0_49, %c1_50, %c2_51, %c0_52] : memref<1x1x10x10x128xbf16, #tpu.memory_space<vmem>>, vector<1x1x8x8x128xbf16>
    %23 = vector.shape_cast %22 : vector<1x1x8x8x128xbf16> to vector<8x8x128xbf16>
    %c0_53 = arith.constant 0 : index
    %c0_54 = arith.constant 0 : index
    %c640 = arith.constant 640 : index
    %24 = vector.load %arg8[%c0_53, %c0_54, %c640] : memref<8x8x1152xbf16, #tpu.memory_space<vmem>>, vector<8x8x128xbf16>
    tpu.vector_store %arg8[%c0_53, %c0_54, %c640], %23 {strides = array<i32>} : memref<8x8x1152xbf16, #tpu.memory_space<vmem>>, vector<8x8x128xbf16>,
    %c0_55 = arith.constant 0 : index
    %c0_56 = arith.constant 0 : index
    %c2_57 = arith.constant 2 : index
    %c0_58 = arith.constant 0 : index
    %c0_59 = arith.constant 0 : index
    %25 = vector.load %arg7[%c0_55, %c0_56, %c2_57, %c0_58, %c0_59] : memref<1x1x10x10x128xbf16, #tpu.memory_space<vmem>>, vector<1x1x8x8x128xbf16>
    %26 = vector.shape_cast %25 : vector<1x1x8x8x128xbf16> to vector<8x8x128xbf16>
    %c0_60 = arith.constant 0 : index
    %c0_61 = arith.constant 0 : index
    %c768 = arith.constant 768 : index
    %27 = vector.load %arg8[%c0_60, %c0_61, %c768] : memref<8x8x1152xbf16, #tpu.memory_space<vmem>>, vector<8x8x128xbf16>
    tpu.vector_store %arg8[%c0_60, %c0_61, %c768], %26 {strides = array<i32>} : memref<8x8x1152xbf16, #tpu.memory_space<vmem>>, vector<8x8x128xbf16>,
    %c0_62 = arith.constant 0 : index
    %c0_63 = arith.constant 0 : index
    %c2_64 = arith.constant 2 : index
    %c1_65 = arith.constant 1 : index
    %c0_66 = arith.constant 0 : index
    %28 = vector.load %arg7[%c0_62, %c0_63, %c2_64, %c1_65, %c0_66] : memref<1x1x10x10x128xbf16, #tpu.memory_space<vmem>>, vector<1x1x8x8x128xbf16>
    %29 = vector.shape_cast %28 : vector<1x1x8x8x128xbf16> to vector<8x8x128xbf16>
    %c0_67 = arith.constant 0 : index
    %c0_68 = arith.constant 0 : index
    %c896 = arith.constant 896 : index
    %30 = vector.load %arg8[%c0_67, %c0_68, %c896] : memref<8x8x1152xbf16, #tpu.memory_space<vmem>>, vector<8x8x128xbf16>
    tpu.vector_store %arg8[%c0_67, %c0_68, %c896], %29 {strides = array<i32>} : memref<8x8x1152xbf16, #tpu.memory_space<vmem>>, vector<8x8x128xbf16>,
    %c0_69 = arith.constant 0 : index
    %c0_70 = arith.constant 0 : index
    %c2_71 = arith.constant 2 : index
    %c2_72 = arith.constant 2 : index
    %c0_73 = arith.constant 0 : index
    %31 = vector.load %arg7[%c0_69, %c0_70, %c2_71, %c2_72, %c0_73] : memref<1x1x10x10x128xbf16, #tpu.memory_space<vmem>>, vector<1x1x8x8x128xbf16>
    %32 = vector.shape_cast %31 : vector<1x1x8x8x128xbf16> to vector<8x8x128xbf16>
    %c0_74 = arith.constant 0 : index
    %c0_75 = arith.constant 0 : index
    %c1024 = arith.constant 1024 : index
    %33 = vector.load %arg8[%c0_74, %c0_75, %c1024] : memref<8x8x1152xbf16, #tpu.memory_space<vmem>>, vector<8x8x128xbf16>
    tpu.vector_store %arg8[%c0_74, %c0_75, %c1024], %32 {strides = array<i32>} : memref<8x8x1152xbf16, #tpu.memory_space<vmem>>, vector<8x8x128xbf16>,
    %c0_76 = arith.constant 0 : index
    %c0_77 = arith.constant 0 : index
    %c0_78 = arith.constant 0 : index
    %34 = vector.load %arg8[%c0_76, %c0_77, %c0_78] : memref<8x8x1152xbf16, #tpu.memory_space<vmem>>, vector<8x8x1152xbf16>
    %35 = vector.shape_cast %34 : vector<8x8x1152xbf16> to vector<64x1152xbf16>
    %c0_79 = arith.constant 0 : index
    %c0_80 = arith.constant 0 : index
    %36 = vector.load %arg2[%c0_79, %c0_80] : memref<1152x128xbf16, #tpu.memory_space<vmem>>, vector<1152x128xbf16>
    %cst_81 = arith.constant dense<0.000000e+00> : vector<64x128xf32>
    %37 = tpu.matmul %35, %36, %cst_81 {dimension_numbers = #tpu.dot_dimension_numbers<[1], [0], [0], [1], [0, 0, 1, 1], [], []>} : vector<64x1152xbf16>, vector<1152x128xbf16>, vector<64x128xf32> -> vector<64x128xf32>
    %c0_82 = arith.constant 0 : index
    %c0_83 = arith.constant 0 : index
    %38 = vector.load %arg3[%c0_82, %c0_83] : memref<1x128xf32, #tpu.memory_space<vmem>>, vector<1x128xf32>
    %39 = vector.broadcast %38 : vector<1x128xf32> to vector<64x128xf32>
    %40 = arith.mulf %37, %39 : vector<64x128xf32>
    %c0_84 = arith.constant 0 : index
    %c0_85 = arith.constant 0 : index
    %41 = vector.load %arg4[%c0_84, %c0_85] : memref<1x128xf32, #tpu.memory_space<vmem>>, vector<1x128xf32>
    %42 = vector.broadcast %41 : vector<1x128xf32> to vector<64x128xf32>
    %43 = arith.addf %40, %42 : vector<64x128xf32>
    %c0_86 = arith.constant 0 : index
    %c0_87 = arith.constant 0 : index
    %c0_88 = arith.constant 0 : index
    %44 = vector.load %arg5[%c0_86, %c0_87, %c0_88] : memref<1x1x128xf32, #tpu.memory_space<vmem>>, vector<1x1x128xf32>
    %45 = vector.shape_cast %44 : vector<1x1x128xf32> to vector<1x128xf32>
    %46 = vector.broadcast %45 : vector<1x128xf32> to vector<64x128xf32>
    %47 = arith.addf %43, %46 : vector<64x128xf32>
    %cst_89 = arith.constant 0.000000e+00 : f32
    %48 = vector.broadcast %cst_89 : f32 to vector<64x128xf32>
    %49 = arith.maximumf %47, %48 : vector<64x128xf32>
    %50 = arith.truncf %49 : vector<64x128xf32> to vector<64x128xbf16>
    %c0_90 = arith.constant 0 : index
    %c0_91 = arith.constant 0 : index
    %c0_92 = arith.constant 0 : index
    %51 = vector.load %arg6[%c0_90, %c0_91, %c0_92] : memref<1x64x128xbf16, #tpu.memory_space<vmem>>, vector<1x64x128xbf16>
    %52 = vector.shape_cast %51 : vector<1x64x128xbf16> to vector<64x128xbf16>
    %53 = vector.shape_cast %50 : vector<64x128xbf16> to vector<1x64x128xbf16>
    tpu.vector_store %arg6[%c0_90, %c0_91, %c0_92], %53 {strides = array<i32>} : memref<1x64x128xbf16, #tpu.memory_space<vmem>>, vector<1x64x128xbf16>,
    return
  }
  func.func @transform_0(%arg0: i32) -> (i32, i32, i32, i32, i32) {
    %c0_i32 = arith.constant 0 : i32
    %c0_i32_0 = arith.constant 0 : i32
    %c0_i32_1 = arith.constant 0 : i32
    %c0_i32_2 = arith.constant 0 : i32
    %c0_i32_3 = arith.constant 0 : i32
    return %arg0, %c0_i32, %c0_i32_0, %c0_i32_1, %c0_i32_2 : i32, i32, i32, i32, i32
  }
  func.func @transform_1(%arg0: i32) -> (i32, i32) {
    %c0_i32 = arith.constant 0 : i32
    %c0_i32_0 = arith.constant 0 : i32
    %c0_i32_1 = arith.constant 0 : i32
    return %c0_i32, %c0_i32_0 : i32, i32
  }
  func.func @transform_2(%arg0: i32) -> (i32, i32) {
    %c0_i32 = arith.constant 0 : i32
    %c0_i32_0 = arith.constant 0 : i32
    %c0_i32_1 = arith.constant 0 : i32
    return %c0_i32, %c0_i32_0 : i32, i32
  }
  func.func @transform_3(%arg0: i32) -> (i32, i32) {
    %c0_i32 = arith.constant 0 : i32
    %c0_i32_0 = arith.constant 0 : i32
    %c0_i32_1 = arith.constant 0 : i32
    return %c0_i32, %c0_i32_0 : i32, i32
  }
  func.func @transform_4(%arg0: i32) -> (i32, i32, i32) {
    %c0_i32 = arith.constant 0 : i32
    %c0_i32_0 = arith.constant 0 : i32
    %c0_i32_1 = arith.constant 0 : i32
    return %arg0, %c0_i32, %c0_i32_0 : i32, i32, i32
  }
  func.func @transform_5(%arg0: i32) -> (i32, i32, i32) {
    %c0_i32 = arith.constant 0 : i32
    %c0_i32_0 = arith.constant 0 : i32
    %c0_i32_1 = arith.constant 0 : i32
    return %arg0, %c0_i32, %c0_i32_0 : i32, i32, i32
  }
}

module attributes {stable_mosaic.version = 11 : i64} {
  func.func @_proj_in_gap_kernel(%arg0: i32, %arg1: i32, %arg2: memref<1x64x128xbf16, #tpu.memory_space<vmem>>, %arg3: memref<128x128xbf16, #tpu.memory_space<vmem>>, %arg4: memref<1x128xf32, #tpu.memory_space<vmem>>, %arg5: memref<1x128xf32, #tpu.memory_space<vmem>>, %arg6: memref<128x128xbf16, #tpu.memory_space<vmem>>, %arg7: memref<1x128xf32, #tpu.memory_space<vmem>>, %arg8: memref<1x128xf32, #tpu.memory_space<vmem>>, %arg9: memref<1x64x128xbf16, #tpu.memory_space<vmem>>, %arg10: memref<1x1x128xf32, #tpu.memory_space<vmem>>, %arg11: memref<1x128xf32, #tpu.memory_space<vmem>>) attributes {dimension_semantics = [#tpu.dimension_semantics<parallel>, #tpu.dimension_semantics<arbitrary>], iteration_bounds = array<i64: 2, 1>, scalar_prefetch = 0 : i64, scratch_operands = 1 : i64, tpu.core_type = #tpu.core_type<tc>, window_params = [{transform_indices = @transform_0, window_bounds = array<i64: 1, 64, 128>}, {pipeline_mode = #tpu.pipeline_mode<synchronous>, transform_indices = @transform_1, window_bounds = array<i64: 128, 128>}, {pipeline_mode = #tpu.pipeline_mode<synchronous>, transform_indices = @transform_2, window_bounds = array<i64: 1, 128>}, {pipeline_mode = #tpu.pipeline_mode<synchronous>, transform_indices = @transform_3, window_bounds = array<i64: 1, 128>}, {pipeline_mode = #tpu.pipeline_mode<synchronous>, transform_indices = @transform_4, window_bounds = array<i64: 128, 128>}, {pipeline_mode = #tpu.pipeline_mode<synchronous>, transform_indices = @transform_5, window_bounds = array<i64: 1, 128>}, {pipeline_mode = #tpu.pipeline_mode<synchronous>, transform_indices = @transform_6, window_bounds = array<i64: 1, 128>}, {transform_indices = @transform_7, window_bounds = array<i64: 1, 64, 128>}, {transform_indices = @transform_8, window_bounds = array<i64: 1, 1, 128>}]} {
    %c0_i32 = arith.constant 0 : i32
    %0 = arith.cmpi eq, %arg1, %c0_i32 : i32
    %1 = arith.extui %0 : i1 to i32
    %c0_i32_0 = arith.constant 0 : i32
    %2 = arith.cmpi ne, %1, %c0_i32_0 : i32
    scf.if %2 {
      %cst_20 = arith.constant 0.000000e+00 : f32
      %27 = vector.broadcast %cst_20 : f32 to vector<1x128xf32>
      %c0_21 = arith.constant 0 : index
      %c0_22 = arith.constant 0 : index
      %28 = vector.load %arg11[%c0_21, %c0_22] : memref<1x128xf32, #tpu.memory_space<vmem>>, vector<1x128xf32>
      tpu.vector_store %arg11[%c0_21, %c0_22], %27 {strides = array<i32>} : memref<1x128xf32, #tpu.memory_space<vmem>>, vector<1x128xf32>,
    } else {
    }
    %c0 = arith.constant 0 : index
    %c0_1 = arith.constant 0 : index
    %c0_2 = arith.constant 0 : index
    %3 = vector.load %arg2[%c0, %c0_1, %c0_2] : memref<1x64x128xbf16, #tpu.memory_space<vmem>>, vector<1x64x128xbf16>
    %4 = vector.shape_cast %3 : vector<1x64x128xbf16> to vector<64x128xbf16>
    %c0_3 = arith.constant 0 : index
    %c0_4 = arith.constant 0 : index
    %5 = vector.load %arg3[%c0_3, %c0_4] : memref<128x128xbf16, #tpu.memory_space<vmem>>, vector<128x128xbf16>
    %cst = arith.constant dense<0.000000e+00> : vector<64x128xf32>
    %6 = tpu.matmul %4, %5, %cst {dimension_numbers = #tpu.dot_dimension_numbers<[1], [0], [0], [1], [0, 0, 1, 1], [], []>} : vector<64x128xbf16>, vector<128x128xbf16>, vector<64x128xf32> -> vector<64x128xf32>
    %c0_5 = arith.constant 0 : index
    %c0_6 = arith.constant 0 : index
    %7 = vector.load %arg4[%c0_5, %c0_6] : memref<1x128xf32, #tpu.memory_space<vmem>>, vector<1x128xf32>
    %8 = vector.broadcast %7 : vector<1x128xf32> to vector<64x128xf32>
    %9 = arith.mulf %6, %8 : vector<64x128xf32>
    %c0_7 = arith.constant 0 : index
    %c0_8 = arith.constant 0 : index
    %10 = vector.load %arg5[%c0_7, %c0_8] : memref<1x128xf32, #tpu.memory_space<vmem>>, vector<1x128xf32>
    %11 = vector.broadcast %10 : vector<1x128xf32> to vector<64x128xf32>
    %12 = arith.addf %9, %11 : vector<64x128xf32>
    %cst_9 = arith.constant 0.000000e+00 : f32
    %13 = vector.broadcast %cst_9 : f32 to vector<64x128xf32>
    %14 = arith.maximumf %12, %13 : vector<64x128xf32>
    %15 = arith.truncf %14 : vector<64x128xf32> to vector<64x128xbf16>
    %c0_10 = arith.constant 0 : index
    %c0_11 = arith.constant 0 : index
    %c0_12 = arith.constant 0 : index
    %16 = vector.load %arg9[%c0_10, %c0_11, %c0_12] : memref<1x64x128xbf16, #tpu.memory_space<vmem>>, vector<1x64x128xbf16>
    %17 = vector.shape_cast %16 : vector<1x64x128xbf16> to vector<64x128xbf16>
    %18 = vector.shape_cast %15 : vector<64x128xbf16> to vector<1x64x128xbf16>
    tpu.vector_store %arg9[%c0_10, %c0_11, %c0_12], %18 {strides = array<i32>} : memref<1x64x128xbf16, #tpu.memory_space<vmem>>, vector<1x64x128xbf16>,
    %c0_13 = arith.constant 0 : index
    %c0_14 = arith.constant 0 : index
    %19 = vector.load %arg11[%c0_13, %c0_14] : memref<1x128xf32, #tpu.memory_space<vmem>>, vector<1x128xf32>
    %cst_15 = arith.constant dense<0.000000e+00> : vector<128xf32>
    %20 = vector.multi_reduction <add>, %14, %cst_15 [0] : vector<64x128xf32> to vector<128xf32>
    %21 = vector.shape_cast %20 : vector<128xf32> to vector<1x128xf32>
    %22 = arith.addf %19, %21 : vector<1x128xf32>
    %c0_16 = arith.constant 0 : index
    %c0_17 = arith.constant 0 : index
    %23 = vector.load %arg11[%c0_16, %c0_17] : memref<1x128xf32, #tpu.memory_space<vmem>>, vector<1x128xf32>
    tpu.vector_store %arg11[%c0_16, %c0_17], %22 {strides = array<i32>} : memref<1x128xf32, #tpu.memory_space<vmem>>, vector<1x128xf32>,
    %c0_i32_18 = arith.constant 0 : i32
    %24 = arith.cmpi eq, %arg1, %c0_i32_18 : i32
    %25 = arith.extui %24 : i1 to i32
    %c0_i32_19 = arith.constant 0 : i32
    %26 = arith.cmpi ne, %25, %c0_i32_19 : i32
    scf.if %26 {
      %c0_20 = arith.constant 0 : index
      %c0_21 = arith.constant 0 : index
      %27 = vector.load %arg11[%c0_20, %c0_21] : memref<1x128xf32, #tpu.memory_space<vmem>>, vector<1x128xf32>
      %cst_22 = arith.constant 1.562500e-02 : f32
      %28 = vector.broadcast %cst_22 : f32 to vector<1x128xf32>
      %29 = arith.mulf %27, %28 : vector<1x128xf32>
      %30 = arith.truncf %29 : vector<1x128xf32> to vector<1x128xbf16>
      %c0_23 = arith.constant 0 : index
      %c0_24 = arith.constant 0 : index
      %31 = vector.load %arg6[%c0_23, %c0_24] : memref<128x128xbf16, #tpu.memory_space<vmem>>, vector<128x128xbf16>
      %cst_25 = arith.constant dense<0.000000e+00> : vector<1x128xf32>
      %32 = tpu.matmul %30, %31, %cst_25 {dimension_numbers = #tpu.dot_dimension_numbers<[1], [0], [0], [1], [0, 0, 1, 1], [], []>} : vector<1x128xbf16>, vector<128x128xbf16>, vector<1x128xf32> -> vector<1x128xf32>
      %c0_26 = arith.constant 0 : index
      %c0_27 = arith.constant 0 : index
      %33 = vector.load %arg7[%c0_26, %c0_27] : memref<1x128xf32, #tpu.memory_space<vmem>>, vector<1x128xf32>
      %34 = arith.mulf %32, %33 : vector<1x128xf32>
      %c0_28 = arith.constant 0 : index
      %c0_29 = arith.constant 0 : index
      %35 = vector.load %arg8[%c0_28, %c0_29] : memref<1x128xf32, #tpu.memory_space<vmem>>, vector<1x128xf32>
      %36 = arith.addf %34, %35 : vector<1x128xf32>
      %c0_30 = arith.constant 0 : index
      %c0_31 = arith.constant 0 : index
      %c0_32 = arith.constant 0 : index
      %37 = vector.load %arg10[%c0_30, %c0_31, %c0_32] : memref<1x1x128xf32, #tpu.memory_space<vmem>>, vector<1x1x128xf32>
      %38 = vector.shape_cast %37 : vector<1x1x128xf32> to vector<1x128xf32>
      %39 = vector.shape_cast %36 : vector<1x128xf32> to vector<1x1x128xf32>
      tpu.vector_store %arg10[%c0_30, %c0_31, %c0_32], %39 {strides = array<i32>} : memref<1x1x128xf32, #tpu.memory_space<vmem>>, vector<1x1x128xf32>,
    } else {
    }
    return
  }
  func.func @transform_0(%arg0: i32, %arg1: i32) -> (i32, i32, i32) {
    %c0_i32 = arith.constant 0 : i32
    %c0_i32_0 = arith.constant 0 : i32
    return %arg0, %arg1, %c0_i32 : i32, i32, i32
  }
  func.func @transform_1(%arg0: i32, %arg1: i32) -> (i32, i32) {
    %c0_i32 = arith.constant 0 : i32
    %c0_i32_0 = arith.constant 0 : i32
    %c0_i32_1 = arith.constant 0 : i32
    return %c0_i32, %c0_i32_0 : i32, i32
  }
  func.func @transform_2(%arg0: i32, %arg1: i32) -> (i32, i32) {
    %c0_i32 = arith.constant 0 : i32
    %c0_i32_0 = arith.constant 0 : i32
    %c0_i32_1 = arith.constant 0 : i32
    return %c0_i32, %c0_i32_0 : i32, i32
  }
  func.func @transform_3(%arg0: i32, %arg1: i32) -> (i32, i32) {
    %c0_i32 = arith.constant 0 : i32
    %c0_i32_0 = arith.constant 0 : i32
    %c0_i32_1 = arith.constant 0 : i32
    return %c0_i32, %c0_i32_0 : i32, i32
  }
  func.func @transform_4(%arg0: i32, %arg1: i32) -> (i32, i32) {
    %c0_i32 = arith.constant 0 : i32
    %c0_i32_0 = arith.constant 0 : i32
    %c0_i32_1 = arith.constant 0 : i32
    return %c0_i32, %c0_i32_0 : i32, i32
  }
  func.func @transform_5(%arg0: i32, %arg1: i32) -> (i32, i32) {
    %c0_i32 = arith.constant 0 : i32
    %c0_i32_0 = arith.constant 0 : i32
    %c0_i32_1 = arith.constant 0 : i32
    return %c0_i32, %c0_i32_0 : i32, i32
  }
  func.func @transform_6(%arg0: i32, %arg1: i32) -> (i32, i32) {
    %c0_i32 = arith.constant 0 : i32
    %c0_i32_0 = arith.constant 0 : i32
    %c0_i32_1 = arith.constant 0 : i32
    return %c0_i32, %c0_i32_0 : i32, i32
  }
  func.func @transform_7(%arg0: i32, %arg1: i32) -> (i32, i32, i32) {
    %c0_i32 = arith.constant 0 : i32
    %c0_i32_0 = arith.constant 0 : i32
    return %arg0, %arg1, %c0_i32 : i32, i32, i32
  }
  func.func @transform_8(%arg0: i32, %arg1: i32) -> (i32, i32, i32) {
    %c0_i32 = arith.constant 0 : i32
    %c0_i32_0 = arith.constant 0 : i32
    %c0_i32_1 = arith.constant 0 : i32
    return %arg0, %c0_i32, %c0_i32_0 : i32, i32, i32
  }
}

</mosaic_0001>

<bundles_post_ra>
// kernel: run.10
= control target key start
LH: loop header
LB: loop body
LE: loop exit
PB: predicated region body
PF: predicated region fallthrough
CT: control target
= control target key end

     0   :  { %s816_s18 = smov 0   ;;  %s818_s19 = smov 0   ;;  %s891_s0 = inlined_call_operand.vmem [shape: bf16[2,64,128], index: 0, kind: input, shape index: {}]   ;;  %s892_s1 = inlined_call_operand.vmem [shape: bf16[128,128], index: 1, kind: input, shape index: {}]   ;;  %s893_s2 = inlined_call_operand.vmem [shape: f32[1,128], index: 2, kind: input, shape index: {}]   ;;  %s894_s3 = inlined_call_operand.vmem [shape: f32[1,128], index: 3, kind: input, shape index: {}]   ;;  %s895_s4 = inlined_call_operand.vmem [shape: bf16[2,64,128], index: 4, kind: input, shape index: {}]   ;;  %s896_s5 = inlined_call_operand.vmem [shape: bf16[2,64,128], index: 5, kind: output, shape index: {}]  }
   0x1   :  { %s820_s20 = smov 0  }
   0x2 LB: > { %s27_s21 = sadd.s32 1, %s780_s19  ;;  %p598_p0 = scmp.ge.s32.totalorder %s784_s20, 1  ;;  %s784_s20 = sphi %s820_s20, %s15_s20   ;;  %s780_s19 = sphi %s818_s19, %s898_s19   ;;  %s776_s18 = sphi %s816_s18, %s897_s18  }
   0x3   : > { %p29_p1 = scmp.ge.s32.totalorder %s27_s21, 2  ;;  %p225_p2 = scmp.lt.s32.totalorder %s784_s20, 3 }
   0x5   : > { %s900_s21 = smov (%p29_p1, %s27_s21), 0  ;;  %p226_p3 = pnand %p598_p0, %p225_p2 }
   0x6   : > { %p271_p4 = scmp.lt.s32.totalorder (!%p226_p3), %s776_s18, 1 }
   0x7   : > { %229 = sbr.rel (%p226_p3) target bundleno = 195 (0xc3), region = 40 }
   0xc   : > { %v669_v0 = vld [vmem:[%s892_s1 + $0x38] sm:$0xff]  ;;  %v668_v1 = vld [vmem:[%s892_s1 + $0x30] sm:$0xff]  ;;  %v667_v2 = vld [vmem:[%s892_s1 + $0x28] sm:$0xff]  ;;  %s902_s18 = smov (!%p271_p4, %s776_s18), 1 }
   0xd   : > { %396 = vmatpush.bf16.msra.mxu0 %v669_v0  ;;  %712 = vmatpush.bf16.msra.mxu1 %v669_v0  ;;  %v666_v3 = vld [vmem:[%s892_s1 + $0x20] sm:$0xff]  ;;  %v665_v4 = vld [vmem:[%s892_s1 + $0x18] sm:$0xff]  ;;  %v664_v5 = vld [vmem:[%s892_s1 + $0x10] sm:$0xff]  ;;  %s859_s11 = sshll.u32 %s902_s18, 5 }
   0xe   : > { %713 = vmatpush.bf16.msra.mxu2 %v669_v0  ;;  %714 = vmatpush.bf16.msra.mxu3 %v669_v0  ;;  %v663_v6 = vld [vmem:[%s892_s1 + $0x8] sm:$0xff]  ;;  %v662_v7 = vld [vmem:[%s892_s1] sm:$0xff]  ;;  %s278_s16 = scalar_lea.vmem %s891_s0, %s859_s11  ;;  %s288_s24 = scalar_lea.vmem %s895_s4, %s859_s11 }
   0xf   : > { %v658_v8 = vld [vmem:[%s278_s16] sm:$0xff]  ;;  %v659_v9 = vld [vmem:[%s278_s16 + $0x8] sm:$0xff]  ;;  %v660_v10 = vld [vmem:[%s278_s16 + $0x10] sm:$0xff]  ;;  %s298_s29 = scalar_lea.vmem %s896_s5, %s859_s11 }
  0x10   : > { %v661_v11 = vld [vmem:[%s278_s16 + $0x18] sm:$0xff]  ;;  %v760_v14 = vld [vmem:[%s893_s2] ss:$0 sm:$0xff]  ;;  %v706_v19 = vld [vmem:[%s288_s24 + $0x8] sm:$0xff]  }
  0x11   : > { %397 = vmatpush.bf16.msra.mxu0 %v668_v1  ;;  %715 = vmatpush.bf16.msra.mxu1 %v668_v1  ;;  %v761_v16 = vld [vmem:[%s894_s3] ss:$0 sm:$0xff]  ;;  %v676_v23 = vunpack.c.l.bf16 %v706_v19  ;;  %v677_v27 = vunpack.c.h.bf16 %v706_v19  ;;  %v707_v32 = vld [vmem:[%s288_s24 + $0x10] sm:$0xff]   ;;  %v708_v33 = vld [vmem:[%s288_s24 + $0x18] sm:$0xff]  }
  0x12   : > { %716 = vmatpush.bf16.msra.mxu2 %v668_v1  ;;  %717 = vmatpush.bf16.msra.mxu3 %v668_v1  ;;  %v671_v17 = vld [vmem:[%s288_s24] sm:$0xff]   ;;  %v680_v42 = vunpack.c.l.bf16 %v707_v32  ;;  %v684_v43 = vunpack.c.l.bf16 %v708_v33  ;;  %v681_v47 = vunpack.c.h.bf16 %v707_v32  ;;  %v685_v49 = vunpack.c.h.bf16 %v708_v33 }
  0x13   : > { %v672_v22 = vunpack.c.l.bf16 %v671_v17  ;;  %v673_v25 = vunpack.c.h.bf16 %v671_v17 }
  0x15   : > { %398 = vmatpush.bf16.msra.mxu0 %v667_v2  ;;  %718 = vmatpush.bf16.msra.mxu1 %v667_v2 }
  0x16   : > { %719 = vmatpush.bf16.msra.mxu2 %v667_v2  ;;  %720 = vmatpush.bf16.msra.mxu3 %v667_v2 }
  0x19   : > { %399 = vmatpush.bf16.msra.mxu0 %v666_v3  ;;  %721 = vmatpush.bf16.msra.mxu1 %v666_v3 }
  0x1a   : > { %722 = vmatpush.bf16.msra.mxu2 %v666_v3  ;;  %723 = vmatpush.bf16.msra.mxu3 %v666_v3 }
  0x1d   : > { %400 = vmatpush.bf16.msra.mxu0 %v665_v4  ;;  %724 = vmatpush.bf16.msra.mxu1 %v665_v4 }
  0x1e   : > { %725 = vmatpush.bf16.msra.mxu2 %v665_v4  ;;  %726 = vmatpush.bf16.msra.mxu3 %v665_v4 }
  0x21   : > { %401 = vmatpush.bf16.msra.mxu0 %v664_v5  ;;  %727 = vmatpush.bf16.msra.mxu1 %v664_v5 }
  0x22   : > { %728 = vmatpush.bf16.msra.mxu2 %v664_v5  ;;  %729 = vmatpush.bf16.msra.mxu3 %v664_v5 }
  0x25   : > { %402 = vmatpush.bf16.msra.mxu0 %v663_v6  ;;  %730 = vmatpush.bf16.msra.mxu1 %v663_v6 }
  0x26   : > { %731 = vmatpush.bf16.msra.mxu2 %v663_v6  ;;  %732 = vmatpush.bf16.msra.mxu3 %v663_v6 }
  0x29   : > { %403 = vmatpush.bf16.msra.mxu0 %v662_v7  ;;  %733 = vmatpush.bf16.msra.mxu1 %v662_v7 }
  0x2a   : > { %734 = vmatpush.bf16.msra.mxu2 %v662_v7  ;;  %735 = vmatpush.bf16.msra.mxu3 %v662_v7 }
  0x2c   : > { %404 = vmatmul.bf16.vlgmr.msra.gmra.mxu0 %v658_v8  ;;  %409 = vmatmul.bf16.vlgmr.msra.gmra.mxu1 %v659_v9 }
  0x2d   : > { %414 = vmatmul.bf16.vlgmr.msra.gmra.mxu2 %v660_v10  ;;  %419 = vmatmul.bf16.vlgmr.msra.gmra.mxu3 %v661_v11 }
  0xa9   : > { %v405_v12 = vpop.f32.mrf.mxu0  ;;  %v410_v13 = vpop.f32.mrf.mxu1 }
  0xaa   : > { %v429_v15 = vmul.f32 %v760_v14, %v405_v12  ;;  %v431_v18 = vmul.f32 %v760_v14, %v410_v13 }
  0xac   : > { %v441_v28 = vadd.f32 %v761_v16, %v429_v15  ;;  %v443_v29 = vadd.f32 %v761_v16, %v431_v18 }
  0xae   : > { %v465_v38 = vadd.f32 %v672_v22, %v441_v28  ;;  %v467_v39 = vadd.f32 %v676_v23, %v443_v29 }
  0xb0   : > { %v415_v20 = vpop.f32.mrf.mxu2  ;;  %v420_v21 = vpop.f32.mrf.mxu3 }
  0xb1   : > { %v407_v24 = vpop.f32.mrf.mxu0  ;;  %v412_v26 = vpop.f32.mrf.mxu1  ;;  %v433_v36 = vmul.f32 %v760_v14, %v415_v20  ;;  %v435_v37 = vmul.f32 %v760_v14, %v420_v21 }
  0xb2   : > { %v430_v30 = vmul.f32 %v760_v14, %v407_v24  ;;  %v432_v31 = vmul.f32 %v760_v14, %v412_v26 }
  0xb3   : > { %v445_v50 = vadd.f32 %v761_v16, %v433_v36  ;;  %v447_v51 = vadd.f32 %v761_v16, %v435_v37 }
  0xb4   : > { %v442_v34 = vadd.f32 %v761_v16, %v430_v30  ;;  %v444_v35 = vadd.f32 %v761_v16, %v432_v31 }
  0xb5   : > { %v469_v56 = vadd.f32 %v680_v42, %v445_v50  ;;  %v471_v57 = vadd.f32 %v684_v43, %v447_v51 }
  0xb6   : > { %v466_v40 = vadd.f32 %v673_v25, %v442_v34  ;;  %v468_v41 = vadd.f32 %v677_v27, %v444_v35 }
  0xb8   : > { %v689_v44 = vpack.c.bf16 %v466_v40, %v465_v38  ;;  %v694_v45 = vpack.c.bf16 %v468_v41, %v467_v39  ;;  %v417_v46 = vpop.f32.mrf.mxu2  ;;  %v422_v48 = vpop.f32.mrf.mxu3 }
  0xb9   : > { %v434_v52 = vmul.f32 %v760_v14, %v417_v46  ;;  %v436_v53 = vmul.f32 %v760_v14, %v422_v48 }
  0xba   : > { %690 = vst [vmem:[%s298_s29] sm:$0xff] %v689_v44  }
  0xbb   : > { %709 = vst [vmem:[%s298_s29 + $0x8] sm:$0xff] %v694_v45   ;;  %v446_v54 = vadd.f32 %v761_v16, %v434_v52  ;;  %v448_v55 = vadd.f32 %v761_v16, %v436_v53 }
  0xbd   : > { %v470_v58 = vadd.f32 %v681_v47, %v446_v54  ;;  %v472_v59 = vadd.f32 %v685_v49, %v448_v55 }
  0xbf   : > { %v699_v60 = vpack.c.bf16 %v470_v58, %v469_v56  ;;  %v704_v61 = vpack.c.bf16 %v472_v59, %v471_v57 }
  0xc1   : > { %710 = vst [vmem:[%s298_s29 + $0x10] sm:$0xff] %v699_v60  }
  0xc2   : > { %711 = vst [vmem:[%s298_s29 + $0x18] sm:$0xff] %v704_v61  }
  0xc3 PF: > { %s15_s20 = sadd.s32 1, %s784_s20   ;;  %s897_s18 = smov %s780_s19 }
  0xc4   : > { %p12_p5 = scmp.ge.s32.totalorder %s15_s20, 4   ;;  %s898_s19 = smov %s900_s21 }
  0xc6   :  { %14 = sbr.rel (!%p12_p5) target bundleno = 2 (0x2), region = 73 }

// kernel: run.7
= control target key start
LH: loop header
LB: loop body
LE: loop exit
PB: predicated region body
PF: predicated region fallthrough
CT: control target
= control target key end

     0   :  { %14 = vsyncpa [#allocation4], 0  ;;  %s1518_s27 = smov 0   ;;  %s1520_s28 = smov 0   ;;  %s1849_s0 = inlined_call_operand.vmem [shape: bf16[2,256,128], index: 0, kind: input, shape index: {}]   ;;  %s1850_s1 = inlined_call_operand.hbm [shape: bf16[128,128], index: 1, kind: input, shape index: {}]   ;;  %s1851_s2 = inlined_call_operand.vmem [shape: f32[1,128], index: 2, kind: input, shape index: {}]   ;;  %s1852_s3 = inlined_call_operand.vmem [shape: f32[1,128], index: 3, kind: input, shape index: {}]   ;;  %s1853_s4 = inlined_call_operand.vmem [shape: bf16[128,128], index: 4, kind: input, shape index: {}]   ;;  %s1854_s5 = inlined_call_operand.vmem [shape: f32[1,128], index: 5, kind: input, shape index: {}]   ;;  %s1855_s6 = inlined_call_operand.vmem [shape: f32[1,128], index: 6, kind: input, shape index: {}]   ;;  %s1856_s7 = inlined_call_operand.vmem [shape: bf16[2,256,128], index: 7, kind: output, shape index: {0}]   ;;  %s1857_s8 = inlined_call_operand.vmem [shape: f32[2,1,128], index: 8, kind: output, shape index: {1}]  }
   0x1   :  { %s1522_s29 = smov 0  }
   0x2 LB: > { %s1077_s30 = sadd.s32 4294967295, %s1467_s29   ;;  %s32_s9 = sadd.s32 1, %s1463_s28  ;;  %s1467_s29 = sphi %s1522_s29, %s20_s29   ;;  %s1463_s28 = sphi %s1520_s28, %s1859_s28   ;;  %s1459_s27 = sphi %s1518_s27, %s1858_s27  }
   0x3   : > { %p34_p0 = scmp.ge.s32.totalorder %s32_s9, 2  ;;  %p1079_p1 = scmp.ge.s32.totalorder %s1467_s29, 1 }
   0x4   : > { %p245_p2 = scmp.lt.s32.totalorder %s1467_s29, 3  ;;  %p1379_p4 = scmp.eq.s32.totalorder %s1077_s30, 0 }
   0x5   : > { %s1861_s9 = smov (%p34_p0, %s32_s9), 0  ;;  %s256_s12 = sshll.u32 %s1850_s1, 4  ;;  %s257_s12 = int_to_ptr.hbm [resolvable:$true] %s256_s12 }
   0x6   : > { %p246_p3 = pnand %p1079_p1, %p245_p2  ;;  %s1469_s13 = smov [#allocation3]  }
   0x7   : > { %s258_s14 = sshll.u32 %s1469_s13, 4  ;;  %s1470_s15 = smov 64   ;;  %s259_s14 = int_to_ptr.vmem [resolvable:$true] %s258_s14 }
   0x8   : > { %p1375_p5 = pneg %p246_p3  ;;  %s1471_s16 = smov 4  }
   0x9   : > { %302 = sbr.rel (%p246_p3) target bundleno = 445 (0x1bd), region = 48 }
   0xa   : > { %p1376_p6 = pnand %p1379_p4, %p1375_p5 }
   0xc   : > { %1378 = dma.hbm_to_vmem [thread:$0]  (!%p1376_p6), %s257_s12, 1024, %s259_s14, [#allocation4], %s1470_s15, %s1470_s15, %s1471_s16  }
   0xe   : > { %1454 = dma.done.wait (%p1379_p4), [#allocation4], 1024  }
   0xf   : > { %1456 = vsyncadd (%p1379_p4), [#allocation4], 4294966272  ;;  %v1243_v0 = vld [vmem:[#allocation3 + $0x38] sm:$0xff]  ;;  %v1242_v1 = vld [vmem:[#allocation3 + $0x30] sm:$0xff]  ;;  %p349_p7 = scmp.lt.s32.totalorder %s1459_s27, 1 }
  0x10   : > { %568 = vmatpush.bf16.msra.mxu0 %v1243_v0  ;;  %1348 = vmatpush.bf16.msra.mxu2 %v1243_v0  ;;  %v1241_v2 = vld [vmem:[#allocation3 + $0x28] sm:$0xff]  ;;  %v1240_v3 = vld [vmem:[#allocation3 + $0x20] sm:$0xff]  ;;  %v1239_v4 = vld [vmem:[#allocation3 + $0x18] sm:$0xff] }
  0x11   : > { %1349 = vmatpush.bf16.msra.mxu3 %v1243_v0  ;;  %1347 = vmatpush.bf16.msra.mxu1 %v1243_v0  ;;  %v1238_v5 = vld [vmem:[#allocation3 + $0x10] sm:$0xff]  ;;  %s1863_s27 = smov (!%p349_p7, %s1459_s27), 1  ;;  %v1237_v6 = vld [vmem:[#allocation3 + $0x8] sm:$0xff]  ;;  %v1236_v7 = vld [vmem:[#allocation3] sm:$0xff] }
  0x12   : > { %s1218_s17 = sshll.u32 %s1863_s27, 7  ;;  %v1573_v25 = vld [vmem:[%s1851_s2] ss:$0 sm:$0xff]  ;;  %s370_s14 = scalar_lea.vmem %s1857_s8, %s1863_s27 }
  0x13   : > { %s1552_s20 = scalar_lea.vmem %s1849_s0, %s1218_s17  ;;  %v1579_v28 = vld [vmem:[%s1852_s3] ss:$0 sm:$0xff]  ;;  %s1606_s30 = scalar_lea.vmem %s1856_s7, %s1218_s17 }
  0x14   : > { %569 = vmatpush.bf16.msra.mxu0 %v1242_v1  ;;  %1351 = vmatpush.bf16.msra.mxu2 %v1242_v1  ;;  %v1220_v8 = vld [vmem:[%s1552_s20] sm:$0xff]  ;;  %v1226_v9 = vld [vmem:[%s1552_s20 + $0x30] sm:$0xff]  ;;  %v1231_v10 = vld [vmem:[%s1552_s20 + $0x58] sm:$0xff] }
  0x15   : > { %1352 = vmatpush.bf16.msra.mxu3 %v1242_v1  ;;  %1350 = vmatpush.bf16.msra.mxu1 %v1242_v1  ;;  %v1224_v11 = vld [vmem:[%s1552_s20 + $0x20] sm:$0xff]  ;;  %v1221_v12 = vld [vmem:[%s1552_s20 + $0x8] sm:$0xff]  ;;  %v1227_v13 = vld [vmem:[%s1552_s20 + $0x38] sm:$0xff] }
  0x16   : > { %v1232_v14 = vld [vmem:[%s1552_s20 + $0x60] sm:$0xff]  ;;  %v1225_v15 = vld [vmem:[%s1552_s20 + $0x28] sm:$0xff]  ;;  %v1222_v16 = vld [vmem:[%s1552_s20 + $0x10] sm:$0xff] }
  0x17   : > { %v1228_v17 = vld [vmem:[%s1552_s20 + $0x40] sm:$0xff]  ;;  %v1233_v18 = vld [vmem:[%s1552_s20 + $0x68] sm:$0xff]  ;;  %v1223_v19 = vld [vmem:[%s1552_s20 + $0x18] sm:$0xff] }
  0x18   : > { %570 = vmatpush.bf16.msra.mxu0 %v1241_v2  ;;  %1354 = vmatpush.bf16.msra.mxu2 %v1241_v2  ;;  %v1229_v20 = vld [vmem:[%s1552_s20 + $0x48] sm:$0xff]  ;;  %v1234_v21 = vld [vmem:[%s1552_s20 + $0x70] sm:$0xff]  ;;  %v1235_v23 = vld [vmem:[%s1552_s20 + $0x78] sm:$0xff] }
  0x19   : > { %1355 = vmatpush.bf16.msra.mxu3 %v1241_v2  ;;  %1353 = vmatpush.bf16.msra.mxu1 %v1241_v2  ;;  %v1230_v22 = vld [vmem:[%s1552_s20 + $0x50] sm:$0xff] }
  0x1c   : > { %571 = vmatpush.bf16.msra.mxu0 %v1240_v3  ;;  %1357 = vmatpush.bf16.msra.mxu2 %v1240_v3 }
  0x1d   : > { %1358 = vmatpush.bf16.msra.mxu3 %v1240_v3  ;;  %1356 = vmatpush.bf16.msra.mxu1 %v1240_v3 }
  0x20   : > { %572 = vmatpush.bf16.msra.mxu0 %v1239_v4  ;;  %1360 = vmatpush.bf16.msra.mxu2 %v1239_v4 }
  0x21   : > { %1361 = vmatpush.bf16.msra.mxu3 %v1239_v4  ;;  %1359 = vmatpush.bf16.msra.mxu1 %v1239_v4 }
  0x24   : > { %573 = vmatpush.bf16.msra.mxu0 %v1238_v5  ;;  %1363 = vmatpush.bf16.msra.mxu2 %v1238_v5 }
  0x25   : > { %1364 = vmatpush.bf16.msra.mxu3 %v1238_v5  ;;  %1362 = vmatpush.bf16.msra.mxu1 %v1238_v5 }
  0x28   : > { %574 = vmatpush.bf16.msra.mxu0 %v1237_v6  ;;  %1366 = vmatpush.bf16.msra.mxu2 %v1237_v6 }
  0x29   : > { %1367 = vmatpush.bf16.msra.mxu3 %v1237_v6  ;;  %1365 = vmatpush.bf16.msra.mxu1 %v1237_v6 }
  0x2c   : > { %575 = vmatpush.bf16.msra.mxu0 %v1236_v7  ;;  %1369 = vmatpush.bf16.msra.mxu2 %v1236_v7 }
  0x2d   : > { %1370 = vmatpush.bf16.msra.mxu3 %v1236_v7  ;;  %1368 = vmatpush.bf16.msra.mxu1 %v1236_v7 }
  0x2f   : > { %576 = vmatmul.bf16.vlgmr.msra.gmra.mxu0 %v1220_v8  ;;  %606 = vmatmul.bf16.vlgmr.msra.gmra.mxu2 %v1226_v9 }
  0x30   : > { %631 = vmatmul.bf16.vlgmr.msra.gmra.mxu3 %v1231_v10  ;;  %596 = vmatmul.bf16.vlgmr.msra.gmra.mxu1 %v1224_v11 }
  0x3f   : > { %581 = vmatmul.bf16.gmra.mxu0 %v1221_v12  ;;  %611 = vmatmul.bf16.gmra.mxu2 %v1227_v13 }
  0x40   : > { %636 = vmatmul.bf16.gmra.mxu3 %v1232_v14  ;;  %601 = vmatmul.bf16.gmra.mxu1 %v1225_v15 }
  0x4f   : > { %586 = vmatmul.bf16.gmra.mxu0 %v1222_v16  ;;  %616 = vmatmul.bf16.gmra.mxu2 %v1228_v17 }
  0x50   : > { %641 = vmatmul.bf16.gmra.mxu3 %v1233_v18 }
  0x5f   : > { %591 = vmatmul.bf16.gmra.mxu0 %v1223_v19  ;;  %621 = vmatmul.bf16.gmra.mxu2 %v1229_v20 }
  0x60   : > { %646 = vmatmul.bf16.gmra.mxu3 %v1234_v21 }
  0x6f   : > { %626 = vmatmul.bf16.gmra.mxu2 %v1230_v22 }
  0x70   : > { %651 = vmatmul.bf16.gmra.mxu3 %v1235_v23 }
  0xac   : > { %v577_v24 = vpop.f32.mrf.mxu0 }
  0xad   : > { %v597_v26 = vpop.f32.mrf.mxu1  ;;  %v661_v27 = vmul.f32 %v1573_v25, %v577_v24 }
  0xae   : > { %v669_v31 = vmul.f32 %v1573_v25, %v597_v26 }
  0xaf   : > { %v1583_v33 = vadd.f32 %v1579_v28, %v661_v27 }
  0xb0   : > { %v1587_v35 = vadd.f32 %v1579_v28, %v669_v31 }
  0xb1   : > { %v729_v43 = vmax.f32 %v1583_v33, 0.0 }
  0xb2   : > { %v607_v29 = vpop.f32.mrf.mxu2  ;;  %v737_v41 = vmax.f32 %v1587_v35, 0.0 }
  0xb3   : > { %v632_v30 = vpop.f32.mrf.mxu3  ;;  %v673_v39 = vmul.f32 %v1573_v25, %v607_v29 }
  0xb4   : > { %v579_v32 = vpop.f32.mrf.mxu0  ;;  %v683_v37 = vmul.f32 %v1573_v25, %v632_v30 }
  0xb5   : > { %v662_v34 = vmul.f32 %v1573_v25, %v579_v32  ;;  %v599_v36 = vpop.f32.mrf.mxu1  ;;  %v1613_v48 = vadd.f32 %v1579_v28, %v673_v39 }
  0xb6   : > { %v670_v38 = vmul.f32 %v1573_v25, %v599_v36  ;;  %v1609_v46 = vadd.f32 %v1579_v28, %v683_v37 }
  0xb7   : > { %v1593_v40 = vadd.f32 %v1579_v28, %v662_v34  ;;  %v741_v59 = vmax.f32 %v1613_v48, 0.0  ;;  %v1472_v48 = vmov 0.0  }
  0xb8   : > { %v1597_v42 = vadd.f32 %v1579_v28, %v670_v38  ;;  %v751_v57 = vmax.f32 %v1609_v46, 0.0  ;;  %375 = vst [vmem:[#allocation2] sm:$0x1] %v1472_v48  ;;  %v1244_v46 = vld [vmem:[%s1853_s4] sm:$0xff] }
  0xb9   : > { %v730_v44 = vmax.f32 %v1593_v40, 0.0 }
  0xba   : > { %v609_v45 = vpop.f32.mrf.mxu2  ;;  %v738_v47 = vmax.f32 %v1597_v42, 0.0 }
  0xbb   : > { %v1255_v49 = vpack.c.bf16 %v730_v44, %v729_v43  ;;  %v674_v50 = vmul.f32 %v1573_v25, %v609_v45  ;;  %v634_v51 = vpop.f32.mrf.mxu3 }
  0xbc   : > { %v582_v52 = vpop.f32.mrf.mxu0  ;;  %v684_v53 = vmul.f32 %v1573_v25, %v634_v51  ;;  %v1275_v54 = vpack.c.bf16 %v738_v47, %v737_v41 }
  0xbd   : > { %1256 = vst [vmem:[%s1606_s30] sm:$0xff] %v1255_v49   ;;  %v1627_v55 = vadd.f32 %v1579_v28, %v674_v50  ;;  %v602_v56 = vpop.f32.mrf.mxu1  ;;  %v663_v63 = vmul.f32 %v1573_v25, %v582_v52 }
  0xbe   : > { %v1631_v58 = vadd.f32 %v1579_v28, %v684_v53  ;;  %1335 = vst [vmem:[%s1606_s30 + $0x20] sm:$0xff] %v1275_v54   ;;  %v671_v3 = vmul.f32 %v1573_v25, %v602_v56 }
  0xbf   : > { %v742_v60 = vmax.f32 %v1627_v55, 0.0  ;;  %v1650_v5 = vadd.f32 %v1579_v28, %v663_v63 }
  0xc0   : > { %v752_v61 = vmax.f32 %v1631_v58, 0.0  ;;  %v1654_v7 = vadd.f32 %v1579_v28, %v671_v3 }
  0xc1   : > { %v1285_v62 = vpack.c.bf16 %v742_v60, %v741_v59  ;;  %v731_v15 = vmax.f32 %v1650_v5, 0.0 }
  0xc2   : > { %v612_v0 = vpop.f32.mrf.mxu2  ;;  %v1310_v1 = vpack.c.bf16 %v752_v61, %v751_v57  ;;  %v739_v13 = vmax.f32 %v1654_v7, 0.0  ;;  %v1251_v7 = vld [vmem:[%s1853_s4 + $0x38] sm:$0xff] }
  0xc3   : > { %1337 = vst [vmem:[%s1606_s30 + $0x30] sm:$0xff] %v1285_v62   ;;  %v637_v2 = vpop.f32.mrf.mxu3  ;;  %v675_v11 = vmul.f32 %v1573_v25, %v612_v0  ;;  %935 = vmatpush.bf16.msrb.mxu1 %v1251_v7 }
  0xc4   : > { %v584_v4 = vpop.f32.mrf.mxu0  ;;  %1342 = vst [vmem:[%s1606_s30 + $0x58] sm:$0xff] %v1310_v1   ;;  %v685_v9 = vmul.f32 %v1573_v25, %v637_v2 }
  0xc5   : > { %v664_v6 = vmul.f32 %v1573_v25, %v584_v4  ;;  %v604_v8 = vpop.f32.mrf.mxu1  ;;  %v1670_v20 = vadd.f32 %v1579_v28, %v675_v11 }
  0xc6   : > { %v672_v10 = vmul.f32 %v1573_v25, %v604_v8  ;;  %v1666_v18 = vadd.f32 %v1579_v28, %v685_v9 }
  0xc7   : > { %v700_v12 = vadd.f32 %v1579_v28, %v664_v6  ;;  %v743_v32 = vmax.f32 %v1670_v20, 0.0 }
  0xc8   : > { %v1662_v14 = vadd.f32 %v1579_v28, %v672_v10  ;;  %v753_v30 = vmax.f32 %v1666_v18, 0.0 }
  0xc9   : > { %v732_v16 = vmax.f32 %v700_v12, 0.0 }
  0xca   : > { %v614_v17 = vpop.f32.mrf.mxu2  ;;  %v740_v19 = vmax.f32 %v1662_v14, 0.0 }
  0xcb   : > { %v1260_v21 = vpack.c.bf16 %v732_v16, %v731_v15  ;;  %v676_v22 = vmul.f32 %v1573_v25, %v614_v17  ;;  %v639_v23 = vpop.f32.mrf.mxu3  ;;  %v826_v17 = vadd.f32 %v730_v44, %v729_v43 }
  0xcc   : > { %v587_v24 = vpop.f32.mrf.mxu0  ;;  %v686_v26 = vmul.f32 %v1573_v25, %v639_v23  ;;  %v1280_v27 = vpack.c.bf16 %v740_v19, %v739_v13 }
  0xcd   : > { %1332 = vst [vmem:[%s1606_s30 + $0x8] sm:$0xff] %v1260_v21   ;;  %v1680_v29 = vadd.f32 %v1579_v28, %v676_v22  ;;  %v665_v38 = vmul.f32 %v1573_v25, %v587_v24  ;;  %v827_v24 = vadd.f32 %v826_v17, %v731_v15 }
  0xce   : > { %v1684_v31 = vadd.f32 %v1579_v28, %v686_v26  ;;  %1336 = vst [vmem:[%s1606_s30 + $0x28] sm:$0xff] %v1280_v27  }
  0xcf   : > { %v744_v34 = vmax.f32 %v1680_v29, 0.0  ;;  %v701_v51 = vadd.f32 %v1579_v28, %v665_v38  ;;  %v828_v40 = vadd.f32 %v827_v24, %v732_v16  ;;  %v1249_v29 = vld [vmem:[%s1853_s4 + $0x28] sm:$0xff] }
  0xd0   : > { %v754_v36 = vmax.f32 %v1684_v31, 0.0 }
  0xd1   : > { %v1290_v37 = vpack.c.bf16 %v744_v34, %v743_v32  ;;  %v733_v62 = vmax.f32 %v701_v51, 0.0 }
  0xd2   : > { %v617_v39 = vpop.f32.mrf.mxu2  ;;  %v1315_v45 = vpack.c.bf16 %v754_v36, %v753_v30 }
  0xd3   : > { %1338 = vst [vmem:[%s1606_s30 + $0x38] sm:$0xff] %v1290_v37   ;;  %v642_v49 = vpop.f32.mrf.mxu3  ;;  %v677_v54 = vmul.f32 %v1573_v25, %v617_v39  ;;  %v829_v38 = vadd.f32 %v828_v40, %v733_v62 }
  0xd4   : > { %v589_v50 = vpop.f32.mrf.mxu0  ;;  %1343 = vst [vmem:[%s1606_s30 + $0x60] sm:$0xff] %v1315_v45   ;;  %v687_v53 = vmul.f32 %v1573_v25, %v642_v49 }
  0xd5   : > { %v666_v52 = vmul.f32 %v1573_v25, %v589_v50  ;;  %v1710_v2 = vadd.f32 %v1579_v28, %v677_v54 }
  0xd6   : > { %v1707_v1 = vadd.f32 %v1579_v28, %v687_v53 }
  0xd7   : > { %v702_v56 = vadd.f32 %v1579_v28, %v666_v52  ;;  %v745_v21 = vmax.f32 %v1710_v2, 0.0 }
  0xd8   : > { %v755_v11 = vmax.f32 %v1707_v1, 0.0 }
  0xd9   : > { %v734_v63 = vmax.f32 %v702_v56, 0.0 }
  0xda   : > { %v619_v0 = vpop.f32.mrf.mxu2 }
  0xdb   : > { %v1265_v3 = vpack.c.bf16 %v734_v63, %v733_v62  ;;  %v678_v4 = vmul.f32 %v1573_v25, %v619_v0  ;;  %v644_v5 = vpop.f32.mrf.mxu3  ;;  %v830_v49 = vadd.f32 %v829_v38, %v734_v63 }
  0xdc   : > { %v592_v6 = vpop.f32.mrf.mxu0  ;;  %v688_v8 = vmul.f32 %v1573_v25, %v644_v5 }
  0xdd   : > { %1333 = vst [vmem:[%s1606_s30 + $0x10] sm:$0xff] %v1265_v3   ;;  %v1716_v9 = vadd.f32 %v1579_v28, %v678_v4  ;;  %v667_v10 = vmul.f32 %v1573_v25, %v592_v6 }
  0xde   : > { %v1721_v12 = vadd.f32 %v1579_v28, %v688_v8 }
  0xdf   : > { %v746_v22 = vmax.f32 %v1716_v9, 0.0  ;;  %v703_v27 = vadd.f32 %v1579_v28, %v667_v10  ;;  %v1247_v9 = vld [vmem:[%s1853_s4 + $0x18] sm:$0xff] }
  0xe0   : > { %v756_v23 = vmax.f32 %v1721_v12, 0.0 }
  0xe1   : > { %v1295_v26 = vpack.c.bf16 %v746_v22, %v745_v21  ;;  %v735_v15 = vmax.f32 %v703_v27, 0.0 }
  0xe2   : > { %v622_v37 = vpop.f32.mrf.mxu2  ;;  %v1320_v33 = vpack.c.bf16 %v756_v23, %v755_v11 }
  0xe3   : > { %1339 = vst [vmem:[%s1606_s30 + $0x40] sm:$0xff] %v1295_v26   ;;  %v647_v43 = vpop.f32.mrf.mxu3  ;;  %v679_v50 = vmul.f32 %v1573_v25, %v622_v37  ;;  %v831_v52 = vadd.f32 %v830_v49, %v735_v15 }
  0xe4   : > { %v594_v44 = vpop.f32.mrf.mxu0  ;;  %1344 = vst [vmem:[%s1606_s30 + $0x68] sm:$0xff] %v1320_v33   ;;  %v689_v45 = vmul.f32 %v1573_v25, %v647_v43 }
  0xe5   : > { %v668_v39 = vmul.f32 %v1573_v25, %v594_v44  ;;  %v715_v56 = vadd.f32 %v1579_v28, %v679_v50 }
  0xe6   : > { %v1746_v16 = vadd.f32 %v1579_v28, %v689_v45 }
  0xe7   : > { %v704_v51 = vadd.f32 %v1579_v28, %v668_v39  ;;  %v747_v17 = vmax.f32 %v715_v56, 0.0 }
  0xe8   : > { %v757_v8 = vmax.f32 %v1746_v16, 0.0  ;;  %v948_v16 = vld [vmem:[%s1854_s5] sm:$0x1] }
  0xe9   : > { %v736_v53 = vmax.f32 %v704_v51, 0.0 }
  0xea   : > { %v624_v54 = vpop.f32.mrf.mxu2 }
  0xeb   : > { %v1270_v62 = vpack.c.bf16 %v736_v53, %v735_v15  ;;  %v832_v0 = vadd.f32 %v831_v52, %v736_v53  ;;  %v680_v3 = vmul.f32 %v1573_v25, %v624_v54  ;;  %v649_v4 = vpop.f32.mrf.mxu3  ;;  %v1248_v54 = vld [vmem:[%s1853_s4 + $0x20] sm:$0xff] }
  0xec   : > { %v690_v63 = vmul.f32 %v1573_v25, %v649_v4  ;;  %v1245_v4 = vld [vmem:[%s1853_s4 + $0x8] sm:$0xff] }
  0xed   : > { %1334 = vst [vmem:[%s1606_s30 + $0x18] sm:$0xff] %v1270_v62   ;;  %v833_v5 = vadd.f32 %v832_v0, %v737_v41  ;;  %v716_v6 = vadd.f32 %v1579_v28, %v680_v3  ;;  %v1246_v0 = vld [vmem:[%s1853_s4 + $0x10] sm:$0xff] }
  0xee   : > { %v1757_v10 = vadd.f32 %v1579_v28, %v690_v63 }
  0xef   : > { %v834_v24 = vadd.f32 %v833_v5, %v738_v47  ;;  %v748_v26 = vmax.f32 %v716_v6, 0.0 }
  0xf0   : > { %v758_v27 = vmax.f32 %v1757_v10, 0.0 }
  0xf1   : > { %v835_v37 = vadd.f32 %v834_v24, %v739_v13  ;;  %v1300_v35 = vpack.c.bf16 %v748_v26, %v747_v17 }
  0xf2   : > { %v627_v33 = vpop.f32.mrf.mxu2  ;;  %v1325_v41 = vpack.c.bf16 %v758_v27, %v757_v8 }
  0xf3   : > { %v836_v40 = vadd.f32 %v835_v37, %v740_v19  ;;  %1340 = vst [vmem:[%s1606_s30 + $0x48] sm:$0xff] %v1300_v35   ;;  %v652_v43 = vpop.f32.mrf.mxu3  ;;  %v681_v44 = vmul.f32 %v1573_v25, %v627_v33 }
  0xf4   : > { %1345 = vst [vmem:[%s1606_s30 + $0x70] sm:$0xff] %v1325_v41   ;;  %v691_v47 = vmul.f32 %v1573_v25, %v652_v43 }
  0xf5   : > { %v837_v42 = vadd.f32 %v836_v40, %v741_v59  ;;  %v1250_v59 = vld [vmem:[%s1853_s4 + $0x30] sm:$0xff]  ;;  %v717_v55 = vadd.f32 %v1579_v28, %v681_v44 }
  0xf6   : > { %v727_v38 = vadd.f32 %v1579_v28, %v691_v47  ;;  %936 = vmatpush.bf16.msrb.mxu1 %v1250_v59 }
  0xf7   : > { %v838_v13 = vadd.f32 %v837_v42, %v742_v60  ;;  %v749_v51 = vmax.f32 %v717_v55, 0.0 }
  0xf8   : > { %v759_v49 = vmax.f32 %v727_v38, 0.0 }
  0xf9   : > { %v839_v14 = vadd.f32 %v838_v13, %v743_v32 }
  0xfa   : > { %v629_v19 = vpop.f32.mrf.mxu2  ;;  %937 = vmatpush.bf16.msrb.mxu1 %v1249_v29 }
  0xfb   : > { %v840_v15 = vadd.f32 %v839_v14, %v744_v34  ;;  %v682_v60 = vmul.f32 %v1573_v25, %v629_v19  ;;  %v654_v39 = vpop.f32.mrf.mxu3 }
  0xfc   : > { %v692_v20 = vmul.f32 %v1573_v25, %v654_v39 }
  0xfd   : > { %v841_v32 = vadd.f32 %v840_v15, %v745_v21  ;;  %v718_v45 = vadd.f32 %v1579_v28, %v682_v60 }
  0xfe   : > { %v728_v50 = vadd.f32 %v1579_v28, %v692_v20  ;;  %938 = vmatpush.bf16.msrb.mxu1 %v1248_v54 }
  0xff   : > { %v842_v34 = vadd.f32 %v841_v32, %v746_v22  ;;  %v750_v25 = vmax.f32 %v718_v45, 0.0 }
 0x100   : > { %v760_v52 = vmax.f32 %v728_v50, 0.0 }
 0x101   : > { %v843_v2 = vadd.f32 %v842_v34, %v747_v17  ;;  %v1305_v53 = vpack.c.bf16 %v750_v25, %v749_v51 }
 0x102   : > { %v1330_v21 = vpack.c.bf16 %v760_v52, %v759_v49  ;;  %939 = vmatpush.bf16.msrb.mxu1 %v1247_v9 }
 0x103   : > { %v844_v56 = vadd.f32 %v843_v2, %v748_v26  ;;  %1341 = vst [vmem:[%s1606_s30 + $0x50] sm:$0xff] %v1305_v53   ;;  %v825_v26 = vld [vmem:[#allocation2] sm:$0x1] }
 0x104   : > { %1346 = vst [vmem:[%s1606_s30 + $0x78] sm:$0xff] %v1330_v21  }
 0x105   : > { %v845_v28 = vadd.f32 %v844_v56, %v749_v51 }
 0x106   : > { %940 = vmatpush.bf16.msrb.mxu1 %v1246_v0 }
 0x107   : > { %v846_v22 = vadd.f32 %v845_v28, %v750_v25 }
 0x109   : > { %v847_v62 = vadd.f32 %v846_v22, %v751_v57 }
 0x10a   : > { %941 = vmatpush.bf16.msrb.mxu1 %v1245_v4 }
 0x10b   : > { %v848_v3 = vadd.f32 %v847_v62, %v752_v61 }
 0x10d   : > { %v849_v63 = vadd.f32 %v848_v3, %v753_v30 }
 0x10e   : > { %942 = vmatpush.bf16.msrb.mxu1 %v1244_v46 }
 0x10f   : > { %v850_v5 = vadd.f32 %v849_v63, %v754_v36 }
 0x111   : > { %v851_v57 = vadd.f32 %v850_v5, %v755_v11 }
 0x113   : > { %v852_v58 = vadd.f32 %v851_v57, %v756_v23 }
 0x115   : > { %v853_v61 = vadd.f32 %v852_v58, %v757_v8 }
 0x117   : > { %v854_v18 = vadd.f32 %v853_v61, %v758_v27  ;;  %v950_v27 = vld [vmem:[%s1855_s6] sm:$0x1] }
 0x119   : > { %v855_v30 = vadd.f32 %v854_v18, %v759_v49 }
 0x11b   : > { %v856_v6 = vadd.f32 %v855_v30, %v760_v52 }
 0x11d   : > { %v857_v31 = vrot.slane %v856_v6, 4 }
 0x11f   : > { %v858_v36 = vadd.f32 %v857_v31, %v856_v6 }
 0x121   : > { %v859_v10 = vrot.slane %v858_v36, 2 }
 0x123   : > { %v860_v17 = vadd.f32 %v859_v10, %v858_v36 }
 0x125   : > { %v861_v24 = vrot.slane %v860_v17, 1 }
 0x127   : > { %v862_v37 = vadd.f32 %v861_v24, %v860_v17 }
 0x129   : > { %v863_v1 = vadd.f32 %v862_v37, %v825_v26 }
 0x12b   : > { %864 = vst [vmem:[#allocation2] sm:$0x1] %v863_v1 }
 0x132   : > { %v868_v11 = vld [vmem:[#allocation2] sm:$0x1] }
 0x133   : > { %v869_v12 = vmul.f32 0.00390625, %v868_v11 }
 0x135   : > { %v870_v23 = vpack.c.bf16 %v869_v12, %v869_v12 }
 0x137   : > { %943 = vmatmul.bf16.vlgmr.msrb.gmra.mxu1 %v870_v23 }
 0x1b4   : > { %v944_v8 = vpop.f32.mrf.mxu1 }
 0x1b5   : > { %v949_v35 = vmul.f32 %v948_v16, %v944_v8 }
 0x1b7   : > { %v951_v33 = vadd.f32 %v950_v27, %v949_v35 }
 0x1b9   : > { %952 = vst [vmem:[%s370_s14] sm:$0x1] %v951_v33 }
 0x1bc   : > { %v946_v41 = vpop.f32.mrf.mxu1 }
 0x1bd PF: > { %s20_s29 = sadd.s32 1, %s1467_s29   ;;  %s1858_s27 = smov %s1463_s28 }
 0x1be   : > { %p17_p8 = scmp.ge.s32.totalorder %s20_s29, 4   ;;  %s1859_s28 = smov %s1861_s9 }
 0x1c0   :  { %19 = sbr.rel (!%p17_p8) target bundleno = 2 (0x2), region = 103 }
 0x1c5   :  { %995 = vsyncpa [#allocation4], 1 }
 0x1c6   :  { %997 = vsyncpa [#allocation4 + $0x1], 1 }

// kernel: run.11
= control target key start
LH: loop header
LB: loop body
LE: loop exit
PB: predicated region body
PF: predicated region fallthrough
CT: control target
= control target key end

     0   :  { %s997_s27 = smov 0   ;;  %s999_s28 = smov 0   ;;  %s1111_s0 = inlined_call_operand.vmem [shape: bf16[2,64,128], index: 0, kind: input, shape index: {}]   ;;  %s1112_s1 = inlined_call_operand.vmem [shape: bf16[128,128], index: 1, kind: input, shape index: {}]   ;;  %s1113_s2 = inlined_call_operand.vmem [shape: f32[1,128], index: 2, kind: input, shape index: {}]   ;;  %s1114_s3 = inlined_call_operand.vmem [shape: f32[1,128], index: 3, kind: input, shape index: {}]   ;;  %s1115_s4 = inlined_call_operand.vmem [shape: bf16[128,128], index: 4, kind: input, shape index: {}]   ;;  %s1116_s5 = inlined_call_operand.vmem [shape: f32[1,128], index: 5, kind: input, shape index: {}]   ;;  %s1117_s6 = inlined_call_operand.vmem [shape: f32[1,128], index: 6, kind: input, shape index: {}]   ;;  %s1118_s7 = inlined_call_operand.vmem [shape: bf16[2,64,128], index: 7, kind: output, shape index: {0}]   ;;  %s1119_s8 = inlined_call_operand.vmem [shape: f32[2,1,128], index: 8, kind: output, shape index: {1}]  }
   0x1   :  { %s1001_s29 = smov 0  }
   0x2 LB: > { %s31_s30 = sadd.s32 1, %s945_s28  ;;  %p752_p0 = scmp.ge.s32.totalorder %s949_s29, 1  ;;  %s949_s29 = sphi %s1001_s29, %s19_s29   ;;  %s945_s28 = sphi %s999_s28, %s1121_s28   ;;  %s941_s27 = sphi %s997_s27, %s1120_s27  }
   0x3   : > { %p33_p1 = scmp.ge.s32.totalorder %s31_s30, 2  ;;  %p286_p2 = scmp.lt.s32.totalorder %s949_s29, 3 }
   0x5   : > { %s1123_s30 = smov (%p33_p1, %s31_s30), 0  ;;  %p287_p3 = pnand %p752_p0, %p286_p2 }
   0x6   : > { %p332_p4 = scmp.lt.s32.totalorder (!%p287_p3), %s941_s27, 1 }
   0x7   : > { %290 = sbr.rel (%p287_p3) target bundleno = 368 (0x170), region = 48 }
   0xc   : > { %v852_v0 = vld [vmem:[%s1112_s1 + $0x38] sm:$0xff]  ;;  %v851_v1 = vld [vmem:[%s1112_s1 + $0x30] sm:$0xff]  ;;  %v850_v2 = vld [vmem:[%s1112_s1 + $0x28] sm:$0xff]  ;;  %s1125_s27 = smov (!%p332_p4, %s941_s27), 1  ;;  %v951_v12 = vmov 0.0  }
   0xd   : > { %884 = vmatpush.bf16.msra.mxu2 %v852_v0  ;;  %885 = vmatpush.bf16.msra.mxu3 %v852_v0  ;;  %v849_v3 = vld [vmem:[%s1112_s1 + $0x20] sm:$0xff]  ;;  %v848_v4 = vld [vmem:[%s1112_s1 + $0x18] sm:$0xff]  ;;  %v847_v5 = vld [vmem:[%s1112_s1 + $0x10] sm:$0xff]  ;;  %s839_s23 = sshll.u32 %s1125_s27, 5  ;;  %358 = vst [vmem:[#allocation2] sm:$0x1] %v951_v12  ;;  %s353_s22 = scalar_lea.vmem %s1119_s8, %s1125_s27 }
   0xe   : > { %455 = vmatpush.bf16.msra.mxu0 %v852_v0  ;;  %v846_v6 = vld [vmem:[%s1112_s1 + $0x8] sm:$0xff]  ;;  %v845_v7 = vld [vmem:[%s1112_s1] sm:$0xff]  ;;  %s339_s10 = scalar_lea.vmem %s1111_s0, %s839_s23  ;;  %v860_v14 = vld [vmem:[%s1115_s4 + $0x38] sm:$0xff]  ;;  %s1074_s26 = scalar_lea.vmem %s1118_s7, %s839_s23 }
   0xf   : > { %v842_v8 = vld [vmem:[%s339_s10 + $0x8] sm:$0xff]  ;;  %v843_v9 = vld [vmem:[%s339_s10 + $0x10] sm:$0xff]  ;;  %v841_v10 = vld [vmem:[%s339_s10] sm:$0xff]  ;;  %618 = vmatpush.bf16.msra.mxu1 %v860_v14 }
  0x10   : > { %v844_v11 = vld [vmem:[%s339_s10 + $0x18] sm:$0xff]  ;;  %v925_v15 = vld [vmem:[%s1113_s2] ss:$0 sm:$0xff]  ;;  %v859_v17 = vld [vmem:[%s1115_s4 + $0x30] sm:$0xff] }
  0x11   : > { %886 = vmatpush.bf16.msra.mxu2 %v851_v1  ;;  %887 = vmatpush.bf16.msra.mxu3 %v851_v1  ;;  %v926_v18 = vld [vmem:[%s1114_s3] ss:$0 sm:$0xff]  ;;  %v858_v24 = vld [vmem:[%s1115_s4 + $0x28] sm:$0xff]  ;;  %v856_v42 = vld [vmem:[%s1115_s4 + $0x18] sm:$0xff] }
  0x12   : > { %456 = vmatpush.bf16.msra.mxu0 %v851_v1  ;;  %v857_v30 = vld [vmem:[%s1115_s4 + $0x20] sm:$0xff]  ;;  %v855_v49 = vld [vmem:[%s1115_s4 + $0x10] sm:$0xff]  ;;  %v854_v52 = vld [vmem:[%s1115_s4 + $0x8] sm:$0xff] }
  0x13   : > { %619 = vmatpush.bf16.msra.mxu1 %v859_v17  ;;  %v853_v55 = vld [vmem:[%s1115_s4] sm:$0xff] }
  0x15   : > { %888 = vmatpush.bf16.msra.mxu2 %v850_v2  ;;  %889 = vmatpush.bf16.msra.mxu3 %v850_v2 }
  0x16   : > { %457 = vmatpush.bf16.msra.mxu0 %v850_v2 }
  0x17   : > { %620 = vmatpush.bf16.msra.mxu1 %v858_v24 }
  0x19   : > { %890 = vmatpush.bf16.msra.mxu2 %v849_v3  ;;  %891 = vmatpush.bf16.msra.mxu3 %v849_v3 }
  0x1a   : > { %458 = vmatpush.bf16.msra.mxu0 %v849_v3 }
  0x1b   : > { %621 = vmatpush.bf16.msra.mxu1 %v857_v30 }
  0x1d   : > { %892 = vmatpush.bf16.msra.mxu2 %v848_v4  ;;  %893 = vmatpush.bf16.msra.mxu3 %v848_v4 }
  0x1e   : > { %459 = vmatpush.bf16.msra.mxu0 %v848_v4 }
  0x1f   : > { %622 = vmatpush.bf16.msra.mxu1 %v856_v42 }
  0x21   : > { %894 = vmatpush.bf16.msra.mxu2 %v847_v5  ;;  %895 = vmatpush.bf16.msra.mxu3 %v847_v5 }
  0x22   : > { %460 = vmatpush.bf16.msra.mxu0 %v847_v5 }
  0x23   : > { %623 = vmatpush.bf16.msra.mxu1 %v855_v49 }
  0x25   : > { %896 = vmatpush.bf16.msra.mxu2 %v846_v6  ;;  %897 = vmatpush.bf16.msra.mxu3 %v846_v6 }
  0x26   : > { %461 = vmatpush.bf16.msra.mxu0 %v846_v6 }
  0x27   : > { %624 = vmatpush.bf16.msra.mxu1 %v854_v52 }
  0x29   : > { %898 = vmatpush.bf16.msra.mxu2 %v845_v7  ;;  %899 = vmatpush.bf16.msra.mxu3 %v845_v7 }
  0x2a   : > { %462 = vmatpush.bf16.msra.mxu0 %v845_v7  ;;  %v532_v7 = vld [vmem:[#allocation2] sm:$0x1] }
  0x2b   : > { %625 = vmatpush.bf16.msra.mxu1 %v853_v55 }
  0x2c   : > { %468 = vmatmul.bf16.vlgmr.msra.gmra.mxu2 %v842_v8  ;;  %473 = vmatmul.bf16.vlgmr.msra.gmra.mxu3 %v843_v9 }
  0x2d   : > { %463 = vmatmul.bf16.vlgmr.msra.gmra.mxu0 %v841_v10 }
  0x3c   : > { %478 = vmatmul.bf16.gmra.mxu3 %v844_v11 }
  0xaa   : > { %v464_v13 = vpop.f32.mrf.mxu0 }
  0xab   : > { %v488_v16 = vmul.f32 %v925_v15, %v464_v13  ;;  %v631_v13 = vld [vmem:[%s1116_s5] sm:$0x1] }
  0xad   : > { %v500_v21 = vadd.f32 %v926_v18, %v488_v16 }
  0xaf   : > { %v469_v19 = vpop.f32.mrf.mxu2  ;;  %v474_v20 = vpop.f32.mrf.mxu3  ;;  %v508_v27 = vmax.f32 %v500_v21, 0.0 }
  0xb0   : > { %v490_v22 = vmul.f32 %v925_v15, %v469_v19  ;;  %v492_v26 = vmul.f32 %v925_v15, %v474_v20 }
  0xb2   : > { %v466_v23 = vpop.f32.mrf.mxu0  ;;  %v502_v29 = vadd.f32 %v926_v18, %v490_v22  ;;  %v504_v34 = vadd.f32 %v926_v18, %v492_v26 }
  0xb3   : > { %v489_v25 = vmul.f32 %v925_v15, %v466_v23 }
  0xb4   : > { %v510_v38 = vmax.f32 %v502_v29, 0.0  ;;  %v512_v43 = vmax.f32 %v504_v34, 0.0 }
  0xb5   : > { %v501_v28 = vadd.f32 %v926_v18, %v489_v25 }
  0xb7   : > { %v509_v31 = vmax.f32 %v501_v28, 0.0  ;;  %v471_v32 = vpop.f32.mrf.mxu2  ;;  %v476_v33 = vpop.f32.mrf.mxu3 }
  0xb8   : > { %v491_v35 = vmul.f32 %v925_v15, %v471_v32  ;;  %v493_v36 = vmul.f32 %v925_v15, %v476_v33 }
  0xb9   : > { %v864_v37 = vpack.c.bf16 %v509_v31, %v508_v27  ;;  %v533_v39 = vadd.f32 %v509_v31, %v508_v27 }
  0xba   : > { %v503_v40 = vadd.f32 %v926_v18, %v491_v35  ;;  %v505_v41 = vadd.f32 %v926_v18, %v493_v36 }
  0xbb   : > { %865 = vst [vmem:[%s1074_s26] sm:$0xff] %v864_v37   ;;  %v534_v47 = vadd.f32 %v533_v39, %v510_v38 }
  0xbc   : > { %v511_v44 = vmax.f32 %v503_v40, 0.0  ;;  %v513_v45 = vmax.f32 %v505_v41, 0.0 }
  0xbe   : > { %v869_v46 = vpack.c.bf16 %v511_v44, %v510_v38  ;;  %v874_v48 = vpack.c.bf16 %v513_v45, %v512_v43  ;;  %v535_v53 = vadd.f32 %v534_v47, %v511_v44 }
  0xbf   : > { %v479_v50 = vpop.f32.mrf.mxu3 }
  0xc0   : > { %881 = vst [vmem:[%s1074_s26 + $0x8] sm:$0xff] %v869_v46   ;;  %v494_v51 = vmul.f32 %v925_v15, %v479_v50  ;;  %v536_v56 = vadd.f32 %v535_v53, %v512_v43 }
  0xc1   : > { %882 = vst [vmem:[%s1074_s26 + $0x10] sm:$0xff] %v874_v48  }
  0xc2   : > { %v506_v54 = vadd.f32 %v926_v18, %v494_v51  ;;  %v537_v60 = vadd.f32 %v536_v56, %v513_v45 }
  0xc4   : > { %v514_v58 = vmax.f32 %v506_v54, 0.0 }
  0xc6   : > { %v538_v62 = vadd.f32 %v537_v60, %v514_v58 }
  0xc7   : > { %v481_v57 = vpop.f32.mrf.mxu3 }
  0xc8   : > { %v495_v59 = vmul.f32 %v925_v15, %v481_v57  ;;  %v633_v15 = vld [vmem:[%s1117_s6] sm:$0x1] }
  0xca   : > { %v507_v61 = vadd.f32 %v926_v18, %v495_v59 }
  0xcc   : > { %v515_v63 = vmax.f32 %v507_v61, 0.0 }
  0xce   : > { %v879_v0 = vpack.c.bf16 %v515_v63, %v514_v58  ;;  %v539_v1 = vadd.f32 %v538_v62, %v515_v63 }
  0xd0   : > { %883 = vst [vmem:[%s1074_s26 + $0x18] sm:$0xff] %v879_v0   ;;  %v540_v2 = vrot.slane %v539_v1, 4 }
  0xd2   : > { %v541_v3 = vadd.f32 %v540_v2, %v539_v1 }
  0xd4   : > { %v542_v4 = vrot.slane %v541_v3, 2 }
  0xd6   : > { %v543_v5 = vadd.f32 %v542_v4, %v541_v3 }
  0xd8   : > { %v544_v6 = vrot.slane %v543_v5, 1 }
  0xda   : > { %v545_v8 = vadd.f32 %v544_v6, %v543_v5 }
  0xdc   : > { %v546_v9 = vadd.f32 %v545_v8, %v532_v7 }
  0xde   : > { %547 = vst [vmem:[#allocation2] sm:$0x1] %v546_v9 }
  0xe5   : > { %v551_v10 = vld [vmem:[#allocation2] sm:$0x1] }
  0xe6   : > { %v552_v11 = vmul.f32 0.015625, %v551_v10 }
  0xe8   : > { %v553_v12 = vpack.c.bf16 %v552_v11, %v552_v11 }
  0xea   : > { %626 = vmatmul.bf16.vlgmr.msra.gmra.mxu1 %v553_v12 }
 0x167   : > { %v627_v14 = vpop.f32.mrf.mxu1 }
 0x168   : > { %v632_v16 = vmul.f32 %v631_v13, %v627_v14 }
 0x16a   : > { %v634_v17 = vadd.f32 %v633_v15, %v632_v16 }
 0x16c   : > { %635 = vst [vmem:[%s353_s22] sm:$0x1] %v634_v17 }
 0x16f   : > { %v629_v18 = vpop.f32.mrf.mxu1 }
 0x170 PF: > { %s19_s29 = sadd.s32 1, %s949_s29   ;;  %s1120_s27 = smov %s945_s28 }
 0x171   : > { %p16_p5 = scmp.ge.s32.totalorder %s19_s29, 4   ;;  %s1121_s28 = smov %s1123_s30 }
 0x173   :  { %18 = sbr.rel (!%p16_p5) target bundleno = 2 (0x2), region = 98 }

// kernel: run.8
= control target key start
LH: loop header
LB: loop body
LE: loop exit
PB: predicated region body
PF: predicated region fallthrough
CT: control target
= control target key end

     0   :  { %10 = vsyncpa [#allocation5], 0  ;;  %s3775_s18 = smov 0   ;;  %s4668_s0 = inlined_call_operand.vmem [shape: bf16[2,8,2,8,256], index: 0, kind: input, shape index: {}]   ;;  %s4669_s1 = inlined_call_operand.vmem [shape: bf16[1152,128], index: 1, kind: input, shape index: {}]   ;;  %s4670_s2 = inlined_call_operand.hbm [shape: f32[1,128], index: 2, kind: input, shape index: {}]   ;;  %s4671_s3 = inlined_call_operand.vmem [shape: f32[1,128], index: 3, kind: input, shape index: {}]   ;;  %s4672_s4 = inlined_call_operand.vmem [shape: f32[2,1,128], index: 4, kind: input, shape index: {}]   ;;  %s4673_s5 = inlined_call_operand.vmem [shape: bf16[2,64,128], index: 5, kind: output, shape index: {}]  }
   0x1 LB: > { %s3781_s19 = sadd.s32 4294967295, %s3741_s18   ;;  %p3070_p0 = scmp.ge.s32.totalorder %s3741_s18, 1  ;;  %s3741_s18 = sphi %s3775_s18, %s16_s18  }
   0x2   : > { %p162_p1 = scmp.lt.s32.totalorder %s3741_s18, 3  ;;  %s177_s22 = sshll.u32 %s4670_s2, 4  ;;  %s178_s22 = int_to_ptr.hbm [resolvable:$true] %s177_s22 }
   0x3   : > { %p3686_p3 = scmp.eq.s32.totalorder %s3781_s19, 0  ;;  %s3743_s23 = smov [#allocation4]  }
   0x4   : > { %p163_p2 = pnand %p3070_p0, %p162_p1  ;;  %s179_s24 = sshll.u32 %s3743_s23, 4  ;;  %s180_s24 = int_to_ptr.vmem [resolvable:$true] %s179_s24 }
   0x6   : > { %p3682_p4 = pneg %p163_p2  ;;  %209 = sbr.rel (%p163_p2) target bundleno = 477 (0x1dd), region = 40 }
   0x8   : > { %p3683_p5 = pnand %p3686_p3, %p3682_p4 }
   0xa   : > { %3685 = dma.hbm_to_vmem [thread:$0]  (!%p3683_p5), %s178_s22, 16, %s180_s24, [#allocation5]  }
   0xb   : > { %3736 = dma.done.wait (%p3686_p3), [#allocation5], 16  }
   0xc   : > { %3738 = vsyncadd (%p3686_p3), [#allocation5], 4294967280  ;;  %v3744_v0 = vmov 0   ;;  %vm256_vm0 = vcmask 1040384   ;;  %vm257_vm1 = vsmask.f32 256 }
   0xd   : > { %262 = vst [vmem:[#allocation2 + $0x8] sm:$0xf] %v3744_v0  ;;  %vm3793_vm2 = vmand %vm256_vm0, %vm257_vm1  ;;  %v259_v2 = vld [vmem:[#allocation2 + $0x4] sm:$0x1]  ;;  %v295_v3 = vld [vmem:[#allocation2 + $0x4c] sm:$0x1] }
   0xe   : > { %266 = vst [vmem:[#allocation2 + $0x10] sm:$0xf] %v3744_v0  ;;  %v260_v4 = vsel %vm3793_vm2, 0, %v259_v2  ;;  %v296_v5 = vsel %vm3793_vm2, 0, %v295_v3  ;;  %v3574_v6 = vld [vmem:[%s4669_s1 + $0x38] sm:$0xff]  ;;  %v3573_v8 = vld [vmem:[%s4669_s1 + $0x30] sm:$0xff] }
   0xf   : > { %270 = vst [vmem:[#allocation2 + $0x18] sm:$0xf] %v3744_v0  ;;  %v3590_v7 = vld [vmem:[%s4669_s1 + $0xb8] sm:$0xff]  ;;  %3662 = vmatpush.bf16.msra.mxu1 %v3574_v6  ;;  %2671 = vmatpush.bf16.msra.mxu0 %v3574_v6  ;;  %p241_p6 = scmp.lt.s32.totalorder %s3781_s19, 1  ;;  %v3589_v9 = vld [vmem:[%s4669_s1 + $0xb0] sm:$0xff]  ;;  %v3572_v12 = vld [vmem:[%s4669_s1 + $0x28] sm:$0xff] }
  0x10   : > { %274 = vst [vmem:[#allocation2 + $0x20] sm:$0xf] %v3744_v0  ;;  %2729 = vmatpush.bf16.msra.mxu2 %v3590_v7  ;;  %v3598_v10 = vld [vmem:[%s4669_s1 + $0xf8] sm:$0xff]  ;;  %v3597_v11 = vld [vmem:[%s4669_s1 + $0xf0] sm:$0xff]  ;;  %v3588_v13 = vld [vmem:[%s4669_s1 + $0xa8] sm:$0xff]  ;;  %vm491_vm4 = vcmask 1043456  }
  0x11   : > { %278 = vst [vmem:[#allocation2 + $0x28] sm:$0xf] %v3744_v0  ;;  %2758 = vmatpush.bf16.msra.mxu3 %v3598_v10  ;;  %s4681_s19 = smov (!%p241_p6, %s3781_s19), 1  ;;  %v3596_v14 = vld [vmem:[%s4669_s1 + $0xe8] sm:$0xff]  ;;  %v3571_v15 = vld [vmem:[%s4669_s1 + $0x20] sm:$0xff]  ;;  %v3570_v17 = vld [vmem:[%s4669_s1 + $0x18] sm:$0xff] }
  0x12   : > { %282 = vst [vmem:[#allocation2 + $0x30] sm:$0xf] %v3744_v0  ;;  %s3529_s22 = sshll.u32 %s4681_s19, 7  ;;  %v3587_v16 = vld [vmem:[%s4669_s1 + $0xa0] sm:$0xff]  ;;  %v3586_v18 = vld [vmem:[%s4669_s1 + $0x98] sm:$0xff]  ;;  %v3569_v22 = vld [vmem:[%s4669_s1 + $0x10] sm:$0xff]  ;;  %s248_s16 = scalar_lea.vmem %s4672_s4, %s4681_s19 }
  0x13   : > { %261 = vst [vmem:[#allocation2 + $0x4] sm:$0x1] %v260_v4  ;;  %3663 = vmatpush.bf16.msra.mxu1 %v3573_v8  ;;  %2672 = vmatpush.bf16.msra.mxu0 %v3573_v8  ;;  %s3855_s27 = scalar_lea.vmem %s4668_s0, %s3529_s22  ;;  %vm492_vm3 = vsmask.f32 7938  ;;  %v3585_v23 = vld [vmem:[%s4669_s1 + $0x90] sm:$0xff]  ;;  %v3568_v26 = vld [vmem:[%s4669_s1 + $0x8] sm:$0xff] }
  0x14   : > { %297 = vst [vmem:[#allocation2 + $0x4c] sm:$0x1] %v296_v5  ;;  %2730 = vmatpush.bf16.msra.mxu2 %v3589_v9  ;;  %v3867_v19 = vld [vmem:[%s3855_s27 + $0x3c] sm:$0xf]  ;;  %v3087_v20 = vld [vmem:[%s3855_s27 + $0xc] sm:$0xf]  ;;  %vm3953_vm5 = vmand %vm491_vm4, %vm492_vm3 }
  0x15   : > { %286 = vst [vmem:[#allocation2 + $0x38] sm:$0xf] %v3744_v0  ;;  %2759 = vmatpush.bf16.msra.mxu3 %v3597_v11  ;;  %v3872_v21 = vld [vmem:[%s3855_s27 + $0x4c] sm:$0xf]  ;;  %v850_v24 = vshrl.u32 %v3867_v19, 16  ;;  %v826_v25 = vshrl.u32 %v3087_v20, 16 }
  0x16   : > { %290 = vst [vmem:[#allocation2 + $0x40] sm:$0xf] %v3744_v0  ;;  %v853_v27 = vshll.u32 %v3867_v19, 16  ;;  %v858_v28 = vshrl.u32 %v3872_v21, 16  ;;  %v3889_v29 = vld [vmem:[#allocation2 + $0xdc] sm:$0x1] }
  0x17   : > { %298 = vst [vmem:[#allocation2 + $0x50] sm:$0xf] %v3744_v0  ;;  %3664 = vmatpush.bf16.msra.mxu1 %v3572_v12  ;;  %2673 = vmatpush.bf16.msra.mxu0 %v3572_v12  ;;  %v3892_v30 = vld [vmem:[#allocation2 + $0xe4] sm:$0x1]  ;;  %v3895_v31 = vld [vmem:[%s3855_s27 + $0x5c] sm:$0xf] }
  0x18   : > { %302 = vst [vmem:[#allocation2 + $0x58] sm:$0xf] %v3744_v0  ;;  %2731 = vmatpush.bf16.msra.mxu2 %v3588_v13  ;;  %v3595_v32 = vld [vmem:[%s4669_s1 + $0xe0] sm:$0xff]  ;;  %v829_v33 = vshll.u32 %v3087_v20, 16  ;;  %v3902_v34 = vld [vmem:[%s3855_s27 + $0x1c] sm:$0xf] }
  0x19   : > { %306 = vst [vmem:[#allocation2 + $0x60] sm:$0xf] %v3744_v0  ;;  %2760 = vmatpush.bf16.msra.mxu3 %v3596_v14  ;;  %v3584_v35 = vld [vmem:[%s4669_s1 + $0x88] sm:$0xff]  ;;  %v3908_v36 = vrot.slane %v826_v25, 7  ;;  %v3567_v38 = vld [vmem:[%s4669_s1] sm:$0xff]  ;;  %v3594_v39 = vld [vmem:[%s4669_s1 + $0xd8] sm:$0xff] }
  0x1a   : > { %310 = vst [vmem:[#allocation2 + $0x68] sm:$0xf] %v3744_v0  ;;  %v3911_v37 = vld [vmem:[%s3855_s27 + $0x6c] sm:$0xf]  ;;  %v866_v40 = vshrl.u32 %v3895_v31, 16  ;;  %v3925_v42 = vrot.slane %v850_v24, 7 }
  0x1b   : > { %314 = vst [vmem:[#allocation2 + $0x70] sm:$0xf] %v3744_v0  ;;  %3665 = vmatpush.bf16.msra.mxu1 %v3571_v15  ;;  %2674 = vmatpush.bf16.msra.mxu0 %v3571_v15  ;;  %v3922_v41 = vld [vmem:[%s3855_s27 + $0x2c] sm:$0xf]  ;;  %v3927_v43 = vrot.slane %v858_v28, 7  ;;  %v861_v44 = vshll.u32 %v3872_v21, 16  ;;  %v831_v52 = vor.u32 %v829_v33, %v3908_v36 }
  0x1c   : > { %318 = vst [vmem:[#allocation2 + $0x78] sm:$0xf] %v3744_v0  ;;  %2732 = vmatpush.bf16.msra.mxu2 %v3587_v16  ;;  %v368_v45 = vsel %vm3793_vm2, 0, %v3889_v29  ;;  %v832_v46 = vrot.slane %v3908_v36, 4  ;;  %v372_v47 = vsel %vm3793_vm2, 0, %v3892_v30  ;;  %v874_v48 = vshrl.u32 %v3911_v37, 16 }
  0x1d   : > { %322 = vst [vmem:[#allocation2 + $0x80] sm:$0xf] %v3744_v0  ;;  %2761 = vmatpush.bf16.msra.mxu3 %v3595_v32  ;;  %v834_v49 = vshrl.u32 %v3902_v34, 16  ;;  %v3582_v50 = vld [vmem:[%s4669_s1 + $0x78] sm:$0xff]  ;;  %v3583_v51 = vld [vmem:[%s4669_s1 + $0x80] sm:$0xff]  ;;  %v837_v53 = vshll.u32 %v3902_v34, 16  ;;  %v855_v63 = vor.u32 %v853_v27, %v3925_v42  ;;  %v863_v5 = vor.u32 %v861_v44, %v3927_v43 }
  0x1e   : > { %326 = vst [vmem:[#allocation2 + $0x88] sm:$0xf] %v3744_v0  ;;  %v842_v54 = vshrl.u32 %v3922_v41, 16  ;;  %v3606_v56 = vld [vmem:[%s4669_s1 + $0x138] sm:$0xff]  ;;  %v3960_v57 = vrot.slane %v866_v40, 7  ;;  %v869_v58 = vshll.u32 %v3895_v31, 16 }
  0x1f   : > { %330 = vst [vmem:[#allocation2 + $0x90] sm:$0xf] %v3744_v0  ;;  %3666 = vmatpush.bf16.msra.mxu1 %v3570_v17  ;;  %2675 = vmatpush.bf16.msra.mxu0 %v3570_v17  ;;  %v845_v59 = vshll.u32 %v3922_v41, 16  ;;  %v3581_v60 = vld [vmem:[%s4669_s1 + $0x70] sm:$0xff]  ;;  %v3973_v7 = vrot.slane %v874_v48, 7  ;;  %v877_v8 = vshll.u32 %v3911_v37, 16 }
  0x20   : > { %334 = vst [vmem:[#allocation2 + $0x98] sm:$0xf] %v3744_v0  ;;  %2733 = vmatpush.bf16.msra.mxu2 %v3586_v18  ;;  %v871_v11 = vor.u32 %v869_v58, %v3960_v57  ;;  %v3980_v12 = vld [vmem:[#allocation2 + $0xec] sm:$0x1]  ;;  %vm988_vm6 = vsmask.f32 3328 }
  0x21   : > { %338 = vst [vmem:[#allocation2 + $0xa0] sm:$0xf] %v3744_v0  ;;  %2762 = vmatpush.bf16.msra.mxu3 %v3594_v39  ;;  %v3580_v14 = vld [vmem:[%s4669_s1 + $0x68] sm:$0xff]  ;;  %v3987_v17 = vrot.slane %v834_v49, 7  ;;  %v879_v20 = vor.u32 %v877_v8, %v3973_v7  ;;  %vm989_vm7 = vsmask.f32 7440 }
  0x22   : > { %342 = vst [vmem:[#allocation2 + $0xa8] sm:$0xf] %v3744_v0  ;;  %v3593_v24 = vld [vmem:[%s4669_s1 + $0xd0] sm:$0xff]  ;;  %v3579_v27 = vld [vmem:[%s4669_s1 + $0x60] sm:$0xff]  ;;  %v4008_v29 = vrot.slane %v842_v54, 7  ;;  %v376_v30 = vsel %vm3793_vm2, 0, %v3980_v12  ;;  %vm4030_vm8 = vmor %vm988_vm6, %vm989_vm7 }
  0x23   : > { %346 = vst [vmem:[#allocation2 + $0xb0] sm:$0xf] %v3744_v0  ;;  %3667 = vmatpush.bf16.msra.mxu1 %v3569_v22  ;;  %2676 = vmatpush.bf16.msra.mxu0 %v3569_v22  ;;  %v3994_v22 = vld [vmem:[%s3855_s27 + $0x14] sm:$0xf]  ;;  %v840_v28 = vrot.slane %v3987_v17, 4  ;;  %v3592_v31 = vld [vmem:[%s4669_s1 + $0xc8] sm:$0xff]  ;;  %v839_v58 = vor.u32 %v837_v53, %v3987_v17 }
  0x24   : > { %350 = vst [vmem:[#allocation2 + $0xb8] sm:$0xf] %v3744_v0  ;;  %2734 = vmatpush.bf16.msra.mxu2 %v3585_v23  ;;  %v3605_v25 = vld [vmem:[%s4669_s1 + $0x130] sm:$0xff]  ;;  %v3604_v32 = vld [vmem:[%s4669_s1 + $0x128] sm:$0xff]  ;;  %v559_v37 = vshrl.u32 %v3994_v22, 16  ;;  %v3622_v44 = vld [vmem:[%s4669_s1 + $0x1b8] sm:$0xff] }
  0x25   : > { %354 = vst [vmem:[#allocation2 + $0xc0] sm:$0xf] %v3744_v0  ;;  %2763 = vmatpush.bf16.msra.mxu3 %v3593_v24  ;;  %v562_v34 = vshll.u32 %v3994_v22, 16  ;;  %v3600_v17 = vld [vmem:[%s4669_s1 + $0x108] sm:$0xff]  ;;  %s3530_s23 = sshll.u32 %s4681_s19, 5 }
  0x26   : > { %358 = vst [vmem:[#allocation2 + $0xc8] sm:$0xf] %v3744_v0  ;;  %s4635_s26 = scalar_lea.vmem %s4673_s5, %s3530_s23 }
  0x27   : > { %362 = vst [vmem:[#allocation2 + $0xd0] sm:$0xf] %v3744_v0  ;;  %3668 = vmatpush.bf16.msra.mxu1 %v3568_v26  ;;  %2677 = vmatpush.bf16.msra.mxu0 %v3568_v26 }
  0x28   : > { %366 = vst [vmem:[#allocation2 + $0xd8] sm:$0xf] %v3744_v0  ;;  %2735 = vmatpush.bf16.msra.mxu2 %v3584_v35 }
  0x29   : > { %370 = vst [vmem:[#allocation2 + $0xe0] sm:$0xf] %v3744_v0  ;;  %2764 = vmatpush.bf16.msra.mxu3 %v3592_v31  ;;  %v3576_v31 = vld [vmem:[%s4669_s1 + $0x48] sm:$0xff] }
  0x2a   : > { %374 = vst [vmem:[#allocation2 + $0xe8] sm:$0xf] %v3744_v0 }
  0x2b   : > { %378 = vst [vmem:[#allocation2 + $0xf0] sm:$0xf] %v3744_v0  ;;  %3669 = vmatpush.bf16.msra.mxu1 %v3567_v38  ;;  %2678 = vmatpush.bf16.msra.mxu0 %v3567_v38 }
  0x2c   : > { %382 = vst [vmem:[#allocation2 + $0xf8] sm:$0xf] %v3744_v0  ;;  %2736 = vmatpush.bf16.msra.mxu2 %v3583_v51 }
  0x2d   : > { %386 = vst [vmem:[#allocation2 + $0x100] sm:$0xf] %v3744_v0 }
  0x2e   : > { %390 = vst [vmem:[#allocation2 + $0x108] sm:$0xf] %v3744_v0 }
  0x2f   : > { %394 = vst [vmem:[#allocation2 + $0x110] sm:$0xf] %v3744_v0  ;;  %v955_v61 = vld [vmem:[#allocation2 + $0xd8] sm:$0xf]  ;;  %2700 = vmatpush.bf16.msrb.mxu1 %v3582_v50  ;;  %2787 = vmatpush.bf16.msrb.mxu0 %v3606_v56 }
  0x30   : > { %v1119_v62 = vld [vmem:[#allocation2 + $0xd8] sm:$0xf]  ;;  %398 = vst [vmem:[#allocation2 + $0x118] sm:$0xf] %v3744_v0  ;;  %v906_v2 = vld [vmem:[#allocation2 + $0xe0] sm:$0xf]  ;;  %2845 = vmatpush.bf16.msrb.mxu2 %v3622_v44 }
  0x31   : > { %v1136_v3 = vshrl.u32 %v1119_v62, 16  ;;  %v1139_v4 = vshll.u32 %v1119_v62, 16  ;;  %v907_v6 = vsel %vm3953_vm5, %v831_v52, %v906_v2  ;;  %963 = vst [vmem:[#allocation3] sm:$0xf] %v955_v61  ;;  %v3977_v0 = vld [vmem:[%s3855_s27 + $0x4] sm:$0xf] }
  0x32   : > { %908 = vst [vmem:[#allocation2 + $0xe0] sm:$0xf] %v907_v6  ;;  %v551_v18 = vshrl.u32 %v3977_v0, 16  ;;  %v912_v50 = vld [vmem:[#allocation2 + $0xe8] sm:$0xf]  ;;  %v3591_v62 = vld [vmem:[%s4669_s1 + $0xc0] sm:$0xff] }
  0x33   : > { %v1138_v9 = vrot.slane %v1136_v3, 4  ;;  %v1141_v10 = vrot.slane %v1139_v4, 5  ;;  %v924_v13 = vld [vmem:[#allocation2 + $0xf8] sm:$0xf]  ;;  %369 = vst [vmem:[#allocation2 + $0xdc] sm:$0x1] %v368_v45  ;;  %2701 = vmatpush.bf16.msrb.mxu1 %v3581_v60  ;;  %2788 = vmatpush.bf16.msrb.mxu0 %v3605_v25  ;;  %v847_v4 = vor.u32 %v845_v59, %v4008_v29 }
  0x34   : > { %v925_v15 = vsel %vm3953_vm5, %v855_v63, %v924_v13  ;;  %v930_v16 = vld [vmem:[#allocation2 + $0x100] sm:$0xf]  ;;  %373 = vst [vmem:[#allocation2 + $0xe4] sm:$0x1] %v372_v47  ;;  %v4019_v35 = vrot.slane %v551_v18, 7  ;;  %v554_v45 = vshll.u32 %v3977_v0, 16  ;;  %2765 = vmatpush.bf16.msra.mxu3 %v3591_v62 }
  0x35   : > { %926 = vst [vmem:[#allocation2 + $0xf8] sm:$0xf] %v925_v15  ;;  %v931_v19 = vsel %vm3953_vm5, %v863_v5, %v930_v16  ;;  %v936_v21 = vld [vmem:[#allocation2 + $0x108] sm:$0xf]  ;;  %v1142_v23 = vor.u32 %v1141_v10, %v1138_v9  ;;  %v3603_v63 = vld [vmem:[%s4669_s1 + $0x120] sm:$0xff]  ;;  %v4047_v3 = vrot.slane %v559_v37, 7  ;;  %v913_v10 = vsel %vm3953_vm5, %v839_v58, %v912_v50 }
  0x36   : > { %932 = vst [vmem:[#allocation2 + $0x100] sm:$0xf] %v931_v19  ;;  %v937_v26 = vsel %vm3953_vm5, %v871_v11, %v936_v21  ;;  %v942_v33 = vld [vmem:[#allocation2 + $0x110] sm:$0xf]  ;;  %v299_v11 = vld [vmem:[#allocation2 + $0x54] sm:$0x1]  ;;  %v556_v41 = vor.u32 %v554_v45, %v4019_v35 }
  0x37   : > { %938 = vst [vmem:[#allocation2 + $0x108] sm:$0xf] %v937_v26  ;;  %2702 = vmatpush.bf16.msrb.mxu1 %v3580_v14  ;;  %v943_v40 = vsel %vm3953_vm5, %v879_v20, %v942_v33  ;;  %v1143_v48 = vrot.slane %v1142_v23, 4  ;;  %2789 = vmatpush.bf16.msrb.mxu0 %v3604_v32  ;;  %v918_v2 = vld [vmem:[#allocation2 + $0xf0] sm:$0xf]  ;;  %v564_v19 = vor.u32 %v562_v34, %v4047_v3  ;;  %v3602_v20 = vld [vmem:[%s4669_s1 + $0x118] sm:$0xff] }
  0x38   : > { %944 = vst [vmem:[#allocation2 + $0x110] sm:$0xf] %v943_v40  ;;  %v3097_v5 = vld [vmem:[#allocation3] sm:$0xf]  ;;  %v631_v13 = vld [vmem:[#allocation2 + $0x50] sm:$0xf]  ;;  %v919_v18 = vsel %vm3953_vm5, %v847_v4, %v918_v2 }
  0x39   : > { %v956_v38 = vld [vmem:[#allocation2 + $0xe0] sm:$0xf]  ;;  %v303_v14 = vld [vmem:[#allocation2 + $0x5c] sm:$0x1]  ;;  %v637_v59 = vld [vmem:[#allocation2 + $0x58] sm:$0xf] }
  0x3a   : > { %v1121_v39 = vld [vmem:[#allocation2 + $0xe0] sm:$0xf]  ;;  %964 = vst [vmem:[#allocation3 + $0x24] sm:$0xf] %v956_v38  ;;  %v1120_v47 = vld [vmem:[#allocation2 + $0xdc] sm:$0x1]  ;;  %v632_v38 = vsel %vm3953_vm5, %v556_v41, %v631_v13  ;;  %v638_v44 = vsel %vm3953_vm5, %v564_v19, %v637_v59 }
  0x3b   : > { %v1150_v49 = vshrl.u32 %v1121_v39, 16  ;;  %v909_v51 = vld [vmem:[#allocation2 + $0xe4] sm:$0x1]  ;;  %v1145_v54 = vshll.u32 %v1120_v47, 16  ;;  %v1153_v56 = vshll.u32 %v1121_v39, 16  ;;  %2703 = vmatpush.bf16.msrb.mxu1 %v3579_v27  ;;  %2790 = vmatpush.bf16.msrb.mxu0 %v3603_v63  ;;  %v3577_v16 = vld [vmem:[%s4669_s1 + $0x50] sm:$0xff] }
  0x3c   : > { %v959_v60 = vld [vmem:[#allocation2 + $0xf8] sm:$0xf]  ;;  %v910_v61 = vsel %vm3793_vm2, %v832_v46, %v909_v51  ;;  %v848_v23 = vrot.slane %v4008_v29, 4  ;;  %914 = vst [vmem:[#allocation2 + $0xe8] sm:$0xf] %v913_v10  ;;  %v300_v24 = vsel %vm3793_vm2, 0, %v299_v11 }
  0x3d   : > { %v960_v53 = vld [vmem:[#allocation2 + $0x100] sm:$0xf]  ;;  %967 = vst [vmem:[#allocation3 + $0x90] sm:$0xf] %v959_v60  ;;  %v1147_v36 = vrot.slane %v1145_v54, 5  ;;  %v3578_v46 = vld [vmem:[%s4669_s1 + $0x58] sm:$0xff] }
  0x3e   : > { %968 = vst [vmem:[#allocation3 + $0xb4] sm:$0xf] %v960_v53  ;;  %v961_v6 = vld [vmem:[#allocation2 + $0x108] sm:$0xf]  ;;  %v1152_v0 = vrot.slane %v1150_v49, 4  ;;  %v1155_v9 = vrot.slane %v1153_v56, 5 }
  0x3f   : > { %911 = vst [vmem:[#allocation2 + $0xe4] sm:$0x1] %v910_v61  ;;  %v1148_v8 = vsel %vm4030_vm8, %v1143_v48, %v1147_v36  ;;  %2704 = vmatpush.bf16.msrb.mxu1 %v3578_v46  ;;  %v962_v22 = vld [vmem:[#allocation2 + $0x110] sm:$0xf]  ;;  %v379_v25 = vld [vmem:[#allocation2 + $0xf4] sm:$0x1]  ;;  %2791 = vmatpush.bf16.msrb.mxu0 %v3602_v20 }
  0x40   : > { %1255 = vst [vmem:[#allocation3 + $0x8] sm:$0xf] %v1148_v8  ;;  %v1156_v26 = vor.u32 %v1155_v9, %v1152_v0  ;;  %v304_v27 = vsel %vm3793_vm2, 0, %v303_v14  ;;  %v4078_v32 = vld [vmem:[#allocation2 + $0x9c] sm:$0x1]  ;;  %v557_v56 = vrot.slane %v4019_v35, 4 }
  0x41   : > { %v3535_v15 = vld [vmem:[#allocation3 + $0x20] sm:$0xf0]  ;;  %969 = vst [vmem:[#allocation3 + $0xd8] sm:$0xf] %v961_v6  ;;  %v4081_v33 = vld [vmem:[%s3855_s27 + $0x8] sm:$0xf] }
  0x42   : > { %v3098_v21 = vor.u32 %v3535_v15, %v3097_v5  ;;  %970 = vst [vmem:[#allocation3 + $0xfc] sm:$0xf] %v962_v22  ;;  %v972_v39 = vld [vmem:[#allocation2 + $0x90] sm:$0xf]  ;;  %v4087_v45 = vld [vmem:[#allocation2 + $0x94] sm:$0x1] }
  0x43   : > { %920 = vst [vmem:[#allocation2 + $0xf0] sm:$0xf] %v919_v18  ;;  %2705 = vmatpush.bf16.msrb.mxu1 %v3577_v16  ;;  %v689_v49 = vshrl.u32 %v4081_v33, 16  ;;  %v992_v50 = vshrl.u32 %v972_v39, 16  ;;  %v1157_v51 = vrot.slane %v1156_v26, 4  ;;  %v380_v58 = vsel %vm3793_vm2, 0, %v379_v25 }
  0x44   : > { %v3169_v37 = vld [vmem:[#allocation3 + $0x90] sm:$0xf]  ;;  %2679 = vmatmul.bf16.vlgmr.msra.gmra.mxu0 %v3098_v21  ;;  %301 = vst [vmem:[#allocation2 + $0x54] sm:$0x1] %v300_v24  ;;  %v565_v60 = vrot.slane %v4047_v3, 4  ;;  %v332_v61 = vsel %vm3793_vm2, 0, %v4087_v45 }
  0x45   : > { %v3553_v40 = vld [vmem:[#allocation3 + $0xb0] sm:$0xf0]  ;;  %305 = vst [vmem:[#allocation2 + $0x5c] sm:$0x1] %v304_v27  ;;  %v336_v62 = vsel %vm3793_vm2, 0, %v4078_v32  ;;  %v692_v63 = vshll.u32 %v4081_v33, 16 }
  0x46   : > { %v3170_v47 = vor.u32 %v3553_v40, %v3169_v37  ;;  %v1122_v48 = vld [vmem:[#allocation2 + $0xe4] sm:$0x1]  ;;  %633 = vst [vmem:[#allocation2 + $0x50] sm:$0xf] %v632_v38  ;;  %v957_v35 = vld [vmem:[#allocation2 + $0xe8] sm:$0xf] }
  0x47   : > { %v1159_v54 = vshll.u32 %v1122_v48, 16  ;;  %639 = vst [vmem:[#allocation2 + $0x58] sm:$0xf] %v638_v44  ;;  %2706 = vmatpush.bf16.msrb.mxu1 %v3576_v31  ;;  %v995_v3 = vshll.u32 %v972_v39, 16  ;;  %v1123_v34 = vld [vmem:[#allocation2 + $0xe8] sm:$0xf] }
  0x48   : > { %2689 = vmatmul.bf16.vlgmr.msra.gmra.mxu1 %v3170_v47  ;;  %377 = vst [vmem:[#allocation2 + $0xec] sm:$0x1] %v376_v30  ;;  %v4105_v53 = vrot.slane %v689_v49, 7  ;;  %v4107_v36 = vrot.slane %v992_v50, 4  ;;  %v1164_v8 = vshrl.u32 %v1123_v34, 16  ;;  %v1167_v0 = vshll.u32 %v1123_v34, 16 }
  0x49   : > { %v1161_v2 = vrot.slane %v1159_v54, 5  ;;  %965 = vst [vmem:[#allocation3 + $0x48] sm:$0xf] %v957_v35  ;;  %v4113_v10 = vrot.slane %v995_v3, 5  ;;  %v769_v59 = vld [vmem:[#allocation2 + $0x98] sm:$0xf] }
  0x4a   : > { %v958_v4 = vld [vmem:[#allocation2 + $0xf0] sm:$0xf]  ;;  %381 = vst [vmem:[#allocation2 + $0xf4] sm:$0x1] %v380_v58  ;;  %v4117_v14 = vrot.slane %v1164_v8, 4  ;;  %v1169_v20 = vrot.slane %v1167_v0, 5  ;;  %v694_v22 = vor.u32 %v692_v63, %v4105_v53 }
  0x4b   : > { %v1162_v46 = vsel %vm4030_vm8, %v1157_v51, %v1161_v2  ;;  %v1125_v5 = vld [vmem:[#allocation2 + $0xf0] sm:$0xf]  ;;  %v634_v6 = vld [vmem:[#allocation2 + $0x54] sm:$0x1]  ;;  %966 = vst [vmem:[#allocation3 + $0x6c] sm:$0xf] %v958_v4  ;;  %v998_v32 = vor.u32 %v4113_v10, %v4107_v36 }
  0x4c   : > { %1256 = vst [vmem:[#allocation3 + $0x2c] sm:$0xf] %v1162_v46  ;;  %v635_v12 = vsel %vm3793_vm2, %v557_v56, %v634_v6  ;;  %v640_v30 = vld [vmem:[#allocation2 + $0x5c] sm:$0x1]  ;;  %v1178_v9 = vshrl.u32 %v1125_v5, 16  ;;  %v1181_v41 = vshll.u32 %v1125_v5, 16  ;;  %v770_v44 = vsel %vm3953_vm5, %v694_v22, %v769_v59 }
  0x4d   : > { %v641_v11 = vsel %vm3793_vm2, %v565_v60, %v640_v30  ;;  %v1263_v13 = vld [vmem:[#allocation2 + $0x50] sm:$0xf]  ;;  %636 = vst [vmem:[#allocation2 + $0x54] sm:$0x1] %v635_v12  ;;  %v3105_v15 = vld [vmem:[#allocation3 + $0x8] sm:$0xf]  ;;  %v1170_v51 = vor.u32 %v1169_v20, %v4117_v14 }
  0x4e   : > { %v3205_v16 = vld [vmem:[#allocation3 + $0xd8] sm:$0xf]  ;;  %v3562_v18 = vld [vmem:[#allocation3 + $0xf8] sm:$0xf0]  ;;  %1271 = vst [vmem:[#allocation3 + $0xc] sm:$0xf] %v1263_v13 }
  0x4f   : > { %v1264_v19 = vld [vmem:[#allocation2 + $0x58] sm:$0xf]  ;;  %v1180_v21 = vrot.slane %v1178_v9, 4  ;;  %v915_v24 = vld [vmem:[#allocation2 + $0xec] sm:$0x1]  ;;  %v3621_v25 = vld [vmem:[%s4669_s1 + $0x1b0] sm:$0xff]  ;;  %v3206_v47 = vor.u32 %v3562_v18, %v3205_v16 }
  0x50   : > { %1272 = vst [vmem:[#allocation3 + $0x30] sm:$0xf] %v1264_v19  ;;  %v3601_v26 = vld [vmem:[%s4669_s1 + $0x110] sm:$0xff]  ;;  %v3133_v27 = vld [vmem:[#allocation3 + $0x48] sm:$0xf]  ;;  %v916_v31 = vsel %vm3793_vm2, %v840_v28, %v915_v24  ;;  %v3575_v33 = vld [vmem:[%s4669_s1 + $0x40] sm:$0xff]  ;;  %2846 = vmatpush.bf16.msrb.mxu2 %v3621_v25 }
  0x51   : > { %642 = vst [vmem:[#allocation2 + $0x5c] sm:$0x1] %v641_v11  ;;  %v3630_v37 = vld [vmem:[%s4669_s1 + $0x1f8] sm:$0xff]  ;;  %v921_v38 = vld [vmem:[#allocation2 + $0xf4] sm:$0x1]  ;;  %v1183_v39 = vrot.slane %v1181_v41, 5  ;;  %2792 = vmatpush.bf16.msrb.mxu0 %v3601_v26  ;;  %2707 = vmatpush.bf16.msrb.mxu1 %v3575_v33 }
  0x52   : > { %917 = vst [vmem:[#allocation2 + $0xec] sm:$0x1] %v916_v31  ;;  %v922_v28 = vsel %vm3793_vm2, %v848_v23, %v921_v38  ;;  %2874 = vmatpush.bf16.msrb.mxu3 %v3630_v37  ;;  %v3544_v48 = vld [vmem:[#allocation3 + $0x68] sm:$0xf0]  ;;  %v544_v49 = vld [vmem:[%s3855_s27 + $0x24] sm:$0xf] }
  0x53   : > { %v3536_v40 = vld [vmem:[#allocation3 + $0x28] sm:$0xf0]  ;;  %333 = vst [vmem:[#allocation2 + $0x94] sm:$0x1] %v332_v61  ;;  %v3134_v50 = vor.u32 %v3544_v48, %v3133_v27  ;;  %v3614_v29 = vld [vmem:[%s4669_s1 + $0x178] sm:$0xff]  ;;  %v3599_v54 = vld [vmem:[%s4669_s1 + $0x100] sm:$0xff]  ;;  %v1184_v60 = vor.u32 %v1183_v39, %v1180_v21 }
  0x54   : > { %v3106_v45 = vor.u32 %v3536_v40, %v3105_v15  ;;  %923 = vst [vmem:[#allocation2 + $0xf4] sm:$0x1] %v922_v28  ;;  %v3620_v23 = vld [vmem:[%s4669_s1 + $0x1a8] sm:$0xff]  ;;  %v567_v56 = vshrl.u32 %v544_v49, 16  ;;  %v545_v61 = vld [vmem:[%s3855_s27 + $0x34] sm:$0xf] }
  0x55   : > { %337 = vst [vmem:[#allocation2 + $0x9c] sm:$0x1] %v336_v62  ;;  %v3532_v58 = vld [vmem:[#allocation3 + $0xc] sm:$0xf]  ;;  %2793 = vmatpush.bf16.msrb.mxu0 %v3600_v17  ;;  %2816 = vmatpush.bf16.msra.mxu1 %v3614_v29  ;;  %v570_v2 = vshll.u32 %v544_v49, 16  ;;  %v575_v35 = vshrl.u32 %v545_v61, 16 }
  0x56   : > { %2737 = vmatmul.bf16.vlgmr.msra.gmra.mxu2 %v3106_v45  ;;  %771 = vst [vmem:[#allocation2 + $0x98] sm:$0xf] %v770_v44  ;;  %2684 = vmatmul.bf16.gmra.mxu0 %v3134_v50  ;;  %v4163_v63 = vrot.slane %v567_v56, 7  ;;  %v578_v3 = vshll.u32 %v545_v61, 16  ;;  %v695_v46 = vrot.slane %v4105_v53, 4  ;;  %v1171_v8 = vrot.slane %v1170_v51, 4 }
  0x57   : > { %v3107_v62 = vld [vmem:[#allocation3 + $0x2c] sm:$0xf0]  ;;  %2847 = vmatpush.bf16.msrb.mxu2 %v3620_v23  ;;  %v643_v4 = vld [vmem:[#allocation2 + $0x60] sm:$0xf]  ;;  %v263_v5 = vld [vmem:[#allocation2 + $0xc] sm:$0x1] }
  0x58   : > { %2694 = vmatmul.bf16.gmra.mxu1 %v3206_v47  ;;  %v3110_v34 = vor.u32 %v3532_v58, %v3107_v62  ;;  %v572_v36 = vor.u32 %v570_v2, %v4163_v63  ;;  %v4167_v0 = vrot.slane %v575_v35, 7  ;;  %v264_v12 = vsel %vm3793_vm2, 0, %v263_v5  ;;  %v649_v11 = vld [vmem:[#allocation2 + $0x68] sm:$0xf]  ;;  %v267_v15 = vld [vmem:[#allocation2 + $0x14] sm:$0x1] }
  0x59   : > { %v1124_v6 = vld [vmem:[#allocation2 + $0xec] sm:$0x1]  ;;  %v1185_v9 = vrot.slane %v1184_v60, 4  ;;  %2794 = vmatpush.bf16.msrb.mxu0 %v3599_v54  ;;  %265 = vst [vmem:[#allocation2 + $0xc] sm:$0x1] %v264_v12  ;;  %v999_v13 = vrot.slane %v998_v32, 4 }
  0x5a   : > { %2766 = vmatmul.bf16.vlgmr.msra.gmra.mxu3 %v3110_v34  ;;  %v1173_v30 = vshll.u32 %v1124_v6, 16  ;;  %v973_v10 = vld [vmem:[#allocation2 + $0x94] sm:$0x1]  ;;  %v580_v41 = vor.u32 %v578_v3, %v4167_v0  ;;  %v644_v59 = vsel %vm3953_vm5, %v572_v36, %v643_v4  ;;  %v268_v24 = vsel %vm3793_vm2, 0, %v267_v15  ;;  %v402_v25 = vld [vmem:[%s3855_s27] sm:$0xf] }
  0x5b   : > { %v1126_v53 = vld [vmem:[#allocation2 + $0xf4] sm:$0x1]  ;;  %v1001_v14 = vshll.u32 %v973_v10, 16  ;;  %645 = vst [vmem:[#allocation2 + $0x60] sm:$0xf] %v644_v59  ;;  %v411_v17 = vshrl.u32 %v402_v25, 16 }
  0x5c   : > { %v1175_v16 = vrot.slane %v1173_v30, 5  ;;  %v1187_v18 = vshll.u32 %v1126_v53, 16  ;;  %v772_v19 = vld [vmem:[#allocation2 + $0x9c] sm:$0x1]  ;;  %v650_v38 = vsel %vm3953_vm5, %v580_v41, %v649_v11  ;;  %v403_v39 = vld [vmem:[%s3855_s27 + $0x10] sm:$0xf] }
  0x5d   : > { %v773_v20 = vsel %vm3793_vm2, %v695_v46, %v772_v19  ;;  %v974_v21 = vld [vmem:[#allocation2 + $0x98] sm:$0xf]  ;;  %v1003_v22 = vrot.slane %v1001_v14, 5  ;;  %v414_v40 = vshll.u32 %v402_v25, 16  ;;  %v419_v47 = vshrl.u32 %v403_v39, 16  ;;  %v3629_v60 = vld [vmem:[%s4669_s1 + $0x1f0] sm:$0xff] }
  0x5e   : > { %v1176_v26 = vsel %vm4030_vm8, %v1171_v8, %v1175_v16  ;;  %v1189_v27 = vrot.slane %v1187_v18, 5  ;;  %774 = vst [vmem:[#allocation2 + $0x9c] sm:$0x1] %v773_v20  ;;  %v1006_v31 = vshrl.u32 %v974_v21, 16  ;;  %v1009_v33 = vshll.u32 %v974_v21, 16  ;;  %2875 = vmatpush.bf16.msrb.mxu3 %v3629_v60 }
  0x5f   : > { %1257 = vst [vmem:[#allocation3 + $0x50] sm:$0xf] %v1176_v26  ;;  %v1004_v37 = vsel %vm4030_vm8, %v999_v13, %v1003_v22  ;;  %v413_v48 = vrot.slane %v411_v17, 7  ;;  %v422_v49 = vshll.u32 %v403_v39, 16  ;;  %v494_v50 = vld [vmem:[#allocation2 + $0x8] sm:$0xf] }
  0x60   : > { %v1190_v28 = vsel %vm4030_vm8, %v1185_v9, %v1189_v27  ;;  %v1008_v44 = vrot.slane %v1006_v31, 4  ;;  %v1011_v45 = vrot.slane %v1009_v33, 5  ;;  %1111 = vst [vmem:[#allocation3 + $0x4] sm:$0xf] %v1004_v37  ;;  %v421_v29 = vrot.slane %v419_v47, 7 }
  0x61   : > { %1258 = vst [vmem:[#allocation3 + $0x74] sm:$0xf] %v1190_v28  ;;  %v497_v23 = vld [vmem:[#allocation2 + $0xc] sm:$0x1]  ;;  %v416_v56 = vor.u32 %v414_v40, %v413_v48  ;;  %v417_v58 = vrot.slane %v413_v48, 4  ;;  %v856_v15 = vrot.slane %v3925_v42, 4 }
  0x62   : > { %v1012_v51 = vor.u32 %v1011_v45, %v1008_v44  ;;  %651 = vst [vmem:[#allocation2 + $0x68] sm:$0xf] %v650_v38  ;;  %v1265_v54 = vld [vmem:[#allocation2 + $0x60] sm:$0xf]  ;;  %v424_v61 = vor.u32 %v422_v49, %v421_v29  ;;  %v500_v62 = vld [vmem:[#allocation2 + $0x10] sm:$0xf] }
  0x63   : > { %269 = vst [vmem:[#allocation2 + $0x14] sm:$0x1] %v268_v24  ;;  %v495_v35 = vsel %vm3953_vm5, %v416_v56, %v494_v50  ;;  %v498_v3 = vsel %vm3793_vm2, %v417_v58, %v497_v23  ;;  %v383_v34 = vld [vmem:[#allocation2 + $0xfc] sm:$0x1]  ;;  %v387_v46 = vld [vmem:[#allocation2 + $0x104] sm:$0x1] }
  0x64   : > { %v1013_v32 = vrot.slane %v1012_v51, 4  ;;  %1273 = vst [vmem:[#allocation3 + $0x54] sm:$0xf] %v1265_v54  ;;  %v501_v6 = vsel %vm3953_vm5, %v424_v61, %v500_v62  ;;  %v384_v8 = vsel %vm3793_vm2, 0, %v383_v34  ;;  %v425_v36 = vrot.slane %v421_v29, 4  ;;  %v3613_v42 = vld [vmem:[%s4669_s1 + $0x170] sm:$0xff] }
  0x65   : > { %v975_v2 = vld [vmem:[#allocation2 + $0x9c] sm:$0x1]  ;;  %496 = vst [vmem:[#allocation2 + $0x8] sm:$0xf] %v495_v35  ;;  %v388_v11 = vsel %vm3793_vm2, 0, %v387_v46  ;;  %v864_v16 = vrot.slane %v3927_v43, 4  ;;  %2817 = vmatpush.bf16.msra.mxu1 %v3613_v42 }
  0x66   : > { %v3141_v4 = vld [vmem:[#allocation3 + $0x50] sm:$0xf]  ;;  %v1015_v5 = vshll.u32 %v975_v2, 16  ;;  %499 = vst [vmem:[#allocation2 + $0xc] sm:$0x1] %v498_v3  ;;  %v3619_v43 = vld [vmem:[%s4669_s1 + $0x1a0] sm:$0xff] }
  0x67   : > { %502 = vst [vmem:[#allocation2 + $0x10] sm:$0xf] %v501_v6  ;;  %v1127_v14 = vld [vmem:[#allocation2 + $0xf8] sm:$0xf]  ;;  %v1129_v59 = vld [vmem:[#allocation2 + $0x100] sm:$0xf]  ;;  %2848 = vmatpush.bf16.msrb.mxu2 %v3619_v43 }
  0x68   : > { %v3545_v12 = vld [vmem:[#allocation3 + $0x70] sm:$0xf0]  ;;  %v1017_v30 = vrot.slane %v1015_v5, 5  ;;  %385 = vst [vmem:[#allocation2 + $0xfc] sm:$0x1] %v384_v8  ;;  %v1192_v21 = vshrl.u32 %v1127_v14, 16 }
  0x69   : > { %v3142_v9 = vor.u32 %v3545_v12, %v3141_v4  ;;  %v1266_v10 = vld [vmem:[#allocation2 + $0x68] sm:$0xf]  ;;  %v339_v18 = vld [vmem:[#allocation2 + $0xa4] sm:$0x1]  ;;  %389 = vst [vmem:[#allocation2 + $0x104] sm:$0x1] %v388_v11 }
  0x6a   : > { %v1018_v53 = vsel %vm4030_vm8, %v1013_v32, %v1017_v30  ;;  %1274 = vst [vmem:[#allocation3 + $0x78] sm:$0xf] %v1266_v10  ;;  %v503_v13 = vld [vmem:[#allocation2 + $0x14] sm:$0x1]  ;;  %v1195_v22 = vshll.u32 %v1127_v14, 16  ;;  %v1206_v31 = vshrl.u32 %v1129_v59, 16 }
  0x6b   : > { %2742 = vmatmul.bf16.gmra.mxu2 %v3142_v9  ;;  %1112 = vst [vmem:[#allocation3 + $0x28] sm:$0xf] %v1018_v53  ;;  %v504_v41 = vsel %vm3793_vm2, %v425_v36, %v503_v13  ;;  %v3541_v19 = vld [vmem:[#allocation3 + $0x54] sm:$0xf]  ;;  %v3531_v24 = vld [vmem:[#allocation3 + $0x4] sm:$0xf] }
  0x6c   : > { %505 = vst [vmem:[#allocation2 + $0x14] sm:$0x1] %v504_v41  ;;  %v1279_v20 = vld [vmem:[#allocation2 + $0x8] sm:$0xf]  ;;  %v1209_v33 = vshll.u32 %v1129_v59, 16  ;;  %v340_v39 = vsel %vm3793_vm2, 0, %v339_v18 }
  0x6d   : > { %v1280_v25 = vld [vmem:[#allocation2 + $0xc] sm:$0x1]  ;;  %v1296_v26 = vshrl.u32 %v1279_v20, 16  ;;  %v1299_v27 = vshll.u32 %v1279_v20, 16  ;;  %v1194_v50 = vrot.slane %v1192_v21, 4  ;;  %v1197_v51 = vrot.slane %v1195_v22, 5 }
  0x6e   : > { %v1281_v37 = vld [vmem:[#allocation2 + $0x10] sm:$0xf]  ;;  %v1305_v38 = vshll.u32 %v1280_v25, 16  ;;  %v3628_v29 = vld [vmem:[%s4669_s1 + $0x1e8] sm:$0xff]  ;;  %v1208_v62 = vrot.slane %v1206_v31, 4  ;;  %v1211_v2 = vrot.slane %v1209_v33, 5 }
  0x6f   : > { %v1298_v17 = vrot.slane %v1296_v26, 4  ;;  %v1301_v40 = vrot.slane %v1299_v27, 5  ;;  %v1310_v28 = vshrl.u32 %v1281_v37, 16  ;;  %v1313_v44 = vshll.u32 %v1281_v37, 16  ;;  %v927_v45 = vld [vmem:[#allocation2 + $0xfc] sm:$0x1]  ;;  %2876 = vmatpush.bf16.msrb.mxu3 %v3628_v29 }
  0x70   : > { %v1307_v48 = vrot.slane %v1305_v38, 5  ;;  %v928_v49 = vsel %vm3793_vm2, %v856_v15, %v927_v45  ;;  %341 = vst [vmem:[#allocation2 + $0xa4] sm:$0x1] %v340_v39  ;;  %v933_v46 = vld [vmem:[#allocation2 + $0x104] sm:$0x1]  ;;  %v1198_v6 = vor.u32 %v1197_v51, %v1194_v50  ;;  %v1212_v53 = vor.u32 %v1211_v2, %v1208_v62  ;;  %v3612_v37 = vld [vmem:[%s4669_s1 + $0x168] sm:$0xff] }
  0x71   : > { %v3143_v47 = vld [vmem:[#allocation3 + $0x74] sm:$0xf0]  ;;  %v1302_v56 = vor.u32 %v1301_v40, %v1298_v17  ;;  %v1312_v58 = vrot.slane %v1310_v28, 4  ;;  %v1315_v60 = vrot.slane %v1313_v44, 5  ;;  %929 = vst [vmem:[#allocation2 + $0xfc] sm:$0x1] %v928_v49  ;;  %v934_v5 = vsel %vm3793_vm2, %v864_v16, %v933_v46  ;;  %2818 = vmatpush.bf16.msra.mxu1 %v3612_v37 }
  0x72   : > { %v3099_v23 = vld [vmem:[#allocation3 + $0x24] sm:$0xf0]  ;;  %v3146_v54 = vor.u32 %v3541_v19, %v3143_v47  ;;  %v343_v4 = vld [vmem:[#allocation2 + $0xac] sm:$0x1]  ;;  %v3080_v36 = vld [vmem:[%s3855_s27 + $0x18] sm:$0xf] }
  0x73   : > { %v3102_v32 = vor.u32 %v3531_v24, %v3099_v23  ;;  %v1282_v61 = vld [vmem:[#allocation2 + $0x14] sm:$0x1]  ;;  %v1303_v35 = vrot.slane %v1302_v56, 4  ;;  %v1316_v3 = vor.u32 %v1315_v60, %v1312_v58  ;;  %v344_v8 = vsel %vm3793_vm2, 0, %v343_v4  ;;  %v3081_v12 = vld [vmem:[%s3855_s27 + $0x28] sm:$0xf] }
  0x74   : > { %2771 = vmatmul.bf16.gmra.mxu3 %v3146_v54  ;;  %v1319_v34 = vshll.u32 %v1282_v61, 16  ;;  %935 = vst [vmem:[#allocation2 + $0x104] sm:$0x1] %v934_v5  ;;  %v697_v11 = vshrl.u32 %v3080_v36, 16  ;;  %v700_v13 = vshll.u32 %v3080_v36, 16  ;;  %v705_v14 = vshrl.u32 %v3081_v12, 16 }
  0x75   : > { %2708 = vmatmul.bf16.vlgmr.msrb.gmra.mxu1 %v3102_v32  ;;  %v1308_v30 = vsel %vm4030_vm8, %v1303_v35, %v1307_v48  ;;  %v1317_v9 = vrot.slane %v1316_v3, 4  ;;  %v708_v41 = vshll.u32 %v3081_v12, 16  ;;  %345 = vst [vmem:[#allocation2 + $0xac] sm:$0x1] %v344_v8  ;;  %v775_v16 = vld [vmem:[#allocation2 + $0xa0] sm:$0xf] }
  0x76   : > { %v1321_v10 = vrot.slane %v1319_v34, 5  ;;  %1415 = vst [vmem:[#allocation3 + $0x10] sm:$0xf] %v1308_v30  ;;  %v699_v15 = vrot.slane %v697_v11, 7  ;;  %v1199_v19 = vrot.slane %v1198_v6, 4  ;;  %v707_v20 = vrot.slane %v705_v14, 7 }
  0x77   : > { %v778_v25 = vld [vmem:[#allocation2 + $0xa4] sm:$0x1]  ;;  %v781_v26 = vld [vmem:[#allocation2 + $0xa8] sm:$0xf]  ;;  %v1213_v27 = vrot.slane %v1212_v53, 4  ;;  %v3618_v38 = vld [vmem:[%s4669_s1 + $0x198] sm:$0xff] }
  0x78   : > { %v1322_v59 = vsel %vm4030_vm8, %v1317_v9, %v1321_v10  ;;  %v1128_v18 = vld [vmem:[#allocation2 + $0xfc] sm:$0x1]  ;;  %v702_v22 = vor.u32 %v700_v13, %v699_v15  ;;  %v703_v24 = vrot.slane %v699_v15, 4  ;;  %v710_v31 = vor.u32 %v708_v41, %v707_v20  ;;  %v546_v42 = vld [vmem:[%s3855_s27 + $0x44] sm:$0xf]  ;;  %2849 = vmatpush.bf16.msrb.mxu2 %v3618_v38 }
  0x79   : > { %1416 = vst [vmem:[#allocation3 + $0x34] sm:$0xf] %v1322_v59  ;;  %v1201_v21 = vshll.u32 %v1128_v18, 16  ;;  %v711_v33 = vrot.slane %v707_v20, 4  ;;  %v547_v40 = vld [vmem:[%s3855_s27 + $0x54] sm:$0xf] }
  0x7a   : > { %v776_v39 = vsel %vm3953_vm5, %v702_v22, %v775_v16  ;;  %v779_v17 = vsel %vm3793_vm2, %v703_v24, %v778_v25  ;;  %v583_v28 = vshrl.u32 %v546_v42, 16  ;;  %v782_v45 = vsel %vm3953_vm5, %v710_v31, %v781_v26  ;;  %v655_v49 = vld [vmem:[#allocation2 + $0x70] sm:$0xf]  ;;  %v661_v3 = vld [vmem:[#allocation2 + $0x78] sm:$0xf] }
  0x7b   : > { %v1203_v43 = vrot.slane %v1201_v21, 5  ;;  %v1130_v44 = vld [vmem:[#allocation2 + $0x104] sm:$0x1]  ;;  %777 = vst [vmem:[#allocation2 + $0xa0] sm:$0xf] %v776_v39  ;;  %v586_v47 = vshll.u32 %v546_v42, 16 }
  0x7c   : > { %v591_v48 = vshrl.u32 %v547_v40, 16  ;;  %v1215_v29 = vshll.u32 %v1130_v44, 16  ;;  %780 = vst [vmem:[#allocation2 + $0xa4] sm:$0x1] %v779_v17  ;;  %v4246_v23 = vrot.slane %v583_v28, 7  ;;  %v594_v58 = vshll.u32 %v547_v40, 16 }
  0x7d   : > { %v3113_v50 = vld [vmem:[#allocation3 + $0x10] sm:$0xf]  ;;  %v1204_v51 = vsel %vm4030_vm8, %v1199_v19, %v1203_v43  ;;  %v784_v54 = vld [vmem:[#allocation2 + $0xac] sm:$0x1]  ;;  %783 = vst [vmem:[#allocation2 + $0xa8] sm:$0xf] %v782_v45 }
  0x7e   : > { %1259 = vst [vmem:[#allocation3 + $0x98] sm:$0xf] %v1204_v51  ;;  %v4248_v56 = vrot.slane %v591_v48, 7  ;;  %v1217_v32 = vrot.slane %v1215_v29, 5  ;;  %v785_v61 = vsel %vm3793_vm2, %v711_v33, %v784_v54  ;;  %v588_v62 = vor.u32 %v586_v47, %v4246_v23  ;;  %v271_v4 = vld [vmem:[#allocation2 + $0x1c] sm:$0x1] }
  0x7f   : > { %786 = vst [vmem:[#allocation2 + $0xac] sm:$0x1] %v785_v61  ;;  %v275_v5 = vld [vmem:[#allocation2 + $0x24] sm:$0x1]  ;;  %v404_v6 = vld [vmem:[%s3855_s27 + $0x20] sm:$0xf] }
  0x80   : > { %v3537_v60 = vld [vmem:[#allocation3 + $0x30] sm:$0xf0]  ;;  %v596_v35 = vor.u32 %v594_v58, %v4248_v56  ;;  %v1218_v34 = vsel %vm4030_vm8, %v1213_v27, %v1217_v32  ;;  %v656_v46 = vsel %vm3953_vm5, %v588_v62, %v655_v49  ;;  %v272_v36 = vsel %vm3793_vm2, 0, %v271_v4  ;;  %v405_v41 = vld [vmem:[%s3855_s27 + $0x30] sm:$0xf] }
  0x81   : > { %v3114_v2 = vor.u32 %v3537_v60, %v3113_v50  ;;  %1260 = vst [vmem:[#allocation3 + $0xbc] sm:$0xf] %v1218_v34  ;;  %v276_v12 = vsel %vm3793_vm2, 0, %v275_v5  ;;  %v427_v9 = vshrl.u32 %v404_v6, 16  ;;  %v430_v10 = vshll.u32 %v404_v6, 16  ;;  %v3627_v60 = vld [vmem:[%s4669_s1 + $0x1e0] sm:$0xff] }
  0x82   : > { %v662_v8 = vsel %vm3953_vm5, %v596_v35, %v661_v3  ;;  %v976_v30 = vld [vmem:[#allocation2 + $0xa0] sm:$0xf]  ;;  %657 = vst [vmem:[#allocation2 + $0x70] sm:$0xf] %v656_v46  ;;  %v435_v31 = vshrl.u32 %v405_v41, 16  ;;  %v438_v39 = vshll.u32 %v405_v41, 16  ;;  %2877 = vmatpush.bf16.msrb.mxu3 %v3627_v60 }
  0x83   : > { %2795 = vmatmul.bf16.vlgmr.msrb.gmra.mxu0 %v3114_v2  ;;  %v977_v11 = vld [vmem:[#allocation2 + $0xa4] sm:$0x1]  ;;  %v1020_v53 = vshrl.u32 %v976_v30, 16  ;;  %v1023_v13 = vshll.u32 %v976_v30, 16  ;;  %663 = vst [vmem:[#allocation2 + $0x78] sm:$0xf] %v662_v8 }
  0x84   : > { %v1029_v14 = vshll.u32 %v977_v11, 16  ;;  %273 = vst [vmem:[#allocation2 + $0x1c] sm:$0x1] %v272_v36  ;;  %v429_v59 = vrot.slane %v427_v9, 7  ;;  %v978_v15 = vld [vmem:[#allocation2 + $0xa8] sm:$0xf] }
  0x85   : > { %v1022_v16 = vrot.slane %v1020_v53, 4  ;;  %v1025_v18 = vrot.slane %v1023_v13, 5  ;;  %277 = vst [vmem:[#allocation2 + $0x24] sm:$0x1] %v276_v12  ;;  %v3177_v19 = vld [vmem:[#allocation3 + $0x98] sm:$0xf] }
  0x86   : > { %v979_v20 = vld [vmem:[#allocation2 + $0xac] sm:$0x1]  ;;  %v1034_v21 = vshrl.u32 %v978_v15, 16  ;;  %v1037_v22 = vshll.u32 %v978_v15, 16  ;;  %v432_v24 = vor.u32 %v430_v10, %v429_v59  ;;  %v1031_v26 = vrot.slane %v1029_v14, 5  ;;  %v4278_v2 = vld [vmem:[%s4669_s1 + $0x238] sm:$0xff] }
  0x87   : > { %v1026_v25 = vor.u32 %v1025_v18, %v1022_v16  ;;  %v1043_v27 = vshll.u32 %v979_v20, 16  ;;  %v506_v33 = vld [vmem:[#allocation2 + $0x18] sm:$0xf]  ;;  %v433_v43 = vrot.slane %v429_v59, 4  ;;  %v437_v45 = vrot.slane %v435_v31, 7  ;;  %2903 = vmatpush.bf16.msra.mxu0 %v4278_v2  ;;  %v3617_v15 = vld [vmem:[%s4669_s1 + $0x190] sm:$0xff] }
  0x88   : > { %v3554_v37 = vld [vmem:[#allocation3 + $0xb8] sm:$0xf0]  ;;  %v1036_v38 = vrot.slane %v1034_v21, 4  ;;  %v1039_v42 = vrot.slane %v1037_v22, 5  ;;  %v507_v49 = vsel %vm3953_vm5, %v432_v24, %v506_v33  ;;  %v512_v50 = vld [vmem:[#allocation2 + $0x20] sm:$0xf]  ;;  %2850 = vmatpush.bf16.msrb.mxu2 %v3617_v15 }
  0x89   : > { %v3178_v17 = vor.u32 %v3554_v37, %v3177_v19  ;;  %v1027_v40 = vrot.slane %v1026_v25, 4  ;;  %v1045_v28 = vrot.slane %v1043_v27, 5  ;;  %v1267_v44 = vld [vmem:[#allocation2 + $0x70] sm:$0xf]  ;;  %v440_v29 = vor.u32 %v438_v39, %v437_v45  ;;  %508 = vst [vmem:[#allocation2 + $0x18] sm:$0xf] %v507_v49 }
  0x8a   : > { %v1040_v47 = vor.u32 %v1039_v42, %v1036_v38  ;;  %v1268_v48 = vld [vmem:[#allocation2 + $0x78] sm:$0xf]  ;;  %1275 = vst [vmem:[#allocation3 + $0x9c] sm:$0xf] %v1267_v44  ;;  %v441_v54 = vrot.slane %v437_v45, 4  ;;  %v872_v36 = vrot.slane %v3960_v57, 4 }
  0x8b   : > { %2747 = vmatmul.bf16.gmra.mxu2 %v3178_v17  ;;  %v1032_v51 = vsel %vm4030_vm8, %v1027_v40, %v1031_v26  ;;  %1276 = vst [vmem:[#allocation3 + $0xc0] sm:$0xf] %v1268_v48  ;;  %v509_v58 = vld [vmem:[#allocation2 + $0x1c] sm:$0x1]  ;;  %v513_v35 = vsel %vm3953_vm5, %v440_v29, %v512_v50  ;;  %v391_v3 = vld [vmem:[#allocation2 + $0x10c] sm:$0x1] }
  0x8c   : > { %v1041_v32 = vrot.slane %v1040_v47, 4  ;;  %1113 = vst [vmem:[#allocation3 + $0x4c] sm:$0xf] %v1032_v51  ;;  %v510_v61 = vsel %vm3793_vm2, %v433_v43, %v509_v58  ;;  %v515_v62 = vld [vmem:[#allocation2 + $0x24] sm:$0x1]  ;;  %v392_v6 = vsel %vm3793_vm2, 0, %v391_v3 }
  0x8d   : > { %v395_v34 = vld [vmem:[#allocation2 + $0x114] sm:$0x1]  ;;  %511 = vst [vmem:[#allocation2 + $0x1c] sm:$0x1] %v510_v61  ;;  %v516_v4 = vsel %vm3793_vm2, %v441_v54, %v515_v62  ;;  %v1131_v5 = vld [vmem:[#allocation2 + $0x108] sm:$0xf] }
  0x8e   : > { %v1046_v46 = vsel %vm4030_vm8, %v1041_v32, %v1045_v28  ;;  %v1133_v8 = vld [vmem:[#allocation2 + $0x110] sm:$0xf]  ;;  %514 = vst [vmem:[#allocation2 + $0x20] sm:$0xf] %v513_v35  ;;  %v396_v12 = vsel %vm3793_vm2, 0, %v395_v34  ;;  %v1220_v30 = vshrl.u32 %v1131_v5, 16 }
  0x8f   : > { %1114 = vst [vmem:[#allocation3 + $0x70] sm:$0xf] %v1046_v46  ;;  %v1223_v9 = vshll.u32 %v1131_v5, 16  ;;  %v347_v11 = vld [vmem:[#allocation2 + $0xb4] sm:$0x1]  ;;  %v880_v53 = vrot.slane %v3973_v7, 4 }
  0x90   : > { %517 = vst [vmem:[#allocation2 + $0x24] sm:$0x1] %v516_v4  ;;  %v1234_v14 = vshrl.u32 %v1133_v8, 16  ;;  %v3611_v57 = vld [vmem:[%s4669_s1 + $0x160] sm:$0xff]  ;;  %v1283_v16 = vld [vmem:[#allocation2 + $0x18] sm:$0xf] }
  0x91   : > { %v3550_v10 = vld [vmem:[#allocation3 + $0x9c] sm:$0xf]  ;;  %393 = vst [vmem:[#allocation2 + $0x10c] sm:$0x1] %v392_v6  ;;  %v1237_v18 = vshll.u32 %v1133_v8, 16  ;;  %v4305_v19 = vld [vmem:[%s4669_s1 + $0x230] sm:$0xff]  ;;  %2819 = vmatpush.bf16.msra.mxu1 %v3611_v57 }
  0x92   : > { %v3179_v13 = vld [vmem:[#allocation3 + $0xbc] sm:$0xf0]  ;;  %397 = vst [vmem:[#allocation2 + $0x114] sm:$0x1] %v396_v12  ;;  %v3626_v7 = vld [vmem:[%s4669_s1 + $0x1d8] sm:$0xff]  ;;  %v348_v20 = vsel %vm3793_vm2, 0, %v347_v11  ;;  %2904 = vmatpush.bf16.msra.mxu0 %v4305_v19 }
  0x93   : > { %v3540_v41 = vld [vmem:[#allocation3 + $0x4c] sm:$0xf]  ;;  %v3182_v59 = vor.u32 %v3550_v10, %v3179_v13  ;;  %v1324_v22 = vshrl.u32 %v1283_v16, 16  ;;  %v1327_v24 = vshll.u32 %v1283_v16, 16  ;;  %v1222_v25 = vrot.slane %v1220_v30, 4  ;;  %2878 = vmatpush.bf16.msrb.mxu3 %v3626_v7  ;;  %v3610_v7 = vld [vmem:[%s4669_s1 + $0x158] sm:$0xff] }
  0x94   : > { %v1284_v21 = vld [vmem:[#allocation2 + $0x1c] sm:$0x1]  ;;  %v1225_v26 = vrot.slane %v1223_v9, 5  ;;  %v4309_v33 = vrot.slane %v1234_v14, 4  ;;  %349 = vst [vmem:[#allocation2 + $0xb4] sm:$0x1] %v348_v20 }
  0x95   : > { %2776 = vmatmul.bf16.gmra.mxu3 %v3182_v59  ;;  %v1333_v31 = vshll.u32 %v1284_v21, 16  ;;  %v1285_v38 = vld [vmem:[#allocation2 + $0x20] sm:$0xf]  ;;  %v1326_v42 = vrot.slane %v1324_v22, 4  ;;  %v1329_v43 = vrot.slane %v1327_v24, 5  ;;  %v1239_v44 = vrot.slane %v1237_v18, 5  ;;  %2820 = vmatpush.bf16.msra.mxu1 %v3610_v7 }
  0x96   : > { %v3135_v27 = vld [vmem:[#allocation3 + $0x6c] sm:$0xf0]  ;;  %v351_v39 = vld [vmem:[#allocation2 + $0xbc] sm:$0x1]  ;;  %v1338_v40 = vshrl.u32 %v1285_v38, 16  ;;  %v1341_v28 = vshll.u32 %v1285_v38, 16  ;;  %v1226_v35 = vor.u32 %v1225_v26, %v1222_v25 }
  0x97   : > { %v3138_v37 = vor.u32 %v3540_v41, %v3135_v27  ;;  %v1286_v17 = vld [vmem:[#allocation2 + $0x24] sm:$0x1]  ;;  %v352_v45 = vsel %vm3793_vm2, 0, %v351_v39  ;;  %v1330_v47 = vor.u32 %v1329_v43, %v1326_v42  ;;  %v1335_v48 = vrot.slane %v1333_v31, 5  ;;  %v3082_v60 = vld [vmem:[%s3855_s27 + $0x38] sm:$0xf] }
  0x98   : > { %v1347_v49 = vshll.u32 %v1286_v17, 16  ;;  %v939_v50 = vld [vmem:[#allocation2 + $0x10c] sm:$0x1]  ;;  %353 = vst [vmem:[#allocation2 + $0xbc] sm:$0x1] %v352_v45  ;;  %v1340_v51 = vrot.slane %v1338_v40, 4 }
  0x99   : > { %2713 = vmatmul.bf16.gmra.mxu1 %v3138_v37  ;;  %v1343_v29 = vrot.slane %v1341_v28, 5  ;;  %v940_v54 = vsel %vm3793_vm2, %v872_v36, %v939_v50  ;;  %v945_v58 = vld [vmem:[#allocation2 + $0x114] sm:$0x1]  ;;  %v1331_v32 = vrot.slane %v1330_v47, 4  ;;  %v3083_v3 = vld [vmem:[%s3855_s27 + $0x48] sm:$0xf] }
  0x9a   : > { %v1349_v61 = vrot.slane %v1347_v49, 5  ;;  %941 = vst [vmem:[#allocation2 + $0x10c] sm:$0x1] %v940_v54  ;;  %v946_v62 = vsel %vm3793_vm2, %v880_v53, %v945_v58  ;;  %v713_v46 = vshrl.u32 %v3082_v60, 16  ;;  %v716_v4 = vshll.u32 %v3082_v60, 16  ;;  %v3616_v14 = vld [vmem:[%s4669_s1 + $0x188] sm:$0xff] }
  0x9b   : > { %v1344_v34 = vor.u32 %v1343_v29, %v1340_v51  ;;  %947 = vst [vmem:[#allocation2 + $0x114] sm:$0x1] %v946_v62  ;;  %v721_v5 = vshrl.u32 %v3083_v3, 16  ;;  %v1336_v6 = vsel %vm4030_vm8, %v1331_v32, %v1335_v48  ;;  %v724_v8 = vshll.u32 %v3083_v3, 16  ;;  %v787_v36 = vld [vmem:[#allocation2 + $0xb0] sm:$0xf]  ;;  %2851 = vmatpush.bf16.msrb.mxu2 %v3616_v14 }
  0x9c   : > { %v790_v12 = vld [vmem:[#allocation2 + $0xb4] sm:$0x1]  ;;  %1417 = vst [vmem:[#allocation3 + $0x58] sm:$0xf] %v1336_v6  ;;  %v715_v9 = vrot.slane %v713_v46, 7  ;;  %v1227_v11 = vrot.slane %v1226_v35, 4  ;;  %v1240_v53 = vor.u32 %v1239_v44, %v4309_v33 }
  0x9d   : > { %v1345_v30 = vrot.slane %v1344_v34, 4  ;;  %v723_v10 = vrot.slane %v721_v5, 7  ;;  %v793_v13 = vld [vmem:[#allocation2 + $0xb8] sm:$0xf]  ;;  %v548_v41 = vld [vmem:[%s3855_s27 + $0x64] sm:$0xf] }
  0x9e   : > { %v718_v57 = vor.u32 %v716_v4, %v715_v9  ;;  %v719_v15 = vrot.slane %v715_v9, 4  ;;  %v3615_v20 = vld [vmem:[%s4669_s1 + $0x180] sm:$0xff]  ;;  %v549_v22 = vld [vmem:[%s3855_s27 + $0x74] sm:$0xf]  ;;  %v599_v24 = vshrl.u32 %v548_v41, 16  ;;  %v602_v33 = vshll.u32 %v548_v41, 16 }
  0x9f   : > { %v1350_v59 = vsel %vm4030_vm8, %v1345_v30, %v1349_v61  ;;  %v726_v16 = vor.u32 %v724_v8, %v723_v10  ;;  %v796_v18 = vld [vmem:[#allocation2 + $0xbc] sm:$0x1]  ;;  %v727_v21 = vrot.slane %v723_v10, 4  ;;  %v667_v37 = vld [vmem:[#allocation2 + $0x80] sm:$0xf]  ;;  %v1241_v17 = vrot.slane %v1240_v53, 4  ;;  %2852 = vmatpush.bf16.msrb.mxu2 %v3615_v20 }
  0xa0   : > { %1418 = vst [vmem:[#allocation3 + $0x7c] sm:$0xf] %v1350_v59  ;;  %v788_v26 = vsel %vm3953_vm5, %v718_v57, %v787_v36  ;;  %v791_v27 = vsel %vm3793_vm2, %v719_v15, %v790_v12  ;;  %v4344_v39 = vrot.slane %v599_v24, 7  ;;  %v607_v28 = vshrl.u32 %v549_v22, 16  ;;  %v673_v51 = vld [vmem:[#allocation2 + $0x88] sm:$0xf] }
  0xa1   : > { %v1132_v25 = vld [vmem:[#allocation2 + $0x10c] sm:$0x1]  ;;  %v794_v31 = vsel %vm3953_vm5, %v726_v16, %v793_v13  ;;  %789 = vst [vmem:[#allocation2 + $0xb0] sm:$0xf] %v788_v26  ;;  %v797_v43 = vsel %vm3793_vm2, %v727_v21, %v796_v18  ;;  %v610_v44 = vshll.u32 %v549_v22, 16 }
  0xa2   : > { %v1134_v38 = vld [vmem:[#allocation2 + $0x114] sm:$0x1]  ;;  %v1229_v42 = vshll.u32 %v1132_v25, 16  ;;  %792 = vst [vmem:[#allocation2 + $0xb4] sm:$0x1] %v791_v27  ;;  %v604_v48 = vor.u32 %v602_v33, %v4344_v39  ;;  %v4347_v50 = vrot.slane %v607_v28, 7 }
  0xa3   : > { %v1243_v40 = vshll.u32 %v1134_v38, 16  ;;  %v3149_v45 = vld [vmem:[#allocation3 + $0x58] sm:$0xf]  ;;  %795 = vst [vmem:[#allocation2 + $0xb8] sm:$0xf] %v794_v31  ;;  %3670 = vmatpush.bf16.msra.mxu2 %v4278_v2 }
  0xa4   : > { %v1231_v47 = vrot.slane %v1229_v42, 5  ;;  %798 = vst [vmem:[#allocation2 + $0xbc] sm:$0x1] %v797_v43  ;;  %v668_v54 = vsel %vm3953_vm5, %v604_v48, %v667_v37  ;;  %v279_v58 = vld [vmem:[#allocation2 + $0x2c] sm:$0x1]  ;;  %v612_v35 = vor.u32 %v610_v44, %v4347_v50 }
  0xa5   : > { %v1245_v49 = vrot.slane %v1243_v40, 5  ;;  %v283_v60 = vld [vmem:[#allocation2 + $0x34] sm:$0x1]  ;;  %v406_v32 = vld [vmem:[%s3855_s27 + $0x40] sm:$0xf]  ;;  %v280_v3 = vsel %vm3793_vm2, 0, %v279_v58 }
  0xa6   : > { %v1232_v29 = vsel %vm4030_vm8, %v1227_v11, %v1231_v47  ;;  %v284_v34 = vsel %vm3793_vm2, 0, %v283_v60  ;;  %v407_v46 = vld [vmem:[%s3855_s27 + $0x50] sm:$0xf]  ;;  %v443_v4 = vshrl.u32 %v406_v32, 16  ;;  %669 = vst [vmem:[#allocation2 + $0x80] sm:$0xf] %v668_v54  ;;  %v674_v6 = vsel %vm3953_vm5, %v612_v35, %v673_v51 }
  0xa7   : > { %v3546_v61 = vld [vmem:[#allocation3 + $0x78] sm:$0xf0]  ;;  %v1246_v62 = vsel %vm4030_vm8, %v1241_v17, %v1245_v49  ;;  %1261 = vst [vmem:[#allocation3 + $0xe0] sm:$0xf] %v1232_v29  ;;  %v446_v8 = vshll.u32 %v406_v32, 16  ;;  %v451_v36 = vshrl.u32 %v407_v46, 16  ;;  %3671 = vmatpush.bf16.msra.mxu2 %v4305_v19 }
  0xa8   : > { %v3150_v2 = vor.u32 %v3546_v61, %v3149_v45  ;;  %1262 = vst [vmem:[#allocation3 + $0x104] sm:$0xf] %v1246_v62  ;;  %v980_v5 = vld [vmem:[#allocation2 + $0xb0] sm:$0xf]  ;;  %v445_v53 = vrot.slane %v443_v4, 7  ;;  %v454_v27 = vshll.u32 %v407_v46, 16 }
  0xa9   : > { %v981_v12 = vld [vmem:[#allocation2 + $0xb4] sm:$0x1]  ;;  %v1048_v30 = vshrl.u32 %v980_v5, 16  ;;  %v1051_v9 = vshll.u32 %v980_v5, 16  ;;  %675 = vst [vmem:[#allocation2 + $0x88] sm:$0xf] %v674_v6 }
  0xaa   : > { %2800 = vmatmul.bf16.gmra.mxu0 %v3150_v2  ;;  %v982_v10 = vld [vmem:[#allocation2 + $0xb8] sm:$0xf]  ;;  %v1057_v11 = vshll.u32 %v981_v12, 16  ;;  %281 = vst [vmem:[#allocation2 + $0x2c] sm:$0x1] %v280_v3  ;;  %v448_v18 = vor.u32 %v446_v8, %v445_v53  ;;  %v449_v7 = vrot.slane %v445_v53, 4 }
  0xab   : > { %v983_v13 = vld [vmem:[#allocation2 + $0xbc] sm:$0x1]  ;;  %v1050_v14 = vrot.slane %v1048_v30, 4  ;;  %v1053_v41 = vrot.slane %v1051_v9, 5  ;;  %v1062_v59 = vshrl.u32 %v982_v10, 16  ;;  %v1065_v57 = vshll.u32 %v982_v10, 16 }
  0xac   : > { %v1059_v15 = vrot.slane %v1057_v11, 5  ;;  %v1071_v16 = vshll.u32 %v983_v13, 16  ;;  %285 = vst [vmem:[#allocation2 + $0x34] sm:$0x1] %v284_v34  ;;  %v453_v24 = vrot.slane %v451_v36, 7  ;;  %v3625_v49 = vld [vmem:[%s4669_s1 + $0x1d0] sm:$0xff] }
  0xad   : > { %v1054_v20 = vor.u32 %v1053_v41, %v1050_v14  ;;  %v1064_v21 = vrot.slane %v1062_v59, 4  ;;  %v1067_v22 = vrot.slane %v1065_v57, 5  ;;  %v518_v31 = vld [vmem:[#allocation2 + $0x28] sm:$0xf]  ;;  %v1269_v42 = vld [vmem:[#allocation2 + $0x80] sm:$0xf]  ;;  %2879 = vmatpush.bf16.msrb.mxu3 %v3625_v49 }
  0xae   : > { %v3213_v19 = vld [vmem:[#allocation3 + $0xe0] sm:$0xf]  ;;  %v1073_v26 = vrot.slane %v1071_v16, 5  ;;  %v457_v43 = vrot.slane %v453_v24, 4  ;;  %1277 = vst [vmem:[#allocation3 + $0xe4] sm:$0xf] %v1269_v42  ;;  %v456_v40 = vor.u32 %v454_v27, %v453_v24  ;;  %v519_v28 = vsel %vm3953_vm5, %v448_v18, %v518_v31 }
  0xaf   : > { %v3563_v25 = vld [vmem:[#allocation3 + $0x100] sm:$0xf0]  ;;  %v1055_v37 = vrot.slane %v1054_v20, 4  ;;  %v1068_v38 = vor.u32 %v1067_v22, %v1064_v21  ;;  %v524_v44 = vld [vmem:[#allocation2 + $0x30] sm:$0xf]  ;;  %v3636_v29 = vld [vmem:[%s4669_s1 + $0x228] sm:$0xff] }
  0xb0   : > { %v3214_v33 = vor.u32 %v3563_v25, %v3213_v19  ;;  %v1270_v17 = vld [vmem:[#allocation2 + $0x88] sm:$0xf]  ;;  %v3609_v54 = vld [vmem:[%s4669_s1 + $0x150] sm:$0xff]  ;;  %520 = vst [vmem:[#allocation2 + $0x28] sm:$0xf] %v519_v28  ;;  %v525_v60 = vsel %vm3953_vm5, %v456_v40, %v524_v44  ;;  %v3635_v35 = vld [vmem:[%s4669_s1 + $0x220] sm:$0xff]  ;;  %2905 = vmatpush.bf16.msra.mxu0 %v3636_v29  ;;  %3672 = vmatpush.bf16.msra.mxu2 %v3636_v29 }
  0xb1   : > { %v1060_v45 = vsel %vm4030_vm8, %v1055_v37, %v1059_v15  ;;  %v1069_v47 = vrot.slane %v1068_v38, 4  ;;  %1278 = vst [vmem:[#allocation3 + $0x108] sm:$0xf] %v1270_v17  ;;  %v521_v48 = vld [vmem:[#allocation2 + $0x2c] sm:$0x1]  ;;  %2821 = vmatpush.bf16.msra.mxu1 %v3609_v54  ;;  %v3623_v38 = vld [vmem:[%s4669_s1 + $0x1c0] sm:$0xff] }
  0xb2   : > { %2752 = vmatmul.bf16.gmra.mxu2 %v3214_v33  ;;  %1115 = vst [vmem:[#allocation3 + $0x94] sm:$0xf] %v1060_v45  ;;  %v522_v51 = vsel %vm3793_vm2, %v449_v7, %v521_v48  ;;  %v1567_v61 = vld [vmem:[#allocation2 + $0xe0] sm:$0xf]  ;;  %v3624_v62 = vld [vmem:[%s4669_s1 + $0x1c8] sm:$0xff] }
  0xb3   : > { %v1074_v58 = vsel %vm4030_vm8, %v1069_v47, %v1073_v26  ;;  %v527_v32 = vld [vmem:[#allocation2 + $0x34] sm:$0x1]  ;;  %v1568_v2 = vld [vmem:[#allocation2 + $0xe8] sm:$0xf]  ;;  %v355_v34 = vld [vmem:[#allocation2 + $0xc4] sm:$0x1]  ;;  %2880 = vmatpush.bf16.msrb.mxu3 %v3624_v62 }
  0xb4   : > { %1116 = vst [vmem:[#allocation3 + $0xb8] sm:$0xf] %v1074_v58  ;;  %v528_v3 = vsel %vm3793_vm2, %v457_v43, %v527_v32  ;;  %v359_v46 = vld [vmem:[#allocation2 + $0xcc] sm:$0x1]  ;;  %v356_v4 = vsel %vm3793_vm2, 0, %v355_v34  ;;  %2906 = vmatpush.bf16.msra.mxu0 %v3635_v35  ;;  %3673 = vmatpush.bf16.msra.mxu2 %v3635_v35 }
  0xb5   : > { %523 = vst [vmem:[#allocation2 + $0x2c] sm:$0x1] %v522_v51  ;;  %v3084_v5 = vld [vmem:[%s3855_s27 + $0x58] sm:$0xf]  ;;  %v3085_v6 = vld [vmem:[%s3855_s27 + $0x68] sm:$0xf] }
  0xb6   : > { %526 = vst [vmem:[#allocation2 + $0x30] sm:$0xf] %v525_v60  ;;  %v729_v8 = vshrl.u32 %v3084_v5, 16  ;;  %v732_v36 = vshll.u32 %v3084_v5, 16  ;;  %v3559_v12 = vld [vmem:[#allocation3 + $0xe4] sm:$0xf] }
  0xb7   : > { %529 = vst [vmem:[#allocation2 + $0x34] sm:$0x1] %v528_v3  ;;  %v360_v30 = vsel %vm3793_vm2, 0, %v359_v46  ;;  %v737_v9 = vshrl.u32 %v3085_v6, 16  ;;  %v740_v53 = vshll.u32 %v3085_v6, 16  ;;  %v3608_v25 = vld [vmem:[%s4669_s1 + $0x148] sm:$0xff]  ;;  %2881 = vmatpush.bf16.msrb.mxu3 %v3623_v38 }
  0xb8   : > { %v3215_v10 = vld [vmem:[#allocation3 + $0x104] sm:$0xf0]  ;;  %1575 = vst [vmem:[#allocation3 + $0x18] sm:$0xf] %v1567_v61  ;;  %v731_v11 = vrot.slane %v729_v8, 7  ;;  %2822 = vmatpush.bf16.msra.mxu1 %v3608_v25  ;;  %v3634_v25 = vld [vmem:[%s4669_s1 + $0x218] sm:$0xff] }
  0xb9   : > { %v3549_v13 = vld [vmem:[#allocation3 + $0x94] sm:$0xf]  ;;  %v3218_v14 = vor.u32 %v3559_v12, %v3215_v10  ;;  %1576 = vst [vmem:[#allocation3 + $0x3c] sm:$0xf] %v1568_v2  ;;  %v739_v41 = vrot.slane %v737_v9, 7  ;;  %v3607_v38 = vld [vmem:[%s4669_s1 + $0x140] sm:$0xff]  ;;  %2907 = vmatpush.bf16.msra.mxu0 %v3634_v25  ;;  %3674 = vmatpush.bf16.msra.mxu2 %v3634_v25 }
  0xba   : > { %v1287_v59 = vld [vmem:[#allocation2 + $0x28] sm:$0xf]  ;;  %357 = vst [vmem:[#allocation2 + $0xc4] sm:$0x1] %v356_v4  ;;  %v734_v57 = vor.u32 %v732_v36, %v731_v11  ;;  %v735_v15 = vrot.slane %v731_v11, 4 }
  0xbb   : > { %v3171_v16 = vld [vmem:[#allocation3 + $0xb4] sm:$0xf0]  ;;  %2781 = vmatmul.bf16.gmra.mxu3 %v3218_v14  ;;  %v1352_v18 = vshrl.u32 %v1287_v59, 16  ;;  %v1355_v7 = vshll.u32 %v1287_v59, 16  ;;  %361 = vst [vmem:[#allocation2 + $0xcc] sm:$0x1] %v360_v30  ;;  %v742_v21 = vor.u32 %v740_v53, %v739_v41 }
  0xbc   : > { %v3174_v19 = vor.u32 %v3549_v13, %v3171_v16  ;;  %v1288_v20 = vld [vmem:[#allocation2 + $0x2c] sm:$0x1]  ;;  %v743_v22 = vrot.slane %v739_v41, 4  ;;  %v799_v24 = vld [vmem:[#allocation2 + $0xc0] sm:$0xf]  ;;  %2823 = vmatpush.bf16.msra.mxu1 %v3607_v38 }
  0xbd   : > { %v1289_v26 = vld [vmem:[#allocation2 + $0x30] sm:$0xf]  ;;  %v1354_v27 = vrot.slane %v1352_v18, 4  ;;  %v1357_v31 = vrot.slane %v1355_v7, 5  ;;  %v1361_v33 = vshll.u32 %v1288_v20, 16  ;;  %v800_v37 = vsel %vm3953_vm5, %v734_v57, %v799_v24 }
  0xbe   : > { %2718 = vmatmul.bf16.gmra.mxu1 %v3174_v19  ;;  %v1290_v42 = vld [vmem:[#allocation2 + $0x34] sm:$0x1]  ;;  %v1366_v43 = vshrl.u32 %v1289_v26, 16  ;;  %v1369_v17 = vshll.u32 %v1289_v26, 16  ;;  %801 = vst [vmem:[#allocation2 + $0xc0] sm:$0xf] %v800_v37 }
  0xbf   : > { %v1358_v40 = vor.u32 %v1357_v31, %v1354_v27  ;;  %v1363_v28 = vrot.slane %v1361_v33, 5  ;;  %v1375_v44 = vshll.u32 %v1290_v42, 16  ;;  %v3121_v45 = vld [vmem:[#allocation3 + $0x18] sm:$0xf]  ;;  %v805_v47 = vld [vmem:[#allocation2 + $0xc8] sm:$0xf] }
  0xc0   : > { %v1368_v48 = vrot.slane %v1366_v43, 4  ;;  %v1371_v49 = vrot.slane %v1369_v17, 5  ;;  %v3538_v51 = vld [vmem:[#allocation3 + $0x38] sm:$0xf0]  ;;  %v806_v29 = vsel %vm3953_vm5, %v742_v21, %v805_v47  ;;  %v291_v2 = vld [vmem:[#allocation2 + $0x44] sm:$0x1] }
  0xc1   : > { %v287_v54 = vld [vmem:[#allocation2 + $0x3c] sm:$0x1]  ;;  %v1359_v58 = vrot.slane %v1358_v40, 4  ;;  %v3122_v60 = vor.u32 %v3538_v51, %v3121_v45  ;;  %v802_v32 = vld [vmem:[#allocation2 + $0xc4] sm:$0x1]  ;;  %v1377_v62 = vrot.slane %v1375_v44, 5 }
  0xc2   : > { %807 = vst [vmem:[#allocation2 + $0xc8] sm:$0xf] %v806_v29  ;;  %v1372_v61 = vor.u32 %v1371_v49, %v1368_v48  ;;  %v803_v35 = vsel %vm3793_vm2, %v735_v15, %v802_v32  ;;  %v808_v3 = vld [vmem:[#allocation2 + $0xcc] sm:$0x1]  ;;  %v288_v4 = vsel %vm3793_vm2, 0, %v287_v54  ;;  %v292_v5 = vsel %vm3793_vm2, 0, %v291_v2 }
  0xc3   : > { %v1364_v34 = vsel %vm4030_vm8, %v1359_v58, %v1363_v28  ;;  %2853 = vmatmul.bf16.vlgmr.msrb.gmra.mxu2 %v3122_v60  ;;  %804 = vst [vmem:[#allocation2 + $0xc4] sm:$0x1] %v803_v35  ;;  %v809_v46 = vsel %vm3793_vm2, %v743_v22, %v808_v3  ;;  %v408_v6 = vld [vmem:[%s3855_s27 + $0x60] sm:$0xf]  ;;  %v409_v36 = vld [vmem:[%s3855_s27 + $0x70] sm:$0xf] }
  0xc4   : > { %v1373_v8 = vrot.slane %v1372_v61, 4  ;;  %1419 = vst [vmem:[#allocation3 + $0xa0] sm:$0xf] %v1364_v34  ;;  %v459_v12 = vshrl.u32 %v408_v6, 16  ;;  %v462_v9 = vshll.u32 %v408_v6, 16  ;;  %v467_v10 = vshrl.u32 %v409_v36, 16 }
  0xc5   : > { %810 = vst [vmem:[#allocation2 + $0xcc] sm:$0x1] %v809_v46  ;;  %v984_v30 = vld [vmem:[#allocation2 + $0xc0] sm:$0xf]  ;;  %v470_v59 = vshll.u32 %v409_v36, 16  ;;  %v3633_v44 = vld [vmem:[%s4669_s1 + $0x210] sm:$0xff] }
  0xc6   : > { %v1378_v11 = vsel %vm4030_vm8, %v1373_v8, %v1377_v62  ;;  %v1076_v53 = vshrl.u32 %v984_v30, 16  ;;  %v1079_v13 = vshll.u32 %v984_v30, 16  ;;  %289 = vst [vmem:[#allocation2 + $0x3c] sm:$0x1] %v288_v4  ;;  %v461_v14 = vrot.slane %v459_v12, 7  ;;  %2908 = vmatpush.bf16.msra.mxu0 %v3633_v44  ;;  %3675 = vmatpush.bf16.msra.mxu2 %v3633_v44 }
  0xc7   : > { %1420 = vst [vmem:[#allocation3 + $0xc4] sm:$0xf] %v1378_v11  ;;  %v469_v41 = vrot.slane %v467_v10, 7  ;;  %v530_v57 = vld [vmem:[#allocation2 + $0x38] sm:$0xf] }
  0xc8   : > { %v1078_v16 = vrot.slane %v1076_v53, 4  ;;  %v1081_v18 = vrot.slane %v1079_v13, 5  ;;  %293 = vst [vmem:[#allocation2 + $0x44] sm:$0x1] %v292_v5  ;;  %v464_v7 = vor.u32 %v462_v9, %v461_v14  ;;  %v465_v21 = vrot.slane %v461_v14, 4  ;;  %v3632_v9 = vld [vmem:[%s4669_s1 + $0x208] sm:$0xff] }
  0xc9   : > { %v986_v15 = vld [vmem:[#allocation2 + $0xc8] sm:$0xf]  ;;  %v472_v22 = vor.u32 %v470_v59, %v469_v41  ;;  %v536_v24 = vld [vmem:[#allocation2 + $0x40] sm:$0xf]  ;;  %v473_v31 = vrot.slane %v469_v41, 4 }
  0xca   : > { %v1090_v19 = vshrl.u32 %v986_v15, 16  ;;  %v1093_v20 = vshll.u32 %v986_v15, 16  ;;  %v985_v26 = vld [vmem:[#allocation2 + $0xc4] sm:$0x1]  ;;  %v1082_v27 = vor.u32 %v1081_v18, %v1078_v16  ;;  %v531_v33 = vsel %vm3953_vm5, %v464_v7, %v530_v57  ;;  %v1583_v37 = vld [vmem:[#allocation2 + $0x98] sm:$0xf]  ;;  %2909 = vmatpush.bf16.msra.mxu0 %v3632_v9  ;;  %3676 = vmatpush.bf16.msra.mxu2 %v3632_v9 }
  0xcb   : > { %v3185_v42 = vld [vmem:[#allocation3 + $0xa0] sm:$0xf]  ;;  %v1085_v43 = vshll.u32 %v985_v26, 16  ;;  %v537_v28 = vsel %vm3953_vm5, %v472_v22, %v536_v24  ;;  %532 = vst [vmem:[#allocation2 + $0x38] sm:$0xf] %v531_v33  ;;  %v1600_v48 = vshrl.u32 %v1583_v37, 16 }
  0xcc   : > { %v1092_v17 = vrot.slane %v1090_v19, 4  ;;  %v1095_v40 = vrot.slane %v1093_v20, 5  ;;  %v987_v45 = vld [vmem:[#allocation2 + $0xcc] sm:$0x1]  ;;  %v1083_v47 = vrot.slane %v1082_v27, 4  ;;  %v1603_v6 = vshll.u32 %v1583_v37, 16 }
  0xcd   : > { %v1087_v49 = vrot.slane %v1085_v43, 5  ;;  %v1099_v29 = vshll.u32 %v987_v45, 16  ;;  %v533_v54 = vld [vmem:[#allocation2 + $0x3c] sm:$0x1]  ;;  %538 = vst [vmem:[#allocation2 + $0x40] sm:$0xf] %v537_v28 }
  0xce   : > { %v1096_v51 = vor.u32 %v1095_v40, %v1092_v17  ;;  %v3555_v58 = vld [vmem:[#allocation3 + $0xc0] sm:$0xf0]  ;;  %v534_v60 = vsel %vm3793_vm2, %v465_v21, %v533_v54  ;;  %v1584_v32 = vld [vmem:[#allocation2 + $0x9c] sm:$0x1]  ;;  %v1585_v61 = vld [vmem:[#allocation2 + $0xa0] sm:$0xf] }
  0xcf   : > { %v3186_v62 = vor.u32 %v3555_v58, %v3185_v42  ;;  %v1088_v35 = vsel %vm4030_vm8, %v1083_v47, %v1087_v49  ;;  %v1101_v2 = vrot.slane %v1099_v29, 5  ;;  %535 = vst [vmem:[#allocation2 + $0x3c] sm:$0x1] %v534_v60  ;;  %v539_v34 = vld [vmem:[#allocation2 + $0x44] sm:$0x1]  ;;  %v1602_v5 = vrot.slane %v1600_v48, 4 }
  0xd0   : > { %v1097_v3 = vrot.slane %v1096_v51, 4  ;;  %1117 = vst [vmem:[#allocation3 + $0xdc] sm:$0xf] %v1088_v35  ;;  %v540_v46 = vsel %vm3793_vm2, %v473_v31, %v539_v34  ;;  %v1586_v4 = vld [vmem:[#allocation2 + $0xa4] sm:$0x1]  ;;  %v1609_v36 = vshll.u32 %v1584_v32, 16 }
  0xd1   : > { %2805 = vmatmul.bf16.gmra.mxu0 %v3186_v62  ;;  %541 = vst [vmem:[#allocation2 + $0x44] sm:$0x1] %v540_v46  ;;  %v1614_v12 = vshrl.u32 %v1585_v61, 16  ;;  %v1617_v30 = vshll.u32 %v1585_v61, 16  ;;  %v1605_v10 = vrot.slane %v1603_v6, 5  ;;  %v1623_v11 = vshll.u32 %v1586_v4, 16 }
  0xd2   : > { %v1102_v8 = vsel %vm4030_vm8, %v1097_v3, %v1101_v2  ;;  %v1569_v53 = vld [vmem:[#allocation2 + $0xf0] sm:$0xf]  ;;  %v1291_v13 = vld [vmem:[#allocation2 + $0x38] sm:$0xf]  ;;  %v1611_v14 = vrot.slane %v1609_v36, 5  ;;  %v3631_v57 = vld [vmem:[%s4669_s1 + $0x200] sm:$0xff] }
  0xd3   : > { %1118 = vst [vmem:[#allocation3 + $0x100] sm:$0xf] %v1102_v8  ;;  %v1616_v41 = vrot.slane %v1614_v12, 4  ;;  %v1619_v59 = vrot.slane %v1617_v30, 5  ;;  %v1380_v16 = vshrl.u32 %v1291_v13, 16  ;;  %v1383_v18 = vshll.u32 %v1291_v13, 16  ;;  %2910 = vmatpush.bf16.msra.mxu0 %v3631_v57  ;;  %3677 = vmatpush.bf16.msra.mxu2 %v3631_v57 }
  0xd4   : > { %v1293_v15 = vld [vmem:[#allocation2 + $0x40] sm:$0xf]  ;;  %v1606_v7 = vor.u32 %v1605_v10, %v1602_v5  ;;  %v1625_v19 = vrot.slane %v1623_v11, 5  ;;  %v1570_v24 = vld [vmem:[#allocation2 + $0xf8] sm:$0xf] }
  0xd5   : > { %v1394_v20 = vshrl.u32 %v1293_v15, 16  ;;  %v1397_v21 = vshll.u32 %v1293_v15, 16  ;;  %v1620_v22 = vor.u32 %v1619_v59, %v1616_v41  ;;  %1577 = vst [vmem:[#allocation3 + $0x60] sm:$0xf] %v1569_v53  ;;  %v1382_v26 = vrot.slane %v1380_v16, 4 }
  0xd6   : > { %v1292_v25 = vld [vmem:[#allocation2 + $0x3c] sm:$0x1]  ;;  %v1385_v27 = vrot.slane %v1383_v18, 5  ;;  %v1607_v31 = vrot.slane %v1606_v7, 4  ;;  %1578 = vst [vmem:[#allocation3 + $0x84] sm:$0xf] %v1570_v24 }
  0xd7   : > { %v3558_v33 = vld [vmem:[#allocation3 + $0xdc] sm:$0xf]  ;;  %v1389_v37 = vshll.u32 %v1292_v25, 16  ;;  %v1396_v38 = vrot.slane %v1394_v20, 4  ;;  %v1399_v42 = vrot.slane %v1397_v21, 5  ;;  %v1621_v43 = vrot.slane %v1620_v22, 4 }
  0xd8   : > { %v1294_v17 = vld [vmem:[#allocation2 + $0x44] sm:$0x1]  ;;  %v1386_v40 = vor.u32 %v1385_v27, %v1382_v26  ;;  %v1612_v28 = vsel %vm4030_vm8, %v1607_v31, %v1611_v14  ;;  %v1423_v44 = vld [vmem:[#allocation2 + $0x50] sm:$0xf]  ;;  %v1424_v58 = vld [vmem:[#allocation2 + $0x54] sm:$0x1] }
  0xd9   : > { %v1391_v47 = vrot.slane %v1389_v37, 5  ;;  %v1400_v48 = vor.u32 %v1399_v42, %v1396_v38  ;;  %v1403_v49 = vshll.u32 %v1294_v17, 16  ;;  %v1626_v51 = vsel %vm4030_vm8, %v1621_v43, %v1625_v19  ;;  %1719 = vst [vmem:[#allocation3 + $0x1c] sm:$0xf] %v1612_v28  ;;  %v1425_v62 = vld [vmem:[#allocation2 + $0x58] sm:$0xf] }
  0xda   : > { %v3207_v45 = vld [vmem:[#allocation3 + $0xfc] sm:$0xf0]  ;;  %v1387_v54 = vrot.slane %v1386_v40, 4  ;;  %1720 = vst [vmem:[#allocation3 + $0x40] sm:$0xf] %v1626_v51  ;;  %v1440_v60 = vshrl.u32 %v1423_v44, 16 }
  0xdb   : > { %v3210_v29 = vor.u32 %v3558_v33, %v3207_v45  ;;  %v1401_v32 = vrot.slane %v1400_v48, 4  ;;  %v1405_v61 = vrot.slane %v1403_v49, 5  ;;  %v1426_v35 = vld [vmem:[#allocation2 + $0x5c] sm:$0x1]  ;;  %v1443_v46 = vshll.u32 %v1423_v44, 16 }
  0xdc   : > { %v1392_v3 = vsel %vm4030_vm8, %v1387_v54, %v1391_v47  ;;  %v3157_v2 = vld [vmem:[#allocation3 + $0x60] sm:$0xf]  ;;  %v1442_v34 = vrot.slane %v1440_v60, 4  ;;  %v1449_v4 = vshll.u32 %v1424_v58, 16  ;;  %v1454_v6 = vshrl.u32 %v1425_v62, 16 }
  0xdd   : > { %2723 = vmatmul.bf16.gmra.mxu1 %v3210_v29  ;;  %v1406_v5 = vsel %vm4030_vm8, %v1401_v32, %v1405_v61  ;;  %1421 = vst [vmem:[#allocation3 + $0xe8] sm:$0xf] %v1392_v3  ;;  %v1457_v8 = vshll.u32 %v1425_v62, 16  ;;  %v1463_v36 = vshll.u32 %v1426_v35, 16  ;;  %v1445_v12 = vrot.slane %v1443_v46, 5 }
  0xde   : > { %1422 = vst [vmem:[#allocation3 + $0x10c] sm:$0xf] %v1406_v5  ;;  %v1451_v30 = vrot.slane %v1449_v4, 5  ;;  %v1587_v9 = vld [vmem:[#allocation2 + $0xa8] sm:$0xf]  ;;  %v1456_v11 = vrot.slane %v1454_v6, 4 }
  0xdf   : > { %v3547_v10 = vld [vmem:[#allocation3 + $0x80] sm:$0xf0]  ;;  %v1459_v53 = vrot.slane %v1457_v8, 5  ;;  %v1465_v13 = vrot.slane %v1463_v36, 5  ;;  %v1628_v14 = vshrl.u32 %v1587_v9, 16  ;;  %v1446_v57 = vor.u32 %v1445_v12, %v1442_v34 }
  0xe0   : > { %v3534_v41 = vld [vmem:[#allocation3 + $0x1c] sm:$0xf]  ;;  %v3158_v59 = vor.u32 %v3547_v10, %v3157_v2  ;;  %v1588_v15 = vld [vmem:[#allocation2 + $0xac] sm:$0x1]  ;;  %v1589_v16 = vld [vmem:[#allocation2 + $0xb0] sm:$0xf] }
  0xe1   : > { %v3123_v18 = vld [vmem:[#allocation3 + $0x3c] sm:$0xf0]  ;;  %v1460_v7 = vor.u32 %v1459_v53, %v1456_v11  ;;  %v1590_v19 = vld [vmem:[#allocation2 + $0xb4] sm:$0x1]  ;;  %v1630_v20 = vrot.slane %v1628_v14, 4  ;;  %v1631_v21 = vshll.u32 %v1587_v9, 16 }
  0xe2   : > { %v3126_v22 = vor.u32 %v3534_v41, %v3123_v18  ;;  %2858 = vmatmul.bf16.gmra.mxu2 %v3158_v59  ;;  %v1447_v24 = vrot.slane %v1446_v57, 4  ;;  %v1637_v25 = vshll.u32 %v1588_v15, 16  ;;  %v1642_v26 = vshrl.u32 %v1589_v16, 16  ;;  %v1727_v27 = vld [vmem:[#allocation2 + $0xe0] sm:$0xf] }
  0xe3   : > { %v1461_v31 = vrot.slane %v1460_v7, 4  ;;  %v1633_v33 = vrot.slane %v1631_v21, 5  ;;  %v1645_v37 = vshll.u32 %v1589_v16, 16  ;;  %v1651_v38 = vshll.u32 %v1590_v19, 16  ;;  %v1728_v42 = vld [vmem:[#allocation2 + $0xe4] sm:$0x1] }
  0xe4   : > { %v3221_v43 = vld [vmem:[#allocation3 + $0xe8] sm:$0xf]  ;;  %2882 = vmatmul.bf16.vlgmr.msrb.gmra.mxu3 %v3126_v22  ;;  %v1452_v17 = vsel %vm4030_vm8, %v1447_v24, %v1451_v30  ;;  %v1639_v40 = vrot.slane %v1637_v25, 5  ;;  %v1644_v28 = vrot.slane %v1642_v26, 4  ;;  %v1730_v54 = vld [vmem:[#allocation2 + $0xec] sm:$0x1] }
  0xe5   : > { %v1729_v44 = vld [vmem:[#allocation2 + $0xe8] sm:$0xf]  ;;  %v3564_v45 = vld [vmem:[#allocation3 + $0x108] sm:$0xf0]  ;;  %v1466_v47 = vsel %vm4030_vm8, %v1461_v31, %v1465_v13  ;;  %1559 = vst [vmem:[#allocation3 + $0x14] sm:$0xf] %v1452_v17  ;;  %v1634_v48 = vor.u32 %v1633_v33, %v1630_v20 }
  0xe6   : > { %v1647_v49 = vrot.slane %v1645_v37, 5  ;;  %v1653_v51 = vrot.slane %v1651_v38, 5  ;;  %v3222_v29 = vor.u32 %v3564_v45, %v3221_v43  ;;  %1560 = vst [vmem:[#allocation3 + $0x38] sm:$0xf] %v1466_v47  ;;  %v1744_v58 = vshrl.u32 %v1727_v27, 16 }
  0xe7   : > { %v1747_v60 = vshll.u32 %v1727_v27, 16  ;;  %v1635_v32 = vrot.slane %v1634_v48, 4  ;;  %v1753_v62 = vshll.u32 %v1728_v42, 16  ;;  %v1758_v35 = vshrl.u32 %v1729_v44, 16  ;;  %v1571_v3 = vld [vmem:[#allocation2 + $0x100] sm:$0xf] }
  0xe8   : > { %v1648_v61 = vor.u32 %v1647_v49, %v1644_v28  ;;  %2810 = vmatmul.bf16.gmra.mxu0 %v3222_v29  ;;  %v1746_v2 = vrot.slane %v1744_v58, 4  ;;  %v1761_v46 = vshll.u32 %v1729_v44, 16  ;;  %v1767_v4 = vshll.u32 %v1730_v54, 16  ;;  %v1572_v5 = vld [vmem:[#allocation2 + $0x108] sm:$0xf] }
  0xe9   : > { %v1749_v34 = vrot.slane %v1747_v60, 5  ;;  %v1640_v6 = vsel %vm4030_vm8, %v1635_v32, %v1639_v40  ;;  %v1760_v36 = vrot.slane %v1758_v35, 4  ;;  %1579 = vst [vmem:[#allocation3 + $0xa8] sm:$0xf] %v1571_v3  ;;  %v1755_v30 = vrot.slane %v1753_v62, 5 }
  0xea   : > { %v1649_v8 = vrot.slane %v1648_v61, 4  ;;  %1721 = vst [vmem:[#allocation3 + $0x64] sm:$0xf] %v1640_v6  ;;  %v1763_v9 = vrot.slane %v1761_v46, 5  ;;  %v307_v10 = vld [vmem:[#allocation2 + $0x64] sm:$0x1] }
  0xeb   : > { %v1750_v12 = vor.u32 %v1749_v34, %v1746_v2  ;;  %v1769_v53 = vrot.slane %v1767_v4, 5  ;;  %1580 = vst [vmem:[#allocation3 + $0xcc] sm:$0xf] %v1572_v5  ;;  %v308_v13 = vsel %vm3793_vm2, 0, %v307_v10  ;;  %v311_v14 = vld [vmem:[#allocation2 + $0x6c] sm:$0x1] }
  0xec   : > { %v1654_v11 = vsel %vm4030_vm8, %v1649_v8, %v1653_v51  ;;  %v3533_v41 = vld [vmem:[#allocation3 + $0x14] sm:$0xf]  ;;  %v1764_v57 = vor.u32 %v1763_v9, %v1760_v36  ;;  %v312_v15 = vsel %vm3793_vm2, 0, %v311_v14  ;;  %309 = vst [vmem:[#allocation2 + $0x64] sm:$0x1] %v308_v13  ;;  %v573_v24 = vrot.slane %v4163_v63, 4 }
  0xed   : > { %1722 = vst [vmem:[#allocation3 + $0x88] sm:$0xf] %v1654_v11  ;;  %v1751_v59 = vrot.slane %v1750_v12, 4  ;;  %v3115_v16 = vld [vmem:[#allocation3 + $0x34] sm:$0xf0]  ;;  %v581_v31 = vrot.slane %v4167_v0, 4 }
  0xee   : > { %v1427_v18 = vld [vmem:[#allocation2 + $0x60] sm:$0xf]  ;;  %v3118_v7 = vor.u32 %v3533_v41, %v3115_v16  ;;  %v1765_v20 = vrot.slane %v1764_v57, 4  ;;  %313 = vst [vmem:[#allocation2 + $0x6c] sm:$0x1] %v312_v15 }
  0xef   : > { %v1756_v19 = vsel %vm4030_vm8, %v1751_v59, %v1755_v30  ;;  %v1429_v21 = vld [vmem:[#allocation2 + $0x68] sm:$0xf]  ;;  %v1468_v22 = vshrl.u32 %v1427_v18, 16  ;;  %v1471_v25 = vshll.u32 %v1427_v18, 16  ;;  %v1591_v42 = vld [vmem:[#allocation2 + $0xb8] sm:$0xf] }
  0xf0   : > { %1863 = vst [vmem:[#allocation3 + $0x20] sm:$0xf] %v1756_v19  ;;  %v1482_v26 = vshrl.u32 %v1429_v21, 16  ;;  %v1485_v27 = vshll.u32 %v1429_v21, 16  ;;  %2824 = vmatmul.bf16.vlgmr.msra.gmra.mxu1 %v3118_v7  ;;  %v1770_v33 = vsel %vm4030_vm8, %v1765_v20, %v1769_v53  ;;  %v3193_v37 = vld [vmem:[#allocation3 + $0xa8] sm:$0xf] }
  0xf1   : > { %v1470_v38 = vrot.slane %v1468_v22, 4  ;;  %v3543_v43 = vld [vmem:[#allocation3 + $0x64] sm:$0xf]  ;;  %1864 = vst [vmem:[#allocation3 + $0x44] sm:$0xf] %v1770_v33  ;;  %v1473_v17 = vrot.slane %v1471_v25, 5 }
  0xf2   : > { %v1484_v40 = vrot.slane %v1482_v26, 4  ;;  %v3556_v28 = vld [vmem:[#allocation3 + $0xc8] sm:$0xf0]  ;;  %v1487_v44 = vrot.slane %v1485_v27, 5  ;;  %v1592_v63 = vld [vmem:[#allocation2 + $0xbc] sm:$0x1] }
  0xf3   : > { %v1656_v45 = vshrl.u32 %v1591_v42, 16  ;;  %v3194_v48 = vor.u32 %v3556_v28, %v3193_v37  ;;  %v1474_v49 = vor.u32 %v1473_v17, %v1470_v38  ;;  %v1593_v51 = vld [vmem:[#allocation2 + $0xc0] sm:$0xf]  ;;  %v1594_v0 = vld [vmem:[#allocation2 + $0xc4] sm:$0x1]  ;;  %v1659_v32 = vshll.u32 %v1591_v42, 16 }
  0xf4   : > { %v3159_v47 = vld [vmem:[#allocation3 + $0x84] sm:$0xf0]  ;;  %v646_v54 = vld [vmem:[#allocation2 + $0x64] sm:$0x1]  ;;  %v1488_v58 = vor.u32 %v1487_v44, %v1484_v40  ;;  %v1731_v61 = vld [vmem:[#allocation2 + $0xf0] sm:$0xf] }
  0xf5   : > { %v3162_v29 = vor.u32 %v3543_v43, %v3159_v47  ;;  %v1658_v60 = vrot.slane %v1656_v45, 4  ;;  %2863 = vmatmul.bf16.gmra.mxu2 %v3194_v48  ;;  %v647_v62 = vsel %vm3793_vm2, %v573_v24, %v646_v54  ;;  %v652_v35 = vld [vmem:[#allocation2 + $0x6c] sm:$0x1]  ;;  %v4478_v3 = vrot.slane %v1474_v49, 4  ;;  %v1732_v11 = vld [vmem:[#allocation2 + $0xf4] sm:$0x1] }
  0xf6   : > { %v1665_v2 = vshll.u32 %v1592_v63, 16  ;;  %v1670_v34 = vshrl.u32 %v1593_v51, 16  ;;  %648 = vst [vmem:[#allocation2 + $0x64] sm:$0x1] %v647_v62  ;;  %v653_v4 = vsel %vm3793_vm2, %v581_v31, %v652_v35  ;;  %v4482_v5 = vrot.slane %v1488_v58, 4 }
  0xf7   : > { %2887 = vmatmul.bf16.gmra.mxu3 %v3162_v29  ;;  %v3129_v46 = vld [vmem:[#allocation3 + $0x20] sm:$0xf]  ;;  %v1661_v6 = vrot.slane %v1659_v32, 5  ;;  %654 = vst [vmem:[#allocation2 + $0x6c] sm:$0x1] %v653_v4  ;;  %v1673_v12 = vshll.u32 %v1593_v51, 16 }
  0xf8   : > { %v1667_v8 = vrot.slane %v1665_v2, 5  ;;  %v1672_v36 = vrot.slane %v1670_v34, 4  ;;  %v1679_v30 = vshll.u32 %v1594_v0, 16  ;;  %v3539_v9 = vld [vmem:[#allocation3 + $0x40] sm:$0xf0]  ;;  %v1772_v57 = vshrl.u32 %v1731_v61, 16 }
  0xf9   : > { %v1662_v10 = vor.u32 %v1661_v6, %v1658_v60  ;;  %v1733_v53 = vld [vmem:[#allocation2 + $0xf8] sm:$0xf]  ;;  %v3130_v13 = vor.u32 %v3539_v9, %v3129_v46  ;;  %v1675_v14 = vrot.slane %v1673_v12, 5  ;;  %v1734_v59 = vld [vmem:[#allocation2 + $0xfc] sm:$0x1]  ;;  %v1775_v16 = vshll.u32 %v1731_v61, 16 }
  0xfa   : > { %v1681_v41 = vrot.slane %v1679_v30, 5  ;;  %v1781_v18 = vshll.u32 %v1732_v11, 16  ;;  %v1786_v7 = vshrl.u32 %v1733_v53, 16  ;;  %v1774_v20 = vrot.slane %v1772_v57, 4  ;;  %v399_v24 = vld [vmem:[#allocation2 + $0x11c] sm:$0x1] }
  0xfb   : > { %v1663_v15 = vrot.slane %v1662_v10, 4  ;;  %2911 = vmatmul.bf16.vlgmr.msra.gmra.mxu0 %v3130_v13  ;;  %v1676_v19 = vor.u32 %v1675_v14, %v1672_v36  ;;  %v1789_v21 = vshll.u32 %v1733_v53, 16  ;;  %v1795_v22 = vshll.u32 %v1734_v59, 16  ;;  %v3094_v33 = vld [vmem:[%s3855_s27 + $0x7c] sm:$0xf] }
  0xfc   : > { %v1777_v26 = vrot.slane %v1775_v16, 5  ;;  %v1783_v27 = vrot.slane %v1781_v18, 5  ;;  %v1788_v31 = vrot.slane %v1786_v7, 4  ;;  %v400_v44 = vsel %vm3793_vm2, 0, %v399_v24  ;;  %v1573_v49 = vld [vmem:[#allocation2 + $0x110] sm:$0xf] }
  0xfd   : > { %v1668_v25 = vsel %vm4030_vm8, %v1663_v15, %v1667_v8  ;;  %v1428_v37 = vld [vmem:[#allocation2 + $0x64] sm:$0x1]  ;;  %v1677_v38 = vrot.slane %v1676_v19, 4  ;;  %v1791_v42 = vrot.slane %v1789_v21, 5  ;;  %v1797_v28 = vrot.slane %v1795_v22, 5 }
  0xfe   : > { %1723 = vst [vmem:[#allocation3 + $0xac] sm:$0xf] %v1668_v25  ;;  %v1430_v43 = vld [vmem:[#allocation2 + $0x6c] sm:$0x1]  ;;  %v1477_v17 = vshll.u32 %v1428_v37, 16  ;;  %v1778_v40 = vor.u32 %v1777_v26, %v1774_v20  ;;  %v882_v48 = vshrl.u32 %v3094_v33, 16 }
  0xff   : > { %v1491_v63 = vshll.u32 %v1430_v43, 16  ;;  %v1682_v45 = vsel %vm4030_vm8, %v1677_v38, %v1681_v41  ;;  %v1792_v47 = vor.u32 %v1791_v42, %v1788_v31  ;;  %401 = vst [vmem:[#allocation2 + $0x11c] sm:$0x1] %v400_v44  ;;  %v885_v29 = vshll.u32 %v3094_v33, 16  ;;  %v948_v35 = vld [vmem:[#allocation2 + $0x118] sm:$0xf]  ;;  %v4509_v41 = vpop.f32.mrf.mxu1 }
 0x100   : > { %v1479_v51 = vrot.slane %v1477_v17, 5  ;;  %1724 = vst [vmem:[#allocation3 + $0xd0] sm:$0xf] %v1682_v45  ;;  %v1779_v0 = vrot.slane %v1778_v40, 4  ;;  %v884_v60 = vrot.slane %v882_v48, 7  ;;  %v589_v32 = vrot.slane %v4246_v23, 4 }
 0x101   : > { %v1493_v54 = vrot.slane %v1491_v63, 5  ;;  %v1793_v58 = vrot.slane %v1792_v47, 4  ;;  %1581 = vst [vmem:[#allocation3 + $0xf0] sm:$0xf] %v1573_v49  ;;  %v1431_v2 = vld [vmem:[#allocation2 + $0x70] sm:$0xf] }
 0x102   : > { %v1480_v61 = vsel %vm4030_vm8, %v4478_v3, %v1479_v51  ;;  %v1784_v62 = vsel %vm4030_vm8, %v1779_v0, %v1783_v27  ;;  %v887_v4 = vor.u32 %v885_v29, %v884_v60  ;;  %v888_v6 = vrot.slane %v884_v60, 4  ;;  %v315_v8 = vld [vmem:[#allocation2 + $0x74] sm:$0x1]  ;;  %v319_v36 = vld [vmem:[#allocation2 + $0x7c] sm:$0x1] }
 0x103   : > { %v1494_v34 = vsel %vm4030_vm8, %v4482_v5, %v1493_v54  ;;  %1561 = vst [vmem:[#allocation3 + $0x5c] sm:$0xf] %v1480_v61  ;;  %v1798_v46 = vsel %vm4030_vm8, %v1793_v58, %v1797_v28  ;;  %v1433_v12 = vld [vmem:[#allocation2 + $0x78] sm:$0xf]  ;;  %v1496_v9 = vshrl.u32 %v1431_v2, 16  ;;  %v1499_v10 = vshll.u32 %v1431_v2, 16  ;;  %v4522_v58 = vpop.f32.mrf.mxu0 }
 0x104   : > { %1562 = vst [vmem:[#allocation3 + $0x80] sm:$0xf] %v1494_v34  ;;  %v949_v30 = vsel %vm3953_vm5, %v887_v4, %v948_v35  ;;  %v597_v11 = vrot.slane %v4248_v56, 4  ;;  %v316_v53 = vsel %vm3793_vm2, 0, %v315_v8  ;;  %v320_v59 = vsel %vm3793_vm2, 0, %v319_v36 }
 0x105   : > { %v3552_v3 = vld [vmem:[#allocation3 + $0xac] sm:$0xf]  ;;  %1865 = vst [vmem:[#allocation3 + $0x68] sm:$0xf] %v1784_v62  ;;  %v1510_v57 = vshrl.u32 %v1433_v12, 16  ;;  %v4513_v16 = vrot.slane %v1496_v9, 4 }
 0x106   : > { %1866 = vst [vmem:[#allocation3 + $0x8c] sm:$0xf] %v1798_v46  ;;  %v951_v5 = vld [vmem:[#allocation2 + $0x11c] sm:$0x1]  ;;  %v4515_v18 = vrot.slane %v1499_v10, 5  ;;  %v1513_v7 = vshll.u32 %v1433_v12, 16 }
 0x107   : > { %v3195_v13 = vld [vmem:[#allocation3 + $0xcc] sm:$0xf0]  ;;  %950 = vst [vmem:[#allocation2 + $0x118] sm:$0xf] %v949_v30  ;;  %v952_v14 = vsel %vm3793_vm2, %v888_v6, %v951_v5  ;;  %v363_v19 = vld [vmem:[#allocation2 + $0xd4] sm:$0x1]  ;;  %v4530_v4 = vpop.f32.mrf.mxu1 }
 0x108   : > { %v3198_v15 = vor.u32 %v3552_v3, %v3195_v13  ;;  %953 = vst [vmem:[#allocation2 + $0x11c] sm:$0x1] %v952_v14  ;;  %v3086_v20 = vld [vmem:[%s3855_s27 + $0x78] sm:$0xf]  ;;  %v364_v22 = vsel %vm3793_vm2, 0, %v363_v19  ;;  %v1512_v26 = vrot.slane %v1510_v57, 4  ;;  %v1502_v54 = vor.u32 %v4515_v18, %v4513_v16 }
 0x109   : > { %317 = vst [vmem:[#allocation2 + $0x74] sm:$0x1] %v316_v53  ;;  %v745_v24 = vshrl.u32 %v3086_v20, 16  ;;  %v748_v27 = vshll.u32 %v3086_v20, 16  ;;  %v1515_v37 = vrot.slane %v1513_v7, 5 }
 0x10a   : > { %v3542_v21 = vld [vmem:[#allocation3 + $0x5c] sm:$0xf]  ;;  %2892 = vmatmul.bf16.gmra.mxu3 %v3198_v15  ;;  %321 = vst [vmem:[#allocation2 + $0x7c] sm:$0x1] %v320_v59  ;;  %v811_v42 = vld [vmem:[#allocation2 + $0xd0] sm:$0xf] }
 0x10b   : > { %v3151_v25 = vld [vmem:[#allocation3 + $0x7c] sm:$0xf0]  ;;  %365 = vst [vmem:[#allocation2 + $0xd4] sm:$0x1] %v364_v22  ;;  %v747_v38 = vrot.slane %v745_v24, 7  ;;  %v1516_v46 = vor.u32 %v1515_v37, %v1512_v26  ;;  %v1503_v59 = vrot.slane %v1502_v54, 4 }
 0x10c   : > { %v3154_v31 = vor.u32 %v3542_v21, %v3151_v25  ;;  %v3165_v33 = vld [vmem:[#allocation3 + $0x68] sm:$0xf]  ;;  %v1596_v40 = vld [vmem:[#allocation2 + $0xcc] sm:$0x1]  ;;  %v1735_v48 = vld [vmem:[#allocation2 + $0x100] sm:$0xf] }
 0x10d   : > { %v3548_v43 = vld [vmem:[#allocation3 + $0x88] sm:$0xf0]  ;;  %v1595_v17 = vld [vmem:[#allocation2 + $0xc8] sm:$0xf]  ;;  %v750_v63 = vor.u32 %v748_v27, %v747_v38  ;;  %v751_v45 = vrot.slane %v747_v38, 4  ;;  %v1693_v51 = vshll.u32 %v1596_v40, 16 }
 0x10e   : > { %2829 = vmatmul.bf16.gmra.mxu1 %v3154_v31  ;;  %v3166_v28 = vor.u32 %v3548_v43, %v3165_v33  ;;  %v1574_v44 = vld [vmem:[#allocation2 + $0x118] sm:$0xf]  ;;  %v1684_v47 = vshrl.u32 %v1595_v17, 16  ;;  %v1687_v49 = vshll.u32 %v1595_v17, 16  ;;  %v1736_v0 = vld [vmem:[#allocation2 + $0x104] sm:$0x1] }
 0x10f   : > { %1582 = vst [vmem:[#allocation3 + $0x114] sm:$0xf] %v1574_v44  ;;  %v812_v60 = vsel %vm3953_vm5, %v750_v63, %v811_v42  ;;  %v1737_v62 = vld [vmem:[#allocation2 + $0x108] sm:$0xf]  ;;  %v1800_v35 = vshrl.u32 %v1735_v48, 16  ;;  %v1695_v8 = vrot.slane %v1693_v51, 5 }
 0x110   : > { %2916 = vmatmul.bf16.gmra.mxu0 %v3166_v28  ;;  %v658_v29 = vld [vmem:[#allocation2 + $0x74] sm:$0x1]  ;;  %v1686_v61 = vrot.slane %v1684_v47, 4  ;;  %813 = vst [vmem:[#allocation2 + $0xd0] sm:$0xf] %v812_v60  ;;  %v1689_v6 = vrot.slane %v1687_v49, 5  ;;  %v4540_v49 = vpop.f32.mrf.mxu0 }
 0x111   : > { %v659_v2 = vsel %vm3793_vm2, %v589_v32, %v658_v29  ;;  %v664_v34 = vld [vmem:[#allocation2 + $0x7c] sm:$0x1]  ;;  %v3229_v36 = vld [vmem:[#allocation3 + $0xf0] sm:$0xf]  ;;  %v1738_v3 = vld [vmem:[#allocation2 + $0x10c] sm:$0x1] }
 0x112   : > { %660 = vst [vmem:[#allocation2 + $0x74] sm:$0x1] %v659_v2  ;;  %v665_v55 = vsel %vm3793_vm2, %v597_v11, %v664_v34  ;;  %v814_v12 = vld [vmem:[#allocation2 + $0xd4] sm:$0x1]  ;;  %v1690_v32 = vor.u32 %v1689_v6, %v1686_v61  ;;  %v1802_v30 = vrot.slane %v1800_v35, 4  ;;  %v1803_v9 = vshll.u32 %v1735_v48, 16  ;;  %v4544_v61 = vpop.f32.mrf.mxu1 }
 0x113   : > { %666 = vst [vmem:[#allocation2 + $0x7c] sm:$0x1] %v665_v55  ;;  %v815_v23 = vsel %vm3793_vm2, %v751_v45, %v814_v12  ;;  %v1739_v10 = vld [vmem:[#allocation2 + $0x110] sm:$0xf]  ;;  %v1809_v5 = vshll.u32 %v1736_v0, 16  ;;  %v1814_v53 = vshrl.u32 %v1737_v62, 16 }
 0x114   : > { %816 = vst [vmem:[#allocation2 + $0xd4] sm:$0x1] %v815_v23  ;;  %v1817_v13 = vshll.u32 %v1737_v62, 16  ;;  %v1823_v14 = vshll.u32 %v1738_v3, 16  ;;  %v1517_v56 = vrot.slane %v1516_v46, 4  ;;  %v1691_v57 = vrot.slane %v1690_v32, 4 }
 0x115   : > { %v1805_v15 = vrot.slane %v1803_v9, 5  ;;  %v1740_v11 = vld [vmem:[#allocation2 + $0x114] sm:$0x1]  ;;  %v1811_v18 = vrot.slane %v1809_v5, 5  ;;  %v1816_v7 = vrot.slane %v1814_v53, 4  ;;  %v1828_v25 = vshrl.u32 %v1739_v10, 16 }
 0x116   : > { %v3565_v16 = vld [vmem:[#allocation3 + $0x110] sm:$0xf0]  ;;  %v1819_v19 = vrot.slane %v1817_v13, 5  ;;  %v1825_v20 = vrot.slane %v1823_v14, 5  ;;  %v1696_v22 = vsel %vm4030_vm8, %v1691_v57, %v1695_v8  ;;  %v1741_v31 = vld [vmem:[#allocation2 + $0x118] sm:$0xf] }
 0x117   : > { %v3230_v21 = vor.u32 %v3565_v16, %v3229_v36  ;;  %v1806_v24 = vor.u32 %v1805_v15, %v1802_v30  ;;  %v1597_v26 = vld [vmem:[#allocation2 + $0xd0] sm:$0xf]  ;;  %1725 = vst [vmem:[#allocation3 + $0xf4] sm:$0xf] %v1696_v22  ;;  %v1831_v33 = vshll.u32 %v1739_v10, 16  ;;  %v1837_v37 = vshll.u32 %v1740_v11, 16  ;;  %v4550_v30 = vpop.f32.mrf.mxu2 }
 0x118   : > { %v1820_v27 = vor.u32 %v1819_v19, %v1816_v7  ;;  %v1698_v42 = vshrl.u32 %v1597_v26, 16  ;;  %v1701_v43 = vshll.u32 %v1597_v26, 16  ;;  %v1742_v40 = vld [vmem:[#allocation2 + $0x11c] sm:$0x1]  ;;  %v1830_v28 = vrot.slane %v1828_v25, 4  ;;  %v4562_v19 = vpop.f32.mrf.mxu0 }
 0x119   : > { %2868 = vmatmul.bf16.gmra.mxu2 %v3230_v21  ;;  %v1432_v38 = vld [vmem:[#allocation2 + $0x74] sm:$0x1]  ;;  %v1807_v17 = vrot.slane %v1806_v24, 4  ;;  %v1833_v47 = vrot.slane %v1831_v33, 5  ;;  %v1839_v48 = vrot.slane %v1837_v37, 5  ;;  %v1842_v36 = vshrl.u32 %v1741_v31, 16  ;;  %v2767_v24 = vpop.f32.mrf.mxu3 }
 0x11a   : > { %v1434_v44 = vld [vmem:[#allocation2 + $0x7c] sm:$0x1]  ;;  %v1505_v63 = vshll.u32 %v1432_v38, 16  ;;  %v1821_v45 = vrot.slane %v1820_v27, 4  ;;  %v1700_v29 = vrot.slane %v1698_v42, 4  ;;  %v1703_v54 = vrot.slane %v1701_v43, 5  ;;  %v4568_v22 = vpop.f32.mrf.mxu1 }
 0x11b   : > { %v1519_v51 = vshll.u32 %v1434_v44, 16  ;;  %v1598_v0 = vld [vmem:[#allocation2 + $0xd4] sm:$0x1]  ;;  %v1812_v60 = vsel %vm4030_vm8, %v1807_v17, %v1811_v18  ;;  %v1834_v34 = vor.u32 %v1833_v47, %v1830_v28  ;;  %v323_v46 = vld [vmem:[#allocation2 + $0x84] sm:$0x1]  ;;  %v1845_v55 = vshll.u32 %v1741_v31, 16 }
 0x11c   : > { %v1507_v62 = vrot.slane %v1505_v63, 5  ;;  %v1707_v35 = vshll.u32 %v1598_v0, 16  ;;  %v1826_v2 = vsel %vm4030_vm8, %v1821_v45, %v1825_v20  ;;  %1867 = vst [vmem:[#allocation3 + $0xb0] sm:$0xf] %v1812_v60  ;;  %v1704_v8 = vor.u32 %v1703_v54, %v1700_v29  ;;  %v327_v9 = vld [vmem:[#allocation2 + $0x8c] sm:$0x1] }
 0x11d   : > { %v1521_v6 = vrot.slane %v1519_v51, 5  ;;  %1868 = vst [vmem:[#allocation3 + $0xd4] sm:$0xf] %v1826_v2  ;;  %v1835_v23 = vrot.slane %v1834_v34, 4  ;;  %v1851_v32 = vshll.u32 %v1742_v40, 16  ;;  %v1844_v53 = vrot.slane %v1842_v36, 4 }
 0x11e   : > { %v1508_v12 = vsel %vm4030_vm8, %v1503_v59, %v1507_v62  ;;  %v1709_v3 = vrot.slane %v1707_v35, 5  ;;  %v1705_v5 = vrot.slane %v1704_v8, 4  ;;  %v1847_v14 = vrot.slane %v1845_v55, 5  ;;  %v1435_v21 = vld [vmem:[#allocation2 + $0x80] sm:$0xf] }
 0x11f   : > { %v1522_v10 = vsel %vm4030_vm8, %v1517_v56, %v1521_v6  ;;  %1563 = vst [vmem:[#allocation3 + $0xa4] sm:$0xf] %v1508_v12  ;;  %v1840_v13 = vsel %vm4030_vm8, %v1835_v23, %v1839_v48  ;;  %v324_v59 = vsel %vm3793_vm2, 0, %v323_v46  ;;  %v328_v15 = vsel %vm3793_vm2, 0, %v327_v9  ;;  %v1437_v31 = vld [vmem:[#allocation2 + $0x88] sm:$0xf]  ;;  %v4574_v40 = vpop.f32.mrf.mxu2 }
 0x120   : > { %1564 = vst [vmem:[#allocation3 + $0xc8] sm:$0xf] %v1522_v10  ;;  %v1710_v57 = vsel %vm4030_vm8, %v1705_v5, %v1709_v3  ;;  %v1848_v56 = vor.u32 %v1847_v14, %v1844_v53  ;;  %v1853_v11 = vrot.slane %v1851_v32, 5  ;;  %v605_v25 = vrot.slane %v4344_v39, 4  ;;  %v3561_v37 = vld [vmem:[#allocation3 + $0xf4] sm:$0xf]  ;;  %v2687_v54 = vpop.f32.mrf.mxu0 }
 0x121   : > { %1869 = vst [vmem:[#allocation3 + $0xf8] sm:$0xf] %v1840_v13  ;;  %v613_v38 = vrot.slane %v4347_v50, 4  ;;  %v1524_v43 = vshrl.u32 %v1435_v21, 16  ;;  %v1527_v17 = vshll.u32 %v1435_v21, 16  ;;  %v1538_v44 = vshrl.u32 %v1437_v31, 16  ;;  %v4580_v2 = vpop.f32.mrf.mxu3 }
 0x122   : > { %1726 = vst [vmem:[#allocation3 + $0x118] sm:$0xf] %v1710_v57  ;;  %v1849_v7 = vrot.slane %v1848_v56, 4  ;;  %v1541_v63 = vshll.u32 %v1437_v31, 16  ;;  %v2709_v35 = vpop.f32.mrf.mxu1 }
 0x123   : > { %v3201_v16 = vld [vmem:[#allocation3 + $0xb0] sm:$0xf]  ;;  %325 = vst [vmem:[#allocation2 + $0x84] sm:$0x1] %v324_v59  ;;  %v1526_v0 = vrot.slane %v1524_v43, 4  ;;  %v1529_v29 = vrot.slane %v1527_v17, 5  ;;  %v2710_v46 = vadd.f32 %v2709_v35, %v4522_v58 }
 0x124   : > { %v3557_v18 = vld [vmem:[#allocation3 + $0xd0] sm:$0xf0]  ;;  %329 = vst [vmem:[#allocation2 + $0x8c] sm:$0x1] %v328_v15  ;;  %v1854_v27 = vsel %vm4030_vm8, %v1849_v7, %v1853_v11  ;;  %v1540_v60 = vrot.slane %v1538_v44, 4  ;;  %v1543_v62 = vrot.slane %v1541_v63, 5 }
 0x125   : > { %v3202_v20 = vor.u32 %v3557_v18, %v3201_v16  ;;  %1870 = vst [vmem:[#allocation3 + $0x11c] sm:$0xf] %v1854_v27  ;;  %v1530_v8 = vor.u32 %v1529_v29, %v1526_v0  ;;  %v2739_v36 = vadd.f32 %v4550_v30, %v2710_v46 }
 0x126   : > { %v3551_v26 = vld [vmem:[#allocation3 + $0xa4] sm:$0xf]  ;;  %v1544_v55 = vor.u32 %v1543_v62, %v1540_v60 }
 0x127   : > { %v3187_v33 = vld [vmem:[#allocation3 + $0xc4] sm:$0xf0]  ;;  %2921 = vmatmul.bf16.gmra.mxu0 %v3202_v20  ;;  %v2743_v1 = vpop.f32.mrf.mxu2  ;;  %v2768_v12 = vadd.f32 %v2767_v24, %v2739_v36  ;;  %v1531_v32 = vrot.slane %v1530_v8, 4 }
 0x128   : > { %v3190_v42 = vor.u32 %v3551_v26, %v3187_v33  ;;  %v3237_v51 = vld [vmem:[#allocation3 + $0xf8] sm:$0xf]  ;;  %v2796_v10 = vpop.f32.mrf.mxu0  ;;  %v1545_v5 = vrot.slane %v1544_v55, 4 }
 0x129   : > { %v3231_v28 = vld [vmem:[#allocation3 + $0x114] sm:$0xf0]  ;;  %v4584_v13 = vadd.f32 %v2796_v10, %v2768_v12  ;;  %v2772_v58 = vpop.f32.mrf.mxu3 }
 0x12a   : > { %2834 = vmatmul.bf16.gmra.mxu1 %v3190_v42  ;;  %v3234_v39 = vor.u32 %v3561_v37, %v3231_v28  ;;  %v670_v45 = vld [vmem:[#allocation2 + $0x84] sm:$0x1]  ;;  %v2711_v14 = vpop.f32.mrf.mxu1 }
 0x12b   : > { %v671_v47 = vsel %vm3793_vm2, %v605_v25, %v670_v45  ;;  %v676_v48 = vld [vmem:[#allocation2 + $0x8c] sm:$0x1] }
 0x12c   : > { %2897 = vmatmul.bf16.gmra.mxu3 %v3234_v39  ;;  %672 = vst [vmem:[#allocation2 + $0x84] sm:$0x1] %v671_v47  ;;  %v677_v50 = vsel %vm3793_vm2, %v613_v38, %v676_v48  ;;  %v3566_v34 = vld [vmem:[#allocation3 + $0x118] sm:$0xf0] }
 0x12d   : > { %678 = vst [vmem:[#allocation2 + $0x8c] sm:$0x1] %v677_v50  ;;  %v3238_v6 = vor.u32 %v3566_v34, %v3237_v51 }
 0x12f   : > { %2926 = vmatmul.bf16.vlgmr.msra.gmra.mxu2 %v3238_v6  ;;  %v2745_v56 = vpop.f32.mrf.mxu2 }
 0x130   : > { %v2798_v11 = vpop.f32.mrf.mxu0 }
 0x131   : > { %v2774_v21 = vpop.f32.mrf.mxu3 }
 0x132   : > { %v2714_v16 = vpop.f32.mrf.mxu1 }
 0x133   : > { %v1436_v3 = vld [vmem:[#allocation2 + $0x84] sm:$0x1]  ;;  %v2715_v18 = vadd.f32 %v2714_v16, %v4562_v19 }
 0x134   : > { %v1438_v23 = vld [vmem:[#allocation2 + $0x8c] sm:$0x1]  ;;  %v1533_v9 = vshll.u32 %v1436_v3, 16 }
 0x135   : > { %v1547_v53 = vshll.u32 %v1438_v23, 16  ;;  %v2744_v20 = vadd.f32 %v2743_v1, %v2715_v18 }
 0x136   : > { %v1535_v59 = vrot.slane %v1533_v9, 5 }
 0x137   : > { %v1549_v57 = vrot.slane %v1547_v53, 5  ;;  %v2773_v26 = vadd.f32 %v2772_v58, %v2744_v20  ;;  %v2748_v52 = vpop.f32.mrf.mxu2 }
 0x138   : > { %v1536_v30 = vsel %vm4030_vm8, %v1531_v32, %v1535_v59  ;;  %v2801_v27 = vpop.f32.mrf.mxu0 }
 0x139   : > { %v1550_v15 = vsel %vm4030_vm8, %v1545_v5, %v1549_v57  ;;  %1565 = vst [vmem:[#allocation3 + $0xec] sm:$0xf] %v1536_v30  ;;  %v4591_v31 = vadd.f32 %v2801_v27, %v2773_v26  ;;  %v2777_v42 = vpop.f32.mrf.mxu3  ;;  %v4625_v26 = vld [vmem:[%s248_s16] ss:$0 sm:$0xff] }
 0x13a   : > { %1566 = vst [vmem:[#allocation3 + $0x110] sm:$0xf] %v1550_v15  ;;  %v2716_v33 = vpop.f32.mrf.mxu1 }
 0x13b   : > { %v2717_v37 = vadd.f32 %v2716_v33, %v2687_v54 }
 0x13d   : > { %v2746_v38 = vadd.f32 %v2745_v56, %v2717_v37 }
 0x13f   : > { %v2775_v43 = vadd.f32 %v2774_v21, %v2746_v38  ;;  %v2750_v63 = vpop.f32.mrf.mxu2 }
 0x140   : > { %v3560_v7 = vld [vmem:[#allocation3 + $0xec] sm:$0xf]  ;;  %v2803_v17 = vpop.f32.mrf.mxu0 }
 0x141   : > { %v3223_v24 = vld [vmem:[#allocation3 + $0x10c] sm:$0xf0]  ;;  %v4593_v28 = vadd.f32 %v2803_v17, %v2775_v43  ;;  %v2779_v47 = vpop.f32.mrf.mxu3 }
 0x142   : > { %v3226_v25 = vor.u32 %v3560_v7, %v3223_v24  ;;  %v2719_v19 = vpop.f32.mrf.mxu1  ;;  %v4611_v7 = vld [vmem:[#allocation4] ss:$0 sm:$0xff] }
 0x143   : > { %v2720_v44 = vadd.f32 %v2719_v19, %v4509_v41 }
 0x144   : > { %2839 = vmatmul.bf16.gmra.mxu1 %v3226_v25 }
 0x145   : > { %v2749_v39 = vadd.f32 %v2748_v52, %v2720_v44 }
 0x147   : > { %v2778_v45 = vadd.f32 %v2777_v42, %v2749_v39  ;;  %v2753_v54 = vpop.f32.mrf.mxu2 }
 0x149   : > { %v2782_v46 = vpop.f32.mrf.mxu3 }
 0x14a   : > { %v2721_v50 = vpop.f32.mrf.mxu1 }
 0x14b   : > { %v2722_v0 = vadd.f32 %v2721_v50, %v4530_v4  ;;  %v2712_v4 = vadd.f32 %v2711_v14, %v4540_v49 }
 0x14d   : > { %v2751_v29 = vadd.f32 %v2750_v63, %v2722_v0  ;;  %v2741_v10 = vadd.f32 %v4574_v40, %v2712_v4 }
 0x14e   : > { %v2806_v48 = vpop.f32.mrf.mxu0 }
 0x14f   : > { %v4596_v51 = vadd.f32 %v2806_v48, %v2778_v45  ;;  %v2780_v60 = vadd.f32 %v2779_v47, %v2751_v29  ;;  %v2755_v36 = vpop.f32.mrf.mxu2  ;;  %v2770_v57 = vadd.f32 %v4580_v2, %v2741_v10  ;;  %v4617_v2 = vld [vmem:[%s4671_s3] ss:$0 sm:$0xff] }
 0x151   : > { %v2784_v23 = vpop.f32.mrf.mxu3 }
 0x156   : > { %v2808_v62 = vpop.f32.mrf.mxu0 }
 0x157   : > { %v4599_v35 = vadd.f32 %v2808_v62, %v2780_v60  ;;  %v2854_v59 = vpop.f32.mrf.mxu2 }
 0x15a   : > { %v2724_v34 = vpop.f32.mrf.mxu1 }
 0x15b   : > { %v2725_v41 = vadd.f32 %v2724_v34, %v4544_v61 }
 0x15d   : > { %v2754_v6 = vadd.f32 %v2753_v54, %v2725_v41 }
 0x15f   : > { %v2783_v8 = vadd.f32 %v2782_v46, %v2754_v6  ;;  %v2856_v16 = vpop.f32.mrf.mxu2 }
 0x162   : > { %v2726_v1 = vpop.f32.mrf.mxu1 }
 0x163   : > { %v2727_v3 = vadd.f32 %v2726_v1, %v4568_v22  ;;  %v2799_v22 = vadd.f32 %v2798_v11, %v2770_v57 }
 0x165   : > { %v2811_v55 = vpop.f32.mrf.mxu0  ;;  %v2756_v32 = vadd.f32 %v2755_v36, %v2727_v3 }
 0x166   : > { %v4602_v12 = vadd.f32 %v2811_v55, %v2783_v8 }
 0x167   : > { %v2785_v9 = vadd.f32 %v2784_v23, %v2756_v32  ;;  %v2883_v15 = vpop.f32.mrf.mxu3  ;;  %v2859_v42 = vpop.f32.mrf.mxu2 }
 0x16d   : > { %v2813_v5 = vpop.f32.mrf.mxu0  ;;  %v2825_v53 = vpop.f32.mrf.mxu1 }
 0x16e   : > { %v4607_v61 = vadd.f32 %v2813_v5, %v2785_v9  ;;  %v2826_v58 = vadd.f32 %v2825_v53, %v4584_v13 }
 0x16f   : > { %v2885_v21 = vpop.f32.mrf.mxu3  ;;  %v2861_v0 = vpop.f32.mrf.mxu2 }
 0x170   : > { %v2855_v30 = vadd.f32 %v2854_v59, %v2826_v58 }
 0x172   : > { %v2884_v56 = vadd.f32 %v2883_v15, %v2855_v30 }
 0x175   : > { %v2827_v49 = vpop.f32.mrf.mxu1 }
 0x176   : > { %v2828_v14 = vadd.f32 %v2827_v49, %v2799_v22 }
 0x178   : > { %v2912_v18 = vpop.f32.mrf.mxu0  ;;  %v2857_v20 = vadd.f32 %v2856_v16, %v2828_v14  ;;  %v2864_v36 = vpop.f32.mrf.mxu2 }
 0x179   : > { %v2913_v40 = vadd.f32 %v2912_v18, %v2884_v56 }
 0x17a   : > { %v2886_v13 = vadd.f32 %v2885_v21, %v2857_v20  ;;  %v2888_v39 = vpop.f32.mrf.mxu3 }
 0x17b   : > { %v2936_v24 = vmul.f32 %v4611_v7, %v2913_v40 }
 0x17d   : > { %v2948_v25 = vadd.f32 %v4617_v2, %v2936_v24 }
 0x17f   : > { %v2960_v52 = vadd.f32 %v4625_v26, %v2948_v25 }
 0x180   : > { %v2914_v11 = vpop.f32.mrf.mxu0  ;;  %v2866_v32 = vpop.f32.mrf.mxu2 }
 0x181   : > { %v2915_v27 = vadd.f32 %v2914_v11, %v2886_v13  ;;  %v2968_v43 = vmax.f32 %v2960_v52, 0.0 }
 0x182   : > { %v2890_v34 = vpop.f32.mrf.mxu3 }
 0x183   : > { %v2937_v33 = vmul.f32 %v4611_v7, %v2915_v27 }
 0x185   : > { %v2949_v37 = vadd.f32 %v4617_v2, %v2937_v33 }
 0x187   : > { %v2961_v38 = vadd.f32 %v4625_v26, %v2949_v37 }
 0x189   : > { %v2969_v17 = vmax.f32 %v2961_v38, 0.0 }
 0x18b   : > { %v3642_v19 = vpack.c.bf16 %v2969_v17, %v2968_v43  ;;  %v2830_v44 = vpop.f32.mrf.mxu1 }
 0x18c   : > { %v2831_v63 = vadd.f32 %v2830_v44, %v4591_v31 }
 0x18d   : > { %3643 = vst [vmem:[%s4635_s26] sm:$0xff] %v3642_v19   ;;  %v2917_v45 = vpop.f32.mrf.mxu0  ;;  %v2893_v5 = vpop.f32.mrf.mxu3 }
 0x18e   : > { %v2860_v47 = vadd.f32 %v2859_v42, %v2831_v63 }
 0x190   : > { %v2889_v48 = vadd.f32 %v2888_v39, %v2860_v47 }
 0x192   : > { %v2918_v50 = vadd.f32 %v2917_v45, %v2889_v48 }
 0x193   : > { %v2832_v29 = vpop.f32.mrf.mxu1 }
 0x194   : > { %v2833_v54 = vadd.f32 %v2832_v29, %v4593_v28  ;;  %v2938_v60 = vmul.f32 %v4611_v7, %v2918_v50 }
 0x195   : > { %v2919_v46 = vpop.f32.mrf.mxu0  ;;  %v2895_v14 = vpop.f32.mrf.mxu3 }
 0x196   : > { %v2862_v62 = vadd.f32 %v2861_v0, %v2833_v54  ;;  %v2950_v6 = vadd.f32 %v4617_v2, %v2938_v60 }
 0x198   : > { %v2891_v41 = vadd.f32 %v2890_v34, %v2862_v62  ;;  %v2962_v55 = vadd.f32 %v4625_v26, %v2950_v6 }
 0x19a   : > { %v2920_v31 = vadd.f32 %v2919_v46, %v2891_v41  ;;  %v2970_v28 = vmax.f32 %v2962_v55, 0.0 }
 0x19c   : > { %v2939_v8 = vmul.f32 %v4611_v7, %v2920_v31  ;;  %v2869_v22 = vpop.f32.mrf.mxu2 }
 0x19e   : > { %v2951_v1 = vadd.f32 %v4617_v2, %v2939_v8 }
 0x1a0   : > { %v2963_v3 = vadd.f32 %v4625_v26, %v2951_v1 }
 0x1a2   : > { %v2971_v4 = vmax.f32 %v2963_v3, 0.0 }
 0x1a4   : > { %v3647_v23 = vpack.c.bf16 %v2971_v4, %v2970_v28  ;;  %v2922_v53 = vpop.f32.mrf.mxu0  ;;  %v2871_v13 = vpop.f32.mrf.mxu2 }
 0x1a6   : > { %3659 = vst [vmem:[%s4635_s26 + $0x8] sm:$0xff] %v3647_v23  }
 0x1a7   : > { %v2835_v9 = vpop.f32.mrf.mxu1 }
 0x1a8   : > { %v2836_v10 = vadd.f32 %v2835_v9, %v4596_v51 }
 0x1aa   : > { %v2865_v59 = vadd.f32 %v2864_v36, %v2836_v10 }
 0x1ac   : > { %v2894_v58 = vadd.f32 %v2893_v5, %v2865_v59  ;;  %v2924_v16 = vpop.f32.mrf.mxu0 }
 0x1ae   : > { %v2923_v57 = vadd.f32 %v2922_v53, %v2894_v58 }
 0x1af   : > { %v2837_v30 = vpop.f32.mrf.mxu1  ;;  %v2898_v37 = vpop.f32.mrf.mxu3 }
 0x1b0   : > { %v2838_v15 = vadd.f32 %v2837_v30, %v4599_v35  ;;  %v2940_v56 = vmul.f32 %v4611_v7, %v2923_v57 }
 0x1b2   : > { %v2867_v49 = vadd.f32 %v2866_v32, %v2838_v15  ;;  %v2952_v40 = vadd.f32 %v4617_v2, %v2940_v56  ;;  %v2927_v42 = vpop.f32.mrf.mxu2 }
 0x1b4   : > { %v2896_v18 = vadd.f32 %v2895_v14, %v2867_v49  ;;  %v2964_v21 = vadd.f32 %v4625_v26, %v2952_v40 }
 0x1b6   : > { %v2925_v20 = vadd.f32 %v2924_v16, %v2896_v18  ;;  %v2972_v11 = vmax.f32 %v2964_v21, 0.0 }
 0x1b7   : > { %v2900_v45 = vpop.f32.mrf.mxu3 }
 0x1b8   : > { %v2941_v51 = vmul.f32 %v4611_v7, %v2925_v20 }
 0x1ba   : > { %v2953_v24 = vadd.f32 %v4617_v2, %v2941_v51  ;;  %v2929_v48 = vpop.f32.mrf.mxu2 }
 0x1bc   : > { %v2965_v35 = vadd.f32 %v4625_v26, %v2953_v24 }
 0x1be   : > { %v2973_v25 = vmax.f32 %v2965_v35, 0.0 }
 0x1c0   : > { %v3652_v27 = vpack.c.bf16 %v2973_v25, %v2972_v11 }
 0x1c1   : > { %v2840_v33 = vpop.f32.mrf.mxu1 }
 0x1c2   : > { %3660 = vst [vmem:[%s4635_s26 + $0x10] sm:$0xff] %v3652_v27   ;;  %v2841_v52 = vadd.f32 %v2840_v33, %v4602_v12 }
 0x1c4   : > { %v2870_v38 = vadd.f32 %v2869_v22, %v2841_v52 }
 0x1c6   : > { %v2899_v43 = vadd.f32 %v2898_v37, %v2870_v38 }
 0x1c8   : > { %v2928_v17 = vadd.f32 %v2927_v42, %v2899_v43 }
 0x1c9   : > { %v2842_v19 = vpop.f32.mrf.mxu1 }
 0x1ca   : > { %v2843_v44 = vadd.f32 %v2842_v19, %v4607_v61  ;;  %v2942_v63 = vmul.f32 %v4611_v7, %v2928_v17 }
 0x1cc   : > { %v2872_v39 = vadd.f32 %v2871_v13, %v2843_v44  ;;  %v2954_v50 = vadd.f32 %v4617_v2, %v2942_v63 }
 0x1ce   : > { %v2901_v47 = vadd.f32 %v2900_v45, %v2872_v39  ;;  %v2966_v29 = vadd.f32 %v4625_v26, %v2954_v50 }
 0x1d0   : > { %v2930_v0 = vadd.f32 %v2929_v48, %v2901_v47  ;;  %v2974_v62 = vmax.f32 %v2966_v29, 0.0 }
 0x1d2   : > { %v2943_v12 = vmul.f32 %v4611_v7, %v2930_v0 }
 0x1d4   : > { %v2955_v54 = vadd.f32 %v4617_v2, %v2943_v12 }
 0x1d6   : > { %v2967_v60 = vadd.f32 %v4625_v26, %v2955_v54 }
 0x1d8   : > { %v2975_v34 = vmax.f32 %v2967_v60, 0.0 }
 0x1da   : > { %v3657_v61 = vpack.c.bf16 %v2975_v34, %v2974_v62 }
 0x1dc   : > { %3661 = vst [vmem:[%s4635_s26 + $0x18] sm:$0xff] %v3657_v61  }
 0x1dd PF: > { %s16_s18 = sadd.s32 1, %s3741_s18  }
 0x1de   : > { %p13_p7 = scmp.ge.s32.totalorder %s16_s18, 4  }
 0x1e0   :  { %15 = sbr.rel (!%p13_p7) target bundleno = 1 (0x1), region = 85 }
 0x1e5   :  { %3013 = vsyncpa [#allocation5], 1 }
 0x1e6   :  { %3015 = vsyncpa [#allocation5 + $0x1], 1 }

// kernel: run.9
= control target key start
LH: loop header
LB: loop body
LE: loop exit
PB: predicated region body
PF: predicated region fallthrough
CT: control target
= control target key end

     0   :  { %s3700_s18 = smov 0   ;;  %s4594_s0 = inlined_call_operand.vmem [shape: bf16[2,8,2,8,256], index: 0, kind: input, shape index: {}]   ;;  %s4595_s1 = inlined_call_operand.vmem [shape: bf16[1152,128], index: 1, kind: input, shape index: {}]   ;;  %s4596_s2 = inlined_call_operand.vmem [shape: f32[1,128], index: 2, kind: input, shape index: {}]   ;;  %s4597_s3 = inlined_call_operand.vmem [shape: f32[1,128], index: 3, kind: input, shape index: {}]   ;;  %s4598_s4 = inlined_call_operand.vmem [shape: f32[2,1,128], index: 4, kind: input, shape index: {}]   ;;  %s4599_s5 = inlined_call_operand.vmem [shape: bf16[2,64,128], index: 5, kind: output, shape index: {}]  }
   0x1 LB: > { %s3041_s19 = sadd.s32 4294967295, %s3667_s18   ;;  %p3045_p0 = scmp.ge.s32.totalorder %s3667_s18, 1  ;;  %s3667_s18 = sphi %s3700_s18, %s15_s18  }
   0x2   : > { %p195_p1 = scmp.lt.s32.totalorder %s3667_s18, 3 }
   0x4   : > { %p196_p2 = pnand %p3045_p0, %p195_p1 }
   0x5   : > { %p226_p3 = scmp.lt.s32.totalorder (!%p196_p2), %s3041_s19, 1 }
   0x6   : > { %199 = sbr.rel (%p196_p2) target bundleno = 469 (0x1d5), region = 40 }
   0xb   : > { %v3545_v0 = vld [vmem:[%s4595_s1 + $0x38] sm:$0xff]  ;;  %v3669_v2 = vmov 0   ;;  %v3544_v3 = vld [vmem:[%s4595_s1 + $0x30] sm:$0xff]  ;;  %s4607_s19 = smov (!%p226_p3, %s3041_s19), 1  ;;  %v3543_v6 = vld [vmem:[%s4595_s1 + $0x28] sm:$0xff]  ;;  %vm476_vm1 = vcmask 1043456  }
   0xc   : > { %v3561_v1 = vld [vmem:[%s4595_s1 + $0xb8] sm:$0xff]  ;;  %367 = vst [vmem:[#allocation2 + $0xf8] sm:$0xf] %v3669_v2  ;;  %3633 = vmatpush.bf16.msra.mxu1 %v3545_v0  ;;  %2656 = vmatpush.bf16.msra.mxu0 %v3545_v0  ;;  %v3560_v4 = vld [vmem:[%s4595_s1 + $0xb0] sm:$0xff]  ;;  %s3500_s30 = sshll.u32 %s4607_s19, 7  ;;  %v3559_v7 = vld [vmem:[%s4595_s1 + $0xa8] sm:$0xff]  ;;  %s233_s11 = scalar_lea.vmem %s4598_s4, %s4607_s19 }
   0xd   : > { %371 = vst [vmem:[#allocation2 + $0x100] sm:$0xf] %v3669_v2  ;;  %2714 = vmatpush.bf16.msra.mxu2 %v3561_v1  ;;  %v3569_v5 = vld [vmem:[%s4595_s1 + $0xf8] sm:$0xff]  ;;  %s3737_s12 = scalar_lea.vmem %s4594_s0, %s3500_s30  ;;  %vm477_vm0 = vsmask.f32 7938  ;;  %v3568_v8 = vld [vmem:[%s4595_s1 + $0xf0] sm:$0xff] }
   0xe   : > { %247 = vst [vmem:[#allocation2 + $0x8] sm:$0xf] %v3669_v2  ;;  %v3061_v9 = vld [vmem:[%s3737_s12 + $0x3c] sm:$0xf]  ;;  %2743 = vmatpush.bf16.msra.mxu3 %v3569_v5  ;;  %v3062_v10 = vld [vmem:[%s3737_s12 + $0x4c] sm:$0xf]  ;;  %vm3756_vm2 = vmand %vm476_vm1, %vm477_vm0 }
   0xf   : > { %251 = vst [vmem:[#allocation2 + $0x10] sm:$0xf] %v3669_v2  ;;  %v835_v11 = vshrl.u32 %v3061_v9, 16  ;;  %v838_v12 = vshll.u32 %v3061_v9, 16  ;;  %v843_v13 = vshrl.u32 %v3062_v10, 16  ;;  %v846_v14 = vshll.u32 %v3062_v10, 16 }
  0x10   : > { %3634 = vmatpush.bf16.msra.mxu1 %v3544_v3  ;;  %2657 = vmatpush.bf16.msra.mxu0 %v3544_v3  ;;  %255 = vst [vmem:[#allocation2 + $0x18] sm:$0xf] %v3669_v2  ;;  %v3542_v16 = vld [vmem:[%s4595_s1 + $0x20] sm:$0xff]  ;;  %v3567_v21 = vld [vmem:[%s4595_s1 + $0xe8] sm:$0xff]  ;;  %v3541_v26 = vld [vmem:[%s4595_s1 + $0x18] sm:$0xff]  ;;  %vm241_vm3 = vcmask 1040384  }
  0x11   : > { %2715 = vmatpush.bf16.msra.mxu2 %v3560_v4  ;;  %259 = vst [vmem:[#allocation2 + $0x20] sm:$0xf] %v3669_v2  ;;  %v3748_v15 = vrot.slane %v835_v11, 7  ;;  %v3760_v18 = vrot.slane %v843_v13, 7  ;;  %v3558_v20 = vld [vmem:[%s4595_s1 + $0xa0] sm:$0xff]  ;;  %v3557_v28 = vld [vmem:[%s4595_s1 + $0x98] sm:$0xff] }
  0x12   : > { %263 = vst [vmem:[#allocation2 + $0x28] sm:$0xf] %v3669_v2  ;;  %2744 = vmatpush.bf16.msra.mxu3 %v3568_v8  ;;  %v3566_v29 = vld [vmem:[%s4595_s1 + $0xe0] sm:$0xff]  ;;  %v3540_v30 = vld [vmem:[%s4595_s1 + $0x10] sm:$0xff]  ;;  %v3539_v33 = vld [vmem:[%s4595_s1 + $0x8] sm:$0xff]  ;;  %s3501_s21 = sshll.u32 %s4607_s19, 5 }
  0x13   : > { %v909_v19 = vld [vmem:[#allocation2 + $0xf8] sm:$0xf]  ;;  %267 = vst [vmem:[#allocation2 + $0x30] sm:$0xf] %v3669_v2  ;;  %v840_v22 = vor.u32 %v838_v12, %v3748_v15  ;;  %v848_v24 = vor.u32 %v846_v14, %v3760_v18  ;;  %v3556_v31 = vld [vmem:[%s4595_s1 + $0x90] sm:$0xff]  ;;  %v3555_v35 = vld [vmem:[%s4595_s1 + $0x88] sm:$0xff]  ;;  %s4563_s24 = scalar_lea.vmem %s4599_s5, %s3501_s21 }
  0x14   : > { %3635 = vmatpush.bf16.msra.mxu1 %v3543_v6  ;;  %2658 = vmatpush.bf16.msra.mxu0 %v3543_v6  ;;  %v915_v23 = vld [vmem:[#allocation2 + $0x100] sm:$0xf]  ;;  %271 = vst [vmem:[#allocation2 + $0x38] sm:$0xf] %v3669_v2  ;;  %v3811_v37 = vld [vmem:[%s3737_s12 + $0xc] sm:$0xf] }
  0x15   : > { %2716 = vmatpush.bf16.msra.mxu2 %v3559_v7  ;;  %275 = vst [vmem:[#allocation2 + $0x40] sm:$0xf] %v3669_v2  ;;  %v910_v25 = vsel %vm3756_vm2, %v840_v22, %v909_v19  ;;  %v916_v27 = vsel %vm3756_vm2, %v848_v24, %v915_v23  ;;  %v3538_v36 = vld [vmem:[%s4595_s1] sm:$0xff]  ;;  %v3553_v38 = vld [vmem:[%s4595_s1 + $0x78] sm:$0xff]  ;;  %v3552_v41 = vld [vmem:[%s4595_s1 + $0x70] sm:$0xff]  ;;  %v811_v42 = vshrl.u32 %v3811_v37, 16 }
  0x16   : > { %911 = vst [vmem:[#allocation2 + $0xf8] sm:$0xf] %v910_v25  ;;  %2745 = vmatpush.bf16.msra.mxu3 %v3567_v21  ;;  %v3554_v39 = vld [vmem:[%s4595_s1 + $0x80] sm:$0xff]  ;;  %vm242_vm4 = vsmask.f32 256  ;;  %v3565_v45 = vld [vmem:[%s4595_s1 + $0xd8] sm:$0xff] }
  0x17   : > { %917 = vst [vmem:[#allocation2 + $0x100] sm:$0xf] %v916_v27  ;;  %v3577_v46 = vld [vmem:[%s4595_s1 + $0x138] sm:$0xff]  ;;  %v3064_v49 = vld [vmem:[%s3737_s12 + $0x6c] sm:$0xf]  ;;  %v3845_v52 = vrot.slane %v811_v42, 7  ;;  %vm3849_vm5 = vmand %vm241_vm3, %vm242_vm4 }
  0x18   : > { %3636 = vmatpush.bf16.msra.mxu1 %v3542_v16  ;;  %2659 = vmatpush.bf16.msra.mxu0 %v3542_v16  ;;  %283 = vst [vmem:[#allocation2 + $0x50] sm:$0xf] %v3669_v2  ;;  %v3835_v47 = vld [vmem:[%s3737_s12 + $0x1c] sm:$0xf]  ;;  %v356_v50 = vld [vmem:[#allocation2 + $0xe4] sm:$0x1] }
  0x19   : > { %2717 = vmatpush.bf16.msra.mxu2 %v3558_v20  ;;  %287 = vst [vmem:[#allocation2 + $0x58] sm:$0xf] %v3669_v2  ;;  %v3063_v48 = vld [vmem:[%s3737_s12 + $0x5c] sm:$0xf]  ;;  %v3842_v51 = vld [vmem:[%s3737_s12 + $0x2c] sm:$0xf] }
  0x1a   : > { %291 = vst [vmem:[#allocation2 + $0x60] sm:$0xf] %v3669_v2  ;;  %2746 = vmatpush.bf16.msra.mxu3 %v3566_v29  ;;  %v352_v54 = vld [vmem:[#allocation2 + $0xdc] sm:$0x1]  ;;  %v3551_v55 = vld [vmem:[%s4595_s1 + $0x68] sm:$0xff]  ;;  %v851_v56 = vshrl.u32 %v3063_v48, 16 }
  0x1b   : > { %295 = vst [vmem:[#allocation2 + $0x68] sm:$0xf] %v3669_v2  ;;  %v859_v57 = vshrl.u32 %v3064_v49, 16  ;;  %v819_v58 = vshrl.u32 %v3835_v47, 16  ;;  %v814_v59 = vshll.u32 %v3811_v37, 16  ;;  %v827_v60 = vshrl.u32 %v3842_v51, 16 }
  0x1c   : > { %3637 = vmatpush.bf16.msra.mxu1 %v3541_v26  ;;  %2660 = vmatpush.bf16.msra.mxu0 %v3541_v26  ;;  %299 = vst [vmem:[#allocation2 + $0x70] sm:$0xf] %v3669_v2  ;;  %v817_v61 = vrot.slane %v3845_v52, 4  ;;  %v353_v62 = vsel %vm3849_vm5, 0, %v352_v54  ;;  %v357_v63 = vsel %vm3849_vm5, 0, %v356_v50  ;;  %v822_v0 = vshll.u32 %v3835_v47, 16 }
  0x1d   : > { %2718 = vmatpush.bf16.msra.mxu2 %v3557_v28  ;;  %v944_v32 = vld [vmem:[#allocation2 + $0xf8] sm:$0xf]  ;;  %303 = vst [vmem:[#allocation2 + $0x78] sm:$0xf] %v3669_v2  ;;  %v830_v1 = vshll.u32 %v3842_v51, 16  ;;  %v3874_v4 = vrot.slane %v851_v56, 7  ;;  %v816_v10 = vor.u32 %v814_v59, %v3845_v52 }
  0x1e   : > { %v945_v34 = vld [vmem:[#allocation2 + $0x100] sm:$0xf]  ;;  %952 = vst [vmem:[#allocation3 + $0x90] sm:$0xf] %v944_v32  ;;  %2747 = vmatpush.bf16.msra.mxu3 %v3565_v45  ;;  %v3871_v3 = vld [vmem:[%s3737_s12 + $0x4] sm:$0xf] }
  0x1f   : > { %953 = vst [vmem:[#allocation3 + $0xb4] sm:$0xf] %v945_v34  ;;  %v854_v5 = vshll.u32 %v3063_v48, 16  ;;  %v3876_v6 = vrot.slane %v859_v57, 7  ;;  %v3878_v7 = vrot.slane %v819_v58, 7  ;;  %v862_v11 = vshll.u32 %v3064_v49, 16 }
  0x20   : > { %3638 = vmatpush.bf16.msra.mxu1 %v3540_v30  ;;  %2661 = vmatpush.bf16.msra.mxu0 %v3540_v30  ;;  %307 = vst [vmem:[#allocation2 + $0x80] sm:$0xf] %v3669_v2  ;;  %v244_v8 = vld [vmem:[#allocation2 + $0x4] sm:$0x1]  ;;  %v280_v9 = vld [vmem:[#allocation2 + $0x4c] sm:$0x1] }
  0x21   : > { %2719 = vmatpush.bf16.msra.mxu2 %v3556_v31  ;;  %311 = vst [vmem:[#allocation2 + $0x88] sm:$0xf] %v3669_v2  ;;  %vm973_vm6 = vsmask.f32 3328  ;;  %vm974_vm7 = vsmask.f32 7440  ;;  %v856_v24 = vor.u32 %v854_v5, %v3874_v4  ;;  %v824_v56 = vor.u32 %v822_v0, %v3878_v7 }
  0x22   : > { %315 = vst [vmem:[#allocation2 + $0x90] sm:$0xf] %v3669_v2  ;;  %v3882_v12 = vrot.slane %v827_v60, 7  ;;  %v825_v13 = vrot.slane %v3878_v7, 4  ;;  %v3887_v14 = vld [vmem:[%s3737_s12 + $0x14] sm:$0xf]  ;;  %vm3957_vm8 = vmor %vm973_vm6, %vm974_vm7 }
  0x23   : > { %319 = vst [vmem:[#allocation2 + $0x98] sm:$0xf] %v3669_v2  ;;  %v536_v16 = vshrl.u32 %v3871_v3, 16  ;;  %v544_v27 = vshrl.u32 %v3887_v14, 16  ;;  %v3896_v28 = vld [vmem:[#allocation2 + $0xec] sm:$0x1] }
  0x24   : > { %3639 = vmatpush.bf16.msra.mxu1 %v3539_v33  ;;  %2662 = vmatpush.bf16.msra.mxu0 %v3539_v33  ;;  %323 = vst [vmem:[#allocation2 + $0xa0] sm:$0xf] %v3669_v2  ;;  %v833_v26 = vrot.slane %v3882_v12, 4  ;;  %v245_v31 = vsel %vm3849_vm5, 0, %v244_v8  ;;  %v281_v32 = vsel %vm3849_vm5, 0, %v280_v9  ;;  %v3564_v34 = vld [vmem:[%s4595_s1 + $0xd0] sm:$0xff]  ;;  %v832_v47 = vor.u32 %v830_v1, %v3882_v12 }
  0x25   : > { %2720 = vmatpush.bf16.msra.mxu2 %v3555_v35  ;;  %v3140_v40 = vld [vmem:[#allocation3 + $0x90] sm:$0xf]  ;;  %327 = vst [vmem:[#allocation2 + $0xa8] sm:$0xf] %v3669_v2  ;;  %v3902_v33 = vld [vmem:[#allocation2 + $0xf4] sm:$0x1]  ;;  %2748 = vmatpush.bf16.msra.mxu3 %v3564_v34 }
  0x26   : > { %v3524_v43 = vld [vmem:[#allocation3 + $0xb0] sm:$0xf0]  ;;  %331 = vst [vmem:[#allocation2 + $0xb0] sm:$0xf] %v3669_v2  ;;  %v539_v37 = vshll.u32 %v3871_v3, 16  ;;  %v547_v42 = vshll.u32 %v3887_v14, 16 }
  0x27   : > { %v3141_v44 = vor.u32 %v3524_v43, %v3140_v40  ;;  %335 = vst [vmem:[#allocation2 + $0xb8] sm:$0xf] %v3669_v2  ;;  %v3576_v35 = vld [vmem:[%s4595_s1 + $0x130] sm:$0xff]  ;;  %v3575_v40 = vld [vmem:[%s4595_s1 + $0x128] sm:$0xff]  ;;  %v3593_v45 = vld [vmem:[%s4595_s1 + $0x1b8] sm:$0xff]  ;;  %v361_v58 = vsel %vm3849_vm5, 0, %v3896_v28 }
  0x28   : > { %3640 = vmatpush.bf16.msra.mxu1 %v3538_v36  ;;  %2663 = vmatpush.bf16.msra.mxu0 %v3538_v36  ;;  %339 = vst [vmem:[#allocation2 + $0xc0] sm:$0xf] %v3669_v2  ;;  %v3550_v36 = vld [vmem:[%s4595_s1 + $0x60] sm:$0xff]  ;;  %v3928_v48 = vld [vmem:[#allocation2 + $0x9c] sm:$0x1]  ;;  %v365_v0 = vsel %vm3849_vm5, 0, %v3902_v33 }
  0x29   : > { %2721 = vmatpush.bf16.msra.mxu2 %v3554_v39  ;;  %343 = vst [vmem:[#allocation2 + $0xc8] sm:$0xf] %v3669_v2  ;;  %v3563_v39 = vld [vmem:[%s4595_s1 + $0xc8] sm:$0xff]  ;;  %v3548_v52 = vld [vmem:[%s4595_s1 + $0x50] sm:$0xff]  ;;  %v3585_v12 = vld [vmem:[%s4595_s1 + $0x178] sm:$0xff] }
  0x2a   : > { %347 = vst [vmem:[#allocation2 + $0xd0] sm:$0xf] %v3669_v2  ;;  %v3944_v59 = vld [vmem:[%s3737_s12 + $0x8] sm:$0xf]  ;;  %2749 = vmatpush.bf16.msra.mxu3 %v3563_v39  ;;  %v3990_v34 = vld [vmem:[#allocation2 + $0x94] sm:$0x1] }
  0x2b   : > { %2674 = vmatmul.bf16.vlgmr.msra.gmra.mxu1 %v3141_v44  ;;  %351 = vst [vmem:[#allocation2 + $0xd8] sm:$0xf] %v3669_v2  ;;  %v754_v33 = vld [vmem:[#allocation2 + $0x98] sm:$0xf] }
  0x2c   : > { %2685 = vmatpush.bf16.msrb.mxu1 %v3553_v38  ;;  %2772 = vmatpush.bf16.msrb.mxu0 %v3577_v46  ;;  %355 = vst [vmem:[#allocation2 + $0xe0] sm:$0xf] %v3669_v2  ;;  %v3926_v46 = vrot.slane %v544_v27, 7  ;;  %v674_v27 = vshrl.u32 %v3944_v59, 16 }
  0x2d   : > { %359 = vst [vmem:[#allocation2 + $0xe8] sm:$0xf] %v3669_v2  ;;  %2830 = vmatpush.bf16.msrb.mxu2 %v3593_v45 }
  0x2e   : > { %363 = vst [vmem:[#allocation2 + $0xf0] sm:$0xf] %v3669_v2 }
  0x2f   : > { %375 = vst [vmem:[#allocation2 + $0x108] sm:$0xf] %v3669_v2 }
  0x30   : > { %2686 = vmatpush.bf16.msrb.mxu1 %v3552_v41  ;;  %379 = vst [vmem:[#allocation2 + $0x110] sm:$0xf] %v3669_v2  ;;  %v3920_v41 = vrot.slane %v536_v16, 7  ;;  %2773 = vmatpush.bf16.msrb.mxu0 %v3576_v35  ;;  %v549_v16 = vor.u32 %v547_v42, %v3926_v46  ;;  %v957_v35 = vld [vmem:[#allocation2 + $0x90] sm:$0xf] }
  0x31   : > { %383 = vst [vmem:[#allocation2 + $0x118] sm:$0xf] %v3669_v2  ;;  %v864_v2 = vor.u32 %v862_v11, %v3876_v6  ;;  %v3574_v11 = vld [vmem:[%s4595_s1 + $0x120] sm:$0xff]  ;;  %v980_v42 = vshll.u32 %v957_v35, 16 }
  0x32   : > { %v940_v19 = vld [vmem:[#allocation2 + $0xd8] sm:$0xf]  ;;  %354 = vst [vmem:[#allocation2 + $0xdc] sm:$0x1] %v353_v62  ;;  %v541_v14 = vor.u32 %v539_v37, %v3920_v41 }
  0x33   : > { %v1104_v20 = vld [vmem:[#allocation2 + $0xd8] sm:$0xf]  ;;  %v891_v21 = vld [vmem:[#allocation2 + $0xe0] sm:$0xf]  ;;  %948 = vst [vmem:[#allocation3] sm:$0xf] %v940_v19 }
  0x34   : > { %2687 = vmatpush.bf16.msrb.mxu1 %v3551_v55  ;;  %v1121_v22 = vshrl.u32 %v1104_v20, 16  ;;  %v1124_v23 = vshll.u32 %v1104_v20, 16  ;;  %v892_v25 = vsel %vm3756_vm2, %v816_v10, %v891_v21  ;;  %358 = vst [vmem:[#allocation2 + $0xe4] sm:$0x1] %v357_v63  ;;  %v3549_v55 = vld [vmem:[%s4595_s1 + $0x58] sm:$0xff]  ;;  %v3562_v63 = vld [vmem:[%s4595_s1 + $0xc0] sm:$0xff]  ;;  %2774 = vmatpush.bf16.msrb.mxu0 %v3575_v40 }
  0x35   : > { %893 = vst [vmem:[#allocation2 + $0xe0] sm:$0xf] %v892_v25  ;;  %v897_v57 = vld [vmem:[#allocation2 + $0xe8] sm:$0xf]  ;;  %v903_v8 = vld [vmem:[#allocation2 + $0xf0] sm:$0xf]  ;;  %2750 = vmatpush.bf16.msra.mxu3 %v3562_v63 }
  0x36   : > { %v1123_v29 = vrot.slane %v1121_v22, 4  ;;  %v1126_v30 = vrot.slane %v1124_v23, 5  ;;  %246 = vst [vmem:[#allocation2 + $0x4] sm:$0x1] %v245_v31  ;;  %v921_v43 = vld [vmem:[#allocation2 + $0x108] sm:$0xf]  ;;  %v904_v25 = vsel %vm3756_vm2, %v832_v47, %v903_v8 }
  0x37   : > { %282 = vst [vmem:[#allocation2 + $0x4c] sm:$0x1] %v281_v32  ;;  %v927_v44 = vld [vmem:[#allocation2 + $0x110] sm:$0xf]  ;;  %v922_v50 = vsel %vm3756_vm2, %v856_v24, %v921_v43  ;;  %v622_v22 = vld [vmem:[#allocation2 + $0x58] sm:$0xf] }
  0x38   : > { %v1127_v38 = vor.u32 %v1126_v30, %v1123_v29  ;;  %2688 = vmatpush.bf16.msrb.mxu1 %v3550_v36  ;;  %v928_v54 = vsel %vm3756_vm2, %v864_v2, %v927_v44  ;;  %923 = vst [vmem:[#allocation2 + $0x108] sm:$0xf] %v922_v50  ;;  %v616_v19 = vld [vmem:[#allocation2 + $0x50] sm:$0xf]  ;;  %v321_v23 = vsel %vm3849_vm5, 0, %v3928_v48  ;;  %v3573_v2 = vld [vmem:[%s4595_s1 + $0x118] sm:$0xff]  ;;  %2775 = vmatpush.bf16.msrb.mxu0 %v3574_v11 }
  0x39   : > { %v1105_v49 = vld [vmem:[#allocation2 + $0xdc] sm:$0x1]  ;;  %929 = vst [vmem:[#allocation2 + $0x110] sm:$0xf] %v928_v54  ;;  %v677_v29 = vshll.u32 %v3944_v59, 16  ;;  %v3547_v32 = vld [vmem:[%s4595_s1 + $0x48] sm:$0xff]  ;;  %v617_v39 = vsel %vm3756_vm2, %v541_v14, %v616_v19  ;;  %v623_v45 = vsel %vm3756_vm2, %v549_v16, %v622_v22 }
  0x3a   : > { %v1128_v60 = vrot.slane %v1127_v38, 4  ;;  %v1130_v62 = vshll.u32 %v1105_v49, 16  ;;  %v3993_v36 = vld [vmem:[%s3737_s12 + $0x24] sm:$0xf]  ;;  %905 = vst [vmem:[#allocation2 + $0xf0] sm:$0xf] %v904_v25 }
  0x3b   : > { %v894_v3 = vld [vmem:[#allocation2 + $0xe4] sm:$0x1]  ;;  %v977_v40 = vshrl.u32 %v957_v35, 16  ;;  %v3068_v43 = vld [vmem:[#allocation3] sm:$0xf]  ;;  %v3999_v49 = vrot.slane %v674_v27, 7 }
  0x3c   : > { %v941_v9 = vld [vmem:[#allocation2 + $0xe0] sm:$0xf]  ;;  %v895_v51 = vsel %vm3849_vm5, %v817_v61, %v894_v3  ;;  %v1132_v10 = vrot.slane %v1130_v62, 5  ;;  %2689 = vmatpush.bf16.msrb.mxu1 %v3549_v55  ;;  %v898_v61 = vsel %vm3756_vm2, %v824_v56, %v897_v57  ;;  %v4002_v50 = vld [vmem:[%s3737_s12 + $0x34] sm:$0xf]  ;;  %v552_v54 = vshrl.u32 %v3993_v36, 16  ;;  %2776 = vmatpush.bf16.msrb.mxu0 %v3573_v2 }
  0x3d   : > { %v1106_v1 = vld [vmem:[#allocation2 + $0xe0] sm:$0xf]  ;;  %949 = vst [vmem:[#allocation3 + $0x24] sm:$0xf] %v941_v9  ;;  %v317_v57 = vsel %vm3849_vm5, 0, %v3990_v34  ;;  %v4008_v63 = vrot.slane %v977_v40, 4  ;;  %v679_v27 = vor.u32 %v677_v29, %v3999_v49 }
  0x3e   : > { %v1135_v20 = vshrl.u32 %v1106_v1, 16  ;;  %v1138_v21 = vshll.u32 %v1106_v1, 16  ;;  %896 = vst [vmem:[#allocation2 + $0xe4] sm:$0x1] %v895_v51  ;;  %v1133_v24 = vsel %vm3957_vm8, %v1128_v60, %v1132_v10  ;;  %v4010_v47 = vrot.slane %v980_v42, 5  ;;  %v3572_v2 = vld [vmem:[%s4595_s1 + $0x110] sm:$0xff] }
  0x3f   : > { %1240 = vst [vmem:[#allocation3 + $0x8] sm:$0xf] %v1133_v24  ;;  %v946_v38 = vld [vmem:[#allocation2 + $0x108] sm:$0xf]  ;;  %v4016_v8 = vrot.slane %v552_v54, 7  ;;  %v555_v9 = vshll.u32 %v3993_v36, 16 }
  0x40   : > { %v1137_v30 = vrot.slane %v1135_v20, 4  ;;  %v1140_v31 = vrot.slane %v1138_v21, 5  ;;  %899 = vst [vmem:[#allocation2 + $0xe8] sm:$0xf] %v898_v61  ;;  %2690 = vmatpush.bf16.msrb.mxu1 %v3548_v52  ;;  %v947_v44 = vld [vmem:[#allocation2 + $0x110] sm:$0xf]  ;;  %2777 = vmatpush.bf16.msrb.mxu0 %v3572_v2 }
  0x41   : > { %954 = vst [vmem:[#allocation3 + $0xd8] sm:$0xf] %v946_v38  ;;  %v560_v51 = vshrl.u32 %v4002_v50, 16  ;;  %v943_v14 = vld [vmem:[#allocation2 + $0xf0] sm:$0xf]  ;;  %v3546_v36 = vld [vmem:[%s4595_s1 + $0x40] sm:$0xff] }
  0x42   : > { %v1141_v37 = vor.u32 %v1140_v31, %v1137_v30  ;;  %955 = vst [vmem:[#allocation3 + $0xfc] sm:$0xf] %v947_v44  ;;  %v3592_v61 = vld [vmem:[%s4595_s1 + $0x1b0] sm:$0xff]  ;;  %v3571_v38 = vld [vmem:[%s4595_s1 + $0x108] sm:$0xff] }
  0x43   : > { %618 = vst [vmem:[#allocation2 + $0x50] sm:$0xf] %v617_v39  ;;  %2831 = vmatpush.bf16.msrb.mxu2 %v3592_v61  ;;  %v983_v39 = vor.u32 %v4010_v47, %v4008_v63 }
  0x44   : > { %v3506_v55 = vld [vmem:[#allocation3 + $0x20] sm:$0xf0]  ;;  %v1142_v56 = vrot.slane %v1141_v37, 4  ;;  %624 = vst [vmem:[#allocation2 + $0x58] sm:$0xf] %v623_v45  ;;  %2691 = vmatpush.bf16.msrb.mxu1 %v3547_v32  ;;  %v4036_v32 = vrot.slane %v560_v51, 7  ;;  %2778 = vmatpush.bf16.msrb.mxu0 %v3571_v38 }
  0x45   : > { %v3069_v60 = vor.u32 %v3506_v55, %v3068_v43  ;;  %v1107_v62 = vld [vmem:[#allocation2 + $0xe4] sm:$0x1]  ;;  %362 = vst [vmem:[#allocation2 + $0xec] sm:$0x1] %v361_v58  ;;  %v1110_v58 = vld [vmem:[#allocation2 + $0xf0] sm:$0xf]  ;;  %v755_v43 = vsel %vm3756_vm2, %v679_v27, %v754_v33 }
  0x46   : > { %v1144_v3 = vshll.u32 %v1107_v62, 16  ;;  %366 = vst [vmem:[#allocation2 + $0xf4] sm:$0x1] %v365_v0  ;;  %v1163_v52 = vshrl.u32 %v1110_v58, 16  ;;  %v563_v0 = vshll.u32 %v4002_v50, 16  ;;  %v1166_v25 = vshll.u32 %v1110_v58, 16 }
  0x47   : > { %2664 = vmatmul.bf16.vlgmr.msra.gmra.mxu0 %v3069_v60  ;;  %v942_v1 = vld [vmem:[#allocation2 + $0xe8] sm:$0xf]  ;;  %951 = vst [vmem:[#allocation3 + $0x6c] sm:$0xf] %v943_v14  ;;  %v3601_v37 = vld [vmem:[%s4595_s1 + $0x1f8] sm:$0xff]  ;;  %v557_v50 = vor.u32 %v555_v9, %v4016_v8  ;;  %v3570_v55 = vld [vmem:[%s4595_s1 + $0x100] sm:$0xff] }
  0x48   : > { %v1108_v10 = vld [vmem:[#allocation2 + $0xe8] sm:$0xf]  ;;  %v1146_v11 = vrot.slane %v1144_v3, 5  ;;  %950 = vst [vmem:[#allocation3 + $0x48] sm:$0xf] %v942_v1  ;;  %v1168_v42 = vrot.slane %v1166_v25, 5  ;;  %2692 = vmatpush.bf16.msrb.mxu1 %v3546_v36  ;;  %2859 = vmatpush.bf16.msrb.mxu3 %v3601_v37  ;;  %v565_v54 = vor.u32 %v563_v0, %v4036_v32 }
  0x49   : > { %v1149_v16 = vshrl.u32 %v1108_v10, 16  ;;  %v3176_v28 = vld [vmem:[#allocation3 + $0xd8] sm:$0xf]  ;;  %v3533_v20 = vld [vmem:[#allocation3 + $0xf8] sm:$0xf0]  ;;  %v1152_v21 = vshll.u32 %v1108_v10, 16  ;;  %2779 = vmatpush.bf16.msrb.mxu0 %v3570_v55 }
  0x4a   : > { %v1147_v19 = vsel %vm3957_vm8, %v1142_v56, %v1146_v11  ;;  %v3177_v22 = vor.u32 %v3533_v20, %v3176_v28  ;;  %v1248_v24 = vld [vmem:[#allocation2 + $0x50] sm:$0xf]  ;;  %318 = vst [vmem:[#allocation2 + $0x94] sm:$0x1] %v317_v57  ;;  %v3076_v40 = vld [vmem:[#allocation3 + $0x8] sm:$0xf] }
  0x4b   : > { %1241 = vst [vmem:[#allocation3 + $0x2c] sm:$0xf] %v1147_v19  ;;  %v1249_v30 = vld [vmem:[#allocation2 + $0x58] sm:$0xf]  ;;  %v1151_v31 = vrot.slane %v1149_v16, 4  ;;  %v1154_v35 = vrot.slane %v1152_v21, 5 }
  0x4c   : > { %1256 = vst [vmem:[#allocation3 + $0xc] sm:$0xf] %v1248_v24  ;;  %2679 = vmatmul.bf16.gmra.mxu1 %v3177_v22  ;;  %v900_v34 = vld [vmem:[#allocation2 + $0xec] sm:$0x1]  ;;  %v680_v60 = vrot.slane %v3999_v49, 4  ;;  %v984_v62 = vrot.slane %v983_v39, 4 }
  0x4d   : > { %1257 = vst [vmem:[#allocation3 + $0x30] sm:$0xf] %v1249_v30  ;;  %v901_v59 = vsel %vm3849_vm5, %v825_v13, %v900_v34  ;;  %v906_v29 = vld [vmem:[#allocation2 + $0xf4] sm:$0x1]  ;;  %v1165_v13 = vrot.slane %v1163_v52, 4  ;;  %v1155_v57 = vor.u32 %v1154_v35, %v1151_v31  ;;  %2801 = vmatpush.bf16.msra.mxu1 %v3585_v12 }
  0x4e   : > { %902 = vst [vmem:[#allocation2 + $0xec] sm:$0x1] %v901_v59  ;;  %v907_v7 = vsel %vm3849_vm5, %v833_v26, %v906_v29  ;;  %v3515_v45 = vld [vmem:[#allocation3 + $0x68] sm:$0xf0]  ;;  %v628_v3 = vld [vmem:[#allocation2 + $0x60] sm:$0xf] }
  0x4f   : > { %v3104_v44 = vld [vmem:[#allocation3 + $0x48] sm:$0xf]  ;;  %908 = vst [vmem:[#allocation2 + $0xf4] sm:$0x1] %v907_v7  ;;  %v1169_v47 = vor.u32 %v1168_v42, %v1165_v13  ;;  %v629_v1 = vsel %vm3756_vm2, %v557_v50, %v628_v3  ;;  %v248_v11 = vld [vmem:[#allocation2 + $0xc] sm:$0x1] }
  0x50   : > { %322 = vst [vmem:[#allocation2 + $0x9c] sm:$0x1] %v321_v23  ;;  %v3591_v26 = vld [vmem:[%s4595_s1 + $0x1a8] sm:$0xff]  ;;  %v3105_v23 = vor.u32 %v3515_v45, %v3104_v44  ;;  %v252_v14 = vld [vmem:[#allocation2 + $0x14] sm:$0x1]  ;;  %v249_v28 = vsel %vm3849_vm5, 0, %v248_v11 }
  0x51   : > { %756 = vst [vmem:[#allocation2 + $0x98] sm:$0xf] %v755_v43  ;;  %2832 = vmatpush.bf16.msrb.mxu2 %v3591_v26  ;;  %v634_v9 = vld [vmem:[#allocation2 + $0x68] sm:$0xf]  ;;  %v958_v16 = vld [vmem:[#allocation2 + $0x94] sm:$0x1] }
  0x52   : > { %v3507_v56 = vld [vmem:[#allocation3 + $0x28] sm:$0xf0]  ;;  %v635_v10 = vsel %vm3756_vm2, %v565_v54, %v634_v9  ;;  %630 = vst [vmem:[#allocation2 + $0x60] sm:$0xf] %v629_v1  ;;  %v253_v58 = vsel %vm3849_vm5, 0, %v252_v14  ;;  %v1156_v20 = vrot.slane %v1155_v57, 4 }
  0x53   : > { %v3077_v48 = vor.u32 %v3507_v56, %v3076_v40  ;;  %v3503_v63 = vld [vmem:[#allocation3 + $0xc] sm:$0xf]  ;;  %v986_v21 = vshll.u32 %v958_v16, 16  ;;  %636 = vst [vmem:[#allocation2 + $0x68] sm:$0xf] %v635_v10  ;;  %v1170_v33 = vrot.slane %v1169_v47, 4 }
  0x54   : > { %v3078_v51 = vld [vmem:[#allocation3 + $0x2c] sm:$0xf0]  ;;  %250 = vst [vmem:[#allocation2 + $0xc] sm:$0x1] %v249_v28  ;;  %v387_v30 = vld [vmem:[%s3737_s12] sm:$0xf] }
  0x55   : > { %2722 = vmatmul.bf16.vlgmr.msra.gmra.mxu2 %v3077_v48  ;;  %v3081_v49 = vor.u32 %v3503_v63, %v3078_v51  ;;  %v1109_v19 = vld [vmem:[#allocation2 + $0xec] sm:$0x1]  ;;  %v988_v24 = vrot.slane %v986_v21, 5  ;;  %254 = vst [vmem:[#allocation2 + $0x14] sm:$0x1] %v253_v58  ;;  %v396_v37 = vshrl.u32 %v387_v30, 16 }
  0x56   : > { %v1111_v52 = vld [vmem:[#allocation2 + $0xf4] sm:$0x1]  ;;  %v1158_v61 = vshll.u32 %v1109_v19, 16  ;;  %v388_v29 = vld [vmem:[%s3737_s12 + $0x10] sm:$0xf]  ;;  %v399_v38 = vshll.u32 %v387_v30, 16 }
  0x57   : > { %2669 = vmatmul.bf16.gmra.mxu0 %v3105_v23  ;;  %2751 = vmatmul.bf16.vlgmr.msra.gmra.mxu3 %v3081_v49  ;;  %v1172_v0 = vshll.u32 %v1111_v52, 16  ;;  %v757_v22 = vld [vmem:[#allocation2 + $0x9c] sm:$0x1]  ;;  %v989_v34 = vsel %vm3957_vm8, %v984_v62, %v988_v24  ;;  %v398_v43 = vrot.slane %v396_v37, 7  ;;  %v404_v44 = vshrl.u32 %v388_v29, 16  ;;  %v3600_v62 = vld [vmem:[%s4595_s1 + $0x1f0] sm:$0xff] }
  0x58   : > { %v1160_v25 = vrot.slane %v1158_v61, 5  ;;  %v758_v2 = vsel %vm3849_vm5, %v680_v60, %v757_v22  ;;  %v959_v27 = vld [vmem:[#allocation2 + $0x98] sm:$0xf]  ;;  %1096 = vst [vmem:[#allocation3 + $0x4] sm:$0xf] %v989_v34  ;;  %v407_v50 = vshll.u32 %v388_v29, 16  ;;  %2860 = vmatpush.bf16.msrb.mxu3 %v3600_v62 }
  0x59   : > { %v1174_v31 = vrot.slane %v1172_v0, 5  ;;  %759 = vst [vmem:[#allocation2 + $0x9c] sm:$0x1] %v758_v2  ;;  %v991_v35 = vshrl.u32 %v959_v27, 16  ;;  %v994_v36 = vshll.u32 %v959_v27, 16  ;;  %v401_v12 = vor.u32 %v399_v38, %v398_v43  ;;  %v3584_v30 = vld [vmem:[%s4595_s1 + $0x170] sm:$0xff] }
  0x5a   : > { %v1161_v59 = vsel %vm3957_vm8, %v1156_v20, %v1160_v25  ;;  %v1250_v13 = vld [vmem:[#allocation2 + $0x60] sm:$0xf]  ;;  %v1251_v42 = vld [vmem:[#allocation2 + $0x68] sm:$0xf]  ;;  %v402_v26 = vrot.slane %v398_v43, 4  ;;  %v406_v55 = vrot.slane %v404_v44, 7  ;;  %2802 = vmatpush.bf16.msra.mxu1 %v3584_v30 }
  0x5b   : > { %v1175_v39 = vsel %vm3957_vm8, %v1170_v33, %v1174_v31  ;;  %1242 = vst [vmem:[#allocation3 + $0x50] sm:$0xf] %v1161_v59  ;;  %v993_v40 = vrot.slane %v991_v35, 4  ;;  %v996_v7 = vrot.slane %v994_v36, 5  ;;  %v479_v54 = vld [vmem:[#allocation2 + $0x8] sm:$0xf] }
  0x5c   : > { %1243 = vst [vmem:[#allocation3 + $0x74] sm:$0xf] %v1175_v39  ;;  %v482_v56 = vld [vmem:[#allocation2 + $0xc] sm:$0x1]  ;;  %v485_v57 = vld [vmem:[#allocation2 + $0x10] sm:$0xf]  ;;  %v409_v23 = vor.u32 %v407_v50, %v406_v55  ;;  %v480_v47 = vsel %vm3756_vm2, %v401_v12, %v479_v54 }
  0x5d   : > { %v997_v45 = vor.u32 %v996_v7, %v993_v40  ;;  %1258 = vst [vmem:[#allocation3 + $0x54] sm:$0xf] %v1250_v13  ;;  %v488_v60 = vld [vmem:[#allocation2 + $0x14] sm:$0x1]  ;;  %v410_v63 = vrot.slane %v406_v55, 4  ;;  %v483_v3 = vsel %vm3849_vm5, %v402_v26, %v482_v56  ;;  %v3590_v31 = vld [vmem:[%s4595_s1 + $0x1a0] sm:$0xff] }
  0x5e   : > { %1259 = vst [vmem:[#allocation3 + $0x78] sm:$0xf] %v1251_v42  ;;  %v368_v9 = vld [vmem:[#allocation2 + $0xfc] sm:$0x1]  ;;  %v486_v14 = vsel %vm3756_vm2, %v409_v23, %v485_v57  ;;  %v372_v16 = vld [vmem:[#allocation2 + $0x104] sm:$0x1]  ;;  %2833 = vmatpush.bf16.msrb.mxu2 %v3590_v31 }
  0x5f   : > { %v998_v51 = vrot.slane %v997_v45, 4  ;;  %481 = vst [vmem:[#allocation2 + $0x8] sm:$0xf] %v480_v47  ;;  %v369_v10 = vsel %vm3849_vm5, 0, %v368_v9  ;;  %v489_v49 = vsel %vm3849_vm5, %v410_v63, %v488_v60  ;;  %v373_v19 = vsel %vm3849_vm5, 0, %v372_v16  ;;  %v3599_v34 = vld [vmem:[%s4595_s1 + $0x1e8] sm:$0xff] }
  0x60   : > { %v960_v48 = vld [vmem:[#allocation2 + $0x9c] sm:$0x1]  ;;  %484 = vst [vmem:[#allocation2 + $0xc] sm:$0x1] %v483_v3  ;;  %v1112_v52 = vld [vmem:[#allocation2 + $0xf8] sm:$0xf]  ;;  %2861 = vmatpush.bf16.msrb.mxu3 %v3599_v34 }
  0x61   : > { %v1000_v1 = vshll.u32 %v960_v48, 16  ;;  %487 = vst [vmem:[#allocation2 + $0x10] sm:$0xf] %v486_v14  ;;  %v1114_v0 = vld [vmem:[#allocation2 + $0x100] sm:$0xf]  ;;  %v1177_v24 = vshrl.u32 %v1112_v52, 16 }
  0x62   : > { %v3112_v11 = vld [vmem:[#allocation3 + $0x50] sm:$0xf]  ;;  %490 = vst [vmem:[#allocation2 + $0x14] sm:$0x1] %v489_v49  ;;  %v1180_v25 = vshll.u32 %v1112_v52, 16  ;;  %v1191_v2 = vshrl.u32 %v1114_v0, 16 }
  0x63   : > { %v3516_v28 = vld [vmem:[#allocation3 + $0x70] sm:$0xf0]  ;;  %v1002_v58 = vrot.slane %v1000_v1, 5  ;;  %370 = vst [vmem:[#allocation2 + $0xfc] sm:$0x1] %v369_v10  ;;  %v1194_v27 = vshll.u32 %v1114_v0, 16 }
  0x64   : > { %v3113_v20 = vor.u32 %v3516_v28, %v3112_v11  ;;  %v3512_v21 = vld [vmem:[#allocation3 + $0x54] sm:$0xf]  ;;  %374 = vst [vmem:[#allocation2 + $0x104] sm:$0x1] %v373_v19  ;;  %v841_v35 = vrot.slane %v3748_v15, 4  ;;  %v849_v36 = vrot.slane %v3760_v18, 4 }
  0x65   : > { %v1003_v61 = vsel %vm3957_vm8, %v998_v51, %v1002_v58  ;;  %v3114_v33 = vld [vmem:[#allocation3 + $0x74] sm:$0xf0]  ;;  %v1179_v29 = vrot.slane %v1177_v24, 4  ;;  %v1182_v37 = vrot.slane %v1180_v25, 5  ;;  %v3502_v38 = vld [vmem:[#allocation3 + $0x4] sm:$0xf] }
  0x66   : > { %2727 = vmatmul.bf16.gmra.mxu2 %v3113_v20  ;;  %1097 = vst [vmem:[#allocation3 + $0x28] sm:$0xf] %v1003_v61  ;;  %v3117_v22 = vor.u32 %v3512_v21, %v3114_v33  ;;  %v1264_v59 = vld [vmem:[#allocation2 + $0x8] sm:$0xf]  ;;  %v1193_v44 = vrot.slane %v1191_v2, 4  ;;  %v1196_v45 = vrot.slane %v1194_v27, 5 }
  0x67   : > { %v1265_v39 = vld [vmem:[#allocation2 + $0xc] sm:$0x1]  ;;  %v1281_v40 = vshrl.u32 %v1264_v59, 16  ;;  %v1284_v7 = vshll.u32 %v1264_v59, 16  ;;  %v1183_v43 = vor.u32 %v1182_v37, %v1179_v29  ;;  %v324_v57 = vld [vmem:[#allocation2 + $0xa4] sm:$0x1] }
  0x68   : > { %2756 = vmatmul.bf16.gmra.mxu3 %v3117_v22  ;;  %v1266_v13 = vld [vmem:[#allocation2 + $0x10] sm:$0xf]  ;;  %v1290_v42 = vshll.u32 %v1265_v39, 16  ;;  %v328_v47 = vld [vmem:[#allocation2 + $0xac] sm:$0x1]  ;;  %v1197_v10 = vor.u32 %v1196_v45, %v1193_v44  ;;  %v325_v16 = vsel %vm3849_vm5, 0, %v324_v57 }
  0x69   : > { %v1267_v50 = vld [vmem:[#allocation2 + $0x14] sm:$0x1]  ;;  %v1283_v15 = vrot.slane %v1281_v40, 4  ;;  %v1286_v54 = vrot.slane %v1284_v7, 5  ;;  %v1295_v18 = vshrl.u32 %v1266_v13, 16  ;;  %v1298_v12 = vshll.u32 %v1266_v13, 16 }
  0x6a   : > { %v1292_v26 = vrot.slane %v1290_v42, 5  ;;  %v1304_v55 = vshll.u32 %v1267_v50, 16  ;;  %v912_v56 = vld [vmem:[#allocation2 + $0xfc] sm:$0x1]  ;;  %v4123_v1 = vrot.slane %v1183_v43, 4  ;;  %v329_v19 = vsel %vm3849_vm5, 0, %v328_v47 }
  0x6b   : > { %v1287_v62 = vor.u32 %v1286_v54, %v1283_v15  ;;  %v1297_v48 = vrot.slane %v1295_v18, 4  ;;  %v1300_v23 = vrot.slane %v1298_v12, 5  ;;  %v913_v63 = vsel %vm3849_vm5, %v841_v35, %v912_v56  ;;  %v918_v51 = vld [vmem:[#allocation2 + $0x104] sm:$0x1]  ;;  %v3051_v28 = vld [vmem:[%s3737_s12 + $0x18] sm:$0xf] }
  0x6c   : > { %v1306_v9 = vrot.slane %v1304_v55, 5  ;;  %914 = vst [vmem:[#allocation2 + $0xfc] sm:$0x1] %v913_v63  ;;  %v919_v49 = vsel %vm3849_vm5, %v849_v36, %v918_v51  ;;  %v3052_v58 = vld [vmem:[%s3737_s12 + $0x28] sm:$0xf]  ;;  %v682_v20 = vshrl.u32 %v3051_v28, 16 }
  0x6d   : > { %v3070_v60 = vld [vmem:[#allocation3 + $0x24] sm:$0xf0]  ;;  %v1288_v11 = vrot.slane %v1287_v62, 4  ;;  %v1301_v14 = vor.u32 %v1300_v23, %v1297_v48  ;;  %920 = vst [vmem:[#allocation2 + $0x104] sm:$0x1] %v919_v49  ;;  %v685_v21 = vshll.u32 %v3051_v28, 16 }
  0x6e   : > { %v3073_v3 = vor.u32 %v3502_v38, %v3070_v60  ;;  %v690_v52 = vshrl.u32 %v3052_v58, 16  ;;  %326 = vst [vmem:[#allocation2 + $0xa4] sm:$0x1] %v325_v16  ;;  %v693_v0 = vshll.u32 %v3052_v58, 16  ;;  %v760_v22 = vld [vmem:[#allocation2 + $0xa0] sm:$0xf] }
  0x6f   : > { %v1293_v61 = vsel %vm3957_vm8, %v1288_v11, %v1292_v26  ;;  %v1302_v33 = vrot.slane %v1301_v14, 4  ;;  %v684_v24 = vrot.slane %v682_v20, 7  ;;  %v766_v2 = vld [vmem:[#allocation2 + $0xa8] sm:$0xf]  ;;  %330 = vst [vmem:[#allocation2 + $0xac] sm:$0x1] %v329_v19 }
  0x70   : > { %2693 = vmatmul.bf16.vlgmr.msrb.gmra.mxu1 %v3073_v3  ;;  %1400 = vst [vmem:[#allocation3 + $0x10] sm:$0xf] %v1293_v61  ;;  %v692_v25 = vrot.slane %v690_v52, 7  ;;  %v3583_v30 = vld [vmem:[%s4595_s1 + $0x168] sm:$0xff]  ;;  %v3589_v31 = vld [vmem:[%s4595_s1 + $0x198] sm:$0xff]  ;;  %v1198_v35 = vrot.slane %v1197_v10, 4 }
  0x71   : > { %v1307_v27 = vsel %vm3957_vm8, %v1302_v33, %v1306_v9  ;;  %v531_v34 = vld [vmem:[%s3737_s12 + $0x44] sm:$0xf]  ;;  %v687_v36 = vor.u32 %v685_v21, %v684_v24  ;;  %v688_v59 = vrot.slane %v684_v24, 4  ;;  %v532_v37 = vld [vmem:[%s3737_s12 + $0x54] sm:$0xf]  ;;  %2803 = vmatpush.bf16.msra.mxu1 %v3583_v30  ;;  %2834 = vmatpush.bf16.msrb.mxu2 %v3589_v31 }
  0x72   : > { %1401 = vst [vmem:[#allocation3 + $0x34] sm:$0xf] %v1307_v27  ;;  %v695_v29 = vor.u32 %v693_v0, %v692_v25  ;;  %v568_v39 = vshrl.u32 %v531_v34, 16  ;;  %v571_v40 = vshll.u32 %v531_v34, 16  ;;  %v576_v7 = vshrl.u32 %v532_v37, 16 }
  0x73   : > { %v1113_v38 = vld [vmem:[#allocation2 + $0xfc] sm:$0x1]  ;;  %v579_v13 = vshll.u32 %v532_v37, 16  ;;  %v696_v43 = vrot.slane %v692_v25, 4  ;;  %v761_v44 = vsel %vm3756_vm2, %v687_v36, %v760_v22  ;;  %v640_v50 = vld [vmem:[#allocation2 + $0x70] sm:$0xf] }
  0x74   : > { %v1186_v42 = vshll.u32 %v1113_v38, 16  ;;  %v767_v45 = vsel %vm3756_vm2, %v695_v29, %v766_v2  ;;  %v1115_v15 = vld [vmem:[#allocation2 + $0x104] sm:$0x1]  ;;  %762 = vst [vmem:[#allocation2 + $0xa0] sm:$0xf] %v761_v44  ;;  %v4149_v54 = vrot.slane %v568_v39, 7 }
  0x75   : > { %v4151_v18 = vrot.slane %v576_v7, 7  ;;  %v1200_v26 = vshll.u32 %v1115_v15, 16  ;;  %v763_v55 = vld [vmem:[#allocation2 + $0xa4] sm:$0x1]  ;;  %768 = vst [vmem:[#allocation2 + $0xa8] sm:$0xf] %v767_v45 }
  0x76   : > { %v1188_v12 = vrot.slane %v1186_v42, 5  ;;  %v764_v57 = vsel %vm3849_vm5, %v688_v59, %v763_v55  ;;  %v573_v60 = vor.u32 %v571_v40, %v4149_v54  ;;  %v646_v48 = vld [vmem:[#allocation2 + $0x78] sm:$0xf]  ;;  %v256_v23 = vld [vmem:[#allocation2 + $0x1c] sm:$0x1] }
  0x77   : > { %v3084_v56 = vld [vmem:[#allocation3 + $0x10] sm:$0xf]  ;;  %v581_v62 = vor.u32 %v579_v13, %v4151_v18  ;;  %v1202_v47 = vrot.slane %v1200_v26, 5  ;;  %765 = vst [vmem:[#allocation2 + $0xa4] sm:$0x1] %v764_v57  ;;  %v257_v11 = vsel %vm3849_vm5, 0, %v256_v23 }
  0x78   : > { %v1189_v63 = vsel %vm3957_vm8, %v4123_v1, %v1188_v12  ;;  %v769_v3 = vld [vmem:[#allocation2 + $0xac] sm:$0x1]  ;;  %v641_v10 = vsel %vm3756_vm2, %v573_v60, %v640_v50  ;;  %v260_v16 = vld [vmem:[#allocation2 + $0x24] sm:$0x1]  ;;  %v389_v28 = vld [vmem:[%s3737_s12 + $0x20] sm:$0xf] }
  0x79   : > { %v3508_v9 = vld [vmem:[#allocation3 + $0x30] sm:$0xf0]  ;;  %1244 = vst [vmem:[#allocation3 + $0x98] sm:$0xf] %v1189_v63  ;;  %v770_v51 = vsel %vm3849_vm5, %v696_v43, %v769_v3  ;;  %v1203_v49 = vsel %vm3957_vm8, %v1198_v35, %v1202_v47  ;;  %v647_v1 = vsel %vm3756_vm2, %v581_v62, %v646_v48  ;;  %v261_v58 = vsel %vm3849_vm5, 0, %v260_v16  ;;  %v3598_v47 = vld [vmem:[%s4595_s1 + $0x1e0] sm:$0xff] }
  0x7a   : > { %v3085_v14 = vor.u32 %v3508_v9, %v3084_v56  ;;  %771 = vst [vmem:[#allocation2 + $0xac] sm:$0x1] %v770_v51  ;;  %v390_v19 = vld [vmem:[%s3737_s12 + $0x30] sm:$0xf]  ;;  %v412_v20 = vshrl.u32 %v389_v28, 16  ;;  %v415_v52 = vshll.u32 %v389_v28, 16  ;;  %2862 = vmatpush.bf16.msrb.mxu3 %v3598_v47 }
  0x7b   : > { %1245 = vst [vmem:[#allocation3 + $0xbc] sm:$0xf] %v1203_v49  ;;  %v961_v21 = vld [vmem:[#allocation2 + $0xa0] sm:$0xf]  ;;  %v420_v61 = vshrl.u32 %v390_v19, 16  ;;  %v423_v7 = vshll.u32 %v390_v19, 16 }
  0x7c   : > { %2780 = vmatmul.bf16.vlgmr.msrb.gmra.mxu0 %v3085_v14  ;;  %642 = vst [vmem:[#allocation2 + $0x70] sm:$0xf] %v641_v10  ;;  %v963_v33 = vld [vmem:[#allocation2 + $0xa8] sm:$0xf]  ;;  %v1005_v0 = vshrl.u32 %v961_v21, 16  ;;  %v1008_v22 = vshll.u32 %v961_v21, 16 }
  0x7d   : > { %648 = vst [vmem:[#allocation2 + $0x78] sm:$0xf] %v647_v1  ;;  %v1019_v24 = vshrl.u32 %v963_v33, 16  ;;  %v1022_v25 = vshll.u32 %v963_v33, 16  ;;  %v414_v2 = vrot.slane %v412_v20, 7  ;;  %v422_v27 = vrot.slane %v420_v61, 7 }
  0x7e   : > { %258 = vst [vmem:[#allocation2 + $0x1c] sm:$0x1] %v257_v11  ;;  %v962_v30 = vld [vmem:[#allocation2 + $0xa4] sm:$0x1]  ;;  %v1007_v31 = vrot.slane %v1005_v0, 4  ;;  %v1010_v34 = vrot.slane %v1008_v22, 5 }
  0x7f   : > { %262 = vst [vmem:[#allocation2 + $0x24] sm:$0x1] %v261_v58  ;;  %v1014_v36 = vshll.u32 %v962_v30, 16  ;;  %v1021_v59 = vrot.slane %v1019_v24, 4  ;;  %v1024_v29 = vrot.slane %v1022_v25, 5  ;;  %v417_v39 = vor.u32 %v415_v52, %v414_v2  ;;  %v4184_v3 = vld [vmem:[%s4595_s1 + $0x238] sm:$0xff] }
  0x80   : > { %v3148_v35 = vld [vmem:[#allocation3 + $0x98] sm:$0xf]  ;;  %v1011_v38 = vor.u32 %v1010_v34, %v1007_v31  ;;  %v418_v40 = vrot.slane %v414_v2, 4  ;;  %v425_v26 = vor.u32 %v423_v7, %v422_v27  ;;  %v426_v55 = vrot.slane %v422_v27, 4  ;;  %v497_v56 = vld [vmem:[#allocation2 + $0x20] sm:$0xf]  ;;  %2888 = vmatpush.bf16.msra.mxu0 %v4184_v3 }
  0x81   : > { %v964_v37 = vld [vmem:[#allocation2 + $0xac] sm:$0x1]  ;;  %v1016_v42 = vrot.slane %v1014_v36, 5  ;;  %v1025_v43 = vor.u32 %v1024_v29, %v1021_v59  ;;  %v491_v45 = vld [vmem:[#allocation2 + $0x18] sm:$0xf]  ;;  %v3582_v25 = vld [vmem:[%s4595_s1 + $0x160] sm:$0xff] }
  0x82   : > { %v3525_v13 = vld [vmem:[#allocation3 + $0xb8] sm:$0xf0]  ;;  %v1028_v44 = vshll.u32 %v964_v37, 16  ;;  %v1012_v15 = vrot.slane %v1011_v38, 4  ;;  %v492_v23 = vsel %vm3756_vm2, %v417_v39, %v491_v45  ;;  %v376_v11 = vld [vmem:[#allocation2 + $0x10c] sm:$0x1]  ;;  %v498_v14 = vsel %vm3756_vm2, %v425_v26, %v497_v56  ;;  %2804 = vmatpush.bf16.msra.mxu1 %v3582_v25 }
  0x83   : > { %v3149_v50 = vor.u32 %v3525_v13, %v3148_v35  ;;  %v1252_v12 = vld [vmem:[#allocation2 + $0x70] sm:$0xf]  ;;  %v1026_v57 = vrot.slane %v1025_v43, 4  ;;  %v380_v49 = vld [vmem:[#allocation2 + $0x114] sm:$0x1]  ;;  %v377_v28 = vsel %vm3849_vm5, 0, %v376_v11 }
  0x84   : > { %v1030_v60 = vrot.slane %v1028_v44, 5  ;;  %v1253_v62 = vld [vmem:[#allocation2 + $0x78] sm:$0xf]  ;;  %1260 = vst [vmem:[#allocation3 + $0x9c] sm:$0xf] %v1252_v12  ;;  %v1017_v48 = vsel %vm3957_vm8, %v1012_v15, %v1016_v42  ;;  %v381_v19 = vsel %vm3849_vm5, 0, %v380_v49 }
  0x85   : > { %2732 = vmatmul.bf16.gmra.mxu2 %v3149_v50  ;;  %1261 = vst [vmem:[#allocation3 + $0xc0] sm:$0xf] %v1253_v62  ;;  %v494_v63 = vld [vmem:[#allocation2 + $0x1c] sm:$0x1]  ;;  %v1116_v16 = vld [vmem:[#allocation2 + $0x108] sm:$0xf] }
  0x86   : > { %v1031_v9 = vsel %vm3957_vm8, %v1026_v57, %v1030_v60  ;;  %1098 = vst [vmem:[#allocation3 + $0x4c] sm:$0xf] %v1017_v48  ;;  %v495_v51 = vsel %vm3849_vm5, %v418_v40, %v494_v63  ;;  %v500_v10 = vld [vmem:[#allocation2 + $0x24] sm:$0x1]  ;;  %v1118_v58 = vld [vmem:[#allocation2 + $0x110] sm:$0xf] }
  0x87   : > { %1099 = vst [vmem:[#allocation3 + $0x70] sm:$0xf] %v1031_v9  ;;  %v501_v1 = vsel %vm3849_vm5, %v426_v55, %v500_v10  ;;  %v1205_v20 = vshrl.u32 %v1116_v16, 16  ;;  %v1208_v21 = vshll.u32 %v1116_v16, 16  ;;  %v332_v61 = vld [vmem:[#allocation2 + $0xb4] sm:$0x1] }
  0x88   : > { %493 = vst [vmem:[#allocation2 + $0x18] sm:$0xf] %v492_v23  ;;  %v1219_v0 = vshrl.u32 %v1118_v58, 16  ;;  %v3588_v2 = vld [vmem:[%s4595_s1 + $0x190] sm:$0xff]  ;;  %v857_v27 = vrot.slane %v3874_v4, 4  ;;  %v3597_v31 = vld [vmem:[%s4595_s1 + $0x1d8] sm:$0xff] }
  0x89   : > { %496 = vst [vmem:[#allocation2 + $0x1c] sm:$0x1] %v495_v51  ;;  %v4212_v34 = vld [vmem:[%s4595_s1 + $0x230] sm:$0xff]  ;;  %v333_v35 = vsel %vm3849_vm5, 0, %v332_v61  ;;  %v1207_v29 = vrot.slane %v1205_v20, 4  ;;  %v1210_v37 = vrot.slane %v1208_v21, 5  ;;  %2835 = vmatpush.bf16.msrb.mxu2 %v3588_v2  ;;  %2863 = vmatpush.bf16.msrb.mxu3 %v3597_v31 }
  0x8a   : > { %499 = vst [vmem:[#allocation2 + $0x20] sm:$0xf] %v498_v14  ;;  %v865_v4 = vrot.slane %v3876_v6, 4  ;;  %v1222_v7 = vshll.u32 %v1118_v58, 16  ;;  %v4217_v43 = vrot.slane %v1219_v0, 4  ;;  %2889 = vmatpush.bf16.msra.mxu0 %v4212_v34  ;;  %v3587_v2 = vld [vmem:[%s4595_s1 + $0x188] sm:$0xff] }
  0x8b   : > { %v3521_v52 = vld [vmem:[#allocation3 + $0x9c] sm:$0xf]  ;;  %502 = vst [vmem:[#allocation2 + $0x24] sm:$0x1] %v501_v1  ;;  %v1211_v57 = vor.u32 %v1210_v37, %v1207_v29  ;;  %v3053_v11 = vld [vmem:[%s3737_s12 + $0x38] sm:$0xf] }
  0x8c   : > { %v3150_v33 = vld [vmem:[#allocation3 + $0xbc] sm:$0xf0]  ;;  %378 = vst [vmem:[#allocation2 + $0x10c] sm:$0x1] %v377_v28  ;;  %v336_v44 = vld [vmem:[#allocation2 + $0xbc] sm:$0x1] }
  0x8d   : > { %v3511_v22 = vld [vmem:[#allocation3 + $0x4c] sm:$0xf]  ;;  %v3153_v24 = vor.u32 %v3521_v52, %v3150_v33  ;;  %382 = vst [vmem:[#allocation2 + $0x114] sm:$0x1] %v381_v19  ;;  %v337_v60 = vsel %vm3849_vm5, 0, %v336_v44  ;;  %v1224_v10 = vrot.slane %v1222_v7, 5  ;;  %2836 = vmatpush.bf16.msrb.mxu2 %v3587_v2 }
  0x8e   : > { %v3106_v30 = vld [vmem:[#allocation3 + $0x6c] sm:$0xf0]  ;;  %334 = vst [vmem:[#allocation2 + $0xb4] sm:$0x1] %v333_v35  ;;  %v3054_v1 = vld [vmem:[%s3737_s12 + $0x48] sm:$0xf] }
  0x8f   : > { %v3109_v36 = vor.u32 %v3511_v22, %v3106_v30  ;;  %2761 = vmatmul.bf16.gmra.mxu3 %v3153_v24  ;;  %v1268_v59 = vld [vmem:[#allocation2 + $0x18] sm:$0xf]  ;;  %338 = vst [vmem:[#allocation2 + $0xbc] sm:$0x1] %v337_v60  ;;  %v698_v16 = vshrl.u32 %v3053_v11, 16  ;;  %v4228_v28 = vrot.slane %v1211_v57, 4  ;;  %v1225_v24 = vor.u32 %v1224_v10, %v4217_v43 }
  0x90   : > { %v1269_v38 = vld [vmem:[#allocation2 + $0x1c] sm:$0x1]  ;;  %v1309_v39 = vshrl.u32 %v1268_v59, 16  ;;  %v1312_v40 = vshll.u32 %v1268_v59, 16  ;;  %v701_v58 = vshll.u32 %v3053_v11, 16  ;;  %v706_v19 = vshrl.u32 %v3054_v1, 16 }
  0x91   : > { %2698 = vmatmul.bf16.gmra.mxu1 %v3109_v36  ;;  %v1270_v13 = vld [vmem:[#allocation2 + $0x20] sm:$0xf]  ;;  %v1318_v42 = vshll.u32 %v1269_v38, 16  ;;  %v709_v20 = vshll.u32 %v3054_v1, 16  ;;  %v772_v21 = vld [vmem:[#allocation2 + $0xb0] sm:$0xf] }
  0x92   : > { %v1271_v45 = vld [vmem:[#allocation2 + $0x24] sm:$0x1]  ;;  %v1311_v50 = vrot.slane %v1309_v39, 4  ;;  %v1314_v15 = vrot.slane %v1312_v40, 5  ;;  %v1323_v12 = vshrl.u32 %v1270_v13, 16  ;;  %v1326_v26 = vshll.u32 %v1270_v13, 16 }
  0x93   : > { %v1320_v6 = vrot.slane %v1318_v42, 5  ;;  %v1332_v55 = vshll.u32 %v1271_v45, 16  ;;  %v924_v56 = vld [vmem:[#allocation2 + $0x10c] sm:$0x1]  ;;  %v700_v33 = vrot.slane %v698_v16, 7  ;;  %v708_v25 = vrot.slane %v706_v19, 7 }
  0x94   : > { %v1315_v62 = vor.u32 %v1314_v15, %v1311_v50  ;;  %v1325_v48 = vrot.slane %v1323_v12, 4  ;;  %v1328_v23 = vrot.slane %v1326_v26, 5  ;;  %v925_v63 = vsel %vm3849_vm5, %v857_v27, %v924_v56  ;;  %v930_v47 = vld [vmem:[#allocation2 + $0x114] sm:$0x1]  ;;  %v778_v22 = vld [vmem:[#allocation2 + $0xb8] sm:$0xf] }
  0x95   : > { %v1334_v9 = vrot.slane %v1332_v55, 5  ;;  %926 = vst [vmem:[#allocation2 + $0x10c] sm:$0x1] %v925_v63  ;;  %v931_v51 = vsel %vm3849_vm5, %v865_v4, %v930_v47  ;;  %v775_v0 = vld [vmem:[#allocation2 + $0xb4] sm:$0x1]  ;;  %v703_v31 = vor.u32 %v701_v58, %v700_v33  ;;  %v704_v35 = vrot.slane %v700_v33, 4 }
  0x96   : > { %v1316_v14 = vrot.slane %v1315_v62, 4  ;;  %v1329_v49 = vor.u32 %v1328_v23, %v1325_v48  ;;  %932 = vst [vmem:[#allocation2 + $0x114] sm:$0x1] %v931_v51  ;;  %v533_v27 = vld [vmem:[%s3737_s12 + $0x64] sm:$0xf]  ;;  %v3581_v36 = vld [vmem:[%s4595_s1 + $0x158] sm:$0xff]  ;;  %v711_v4 = vor.u32 %v709_v20, %v708_v25 }
  0x97   : > { %v3586_v59 = vld [vmem:[%s4595_s1 + $0x180] sm:$0xff]  ;;  %v534_v29 = vld [vmem:[%s3737_s12 + $0x74] sm:$0xf]  ;;  %v584_v37 = vshrl.u32 %v533_v27, 16  ;;  %v712_v38 = vrot.slane %v708_v25, 4  ;;  %v587_v40 = vshll.u32 %v533_v27, 16  ;;  %v773_v13 = vsel %vm3756_vm2, %v703_v31, %v772_v21  ;;  %2805 = vmatpush.bf16.msra.mxu1 %v3581_v36 }
  0x98   : > { %v1321_v52 = vsel %vm3957_vm8, %v1316_v14, %v1320_v6  ;;  %v1330_v61 = vrot.slane %v1329_v49, 4  ;;  %v781_v39 = vld [vmem:[#allocation2 + $0xbc] sm:$0x1]  ;;  %v776_v42 = vsel %vm3849_vm5, %v704_v35, %v775_v0  ;;  %v592_v44 = vshrl.u32 %v534_v29, 16  ;;  %v652_v45 = vld [vmem:[#allocation2 + $0x80] sm:$0xf]  ;;  %2837 = vmatpush.bf16.msrb.mxu2 %v3586_v59 }
  0x99   : > { %1402 = vst [vmem:[#allocation3 + $0x58] sm:$0xf] %v1321_v52  ;;  %v4250_v43 = vrot.slane %v584_v37, 7  ;;  %v779_v12 = vsel %vm3756_vm2, %v711_v4, %v778_v22  ;;  %v782_v26 = vsel %vm3849_vm5, %v712_v38, %v781_v39  ;;  %v595_v6 = vshll.u32 %v534_v29, 16  ;;  %v658_v48 = vld [vmem:[#allocation2 + $0x88] sm:$0xf] }
  0x9a   : > { %v1335_v30 = vsel %vm3957_vm8, %v1330_v61, %v1334_v9  ;;  %774 = vst [vmem:[#allocation2 + $0xb0] sm:$0xf] %v773_v13  ;;  %v1226_v55 = vrot.slane %v1225_v24, 4  ;;  %v4257_v60 = vrot.slane %v592_v44, 7  ;;  %v264_v10 = vld [vmem:[#allocation2 + $0x2c] sm:$0x1] }
  0x9b   : > { %1403 = vst [vmem:[#allocation3 + $0x7c] sm:$0xf] %v1335_v30  ;;  %v589_v57 = vor.u32 %v587_v40, %v4250_v43  ;;  %v268_v11 = vld [vmem:[#allocation2 + $0x34] sm:$0x1]  ;;  %v265_v16 = vsel %vm3849_vm5, 0, %v264_v10 }
  0x9c   : > { %v1117_v7 = vld [vmem:[#allocation2 + $0x10c] sm:$0x1]  ;;  %777 = vst [vmem:[#allocation2 + $0xb4] sm:$0x1] %v776_v42  ;;  %v597_v47 = vor.u32 %v595_v6, %v4257_v60  ;;  %3641 = vmatpush.bf16.msra.mxu2 %v4184_v3  ;;  %v391_v58 = vld [vmem:[%s3737_s12 + $0x40] sm:$0xf] }
  0x9d   : > { %v1119_v50 = vld [vmem:[#allocation2 + $0x114] sm:$0x1]  ;;  %v1214_v15 = vshll.u32 %v1117_v7, 16  ;;  %780 = vst [vmem:[#allocation2 + $0xb8] sm:$0xf] %v779_v12  ;;  %v653_v9 = vsel %vm3756_vm2, %v589_v57, %v652_v45  ;;  %v428_v20 = vshrl.u32 %v391_v58, 16 }
  0x9e   : > { %v1228_v56 = vshll.u32 %v1119_v50, 16  ;;  %783 = vst [vmem:[#allocation2 + $0xbc] sm:$0x1] %v782_v26  ;;  %v659_v1 = vsel %vm3756_vm2, %v597_v47, %v658_v48  ;;  %v431_v21 = vshll.u32 %v391_v58, 16  ;;  %v392_v0 = vld [vmem:[%s3737_s12 + $0x50] sm:$0xf] }
  0x9f   : > { %v1216_v62 = vrot.slane %v1214_v15, 5  ;;  %654 = vst [vmem:[#allocation2 + $0x80] sm:$0xf] %v653_v9  ;;  %v430_v25 = vrot.slane %v428_v20, 7  ;;  %v436_v13 = vshrl.u32 %v392_v0, 16  ;;  %v439_v42 = vshll.u32 %v392_v0, 16 }
  0xa0   : > { %v3120_v23 = vld [vmem:[#allocation3 + $0x58] sm:$0xf]  ;;  %v1230_v63 = vrot.slane %v1228_v56, 5  ;;  %660 = vst [vmem:[#allocation2 + $0x88] sm:$0xf] %v659_v1  ;;  %3642 = vmatpush.bf16.msra.mxu2 %v4212_v34  ;;  %v3596_v57 = vld [vmem:[%s4595_s1 + $0x1d0] sm:$0xff] }
  0xa1   : > { %v1217_v51 = vsel %vm3957_vm8, %v4228_v28, %v1216_v62  ;;  %v269_v28 = vsel %vm3849_vm5, 0, %v268_v11  ;;  %v965_v19 = vld [vmem:[#allocation2 + $0xb0] sm:$0xf]  ;;  %266 = vst [vmem:[#allocation2 + $0x2c] sm:$0x1] %v265_v16  ;;  %v433_v37 = vor.u32 %v431_v21, %v430_v25  ;;  %v434_v34 = vrot.slane %v430_v25, 4  ;;  %2864 = vmatpush.bf16.msrb.mxu3 %v3596_v57 }
  0xa2   : > { %v3517_v14 = vld [vmem:[#allocation3 + $0x78] sm:$0xf0]  ;;  %v1231_v49 = vsel %vm3957_vm8, %v1226_v55, %v1230_v63  ;;  %1246 = vst [vmem:[#allocation3 + $0xe0] sm:$0xf] %v1217_v51  ;;  %v1033_v61 = vshrl.u32 %v965_v19, 16  ;;  %v1036_v33 = vshll.u32 %v965_v19, 16 }
  0xa3   : > { %v3121_v3 = vor.u32 %v3517_v14, %v3120_v23  ;;  %1247 = vst [vmem:[#allocation3 + $0x104] sm:$0xf] %v1231_v49  ;;  %v966_v52 = vld [vmem:[#allocation2 + $0xb4] sm:$0x1]  ;;  %v503_v26 = vld [vmem:[#allocation2 + $0x28] sm:$0xf] }
  0xa4   : > { %v967_v22 = vld [vmem:[#allocation2 + $0xb8] sm:$0xf]  ;;  %v1042_v24 = vshll.u32 %v966_v52, 16  ;;  %270 = vst [vmem:[#allocation2 + $0x34] sm:$0x1] %v269_v28  ;;  %v1035_v27 = vrot.slane %v1033_v61, 4  ;;  %v504_v55 = vsel %vm3756_vm2, %v433_v37, %v503_v26 }
  0xa5   : > { %2785 = vmatmul.bf16.gmra.mxu0 %v3121_v3  ;;  %v968_v2 = vld [vmem:[#allocation2 + $0xbc] sm:$0x1]  ;;  %v1038_v30 = vrot.slane %v1036_v33, 5  ;;  %v1047_v31 = vshrl.u32 %v967_v22, 16  ;;  %v1050_v35 = vshll.u32 %v967_v22, 16  ;;  %v438_v6 = vrot.slane %v436_v13, 7 }
  0xa6   : > { %v1044_v36 = vrot.slane %v1042_v24, 5  ;;  %v1056_v59 = vshll.u32 %v968_v2, 16  ;;  %v1254_v29 = vld [vmem:[#allocation2 + $0x80] sm:$0xf]  ;;  %505 = vst [vmem:[#allocation2 + $0x28] sm:$0xf] %v504_v55 }
  0xa7   : > { %v1039_v38 = vor.u32 %v1038_v30, %v1035_v27  ;;  %v1049_v39 = vrot.slane %v1047_v31, 4  ;;  %v1052_v40 = vrot.slane %v1050_v35, 5  ;;  %1262 = vst [vmem:[#allocation3 + $0xe4] sm:$0xf] %v1254_v29  ;;  %v1255_v12 = vld [vmem:[#allocation2 + $0x88] sm:$0xf]  ;;  %v441_v9 = vor.u32 %v439_v42, %v438_v6 }
  0xa8   : > { %v1058_v15 = vrot.slane %v1056_v59, 5  ;;  %1263 = vst [vmem:[#allocation3 + $0x108] sm:$0xf] %v1255_v12  ;;  %v506_v56 = vld [vmem:[#allocation2 + $0x2c] sm:$0x1]  ;;  %v442_v51 = vrot.slane %v438_v6, 4 }
  0xa9   : > { %v3184_v4 = vld [vmem:[#allocation3 + $0xe0] sm:$0xf]  ;;  %v1040_v45 = vrot.slane %v1039_v38, 4  ;;  %v1053_v50 = vor.u32 %v1052_v40, %v1049_v39  ;;  %v507_v23 = vsel %vm3849_vm5, %v434_v34, %v506_v56  ;;  %v509_v63 = vld [vmem:[#allocation2 + $0x30] sm:$0xf]  ;;  %v3607_v47 = vld [vmem:[%s4595_s1 + $0x228] sm:$0xff] }
  0xaa   : > { %v3534_v7 = vld [vmem:[#allocation3 + $0x100] sm:$0xf0]  ;;  %v3580_v11 = vld [vmem:[%s4595_s1 + $0x150] sm:$0xff]  ;;  %508 = vst [vmem:[#allocation2 + $0x2c] sm:$0x1] %v507_v23  ;;  %2890 = vmatpush.bf16.msra.mxu0 %v3607_v47  ;;  %3643 = vmatpush.bf16.msra.mxu2 %v3607_v47  ;;  %v510_v3 = vsel %vm3756_vm2, %v441_v9, %v509_v63  ;;  %v3595_v58 = vld [vmem:[%s4595_s1 + $0x1c8] sm:$0xff] }
  0xab   : > { %v3185_v44 = vor.u32 %v3534_v7, %v3184_v4  ;;  %v1045_v62 = vsel %vm3957_vm8, %v1040_v45, %v1044_v36  ;;  %v1054_v48 = vrot.slane %v1053_v50, 4  ;;  %v512_v10 = vld [vmem:[#allocation2 + $0x34] sm:$0x1]  ;;  %v1552_v49 = vld [vmem:[#allocation2 + $0xe0] sm:$0xf]  ;;  %2806 = vmatpush.bf16.msra.mxu1 %v3580_v11  ;;  %2865 = vmatpush.bf16.msrb.mxu3 %v3595_v58  ;;  %v3579_v55 = vld [vmem:[%s4595_s1 + $0x148] sm:$0xff] }
  0xac   : > { %1100 = vst [vmem:[#allocation3 + $0x94] sm:$0xf] %v1045_v62  ;;  %v1553_v1 = vld [vmem:[#allocation2 + $0xe8] sm:$0xf]  ;;  %v513_v28 = vsel %vm3849_vm5, %v442_v51, %v512_v10  ;;  %v3606_v19 = vld [vmem:[%s4595_s1 + $0x220] sm:$0xff] }
  0xad   : > { %2737 = vmatmul.bf16.gmra.mxu2 %v3185_v44  ;;  %v1059_v14 = vsel %vm3957_vm8, %v1054_v48, %v1058_v15  ;;  %511 = vst [vmem:[#allocation2 + $0x30] sm:$0xf] %v510_v3  ;;  %v340_v20 = vld [vmem:[#allocation2 + $0xc4] sm:$0x1]  ;;  %v344_v21 = vld [vmem:[#allocation2 + $0xcc] sm:$0x1] }
  0xae   : > { %1101 = vst [vmem:[#allocation3 + $0xb8] sm:$0xf] %v1059_v14  ;;  %v3530_v16 = vld [vmem:[#allocation3 + $0xe4] sm:$0xf]  ;;  %v341_v52 = vsel %vm3849_vm5, 0, %v340_v20  ;;  %v345_v61 = vsel %vm3849_vm5, 0, %v344_v21  ;;  %2891 = vmatpush.bf16.msra.mxu0 %v3606_v19  ;;  %3644 = vmatpush.bf16.msra.mxu2 %v3606_v19 }
  0xaf   : > { %514 = vst [vmem:[#allocation2 + $0x34] sm:$0x1] %v513_v28  ;;  %v3055_v33 = vld [vmem:[%s3737_s12 + $0x58] sm:$0xf]  ;;  %v3186_v0 = vld [vmem:[#allocation3 + $0x104] sm:$0xf0]  ;;  %2807 = vmatpush.bf16.msra.mxu1 %v3579_v55 }
  0xb0   : > { %1560 = vst [vmem:[#allocation3 + $0x18] sm:$0xf] %v1552_v49  ;;  %v3056_v22 = vld [vmem:[%s3737_s12 + $0x68] sm:$0xf]  ;;  %v3189_v24 = vor.u32 %v3530_v16, %v3186_v0  ;;  %v714_v2 = vshrl.u32 %v3055_v33, 16  ;;  %v717_v27 = vshll.u32 %v3055_v33, 16 }
  0xb1   : > { %v1272_v25 = vld [vmem:[#allocation2 + $0x28] sm:$0xf]  ;;  %1561 = vst [vmem:[#allocation3 + $0x3c] sm:$0xf] %v1553_v1  ;;  %v1273_v36 = vld [vmem:[#allocation2 + $0x2c] sm:$0x1] }
  0xb2   : > { %v1337_v31 = vshrl.u32 %v1272_v25, 16  ;;  %v1340_v35 = vshll.u32 %v1272_v25, 16  ;;  %342 = vst [vmem:[#allocation2 + $0xc4] sm:$0x1] %v341_v52  ;;  %2766 = vmatmul.bf16.gmra.mxu3 %v3189_v24  ;;  %v716_v59 = vrot.slane %v714_v2, 7  ;;  %v722_v29 = vshrl.u32 %v3056_v22, 16 }
  0xb3   : > { %v3520_v30 = vld [vmem:[#allocation3 + $0x94] sm:$0xf]  ;;  %346 = vst [vmem:[#allocation2 + $0xcc] sm:$0x1] %v345_v61  ;;  %v1346_v38 = vshll.u32 %v1273_v36, 16  ;;  %v725_v39 = vshll.u32 %v3056_v22, 16 }
  0xb4   : > { %v1339_v34 = vrot.slane %v1337_v31, 4  ;;  %v1342_v4 = vrot.slane %v1340_v35, 5  ;;  %v1274_v7 = vld [vmem:[#allocation2 + $0x30] sm:$0xf]  ;;  %v719_v13 = vor.u32 %v717_v27, %v716_v59  ;;  %v720_v42 = vrot.slane %v716_v59, 4  ;;  %v3594_v11 = vld [vmem:[%s4595_s1 + $0x1c0] sm:$0xff] }
  0xb5   : > { %v3142_v37 = vld [vmem:[#allocation3 + $0xb4] sm:$0xf0]  ;;  %v724_v44 = vrot.slane %v722_v29, 7  ;;  %v784_v45 = vld [vmem:[#allocation2 + $0xc0] sm:$0xf]  ;;  %v1348_v12 = vrot.slane %v1346_v38, 5  ;;  %2866 = vmatpush.bf16.msrb.mxu3 %v3594_v11 }
  0xb6   : > { %v3145_v40 = vor.u32 %v3520_v30, %v3142_v37  ;;  %v1275_v50 = vld [vmem:[#allocation2 + $0x34] sm:$0x1]  ;;  %v1343_v15 = vor.u32 %v1342_v4, %v1339_v34  ;;  %v1351_v26 = vshrl.u32 %v1274_v7, 16  ;;  %v1354_v6 = vshll.u32 %v1274_v7, 16  ;;  %v790_v63 = vld [vmem:[#allocation2 + $0xc8] sm:$0xf] }
  0xb7   : > { %v1360_v56 = vshll.u32 %v1275_v50, 16  ;;  %v3092_v57 = vld [vmem:[#allocation3 + $0x18] sm:$0xf]  ;;  %v727_v62 = vor.u32 %v725_v39, %v724_v44  ;;  %v728_v48 = vrot.slane %v724_v44, 4  ;;  %v785_v23 = vsel %vm3756_vm2, %v719_v13, %v784_v45  ;;  %v272_v20 = vld [vmem:[#allocation2 + $0x3c] sm:$0x1] }
  0xb8   : > { %2703 = vmatmul.bf16.gmra.mxu1 %v3145_v40  ;;  %v1344_v47 = vrot.slane %v1343_v15, 4  ;;  %v1353_v9 = vrot.slane %v1351_v26, 4  ;;  %v1356_v51 = vrot.slane %v1354_v6, 5  ;;  %v3509_v10 = vld [vmem:[#allocation3 + $0x38] sm:$0xf0]  ;;  %v273_v52 = vsel %vm3849_vm5, 0, %v272_v20 }
  0xb9   : > { %v1362_v14 = vrot.slane %v1360_v56, 5  ;;  %v3093_v49 = vor.u32 %v3509_v10, %v3092_v57  ;;  %786 = vst [vmem:[#allocation2 + $0xc0] sm:$0xf] %v785_v23  ;;  %v787_v1 = vld [vmem:[#allocation2 + $0xc4] sm:$0x1]  ;;  %v791_v16 = vsel %vm3756_vm2, %v727_v62, %v790_v63  ;;  %v3605_v34 = vld [vmem:[%s4595_s1 + $0x218] sm:$0xff] }
  0xba   : > { %v1349_v3 = vsel %vm3957_vm8, %v1344_v47, %v1348_v12  ;;  %v1357_v28 = vor.u32 %v1356_v51, %v1353_v9  ;;  %v788_v58 = vsel %vm3849_vm5, %v720_v42, %v787_v1  ;;  %792 = vst [vmem:[#allocation2 + $0xc8] sm:$0xf] %v791_v16  ;;  %v793_v19 = vld [vmem:[#allocation2 + $0xcc] sm:$0x1]  ;;  %v276_v61 = vld [vmem:[#allocation2 + $0x44] sm:$0x1]  ;;  %2892 = vmatpush.bf16.msra.mxu0 %v3605_v34 }
  0xbb   : > { %1404 = vst [vmem:[#allocation3 + $0xa0] sm:$0xf] %v1349_v3  ;;  %v794_v21 = vsel %vm3849_vm5, %v728_v48, %v793_v19  ;;  %v277_v0 = vsel %vm3849_vm5, 0, %v276_v61  ;;  %v393_v22 = vld [vmem:[%s3737_s12 + $0x60] sm:$0xf]  ;;  %v3604_v12 = vld [vmem:[%s4595_s1 + $0x210] sm:$0xff]  ;;  %3645 = vmatpush.bf16.msra.mxu2 %v3605_v34 }
  0xbc   : > { %v1358_v33 = vrot.slane %v1357_v28, 4  ;;  %789 = vst [vmem:[#allocation2 + $0xc4] sm:$0x1] %v788_v58  ;;  %v394_v24 = vld [vmem:[%s3737_s12 + $0x70] sm:$0xf]  ;;  %v444_v25 = vshrl.u32 %v393_v22, 16 }
  0xbd   : > { %2838 = vmatmul.bf16.vlgmr.msrb.gmra.mxu2 %v3093_v49  ;;  %795 = vst [vmem:[#allocation2 + $0xcc] sm:$0x1] %v794_v21  ;;  %v447_v2 = vshll.u32 %v393_v22, 16  ;;  %v452_v30 = vshrl.u32 %v394_v24, 16  ;;  %v455_v31 = vshll.u32 %v394_v24, 16  ;;  %v3578_v13 = vld [vmem:[%s4595_s1 + $0x140] sm:$0xff] }
  0xbe   : > { %v1363_v27 = vsel %vm3957_vm8, %v1358_v33, %v1362_v14  ;;  %274 = vst [vmem:[#allocation2 + $0x3c] sm:$0x1] %v273_v52  ;;  %v515_v35 = vld [vmem:[#allocation2 + $0x38] sm:$0xf]  ;;  %v446_v36 = vrot.slane %v444_v25, 7  ;;  %2808 = vmatpush.bf16.msra.mxu1 %v3578_v13  ;;  %v3603_v9 = vld [vmem:[%s4595_s1 + $0x208] sm:$0xff]  ;;  %2893 = vmatpush.bf16.msra.mxu0 %v3604_v12 }
  0xbf   : > { %1405 = vst [vmem:[#allocation3 + $0xc4] sm:$0xf] %v1363_v27  ;;  %v521_v59 = vld [vmem:[#allocation2 + $0x40] sm:$0xf]  ;;  %v454_v37 = vrot.slane %v452_v30, 7  ;;  %3646 = vmatpush.bf16.msra.mxu2 %v3604_v12 }
  0xc0   : > { %v969_v29 = vld [vmem:[#allocation2 + $0xc0] sm:$0xf]  ;;  %278 = vst [vmem:[#allocation2 + $0x44] sm:$0x1] %v277_v0  ;;  %v449_v40 = vor.u32 %v447_v2, %v446_v36  ;;  %v450_v7 = vrot.slane %v446_v36, 4 }
  0xc1   : > { %v971_v4 = vld [vmem:[#allocation2 + $0xc8] sm:$0xf]  ;;  %v1061_v38 = vshrl.u32 %v969_v29, 16  ;;  %v1064_v39 = vshll.u32 %v969_v29, 16  ;;  %v457_v50 = vor.u32 %v455_v31, %v454_v37  ;;  %v458_v15 = vrot.slane %v454_v37, 4 }
  0xc2   : > { %v3156_v42 = vld [vmem:[#allocation3 + $0xa0] sm:$0xf]  ;;  %v1075_v44 = vshrl.u32 %v971_v4, 16  ;;  %v1078_v45 = vshll.u32 %v971_v4, 16  ;;  %v516_v56 = vsel %vm3756_vm2, %v449_v40, %v515_v35  ;;  %v1568_v57 = vld [vmem:[#allocation2 + $0x98] sm:$0xf]  ;;  %2894 = vmatpush.bf16.msra.mxu0 %v3603_v9 }
  0xc3   : > { %v970_v26 = vld [vmem:[#allocation2 + $0xc4] sm:$0x1]  ;;  %v1063_v6 = vrot.slane %v1061_v38, 4  ;;  %v1066_v55 = vrot.slane %v1064_v39, 5  ;;  %v522_v47 = vsel %vm3756_vm2, %v457_v50, %v521_v59  ;;  %517 = vst [vmem:[#allocation2 + $0x38] sm:$0xf] %v516_v56  ;;  %3647 = vmatpush.bf16.msra.mxu2 %v3603_v9 }
  0xc4   : > { %v972_v62 = vld [vmem:[#allocation2 + $0xcc] sm:$0x1]  ;;  %v1070_v48 = vshll.u32 %v970_v26, 16  ;;  %v1077_v23 = vrot.slane %v1075_v44, 4  ;;  %v1080_v63 = vrot.slane %v1078_v45, 5  ;;  %v1585_v14 = vshrl.u32 %v1568_v57, 16 }
  0xc5   : > { %v1067_v51 = vor.u32 %v1066_v55, %v1063_v6  ;;  %v1084_v10 = vshll.u32 %v972_v62, 16  ;;  %v518_v11 = vld [vmem:[#allocation2 + $0x3c] sm:$0x1]  ;;  %523 = vst [vmem:[#allocation2 + $0x40] sm:$0xf] %v522_v47  ;;  %v1588_v28 = vshll.u32 %v1568_v57, 16 }
  0xc6   : > { %v3526_v49 = vld [vmem:[#allocation3 + $0xc0] sm:$0xf0]  ;;  %v1072_v1 = vrot.slane %v1070_v48, 5  ;;  %v1081_v16 = vor.u32 %v1080_v63, %v1077_v23  ;;  %v519_v3 = vsel %vm3849_vm5, %v450_v7, %v518_v11  ;;  %v1569_v33 = vld [vmem:[#allocation2 + $0x9c] sm:$0x1]  ;;  %v1587_v22 = vrot.slane %v1585_v14, 4 }
  0xc7   : > { %v3157_v58 = vor.u32 %v3526_v49, %v3156_v42  ;;  %v1068_v19 = vrot.slane %v1067_v51, 4  ;;  %v1086_v20 = vrot.slane %v1084_v10, 5  ;;  %520 = vst [vmem:[#allocation2 + $0x3c] sm:$0x1] %v519_v3  ;;  %v524_v21 = vld [vmem:[#allocation2 + $0x44] sm:$0x1] }
  0xc8   : > { %v1082_v52 = vrot.slane %v1081_v16, 4  ;;  %v525_v61 = vsel %vm3849_vm5, %v458_v15, %v524_v21  ;;  %v1570_v0 = vld [vmem:[#allocation2 + $0xa0] sm:$0xf]  ;;  %v1571_v25 = vld [vmem:[#allocation2 + $0xa4] sm:$0x1]  ;;  %v1590_v2 = vrot.slane %v1588_v28, 5 }
  0xc9   : > { %2790 = vmatmul.bf16.gmra.mxu0 %v3157_v58  ;;  %v1073_v24 = vsel %vm3957_vm8, %v1068_v19, %v1072_v1  ;;  %526 = vst [vmem:[#allocation2 + $0x44] sm:$0x1] %v525_v61  ;;  %v1594_v27 = vshll.u32 %v1569_v33, 16  ;;  %v1599_v31 = vshrl.u32 %v1570_v0, 16  ;;  %v1602_v35 = vshll.u32 %v1570_v0, 16 }
  0xca   : > { %v1087_v30 = vsel %vm3957_vm8, %v1082_v52, %v1086_v20  ;;  %1102 = vst [vmem:[#allocation3 + $0xdc] sm:$0xf] %v1073_v24  ;;  %v1608_v36 = vshll.u32 %v1571_v25, 16  ;;  %v1591_v59 = vor.u32 %v1590_v2, %v1587_v22  ;;  %v1276_v37 = vld [vmem:[#allocation2 + $0x38] sm:$0xf]  ;;  %v542_v20 = vrot.slane %v3920_v41, 4 }
  0xcb   : > { %1103 = vst [vmem:[#allocation3 + $0x100] sm:$0xf] %v1087_v30  ;;  %v1596_v29 = vrot.slane %v1594_v27, 5  ;;  %v1601_v34 = vrot.slane %v1599_v31, 4  ;;  %v1604_v4 = vrot.slane %v1602_v35, 5  ;;  %v1365_v40 = vshrl.u32 %v1276_v37, 16 }
  0xcc   : > { %v1554_v38 = vld [vmem:[#allocation2 + $0xf0] sm:$0xf]  ;;  %v1278_v39 = vld [vmem:[#allocation2 + $0x40] sm:$0xf]  ;;  %v1368_v7 = vshll.u32 %v1276_v37, 16  ;;  %v1592_v13 = vrot.slane %v1591_v59, 4 }
  0xcd   : > { %v1610_v42 = vrot.slane %v1608_v36, 5  ;;  %v1379_v45 = vshrl.u32 %v1278_v39, 16  ;;  %v1382_v50 = vshll.u32 %v1278_v39, 16  ;;  %v1605_v15 = vor.u32 %v1604_v4, %v1601_v34  ;;  %v1555_v12 = vld [vmem:[#allocation2 + $0xf8] sm:$0xf] }
  0xce   : > { %v1277_v44 = vld [vmem:[#allocation2 + $0x3c] sm:$0x1]  ;;  %v1367_v26 = vrot.slane %v1365_v40, 4  ;;  %v1370_v6 = vrot.slane %v1368_v7, 5  ;;  %v1597_v56 = vsel %vm3957_vm8, %v1592_v13, %v1596_v29  ;;  %1562 = vst [vmem:[#allocation3 + $0x60] sm:$0xf] %v1554_v38 }
  0xcf   : > { %v1374_v55 = vshll.u32 %v1277_v44, 16  ;;  %v1381_v62 = vrot.slane %v1379_v45, 4  ;;  %v1384_v48 = vrot.slane %v1382_v50, 5  ;;  %v1606_v23 = vrot.slane %v1605_v15, 4  ;;  %1704 = vst [vmem:[#allocation3 + $0x1c] sm:$0xf] %v1597_v56 }
  0xd0   : > { %v1279_v57 = vld [vmem:[#allocation2 + $0x44] sm:$0x1]  ;;  %v1371_v47 = vor.u32 %v1370_v6, %v1367_v26  ;;  %1563 = vst [vmem:[#allocation3 + $0x84] sm:$0xf] %v1555_v12  ;;  %v284_v49 = vld [vmem:[#allocation2 + $0x54] sm:$0x1] }
  0xd1   : > { %v3529_v63 = vld [vmem:[#allocation3 + $0xdc] sm:$0xf]  ;;  %v1376_v9 = vrot.slane %v1374_v55, 5  ;;  %v1388_v51 = vshll.u32 %v1279_v57, 16  ;;  %v1385_v11 = vor.u32 %v1384_v48, %v1381_v62  ;;  %v1611_v14 = vsel %vm3957_vm8, %v1606_v23, %v1610_v42  ;;  %v1408_v61 = vld [vmem:[#allocation2 + $0x50] sm:$0xf] }
  0xd2   : > { %v3178_v10 = vld [vmem:[#allocation3 + $0xfc] sm:$0xf0]  ;;  %v1372_v16 = vrot.slane %v1371_v47, 4  ;;  %1705 = vst [vmem:[#allocation3 + $0x40] sm:$0xf] %v1611_v14  ;;  %v285_v28 = vsel %vm3849_vm5, 0, %v284_v49 }
  0xd3   : > { %v3181_v1 = vor.u32 %v3529_v63, %v3178_v10  ;;  %v1390_v3 = vrot.slane %v1388_v51, 5  ;;  %v1386_v58 = vrot.slane %v1385_v11, 4  ;;  %286 = vst [vmem:[#allocation2 + $0x54] sm:$0x1] %v285_v28  ;;  %v288_v19 = vld [vmem:[#allocation2 + $0x5c] sm:$0x1] }
  0xd4   : > { %v1377_v21 = vsel %vm3957_vm8, %v1372_v16, %v1376_v9  ;;  %v289_v52 = vsel %vm3849_vm5, 0, %v288_v19  ;;  %v1410_v33 = vld [vmem:[#allocation2 + $0x58] sm:$0xf]  ;;  %v550_v0 = vrot.slane %v3926_v46, 4  ;;  %v1425_v24 = vshrl.u32 %v1408_v61, 16  ;;  %v3602_v46 = vld [vmem:[%s4595_s1 + $0x200] sm:$0xff] }
  0xd5   : > { %2708 = vmatmul.bf16.gmra.mxu1 %v3181_v1  ;;  %v1391_v22 = vsel %vm3957_vm8, %v1386_v58, %v1390_v3  ;;  %1406 = vst [vmem:[#allocation3 + $0xe8] sm:$0xf] %v1377_v21  ;;  %v1428_v25 = vshll.u32 %v1408_v61, 16  ;;  %v3128_v2 = vld [vmem:[#allocation3 + $0x60] sm:$0xf]  ;;  %v1439_v30 = vshrl.u32 %v1410_v33, 16  ;;  %2895 = vmatpush.bf16.msra.mxu0 %v3602_v46 }
  0xd6   : > { %1407 = vst [vmem:[#allocation3 + $0x10c] sm:$0xf] %v1391_v22  ;;  %v1572_v41 = vld [vmem:[#allocation2 + $0xa8] sm:$0xf]  ;;  %v3505_v27 = vld [vmem:[#allocation3 + $0x1c] sm:$0xf]  ;;  %3648 = vmatpush.bf16.msra.mxu2 %v3602_v46 }
  0xd7   : > { %290 = vst [vmem:[#allocation2 + $0x5c] sm:$0x1] %v289_v52  ;;  %v1442_v31 = vshll.u32 %v1410_v33, 16  ;;  %v3518_v35 = vld [vmem:[#allocation3 + $0x80] sm:$0xf0]  ;;  %v1427_v36 = vrot.slane %v1425_v24, 4 }
  0xd8   : > { %v1430_v59 = vrot.slane %v1428_v25, 5  ;;  %v1613_v29 = vshrl.u32 %v1572_v41, 16  ;;  %v3129_v34 = vor.u32 %v3518_v35, %v3128_v2  ;;  %v1573_v4 = vld [vmem:[#allocation2 + $0xac] sm:$0x1]  ;;  %v1574_v38 = vld [vmem:[#allocation2 + $0xb0] sm:$0xf] }
  0xd9   : > { %v3094_v37 = vld [vmem:[#allocation3 + $0x3c] sm:$0xf0]  ;;  %v1575_v7 = vld [vmem:[#allocation2 + $0xb4] sm:$0x1]  ;;  %v1616_v42 = vshll.u32 %v1572_v41, 16  ;;  %v4377_v45 = vrot.slane %v1439_v30, 4 }
  0xda   : > { %v3097_v39 = vor.u32 %v3505_v27, %v3094_v37  ;;  %v619_v40 = vld [vmem:[#allocation2 + $0x54] sm:$0x1]  ;;  %v1615_v13 = vrot.slane %v1613_v29, 4  ;;  %2843 = vmatmul.bf16.gmra.mxu2 %v3129_v34  ;;  %v1622_v50 = vshll.u32 %v1573_v4, 16  ;;  %v1627_v15 = vshrl.u32 %v1574_v38, 16 }
  0xdb   : > { %v620_v44 = vsel %vm3849_vm5, %v542_v20, %v619_v40  ;;  %v1712_v12 = vld [vmem:[#allocation2 + $0xe0] sm:$0xf]  ;;  %v1444_v6 = vrot.slane %v1442_v31, 5  ;;  %v1618_v55 = vrot.slane %v1616_v42, 5  ;;  %v1630_v48 = vshll.u32 %v1574_v38, 16 }
  0xdc   : > { %v3192_v26 = vld [vmem:[#allocation3 + $0xe8] sm:$0xf]  ;;  %2867 = vmatmul.bf16.vlgmr.msrb.gmra.mxu3 %v3097_v39  ;;  %621 = vst [vmem:[#allocation2 + $0x54] sm:$0x1] %v620_v44  ;;  %v1624_v57 = vrot.slane %v1622_v50, 5  ;;  %v1629_v62 = vrot.slane %v1627_v15, 4  ;;  %v1431_v9 = vor.u32 %v1430_v59, %v1427_v36 }
  0xdd   : > { %v3535_v56 = vld [vmem:[#allocation3 + $0x108] sm:$0xf0]  ;;  %v1636_v23 = vshll.u32 %v1575_v7, 16  ;;  %v1619_v51 = vor.u32 %v1618_v55, %v1615_v13  ;;  %v1713_v10 = vld [vmem:[#allocation2 + $0xe4] sm:$0x1]  ;;  %v1632_v49 = vrot.slane %v1630_v48, 5  ;;  %v1445_v36 = vor.u32 %v1444_v6, %v4377_v45 }
  0xde   : > { %v3193_v63 = vor.u32 %v3535_v56, %v3192_v26  ;;  %v625_v47 = vld [vmem:[#allocation2 + $0x5c] sm:$0x1]  ;;  %v1714_v11 = vld [vmem:[#allocation2 + $0xe8] sm:$0xf]  ;;  %v1715_v16 = vld [vmem:[#allocation2 + $0xec] sm:$0x1] }
  0xdf   : > { %v626_v14 = vsel %vm3849_vm5, %v550_v0, %v625_v47  ;;  %v1638_v1 = vrot.slane %v1636_v23, 5  ;;  %v1729_v3 = vshrl.u32 %v1712_v12, 16  ;;  %v1620_v28 = vrot.slane %v1619_v51, 4  ;;  %v1556_v22 = vld [vmem:[#allocation2 + $0x100] sm:$0xf] }
  0xe0   : > { %2795 = vmatmul.bf16.gmra.mxu0 %v3193_v63  ;;  %627 = vst [vmem:[#allocation2 + $0x5c] sm:$0x1] %v626_v14  ;;  %v1732_v58 = vshll.u32 %v1712_v12, 16  ;;  %v1738_v19 = vshll.u32 %v1713_v10, 16  ;;  %v1743_v20 = vshrl.u32 %v1714_v11, 16  ;;  %v1633_v21 = vor.u32 %v1632_v49, %v1629_v62 }
  0xe1   : > { %v1731_v52 = vrot.slane %v1729_v3, 4  ;;  %v1746_v61 = vshll.u32 %v1714_v11, 16  ;;  %v1752_v33 = vshll.u32 %v1715_v16, 16  ;;  %v1432_v24 = vrot.slane %v1431_v9, 4  ;;  %v1557_v41 = vld [vmem:[#allocation2 + $0x108] sm:$0xf] }
  0xe2   : > { %v1625_v25 = vsel %vm3957_vm8, %v1620_v28, %v1624_v57  ;;  %v1734_v0 = vrot.slane %v1732_v58, 5  ;;  %v1745_v2 = vrot.slane %v1743_v20, 4  ;;  %v1634_v30 = vrot.slane %v1633_v21, 4  ;;  %1564 = vst [vmem:[#allocation3 + $0xa8] sm:$0xf] %v1556_v22 }
  0xe3   : > { %v1409_v27 = vld [vmem:[#allocation2 + $0x54] sm:$0x1]  ;;  %1706 = vst [vmem:[#allocation3 + $0x64] sm:$0xf] %v1625_v25  ;;  %v1748_v31 = vrot.slane %v1746_v61, 5  ;;  %v1740_v46 = vrot.slane %v1738_v19, 5 }
  0xe4   : > { %v1434_v35 = vshll.u32 %v1409_v27, 16  ;;  %v1735_v59 = vor.u32 %v1734_v0, %v1731_v52  ;;  %v292_v29 = vld [vmem:[#allocation2 + $0x64] sm:$0x1]  ;;  %v1639_v37 = vsel %vm3957_vm8, %v1634_v30, %v1638_v1  ;;  %v1754_v4 = vrot.slane %v1752_v33, 5  ;;  %1565 = vst [vmem:[#allocation3 + $0xcc] sm:$0xf] %v1557_v41 }
  0xe5   : > { %v1749_v34 = vor.u32 %v1748_v31, %v1745_v2  ;;  %v293_v38 = vsel %vm3849_vm5, 0, %v292_v29  ;;  %v296_v39 = vld [vmem:[#allocation2 + $0x6c] sm:$0x1]  ;;  %v558_v40 = vrot.slane %v4016_v8, 4  ;;  %1707 = vst [vmem:[#allocation3 + $0x88] sm:$0xf] %v1639_v37 }
  0xe6   : > { %v1436_v7 = vrot.slane %v1434_v35, 5  ;;  %v1736_v13 = vrot.slane %v1735_v59, 4  ;;  %v297_v42 = vsel %vm3849_vm5, 0, %v296_v39  ;;  %v566_v44 = vrot.slane %v4036_v32, 4  ;;  %294 = vst [vmem:[#allocation2 + $0x64] sm:$0x1] %v293_v38 }
  0xe7   : > { %v1411_v45 = vld [vmem:[#allocation2 + $0x5c] sm:$0x1]  ;;  %v1750_v50 = vrot.slane %v1749_v34, 4  ;;  %v1446_v12 = vrot.slane %v1445_v36, 4  ;;  %298 = vst [vmem:[#allocation2 + $0x6c] sm:$0x1] %v297_v42 }
  0xe8   : > { %v1437_v15 = vsel %vm3957_vm8, %v1432_v24, %v1436_v7  ;;  %v1448_v26 = vshll.u32 %v1411_v45, 16  ;;  %v1741_v6 = vsel %vm3957_vm8, %v1736_v13, %v1740_v46  ;;  %v1412_v8 = vld [vmem:[#allocation2 + $0x60] sm:$0xf]  ;;  %v1414_v56 = vld [vmem:[#allocation2 + $0x68] sm:$0xf] }
  0xe9   : > { %1544 = vst [vmem:[#allocation3 + $0x14] sm:$0xf] %v1437_v15  ;;  %v1755_v55 = vsel %vm3957_vm8, %v1750_v50, %v1754_v4  ;;  %v1453_v57 = vshrl.u32 %v1412_v8, 16  ;;  %v1456_v32 = vshll.u32 %v1412_v8, 16  ;;  %v1467_v23 = vshrl.u32 %v1414_v56, 16 }
  0xea   : > { %v1450_v62 = vrot.slane %v1448_v26, 5  ;;  %v3514_v48 = vld [vmem:[#allocation3 + $0x64] sm:$0xf]  ;;  %1848 = vst [vmem:[#allocation3 + $0x20] sm:$0xf] %v1741_v6  ;;  %v1470_v14 = vshll.u32 %v1414_v56, 16 }
  0xeb   : > { %1849 = vst [vmem:[#allocation3 + $0x44] sm:$0xf] %v1755_v55  ;;  %v3164_v63 = vld [vmem:[#allocation3 + $0xa8] sm:$0xf]  ;;  %v1455_v47 = vrot.slane %v1453_v57, 4  ;;  %v1458_v9 = vrot.slane %v1456_v32, 5 }
  0xec   : > { %v1451_v51 = vsel %vm3957_vm8, %v1446_v12, %v1450_v62  ;;  %v3527_v10 = vld [vmem:[#allocation3 + $0xc8] sm:$0xf0]  ;;  %v1469_v11 = vrot.slane %v1467_v23, 4  ;;  %v1576_v49 = vld [vmem:[#allocation2 + $0xb8] sm:$0xf]  ;;  %v1472_v20 = vrot.slane %v1470_v14, 5 }
  0xed   : > { %1545 = vst [vmem:[#allocation3 + $0x38] sm:$0xf] %v1451_v51  ;;  %v3130_v1 = vld [vmem:[#allocation3 + $0x84] sm:$0xf0]  ;;  %v3165_v16 = vor.u32 %v3527_v10, %v3164_v63  ;;  %v1577_v3 = vld [vmem:[#allocation2 + $0xbc] sm:$0x1]  ;;  %v1459_v19 = vor.u32 %v1458_v9, %v1455_v47 }
  0xee   : > { %v3133_v28 = vor.u32 %v3514_v48, %v3130_v1  ;;  %v631_v58 = vld [vmem:[#allocation2 + $0x64] sm:$0x1]  ;;  %v1578_v21 = vld [vmem:[#allocation2 + $0xc0] sm:$0xf]  ;;  %v1641_v52 = vshrl.u32 %v1576_v49, 16  ;;  %v1644_v24 = vshll.u32 %v1576_v49, 16  ;;  %v1473_v2 = vor.u32 %v1472_v20, %v1469_v11 }
  0xef   : > { %2848 = vmatmul.bf16.gmra.mxu2 %v3165_v16  ;;  %v632_v61 = vsel %vm3849_vm5, %v558_v40, %v631_v58  ;;  %v637_v33 = vld [vmem:[#allocation2 + $0x6c] sm:$0x1]  ;;  %v1579_v22 = vld [vmem:[#allocation2 + $0xc4] sm:$0x1]  ;;  %v1650_v27 = vshll.u32 %v1577_v3, 16  ;;  %v1655_v35 = vshrl.u32 %v1578_v21, 16 }
  0xf0   : > { %v3504_v25 = vld [vmem:[#allocation3 + $0x14] sm:$0xf]  ;;  %2872 = vmatmul.bf16.gmra.mxu3 %v3133_v28  ;;  %633 = vst [vmem:[#allocation2 + $0x64] sm:$0x1] %v632_v61  ;;  %v638_v0 = vsel %vm3849_vm5, %v566_v44, %v637_v33  ;;  %v1643_v41 = vrot.slane %v1641_v52, 4  ;;  %v1646_v31 = vrot.slane %v1644_v24, 5 }
  0xf1   : > { %v3100_v30 = vld [vmem:[#allocation3 + $0x20] sm:$0xf]  ;;  %639 = vst [vmem:[#allocation2 + $0x6c] sm:$0x1] %v638_v0  ;;  %v1460_v59 = vrot.slane %v1459_v19, 4  ;;  %v1474_v46 = vrot.slane %v1473_v2, 4 }
  0xf2   : > { %v3510_v36 = vld [vmem:[#allocation3 + $0x40] sm:$0xf0]  ;;  %v1658_v29 = vshll.u32 %v1578_v21, 16  ;;  %v1664_v37 = vshll.u32 %v1579_v22, 16  ;;  %v1647_v4 = vor.u32 %v1646_v31, %v1643_v41  ;;  %v1652_v38 = vrot.slane %v1650_v27, 5 }
  0xf3   : > { %v3101_v34 = vor.u32 %v3510_v36, %v3100_v30  ;;  %v1657_v39 = vrot.slane %v1655_v35, 4  ;;  %v1716_v40 = vld [vmem:[#allocation2 + $0xf0] sm:$0xf]  ;;  %v1717_v7 = vld [vmem:[#allocation2 + $0xf4] sm:$0x1] }
  0xf4   : > { %v3086_v13 = vld [vmem:[#allocation3 + $0x34] sm:$0xf0]  ;;  %v1660_v42 = vrot.slane %v1658_v29, 5  ;;  %v1666_v44 = vrot.slane %v1664_v37, 5  ;;  %v1648_v15 = vrot.slane %v1647_v4, 4  ;;  %v1757_v26 = vshrl.u32 %v1716_v40, 16 }
  0xf5   : > { %v1718_v45 = vld [vmem:[#allocation2 + $0xf8] sm:$0xf]  ;;  %v3089_v50 = vor.u32 %v3504_v25, %v3086_v13  ;;  %2896 = vmatmul.bf16.vlgmr.msra.gmra.mxu0 %v3101_v34  ;;  %v1719_v12 = vld [vmem:[#allocation2 + $0xfc] sm:$0x1]  ;;  %v1760_v6 = vshll.u32 %v1716_v40, 16  ;;  %v1766_v55 = vshll.u32 %v1717_v7, 16  ;;  %v4422_v34 = vpop.f32.mrf.mxu1 }
  0xf6   : > { %v1661_v8 = vor.u32 %v1660_v42, %v1657_v39  ;;  %v1771_v56 = vshrl.u32 %v1718_v45, 16  ;;  %v1774_v57 = vshll.u32 %v1718_v45, 16  ;;  %v3065_v32 = vld [vmem:[%s3737_s12 + $0x7c] sm:$0xf]  ;;  %v1653_v48 = vsel %vm3957_vm8, %v1648_v15, %v1652_v38  ;;  %v1558_v19 = vld [vmem:[#allocation2 + $0x110] sm:$0xf] }
  0xf7   : > { %2809 = vmatmul.bf16.vlgmr.msra.gmra.mxu1 %v3089_v50  ;;  %v1413_v62 = vld [vmem:[#allocation2 + $0x64] sm:$0x1]  ;;  %v1759_v23 = vrot.slane %v1757_v26, 4  ;;  %v1762_v63 = vrot.slane %v1760_v6, 5  ;;  %v1780_v47 = vshll.u32 %v1719_v12, 16  ;;  %v1768_v49 = vrot.slane %v1766_v55, 5 }
  0xf8   : > { %v1415_v9 = vld [vmem:[#allocation2 + $0x6c] sm:$0x1]  ;;  %v1462_v51 = vshll.u32 %v1413_v62, 16  ;;  %v1662_v10 = vrot.slane %v1661_v8, 4  ;;  %1708 = vst [vmem:[#allocation3 + $0xac] sm:$0xf] %v1653_v48 }
  0xf9   : > { %v1476_v11 = vshll.u32 %v1415_v9, 16  ;;  %v1763_v14 = vor.u32 %v1762_v63, %v1759_v23  ;;  %v1773_v1 = vrot.slane %v1771_v56, 4  ;;  %v1776_v28 = vrot.slane %v1774_v57, 5  ;;  %v933_v24 = vld [vmem:[#allocation2 + $0x118] sm:$0xf] }
  0xfa   : > { %v1464_v16 = vrot.slane %v1462_v51, 5  ;;  %v1667_v3 = vsel %vm3957_vm8, %v1662_v10, %v1666_v44  ;;  %v1782_v58 = vrot.slane %v1780_v47, 5  ;;  %v867_v52 = vshrl.u32 %v3065_v32, 16  ;;  %1566 = vst [vmem:[#allocation3 + $0xf0] sm:$0xf] %v1558_v19 }
  0xfb   : > { %v1478_v20 = vrot.slane %v1476_v11, 5  ;;  %1709 = vst [vmem:[#allocation3 + $0xd0] sm:$0xf] %v1667_v3  ;;  %v1764_v21 = vrot.slane %v1763_v14, 4  ;;  %v870_v61 = vshll.u32 %v3065_v32, 16  ;;  %v1777_v22 = vor.u32 %v1776_v28, %v1773_v1  ;;  %v4436_v28 = vpop.f32.mrf.mxu0 }
  0xfc   : > { %v1465_v33 = vsel %vm3957_vm8, %v1460_v59, %v1464_v16  ;;  %v300_v25 = vld [vmem:[#allocation2 + $0x74] sm:$0x1]  ;;  %v304_v0 = vld [vmem:[#allocation2 + $0x7c] sm:$0x1]  ;;  %v4415_v27 = vrot.slane %v867_v52, 7  ;;  %v574_v13 = vrot.slane %v4149_v54, 4 }
  0xfd   : > { %v1479_v2 = vsel %vm3957_vm8, %v1474_v46, %v1478_v20  ;;  %1546 = vst [vmem:[#allocation3 + $0x5c] sm:$0xf] %v1465_v33  ;;  %v1769_v41 = vsel %vm3957_vm8, %v1764_v21, %v1768_v49  ;;  %v301_v30 = vsel %vm3849_vm5, 0, %v300_v25  ;;  %v1416_v31 = vld [vmem:[#allocation2 + $0x70] sm:$0xf]  ;;  %v1778_v35 = vrot.slane %v1777_v22, 4  ;;  %v4438_v21 = vpop.f32.mrf.mxu1 }
  0xfe   : > { %1547 = vst [vmem:[#allocation3 + $0x80] sm:$0xf] %v1479_v2  ;;  %v1418_v36 = vld [vmem:[#allocation2 + $0x78] sm:$0xf]  ;;  %v872_v59 = vor.u32 %v870_v61, %v4415_v27  ;;  %v1481_v29 = vshrl.u32 %v1416_v31, 16  ;;  %v305_v4 = vsel %vm3849_vm5, 0, %v304_v0 }
  0xff   : > { %1850 = vst [vmem:[#allocation3 + $0x68] sm:$0xf] %v1769_v41  ;;  %v3523_v37 = vld [vmem:[#allocation3 + $0xac] sm:$0xf]  ;;  %v1783_v46 = vsel %vm3957_vm8, %v1778_v35, %v1782_v58  ;;  %v1484_v39 = vshll.u32 %v1416_v31, 16  ;;  %v1495_v40 = vshrl.u32 %v1418_v36, 16 }
 0x100   : > { %302 = vst [vmem:[#allocation2 + $0x74] sm:$0x1] %v301_v30  ;;  %v934_v38 = vsel %vm3756_vm2, %v872_v59, %v933_v24  ;;  %v348_v7 = vld [vmem:[#allocation2 + $0xd4] sm:$0x1]  ;;  %v582_v42 = vrot.slane %v4151_v18, 4  ;;  %v1483_v50 = vrot.slane %v1481_v29, 4 }
 0x101   : > { %1851 = vst [vmem:[#allocation3 + $0x8c] sm:$0xf] %v1783_v46  ;;  %v1498_v15 = vshll.u32 %v1418_v36, 16  ;;  %v349_v12 = vsel %vm3849_vm5, 0, %v348_v7  ;;  %v3057_v6 = vld [vmem:[%s3737_s12 + $0x78] sm:$0xf] }
 0x102   : > { %v3166_v44 = vld [vmem:[#allocation3 + $0xcc] sm:$0xf0]  ;;  %935 = vst [vmem:[#allocation2 + $0x118] sm:$0xf] %v934_v38  ;;  %v1486_v55 = vrot.slane %v1484_v39, 5  ;;  %v1497_v56 = vrot.slane %v1495_v40, 4 }
 0x103   : > { %v3169_v45 = vor.u32 %v3523_v37, %v3166_v44  ;;  %306 = vst [vmem:[#allocation2 + $0x7c] sm:$0x1] %v305_v4  ;;  %v730_v57 = vshrl.u32 %v3057_v6, 16  ;;  %v733_v54 = vshll.u32 %v3057_v6, 16  ;;  %v796_v62 = vld [vmem:[#allocation2 + $0xd0] sm:$0xf] }
 0x104   : > { %v3513_v26 = vld [vmem:[#allocation3 + $0x5c] sm:$0xf]  ;;  %350 = vst [vmem:[#allocation2 + $0xd4] sm:$0x1] %v349_v12  ;;  %v1580_v48 = vld [vmem:[#allocation2 + $0xc8] sm:$0xf]  ;;  %v1487_v22 = vor.u32 %v1486_v55, %v1483_v50 }
 0x105   : > { %v3122_v8 = vld [vmem:[#allocation3 + $0x7c] sm:$0xf0]  ;;  %2877 = vmatmul.bf16.gmra.mxu3 %v3169_v45  ;;  %v1500_v63 = vrot.slane %v1498_v15, 5  ;;  %v732_v47 = vrot.slane %v730_v57, 7  ;;  %v1581_v9 = vld [vmem:[#allocation2 + $0xcc] sm:$0x1] }
 0x106   : > { %v3125_v32 = vor.u32 %v3513_v26, %v3122_v8  ;;  %v3136_v18 = vld [vmem:[#allocation3 + $0x68] sm:$0xf]  ;;  %v1669_v11 = vshrl.u32 %v1580_v48, 16  ;;  %v1672_v14 = vshll.u32 %v1580_v48, 16  ;;  %v1678_v49 = vshll.u32 %v1581_v9, 16  ;;  %v4450_v9 = vpop.f32.mrf.mxu0 }
 0x107   : > { %v643_v23 = vld [vmem:[#allocation2 + $0x74] sm:$0x1]  ;;  %v873_v16 = vrot.slane %v4415_v27, 4  ;;  %v735_v58 = vor.u32 %v733_v54, %v732_v47  ;;  %v736_v19 = vrot.slane %v732_v47, 4  ;;  %v1720_v2 = vld [vmem:[#allocation2 + $0x100] sm:$0xf]  ;;  %v1501_v41 = vor.u32 %v1500_v63, %v1497_v56 }
 0x108   : > { %2814 = vmatmul.bf16.gmra.mxu1 %v3125_v32  ;;  %v3519_v51 = vld [vmem:[#allocation3 + $0x88] sm:$0xf0]  ;;  %v644_v10 = vsel %vm3849_vm5, %v574_v13, %v643_v23  ;;  %v1671_v52 = vrot.slane %v1669_v11, 4  ;;  %v1674_v61 = vrot.slane %v1672_v14, 5  ;;  %v1680_v0 = vrot.slane %v1678_v49, 5  ;;  %v4452_v49 = vpop.f32.mrf.mxu1 }
 0x109   : > { %v3137_v1 = vor.u32 %v3519_v51, %v3136_v18  ;;  %v1559_v3 = vld [vmem:[#allocation2 + $0x118] sm:$0xf]  ;;  %645 = vst [vmem:[#allocation2 + $0x74] sm:$0x1] %v644_v10  ;;  %v797_v24 = vsel %vm3756_vm2, %v735_v58, %v796_v62  ;;  %v1721_v35 = vld [vmem:[#allocation2 + $0x104] sm:$0x1] }
 0x10a   : > { %1567 = vst [vmem:[#allocation3 + $0x114] sm:$0xf] %v1559_v3  ;;  %v649_v20 = vld [vmem:[#allocation2 + $0x7c] sm:$0x1]  ;;  %v1675_v31 = vor.u32 %v1674_v61, %v1671_v52  ;;  %v1722_v36 = vld [vmem:[#allocation2 + $0x108] sm:$0xf] }
 0x10b   : > { %2901 = vmatmul.bf16.gmra.mxu0 %v3137_v1  ;;  %v650_v33 = vsel %vm3849_vm5, %v582_v42, %v649_v20  ;;  %v799_v25 = vld [vmem:[#allocation2 + $0xd4] sm:$0x1]  ;;  %v3200_v59 = vld [vmem:[#allocation3 + $0xf0] sm:$0xf]  ;;  %798 = vst [vmem:[#allocation2 + $0xd0] sm:$0xf] %v797_v24 }
 0x10c   : > { %651 = vst [vmem:[#allocation2 + $0x7c] sm:$0x1] %v650_v33  ;;  %v800_v30 = vsel %vm3849_vm5, %v736_v19, %v799_v25  ;;  %v1723_v29 = vld [vmem:[#allocation2 + $0x10c] sm:$0x1]  ;;  %v1785_v37 = vshrl.u32 %v1720_v2, 16  ;;  %v1788_v46 = vshll.u32 %v1720_v2, 16 }
 0x10d   : > { %801 = vst [vmem:[#allocation2 + $0xd4] sm:$0x1] %v800_v30  ;;  %v1676_v4 = vrot.slane %v1675_v31, 4  ;;  %v1794_v17 = vshll.u32 %v1721_v35, 16  ;;  %v1799_v38 = vshrl.u32 %v1722_v36, 16  ;;  %v1802_v39 = vshll.u32 %v1722_v36, 16 }
 0x10e   : > { %v1488_v40 = vrot.slane %v1487_v22, 4  ;;  %v1787_v7 = vrot.slane %v1785_v37, 4  ;;  %v1790_v13 = vrot.slane %v1788_v46, 5  ;;  %v1808_v42 = vshll.u32 %v1723_v29, 16  ;;  %v384_v44 = vld [vmem:[#allocation2 + $0x11c] sm:$0x1]  ;;  %v4474_v27 = vpop.f32.mrf.mxu0 }
 0x10f   : > { %v1502_v50 = vrot.slane %v1501_v41, 4  ;;  %v1681_v15 = vsel %vm3957_vm8, %v1676_v4, %v1680_v0  ;;  %v1801_v12 = vrot.slane %v1799_v38, 4  ;;  %v1804_v26 = vrot.slane %v1802_v39, 5  ;;  %v1724_v62 = vld [vmem:[#allocation2 + $0x110] sm:$0xf] }
 0x110   : > { %v1417_v45 = vld [vmem:[#allocation2 + $0x74] sm:$0x1]  ;;  %1710 = vst [vmem:[#allocation3 + $0xf4] sm:$0xf] %v1681_v15  ;;  %v1791_v55 = vor.u32 %v1790_v13, %v1787_v7  ;;  %v1796_v56 = vrot.slane %v1794_v17, 5  ;;  %v1810_v32 = vrot.slane %v1808_v42, 5  ;;  %v4462_v17 = vpop.f32.mrf.mxu2 }
 0x111   : > { %v3536_v6 = vld [vmem:[#allocation3 + $0x110] sm:$0xf0]  ;;  %v1490_v8 = vshll.u32 %v1417_v45, 16  ;;  %v1805_v54 = vor.u32 %v1804_v26, %v1801_v12  ;;  %v385_v18 = vsel %vm3849_vm5, 0, %v384_v44  ;;  %v1726_v14 = vld [vmem:[#allocation2 + $0x118] sm:$0xf] }
 0x112   : > { %v3201_v57 = vor.u32 %v3536_v6, %v3200_v59  ;;  %v1725_v48 = vld [vmem:[#allocation2 + $0x114] sm:$0x1]  ;;  %v1792_v47 = vrot.slane %v1791_v55, 4  ;;  %386 = vst [vmem:[#allocation2 + $0x11c] sm:$0x1] %v385_v18  ;;  %v1813_v24 = vshrl.u32 %v1724_v62, 16  ;;  %v2752_v55 = vpop.f32.mrf.mxu3 }
 0x113   : > { %v1419_v23 = vld [vmem:[#allocation2 + $0x7c] sm:$0x1]  ;;  %v1492_v63 = vrot.slane %v1490_v8, 5  ;;  %v1582_v10 = vld [vmem:[#allocation2 + $0xd0] sm:$0xf]  ;;  %v1806_v11 = vrot.slane %v1805_v54, 4  ;;  %v4476_v8 = vpop.f32.mrf.mxu1 }
 0x114   : > { %2853 = vmatmul.bf16.gmra.mxu2 %v3201_v57  ;;  %v1504_v51 = vshll.u32 %v1419_v23, 16  ;;  %v1583_v3 = vld [vmem:[#allocation2 + $0xd4] sm:$0x1]  ;;  %v1683_v58 = vshrl.u32 %v1582_v10, 16  ;;  %v1686_v19 = vshll.u32 %v1582_v10, 16  ;;  %v1797_v20 = vsel %vm3957_vm8, %v1792_v47, %v1796_v56 }
 0x115   : > { %v1493_v1 = vsel %vm3957_vm8, %v1488_v40, %v1492_v63  ;;  %v308_v52 = vld [vmem:[#allocation2 + $0x84] sm:$0x1]  ;;  %v1692_v33 = vshll.u32 %v1583_v3, 16  ;;  %v1811_v22 = vsel %vm3957_vm8, %v1806_v11, %v1810_v32  ;;  %1852 = vst [vmem:[#allocation3 + $0xb0] sm:$0xf] %v1797_v20  ;;  %v1816_v2 = vshll.u32 %v1724_v62, 16 }
 0x116   : > { %v1506_v61 = vrot.slane %v1504_v51, 5  ;;  %1548 = vst [vmem:[#allocation3 + $0xa4] sm:$0xf] %v1493_v1  ;;  %v1685_v25 = vrot.slane %v1683_v58, 4  ;;  %v1688_v0 = vrot.slane %v1686_v19, 5  ;;  %v1822_v41 = vshll.u32 %v1725_v48, 16 }
 0x117   : > { %v1694_v31 = vrot.slane %v1692_v33, 5  ;;  %1853 = vst [vmem:[#allocation3 + $0xd4] sm:$0xf] %v1811_v22  ;;  %v1815_v35 = vrot.slane %v1813_v24, 4  ;;  %v1818_v59 = vrot.slane %v1816_v2, 5  ;;  %v1827_v37 = vshrl.u32 %v1726_v14, 16  ;;  %v4492_v22 = vpop.f32.mrf.mxu0 }
 0x118   : > { %v1507_v30 = vsel %vm3957_vm8, %v1502_v50, %v1506_v61  ;;  %v1689_v36 = vor.u32 %v1688_v0, %v1685_v25  ;;  %v1824_v29 = vrot.slane %v1822_v41, 5  ;;  %v1830_v4 = vshll.u32 %v1726_v14, 16  ;;  %v312_v39 = vld [vmem:[#allocation2 + $0x8c] sm:$0x1]  ;;  %v1420_v50 = vld [vmem:[#allocation2 + $0x80] sm:$0xf]  ;;  %v4488_v61 = vpop.f32.mrf.mxu2 }
 0x119   : > { %1549 = vst [vmem:[#allocation3 + $0xc8] sm:$0xf] %v1507_v30  ;;  %v936_v46 = vld [vmem:[#allocation2 + $0x11c] sm:$0x1]  ;;  %v309_v38 = vsel %vm3849_vm5, 0, %v308_v52  ;;  %v1819_v13 = vor.u32 %v1818_v59, %v1815_v35  ;;  %v1829_v42 = vrot.slane %v1827_v37, 4 }
 0x11a   : > { %v1690_v40 = vrot.slane %v1689_v36, 4  ;;  %v937_v7 = vsel %vm3849_vm5, %v873_v16, %v936_v46  ;;  %310 = vst [vmem:[#allocation2 + $0x84] sm:$0x1] %v309_v38  ;;  %v1832_v44 = vrot.slane %v1830_v4, 5  ;;  %v313_v45 = vsel %vm3849_vm5, 0, %v312_v39  ;;  %v4494_v30 = vpop.f32.mrf.mxu3 }
 0x11b   : > { %938 = vst [vmem:[#allocation2 + $0x11c] sm:$0x1] %v937_v7  ;;  %v1820_v12 = vrot.slane %v1819_v13, 4  ;;  %v1422_v26 = vld [vmem:[#allocation2 + $0x88] sm:$0xf]  ;;  %v590_v56 = vrot.slane %v4250_v43, 4  ;;  %v2694_v41 = vpop.f32.mrf.mxu1 }
 0x11c   : > { %v1695_v15 = vsel %vm3957_vm8, %v1690_v40, %v1694_v31  ;;  %314 = vst [vmem:[#allocation2 + $0x8c] sm:$0x1] %v313_v45  ;;  %v3172_v16 = vld [vmem:[#allocation3 + $0xb0] sm:$0xf]  ;;  %v1833_v32 = vor.u32 %v1832_v44, %v1829_v42  ;;  %v1509_v18 = vshrl.u32 %v1420_v50, 16  ;;  %v1512_v23 = vshll.u32 %v1420_v50, 16 }
 0x11d   : > { %v3522_v6 = vld [vmem:[#allocation3 + $0xa4] sm:$0xf]  ;;  %1711 = vst [vmem:[#allocation3 + $0x118] sm:$0xf] %v1695_v15  ;;  %v1825_v54 = vsel %vm3957_vm8, %v1820_v12, %v1824_v29  ;;  %v598_v63 = vrot.slane %v4257_v60, 4  ;;  %v1523_v10 = vshrl.u32 %v1422_v26, 16  ;;  %v2695_v31 = vadd.f32 %v2694_v41, %v4436_v28 }
 0x11e   : > { %v3528_v57 = vld [vmem:[#allocation3 + $0xd0] sm:$0xf0]  ;;  %1854 = vst [vmem:[#allocation3 + $0xf8] sm:$0xf] %v1825_v54  ;;  %v1526_v11 = vshll.u32 %v1422_v26, 16  ;;  %v1834_v1 = vrot.slane %v1833_v32, 4 }
 0x11f   : > { %v3173_v48 = vor.u32 %v3528_v57, %v3172_v16  ;;  %v3532_v14 = vld [vmem:[#allocation3 + $0xf4] sm:$0xf]  ;;  %v1511_v58 = vrot.slane %v1509_v18, 4  ;;  %v1514_v52 = vrot.slane %v1512_v23, 5  ;;  %v1525_v0 = vrot.slane %v1523_v10, 4  ;;  %v2781_v39 = vpop.f32.mrf.mxu0 }
 0x120   : > { %v3158_v62 = vld [vmem:[#allocation3 + $0xc4] sm:$0xf0]  ;;  %v1528_v2 = vrot.slane %v1526_v11, 5  ;;  %v2724_v53 = vadd.f32 %v4462_v17, %v2695_v31  ;;  %v2728_v28 = vpop.f32.mrf.mxu2 }
 0x121   : > { %v3161_v47 = vor.u32 %v3522_v6, %v3158_v62  ;;  %2906 = vmatmul.bf16.gmra.mxu0 %v3173_v48  ;;  %v655_v51 = vld [vmem:[#allocation2 + $0x84] sm:$0x1]  ;;  %v1515_v36 = vor.u32 %v1514_v52, %v1511_v58 }
 0x122   : > { %v1727_v43 = vld [vmem:[#allocation2 + $0x11c] sm:$0x1]  ;;  %v656_v3 = vsel %vm3849_vm5, %v590_v56, %v655_v51  ;;  %v1529_v59 = vor.u32 %v1528_v2, %v1525_v0  ;;  %v2753_v37 = vadd.f32 %v2752_v55, %v2724_v53  ;;  %v2757_v12 = vpop.f32.mrf.mxu3 }
 0x123   : > { %2819 = vmatmul.bf16.gmra.mxu1 %v3161_v47  ;;  %v1836_v19 = vshll.u32 %v1727_v43, 16  ;;  %657 = vst [vmem:[#allocation2 + $0x84] sm:$0x1] %v656_v3  ;;  %v661_v20 = vld [vmem:[#allocation2 + $0x8c] sm:$0x1]  ;;  %v1516_v46 = vrot.slane %v1515_v36, 4  ;;  %v2696_v45 = vpop.f32.mrf.mxu1 }
 0x124   : > { %v3202_v60 = vld [vmem:[#allocation3 + $0x114] sm:$0xf0]  ;;  %v662_v33 = vsel %vm3849_vm5, %v598_v63, %v661_v20  ;;  %v1530_v13 = vrot.slane %v1529_v59, 4  ;;  %v4500_v44 = vadd.f32 %v2781_v39, %v2753_v37 }
 0x125   : > { %v3205_v24 = vor.u32 %v3532_v14, %v3202_v60  ;;  %v1838_v25 = vrot.slane %v1836_v19, 5  ;;  %663 = vst [vmem:[#allocation2 + $0x8c] sm:$0x1] %v662_v33  ;;  %v3208_v40 = vld [vmem:[#allocation3 + $0xf8] sm:$0xf] }
 0x127   : > { %2882 = vmatmul.bf16.gmra.mxu3 %v3205_v24  ;;  %v1839_v35 = vsel %vm3957_vm8, %v1834_v1, %v1838_v25  ;;  %v2783_v16 = vpop.f32.mrf.mxu0 }
 0x128   : > { %1855 = vst [vmem:[#allocation3 + $0x11c] sm:$0xf] %v1839_v35  ;;  %v4507_v54 = vpop.f32.mrf.mxu2 }
 0x12a   : > { %v1421_v29 = vld [vmem:[#allocation2 + $0x84] sm:$0x1]  ;;  %v4509_v62 = vpop.f32.mrf.mxu3 }
 0x12b   : > { %v1518_v4 = vshll.u32 %v1421_v29, 16  ;;  %v2699_v55 = vpop.f32.mrf.mxu1 }
 0x12c   : > { %v1423_v38 = vld [vmem:[#allocation2 + $0x8c] sm:$0x1]  ;;  %v2700_v56 = vadd.f32 %v2699_v55, %v4474_v27 }
 0x12d   : > { %v1520_v7 = vrot.slane %v1518_v4, 5  ;;  %v1532_v42 = vshll.u32 %v1423_v38, 16 }
 0x12e   : > { %v2729_v32 = vadd.f32 %v2728_v28, %v2700_v56  ;;  %v4534_v56 = vld [vmem:[%s4596_s2] ss:$0 sm:$0xff] }
 0x12f   : > { %v3537_v50 = vld [vmem:[#allocation3 + $0x118] sm:$0xf0]  ;;  %v1521_v15 = vsel %vm3957_vm8, %v1516_v46, %v1520_v7  ;;  %v1534_v17 = vrot.slane %v1532_v42, 5  ;;  %v2786_v63 = vpop.f32.mrf.mxu0 }
 0x130   : > { %v3209_v26 = vor.u32 %v3537_v50, %v3208_v40  ;;  %1550 = vst [vmem:[#allocation3 + $0xec] sm:$0xf] %v1521_v15  ;;  %v2758_v23 = vadd.f32 %v2757_v12, %v2729_v32  ;;  %v2733_v51 = vpop.f32.mrf.mxu2 }
 0x131   : > { %v1535_v6 = vsel %vm3957_vm8, %v1530_v13, %v1534_v17  ;;  %v2697_v13 = vadd.f32 %v2696_v45, %v4450_v9 }
 0x132   : > { %2911 = vmatmul.bf16.vlgmr.msra.gmra.mxu2 %v3209_v26  ;;  %1551 = vst [vmem:[#allocation3 + $0x110] sm:$0xf] %v1535_v6  ;;  %v4511_v47 = vadd.f32 %v2786_v63, %v2758_v23  ;;  %v2762_v10 = vpop.f32.mrf.mxu3  ;;  %v4549_v63 = vld [vmem:[%s233_s11] ss:$0 sm:$0xff] }
 0x133   : > { %v2701_v5 = vpop.f32.mrf.mxu1 }
 0x137   : > { %v3531_v57 = vld [vmem:[#allocation3 + $0xec] sm:$0xf]  ;;  %v4513_v11 = vpop.f32.mrf.mxu0 }
 0x138   : > { %v2735_v3 = vpop.f32.mrf.mxu2 }
 0x139   : > { %v3194_v18 = vld [vmem:[#allocation3 + $0x10c] sm:$0xf0] }
 0x13a   : > { %v3197_v48 = vor.u32 %v3531_v57, %v3194_v18  ;;  %v2764_v19 = vpop.f32.mrf.mxu3 }
 0x13b   : > { %v2704_v14 = vpop.f32.mrf.mxu1 }
 0x13c   : > { %2824 = vmatmul.bf16.gmra.mxu1 %v3197_v48  ;;  %v2705_v27 = vadd.f32 %v2704_v14, %v4422_v34 }
 0x13e   : > { %v2734_v43 = vadd.f32 %v2733_v51, %v2705_v27 }
 0x140   : > { %v2763_v1 = vadd.f32 %v2762_v10, %v2734_v43  ;;  %v2738_v0 = vpop.f32.mrf.mxu2 }
 0x142   : > { %v2767_v34 = vpop.f32.mrf.mxu3 }
 0x143   : > { %v2706_v52 = vpop.f32.mrf.mxu1 }
 0x144   : > { %v2707_v60 = vadd.f32 %v2706_v52, %v4438_v21 }
 0x146   : > { %v2791_v58 = vpop.f32.mrf.mxu0  ;;  %v2736_v33 = vadd.f32 %v2735_v3, %v2707_v60 }
 0x147   : > { %v4516_v20 = vadd.f32 %v2791_v58, %v2763_v1 }
 0x148   : > { %v2765_v24 = vadd.f32 %v2764_v19, %v2736_v33  ;;  %v2740_v46 = vpop.f32.mrf.mxu2 }
 0x14a   : > { %v2769_v4 = vpop.f32.mrf.mxu3 }
 0x14e   : > { %v2793_v25 = vpop.f32.mrf.mxu0 }
 0x14f   : > { %v4519_v2 = vadd.f32 %v2793_v25, %v2765_v24 }
 0x150   : > { %v2839_v7 = vpop.f32.mrf.mxu2 }
 0x152   : > { %v2709_v41 = vpop.f32.mrf.mxu1 }
 0x153   : > { %v2710_v31 = vadd.f32 %v2709_v41, %v4452_v49  ;;  %v2726_v49 = vadd.f32 %v4488_v61, %v2697_v13 }
 0x155   : > { %v2739_v35 = vadd.f32 %v2738_v0, %v2710_v31  ;;  %v2755_v17 = vadd.f32 %v4494_v30, %v2726_v49  ;;  %v4540_v30 = vld [vmem:[%s4597_s3] ss:$0 sm:$0xff] }
 0x157   : > { %v2768_v36 = vadd.f32 %v2767_v34, %v2739_v35  ;;  %v2784_v6 = vadd.f32 %v2783_v16, %v2755_v17  ;;  %v2702_v16 = vadd.f32 %v2701_v5, %v4492_v22 }
 0x158   : > { %v2841_v12 = vpop.f32.mrf.mxu2 }
 0x159   : > { %v2731_v10 = vadd.f32 %v4507_v54, %v2702_v16 }
 0x15a   : > { %v2711_v29 = vpop.f32.mrf.mxu1 }
 0x15b   : > { %v2712_v37 = vadd.f32 %v2711_v29, %v4476_v8  ;;  %v2760_v3 = vadd.f32 %v4509_v62, %v2731_v10 }
 0x15d   : > { %v2796_v53 = vpop.f32.mrf.mxu0  ;;  %v2741_v21 = vadd.f32 %v2740_v46, %v2712_v37  ;;  %v2789_v24 = vadd.f32 %v4513_v11, %v2760_v3 }
 0x15e   : > { %v4522_v59 = vadd.f32 %v2796_v53, %v2768_v36 }
 0x15f   : > { %v2770_v38 = vadd.f32 %v2769_v4, %v2741_v21  ;;  %v2868_v42 = vpop.f32.mrf.mxu3 }
 0x160   : > { %v2844_v48 = vpop.f32.mrf.mxu2 }
 0x165   : > { %v2798_v39 = vpop.f32.mrf.mxu0 }
 0x166   : > { %v4525_v40 = vadd.f32 %v2798_v39, %v2770_v38 }
 0x167   : > { %v2870_v61 = vpop.f32.mrf.mxu3 }
 0x168   : > { %v2846_v25 = vpop.f32.mrf.mxu2 }
 0x172   : > { %v2897_v50 = vpop.f32.mrf.mxu0  ;;  %v2849_v37 = vpop.f32.mrf.mxu2 }
 0x173   : > { %v2873_v5 = vpop.f32.mrf.mxu3 }
 0x174   : > { %v2810_v28 = vpop.f32.mrf.mxu1 }
 0x175   : > { %v2811_v15 = vadd.f32 %v2810_v28, %v4500_v44 }
 0x177   : > { %v2840_v8 = vadd.f32 %v2839_v7, %v2811_v15 }
 0x179   : > { %v2869_v26 = vadd.f32 %v2868_v42, %v2840_v8 }
 0x17a   : > { %v2899_v57 = vpop.f32.mrf.mxu0  ;;  %v2851_v49 = vpop.f32.mrf.mxu2 }
 0x17b   : > { %v2898_v55 = vadd.f32 %v2897_v50, %v2869_v26  ;;  %v2875_v35 = vpop.f32.mrf.mxu3 }
 0x17c   : > { %v2812_v9 = vpop.f32.mrf.mxu1 }
 0x17d   : > { %v2813_v45 = vadd.f32 %v2812_v9, %v2784_v6  ;;  %v2921_v32 = vmul.f32 %v4534_v56, %v2898_v55 }
 0x17f   : > { %v2842_v44 = vadd.f32 %v2841_v12, %v2813_v45  ;;  %v2933_v23 = vadd.f32 %v4540_v30, %v2921_v32 }
 0x181   : > { %v2871_v18 = vadd.f32 %v2870_v61, %v2842_v44  ;;  %v2945_v22 = vadd.f32 %v4549_v63, %v2933_v23 }
 0x183   : > { %v2900_v51 = vadd.f32 %v2899_v57, %v2871_v18  ;;  %v2953_v33 = vmax.f32 %v2945_v22, 0.0 }
 0x185   : > { %v2922_v14 = vmul.f32 %v4534_v56, %v2900_v51  ;;  %v2815_v27 = vpop.f32.mrf.mxu1 }
 0x186   : > { %v2816_v43 = vadd.f32 %v2815_v27, %v4511_v47 }
 0x187   : > { %v2934_v1 = vadd.f32 %v4540_v30, %v2922_v14 }
 0x188   : > { %v2845_v58 = vadd.f32 %v2844_v48, %v2816_v43  ;;  %v2902_v19 = vpop.f32.mrf.mxu0  ;;  %v2878_v50 = vpop.f32.mrf.mxu3 }
 0x189   : > { %v2946_v52 = vadd.f32 %v4549_v63, %v2934_v1 }
 0x18a   : > { %v2874_v60 = vadd.f32 %v2873_v5, %v2845_v58 }
 0x18b   : > { %v2954_v54 = vmax.f32 %v2946_v52, 0.0 }
 0x18c   : > { %v2903_v47 = vadd.f32 %v2902_v19, %v2874_v60 }
 0x18d   : > { %v3613_v0 = vpack.c.bf16 %v2954_v54, %v2953_v33  ;;  %v2817_v62 = vpop.f32.mrf.mxu1 }
 0x18e   : > { %v2818_v41 = vadd.f32 %v2817_v62, %v2789_v24  ;;  %v2923_v31 = vmul.f32 %v4534_v56, %v2903_v47 }
 0x18f   : > { %3614 = vst [vmem:[%s4563_s24] sm:$0xff] %v3613_v0  }
 0x190   : > { %v2847_v34 = vadd.f32 %v2846_v25, %v2818_v41  ;;  %v2904_v36 = vpop.f32.mrf.mxu0  ;;  %v2935_v11 = vadd.f32 %v4540_v30, %v2923_v31  ;;  %v2880_v45 = vpop.f32.mrf.mxu3 }
 0x192   : > { %v2876_v53 = vadd.f32 %v2875_v35, %v2847_v34  ;;  %v2947_v21 = vadd.f32 %v4549_v63, %v2935_v11 }
 0x194   : > { %v2905_v29 = vadd.f32 %v2904_v36, %v2876_v53  ;;  %v2955_v39 = vmax.f32 %v2947_v21, 0.0 }
 0x196   : > { %v2924_v46 = vmul.f32 %v4534_v56, %v2905_v29 }
 0x197   : > { %v2854_v55 = vpop.f32.mrf.mxu2 }
 0x198   : > { %v2936_v4 = vadd.f32 %v4540_v30, %v2924_v46 }
 0x19a   : > { %v2948_v38 = vadd.f32 %v4549_v63, %v2936_v4 }
 0x19c   : > { %v2956_v7 = vmax.f32 %v2948_v38, 0.0 }
 0x19e   : > { %v3618_v13 = vpack.c.bf16 %v2956_v7, %v2955_v39  ;;  %v2907_v15 = vpop.f32.mrf.mxu0 }
 0x19f   : > { %v2856_v23 = vpop.f32.mrf.mxu2 }
 0x1a0   : > { %3630 = vst [vmem:[%s4563_s24 + $0x8] sm:$0xff] %v3618_v13   ;;  %v2820_v42 = vpop.f32.mrf.mxu1 }
 0x1a1   : > { %v2821_v28 = vadd.f32 %v2820_v42, %v4516_v20 }
 0x1a3   : > { %v2850_v17 = vadd.f32 %v2849_v37, %v2821_v28 }
 0x1a5   : > { %v2879_v8 = vadd.f32 %v2878_v50, %v2850_v17 }
 0x1a6   : > { %v2909_v57 = vpop.f32.mrf.mxu0 }
 0x1a7   : > { %v2908_v12 = vadd.f32 %v2907_v15, %v2879_v8 }
 0x1a8   : > { %v2822_v26 = vpop.f32.mrf.mxu1 }
 0x1a9   : > { %v2823_v6 = vadd.f32 %v2822_v26, %v4519_v2  ;;  %v2925_v9 = vmul.f32 %v4534_v56, %v2908_v12 }
 0x1aa   : > { %v2883_v22 = vpop.f32.mrf.mxu3 }
 0x1ab   : > { %v2852_v61 = vadd.f32 %v2851_v49, %v2823_v6  ;;  %v2937_v44 = vadd.f32 %v4540_v30, %v2925_v9 }
 0x1ad   : > { %v2881_v32 = vadd.f32 %v2880_v45, %v2852_v61  ;;  %v2949_v18 = vadd.f32 %v4549_v63, %v2937_v44 }
 0x1af   : > { %v2910_v16 = vadd.f32 %v2909_v57, %v2881_v32  ;;  %v2957_v51 = vmax.f32 %v2949_v18, 0.0 }
 0x1b1   : > { %v2926_v20 = vmul.f32 %v4534_v56, %v2910_v16 }
 0x1b2   : > { %v2885_v54 = vpop.f32.mrf.mxu3 }
 0x1b3   : > { %v2938_v48 = vadd.f32 %v4540_v30, %v2926_v20 }
 0x1b5   : > { %v2950_v2 = vadd.f32 %v4549_v63, %v2938_v48  ;;  %v2912_v1 = vpop.f32.mrf.mxu2 }
 0x1b7   : > { %v2958_v10 = vmax.f32 %v2950_v2, 0.0 }
 0x1b9   : > { %v3623_v14 = vpack.c.bf16 %v2958_v10, %v2957_v51  ;;  %v2825_v27 = vpop.f32.mrf.mxu1 }
 0x1ba   : > { %v2826_v43 = vadd.f32 %v2825_v27, %v4522_v59 }
 0x1bb   : > { %3631 = vst [vmem:[%s4563_s24 + $0x10] sm:$0xff] %v3623_v14  }
 0x1bc   : > { %v2855_v5 = vadd.f32 %v2854_v55, %v2826_v43 }
 0x1bd   : > { %v2914_v25 = vpop.f32.mrf.mxu2 }
 0x1be   : > { %v2884_v3 = vadd.f32 %v2883_v22, %v2855_v5 }
 0x1c0   : > { %v2913_v58 = vadd.f32 %v2912_v1, %v2884_v3 }
 0x1c1   : > { %v2827_v19 = vpop.f32.mrf.mxu1 }
 0x1c2   : > { %v2828_v52 = vadd.f32 %v2827_v19, %v4525_v40  ;;  %v2927_v60 = vmul.f32 %v4534_v56, %v2913_v58 }
 0x1c4   : > { %v2857_v33 = vadd.f32 %v2856_v23, %v2828_v52  ;;  %v2939_v47 = vadd.f32 %v4540_v30, %v2927_v60 }
 0x1c6   : > { %v2886_v24 = vadd.f32 %v2885_v54, %v2857_v33  ;;  %v2951_v62 = vadd.f32 %v4549_v63, %v2939_v47 }
 0x1c8   : > { %v2915_v0 = vadd.f32 %v2914_v25, %v2886_v24  ;;  %v2959_v34 = vmax.f32 %v2951_v62, 0.0 }
 0x1ca   : > { %v2928_v59 = vmul.f32 %v4534_v56, %v2915_v0 }
 0x1cc   : > { %v2940_v41 = vadd.f32 %v4540_v30, %v2928_v59 }
 0x1ce   : > { %v2952_v31 = vadd.f32 %v4549_v63, %v2940_v41 }
 0x1d0   : > { %v2960_v35 = vmax.f32 %v2952_v31, 0.0 }
 0x1d2   : > { %v3628_v40 = vpack.c.bf16 %v2960_v35, %v2959_v34 }
 0x1d4   : > { %3632 = vst [vmem:[%s4563_s24 + $0x18] sm:$0xff] %v3628_v40  }
 0x1d5 PF: > { %s15_s18 = sadd.s32 1, %s3667_s18  }
 0x1d6   : > { %p12_p4 = scmp.ge.s32.totalorder %s15_s18, 4  }
 0x1d8   :  { %14 = sbr.rel (!%p12_p4) target bundleno = 1 (0x1), region = 80 }

// kernel: run.12
= control target key start
LH: loop header
LB: loop body
LE: loop exit
PB: predicated region body
PF: predicated region fallthrough
CT: control target
= control target key end

     0   :  { %s2982_s18 = smov 0   ;;  %s3549_s0 = inlined_call_operand.vmem [shape: bf16[2,8,1,8,128], index: 0, kind: input, shape index: {}]   ;;  %s3550_s1 = inlined_call_operand.vmem [shape: bf16[1152,128], index: 1, kind: input, shape index: {}]   ;;  %s3551_s2 = inlined_call_operand.vmem [shape: f32[1,128], index: 2, kind: input, shape index: {}]   ;;  %s3552_s3 = inlined_call_operand.vmem [shape: f32[1,128], index: 3, kind: input, shape index: {}]   ;;  %s3553_s4 = inlined_call_operand.vmem [shape: f32[2,1,128], index: 4, kind: input, shape index: {}]   ;;  %s3554_s5 = inlined_call_operand.vmem [shape: bf16[2,64,128], index: 5, kind: output, shape index: {}]  }
   0x1 LB: > { %s2315_s19 = sadd.s32 4294967295, %s2949_s18   ;;  %p2319_p0 = scmp.ge.s32.totalorder %s2949_s18, 1  ;;  %s2949_s18 = sphi %s2982_s18, %s15_s18  }
   0x2   : > { %p195_p1 = scmp.lt.s32.totalorder %s2949_s18, 3 }
   0x4   : > { %p196_p2 = pnand %p2319_p0, %p195_p1 }
   0x5   : > { %p226_p3 = scmp.lt.s32.totalorder (!%p196_p2), %s2315_s19, 1 }
   0x6   : > { %199 = sbr.rel (%p196_p2) target bundleno = 347 (0x15b), region = 40 }
   0xb   : > { %v2827_v0 = vld [vmem:[%s3550_s1 + $0x38] sm:$0xff]  ;;  %v2951_v2 = vmov 0   ;;  %v2826_v3 = vld [vmem:[%s3550_s1 + $0x30] sm:$0xff]  ;;  %s3564_s19 = smov (!%p226_p3, %s2315_s19), 1  ;;  %v2825_v6 = vld [vmem:[%s3550_s1 + $0x28] sm:$0xff]  ;;  %vm349_vm0 = vcmask 1043456  }
   0xc   : > { %v2843_v1 = vld [vmem:[%s3550_s1 + $0xb8] sm:$0xff]  ;;  %248 = vst [vmem:[#allocation2 + $0x20] sm:$0xf] %v2951_v2  ;;  %2915 = vmatpush.bf16.msra.mxu1 %v2827_v0  ;;  %1930 = vmatpush.bf16.msra.mxu0 %v2827_v0  ;;  %v2842_v4 = vld [vmem:[%s3550_s1 + $0xb0] sm:$0xff]  ;;  %s2782_s7 = sshll.u32 %s3564_s19, 5  ;;  %v2841_v7 = vld [vmem:[%s3550_s1 + $0xa8] sm:$0xff] }
   0xd   : > { %250 = vst [vmem:[#allocation2 + $0x28] sm:$0xf] %v2951_v2  ;;  %1988 = vmatpush.bf16.msra.mxu2 %v2843_v1  ;;  %v2851_v5 = vld [vmem:[%s3550_s1 + $0xf8] sm:$0xff]  ;;  %v2850_v8 = vld [vmem:[%s3550_s1 + $0xf0] sm:$0xff]  ;;  %s3025_s14 = scalar_lea.vmem %s3549_s0, %s2782_s7  ;;  %vm350_vm1 = vsmask.f32 7938  ;;  %s3513_s28 = scalar_lea.vmem %s3554_s5, %s2782_s7 }
   0xe   : > { %240 = vst [vmem:[#allocation2] sm:$0xf] %v2951_v2  ;;  %2017 = vmatpush.bf16.msra.mxu3 %v2851_v5  ;;  %v263_v9 = vld [vmem:[%s3025_s14 + $0xc] sm:$0xf]  ;;  %v264_v10 = vld [vmem:[%s3025_s14 + $0x10] sm:$0xf]  ;;  %vm3046_vm2 = vmand %vm349_vm0, %vm350_vm1 }
   0xf   : > { %241 = vst [vmem:[#allocation2 + $0x4] sm:$0x1] %v2951_v2  ;;  %v293_v11 = vshrl.u32 %v263_v9, 16  ;;  %v296_v12 = vshll.u32 %v263_v9, 16  ;;  %v301_v13 = vshrl.u32 %v264_v10, 16  ;;  %v304_v14 = vshll.u32 %v264_v10, 16 }
  0x10   : > { %2916 = vmatpush.bf16.msra.mxu1 %v2826_v3  ;;  %1931 = vmatpush.bf16.msra.mxu0 %v2826_v3  ;;  %242 = vst [vmem:[#allocation2 + $0x8] sm:$0xf] %v2951_v2  ;;  %v2824_v15 = vld [vmem:[%s3550_s1 + $0x20] sm:$0xff]  ;;  %v2849_v16 = vld [vmem:[%s3550_s1 + $0xe8] sm:$0xff]  ;;  %v2823_v30 = vld [vmem:[%s3550_s1 + $0x18] sm:$0xff]  ;;  %vm355_vm3 = vcmask 1040384  }
  0x11   : > { %1989 = vmatpush.bf16.msra.mxu2 %v2842_v4  ;;  %243 = vst [vmem:[#allocation2 + $0xc] sm:$0x1] %v2951_v2  ;;  %v3039_v17 = vrot.slane %v293_v11, 7  ;;  %v3041_v18 = vrot.slane %v301_v13, 7  ;;  %v2840_v22 = vld [vmem:[%s3550_s1 + $0xa0] sm:$0xff]  ;;  %v2839_v32 = vld [vmem:[%s3550_s1 + $0x98] sm:$0xff] }
  0x12   : > { %244 = vst [vmem:[#allocation2 + $0x10] sm:$0xf] %v2951_v2  ;;  %2018 = vmatpush.bf16.msra.mxu3 %v2850_v8  ;;  %v260_v25 = vld [vmem:[%s3025_s14] sm:$0xf]  ;;  %v2822_v35 = vld [vmem:[%s3550_s1 + $0x10] sm:$0xff]  ;;  %v2847_v37 = vld [vmem:[%s3550_s1 + $0xd8] sm:$0xff] }
  0x13   : > { %245 = vst [vmem:[#allocation2 + $0x14] sm:$0x1] %v2951_v2  ;;  %v373_v20 = vld [vmem:[#allocation2 + $0x20] sm:$0xf]  ;;  %v298_v23 = vor.u32 %v296_v12, %v3039_v17  ;;  %v306_v24 = vor.u32 %v304_v14, %v3041_v18  ;;  %v269_v26 = vshrl.u32 %v260_v25, 16  ;;  %v272_v33 = vshll.u32 %v260_v25, 16 }
  0x14   : > { %2917 = vmatpush.bf16.msra.mxu1 %v2825_v6  ;;  %1932 = vmatpush.bf16.msra.mxu0 %v2825_v6  ;;  %v379_v21 = vld [vmem:[#allocation2 + $0x28] sm:$0xf]  ;;  %246 = vst [vmem:[#allocation2 + $0x18] sm:$0xf] %v2951_v2  ;;  %v2848_v29 = vld [vmem:[%s3550_s1 + $0xe0] sm:$0xff]  ;;  %v2838_v36 = vld [vmem:[%s3550_s1 + $0x90] sm:$0xff] }
  0x15   : > { %1990 = vmatpush.bf16.msra.mxu2 %v2841_v7  ;;  %247 = vst [vmem:[#allocation2 + $0x1c] sm:$0x1] %v2951_v2  ;;  %v374_v27 = vsel %vm3046_vm2, %v298_v23, %v373_v20  ;;  %v380_v28 = vsel %vm3046_vm2, %v306_v24, %v379_v21  ;;  %v3070_v31 = vrot.slane %v269_v26, 7  ;;  %v3075_v34 = vld [vmem:[#allocation2] sm:$0xe]  ;;  %vm598_vm5 = vcmask 1042432  }
  0x16   : > { %249 = vst [vmem:[#allocation2 + $0x24] sm:$0x1] %v2951_v2  ;;  %2019 = vmatpush.bf16.msra.mxu3 %v2849_v16  ;;  %vm356_vm4 = vsmask.f32 256  ;;  %v567_v38 = vld [vmem:[#allocation2 + $0x4] sm:$0x1] }
  0x17   : > { %251 = vst [vmem:[#allocation2 + $0x2c] sm:$0x1] %v2951_v2  ;;  %v275_v39 = vrot.slane %v3070_v31, 4  ;;  %v352_v40 = vld [vmem:[#allocation2 + $0x8] sm:$0xf]  ;;  %vm599_vm6 = vcmask 1046532   ;;  %v274_v42 = vor.u32 %v272_v33, %v3070_v31  ;;  %vm3105_vm7 = vmand %vm355_vm3, %vm356_vm4 }
  0x18   : > { %2918 = vmatpush.bf16.msra.mxu1 %v2824_v15  ;;  %1933 = vmatpush.bf16.msra.mxu0 %v2824_v15  ;;  %375 = vst [vmem:[#allocation2 + $0x20] sm:$0xf] %v374_v27  ;;  %v2324_v41 = vrot.slane %v3075_v34, 9  ;;  %v265_v43 = vld [vmem:[%s3025_s14 + $0x14] sm:$0xf]  ;;  %v2821_v45 = vld [vmem:[%s3550_s1 + $0x8] sm:$0xff]  ;;  %vm3120_vm8 = vmor %vm598_vm5, %vm599_vm6 }
  0x19   : > { %1991 = vmatpush.bf16.msra.mxu2 %v2840_v22  ;;  %381 = vst [vmem:[#allocation2 + $0x28] sm:$0xf] %v380_v28  ;;  %v266_v44 = vld [vmem:[%s3025_s14 + $0x18] sm:$0xf]  ;;  %v358_v46 = vld [vmem:[#allocation2 + $0xc] sm:$0x1]  ;;  %v353_v59 = vsel %vm3046_vm2, %v274_v42, %v352_v40 }
  0x1a   : > { %252 = vst [vmem:[#allocation2 + $0x30] sm:$0xf] %v2951_v2  ;;  %2020 = vmatpush.bf16.msra.mxu3 %v2848_v29  ;;  %v309_v47 = vshrl.u32 %v265_v43, 16  ;;  %v312_v48 = vshll.u32 %v265_v43, 16  ;;  %v317_v49 = vshrl.u32 %v266_v44, 16  ;;  %v320_v50 = vshll.u32 %v266_v44, 16 }
  0x1b   : > { %253 = vst [vmem:[#allocation2 + $0x34] sm:$0x1] %v2951_v2  ;;  %v603_v52 = vrot.slane %v567_v38, 5  ;;  %v2846_v53 = vld [vmem:[%s3550_s1 + $0xd0] sm:$0xff]  ;;  %v2837_v58 = vld [vmem:[%s3550_s1 + $0x88] sm:$0xff]  ;;  %v2820_v62 = vld [vmem:[%s3550_s1] sm:$0xff]  ;;  %v359_v6 = vsel %vm3105_vm7, %v275_v39, %v358_v46 }
  0x1c   : > { %2919 = vmatpush.bf16.msra.mxu1 %v2823_v30  ;;  %1934 = vmatpush.bf16.msra.mxu0 %v2823_v30  ;;  %254 = vst [vmem:[#allocation2 + $0x38] sm:$0xf] %v2951_v2  ;;  %v3109_v56 = vrot.slane %v309_v47, 7  ;;  %v3111_v57 = vrot.slane %v317_v49, 7  ;;  %v403_v60 = vld [vmem:[#allocation2] sm:$0xf] }
  0x1d   : > { %1992 = vmatpush.bf16.msra.mxu2 %v2839_v32  ;;  %255 = vst [vmem:[#allocation2 + $0x3c] sm:$0x1] %v2951_v2  ;;  %v2845_v63 = vld [vmem:[%s3550_s1 + $0xc8] sm:$0xff]  ;;  %v2835_v4 = vld [vmem:[%s3550_s1 + $0x78] sm:$0xff]  ;;  %v2836_v5 = vld [vmem:[%s3550_s1 + $0x80] sm:$0xff]  ;;  %v604_v9 = vsel %vm3120_vm8, %v2324_v41, %v603_v52  ;;  %v299_v34 = vrot.slane %v3039_v17, 4 }
  0x1e   : > { %256 = vst [vmem:[#allocation2 + $0x40] sm:$0xf] %v2951_v2  ;;  %2021 = vmatpush.bf16.msra.mxu3 %v2847_v37  ;;  %v314_v0 = vor.u32 %v312_v48, %v3109_v56  ;;  %v322_v1 = vor.u32 %v320_v50, %v3111_v57  ;;  %v261_v8 = vld [vmem:[%s3025_s14 + $0x4] sm:$0xf]  ;;  %v262_v10 = vld [vmem:[%s3025_s14 + $0x8] sm:$0xf] }
  0x1f   : > { %v407_v51 = vld [vmem:[#allocation2 + $0x20] sm:$0xf]  ;;  %257 = vst [vmem:[#allocation2 + $0x44] sm:$0x1] %v2951_v2  ;;  %v277_v11 = vshrl.u32 %v261_v8, 16  ;;  %v280_v12 = vshll.u32 %v261_v8, 16 }
  0x20   : > { %2920 = vmatpush.bf16.msra.mxu1 %v2822_v35  ;;  %1935 = vmatpush.bf16.msra.mxu0 %v2822_v35  ;;  %v408_v54 = vld [vmem:[#allocation2 + $0x28] sm:$0xf]  ;;  %415 = vst [vmem:[#allocation3 + $0x90] sm:$0xf] %v407_v51  ;;  %v285_v14 = vshrl.u32 %v262_v10, 16  ;;  %v288_v15 = vshll.u32 %v262_v10, 16 }
  0x21   : > { %1993 = vmatpush.bf16.msra.mxu2 %v2838_v36  ;;  %416 = vst [vmem:[#allocation3 + $0xb4] sm:$0xf] %v408_v54  ;;  %v385_v3 = vld [vmem:[#allocation2 + $0x30] sm:$0xf]  ;;  %v2875_v21 = vld [vmem:[%s3550_s1 + $0x1b8] sm:$0xff]  ;;  %v279_v22 = vrot.slane %v277_v11, 7 }
  0x22   : > { %258 = vst [vmem:[#allocation2 + $0x48] sm:$0xf] %v2951_v2  ;;  %2022 = vmatpush.bf16.msra.mxu3 %v2846_v53  ;;  %v386_v13 = vsel %vm3046_vm2, %v314_v0, %v385_v3  ;;  %v361_v16 = vld [vmem:[#allocation2 + $0x10] sm:$0xf]  ;;  %v367_v23 = vld [vmem:[#allocation2 + $0x18] sm:$0xf] }
  0x23   : > { %259 = vst [vmem:[#allocation2 + $0x4c] sm:$0x1] %v2951_v2  ;;  %v391_v7 = vld [vmem:[#allocation2 + $0x38] sm:$0xf]  ;;  %v2844_v25 = vld [vmem:[%s3550_s1 + $0xc0] sm:$0xff]  ;;  %v3159_v26 = vrot.slane %v285_v14, 7  ;;  %v282_v28 = vor.u32 %v280_v12, %v279_v22 }
  0x24   : > { %2921 = vmatpush.bf16.msra.mxu1 %v2821_v45  ;;  %1936 = vmatpush.bf16.msra.mxu0 %v2821_v45  ;;  %354 = vst [vmem:[#allocation2 + $0x8] sm:$0xf] %v353_v59  ;;  %v2859_v2 = vld [vmem:[%s3550_s1 + $0x138] sm:$0xff]  ;;  %v392_v20 = vsel %vm3046_vm2, %v322_v1, %v391_v7  ;;  %v283_v29 = vrot.slane %v279_v22, 4  ;;  %v2834_v31 = vld [vmem:[%s3550_s1 + $0x70] sm:$0xff]  ;;  %v307_v40 = vrot.slane %v3041_v18, 4 }
  0x25   : > { %1994 = vmatpush.bf16.msra.mxu2 %v2837_v58  ;;  %411 = vst [vmem:[#allocation3] sm:$0xf] %v403_v60  ;;  %v290_v32 = vor.u32 %v288_v15, %v3159_v26  ;;  %v364_v33 = vld [vmem:[#allocation2 + $0x14] sm:$0x1]  ;;  %v362_v36 = vsel %vm3046_vm2, %v282_v28, %v361_v16  ;;  %v2833_v41 = vld [vmem:[%s3550_s1 + $0x68] sm:$0xff]  ;;  %v2832_v50 = vld [vmem:[%s3550_s1 + $0x60] sm:$0xff] }
  0x26   : > { %360 = vst [vmem:[#allocation2 + $0xc] sm:$0x1] %v359_v6  ;;  %2023 = vmatpush.bf16.msra.mxu3 %v2845_v63  ;;  %v2858_v35 = vld [vmem:[%s3550_s1 + $0x130] sm:$0xff]  ;;  %v365_v43 = vsel %vm3105_vm7, %v283_v29, %v364_v33  ;;  %v2857_v48 = vld [vmem:[%s3550_s1 + $0x128] sm:$0xff]  ;;  %v3185_v49 = vld [vmem:[#allocation2] sm:$0xf] }
  0x27   : > { %v2422_v24 = vld [vmem:[#allocation3 + $0x90] sm:$0xf]  ;;  %641 = vst [vmem:[#allocation3 + $0x8] sm:$0xf] %v604_v9  ;;  %v368_v39 = vsel %vm3046_vm2, %v290_v32, %v367_v23  ;;  %v2874_v44 = vld [vmem:[%s3550_s1 + $0x1b0] sm:$0xff]  ;;  %v291_v52 = vrot.slane %v3159_v26, 4 }
  0x28   : > { %2922 = vmatpush.bf16.msra.mxu1 %v2820_v62  ;;  %v2806_v27 = vld [vmem:[#allocation3 + $0xb0] sm:$0xf0]  ;;  %1937 = vmatpush.bf16.msra.mxu0 %v2820_v62  ;;  %387 = vst [vmem:[#allocation2 + $0x30] sm:$0xf] %v386_v13  ;;  %v2883_v53 = vld [vmem:[%s3550_s1 + $0x1f8] sm:$0xff]  ;;  %v315_v62 = vrot.slane %v3109_v56, 4 }
  0x29   : > { %v2423_v30 = vor.u32 %v2806_v27, %v2422_v24  ;;  %1995 = vmatpush.bf16.msra.mxu2 %v2836_v5  ;;  %393 = vst [vmem:[#allocation2 + $0x38] sm:$0xf] %v392_v20  ;;  %v370_v59 = vld [vmem:[#allocation2 + $0x1c] sm:$0x1]  ;;  %v2856_v63 = vld [vmem:[%s3550_s1 + $0x120] sm:$0xff]  ;;  %v439_v0 = vshrl.u32 %v3185_v49, 16 }
  0x2a   : > { %2024 = vmatpush.bf16.msra.mxu3 %v2844_v25  ;;  %363 = vst [vmem:[#allocation2 + $0x10] sm:$0xf] %v362_v36  ;;  %v2831_v5 = vld [vmem:[%s3550_s1 + $0x58] sm:$0xff]  ;;  %v371_v6 = vsel %vm3105_vm7, %v291_v52, %v370_v59  ;;  %v420_v8 = vld [vmem:[#allocation2 + $0x4] sm:$0x1]  ;;  %v442_v26 = vshll.u32 %v3185_v49, 16 }
  0x2b   : > { %1948 = vmatmul.bf16.vlgmr.msra.gmra.mxu1 %v2423_v30  ;;  %v404_v37 = vld [vmem:[#allocation2 + $0x8] sm:$0xf]  ;;  %369 = vst [vmem:[#allocation2 + $0x18] sm:$0xf] %v368_v39  ;;  %v2855_v12 = vld [vmem:[%s3550_s1 + $0x118] sm:$0xff]  ;;  %v441_v24 = vrot.slane %v439_v0, 4 }
  0x2c   : > { %1959 = vmatpush.bf16.msrb.mxu1 %v2835_v4  ;;  %2046 = vmatpush.bf16.msrb.mxu0 %v2859_v2  ;;  %v568_v38 = vld [vmem:[#allocation2 + $0x8] sm:$0xe]  ;;  %412 = vst [vmem:[#allocation3 + $0x24] sm:$0xf] %v404_v37  ;;  %v2350_v60 = vld [vmem:[#allocation3] sm:$0xf] }
  0x2d   : > { %2104 = vmatpush.bf16.msrb.mxu2 %v2875_v21  ;;  %v2325_v42 = vrot.slane %v568_v38, 9  ;;  %v569_v45 = vld [vmem:[#allocation2 + $0xc] sm:$0x1]  ;;  %v649_v46 = vld [vmem:[#allocation2 + $0x8] sm:$0xf]  ;;  %v2830_v21 = vld [vmem:[%s3550_s1 + $0x50] sm:$0xff] }
  0x2e   : > { %v607_v47 = vrot.slane %v569_v45, 5  ;;  %657 = vst [vmem:[#allocation3 + $0xc] sm:$0xf] %v649_v46  ;;  %2133 = vmatpush.bf16.msrb.mxu3 %v2883_v53  ;;  %v2358_v9 = vld [vmem:[#allocation3 + $0x8] sm:$0xf]  ;;  %v448_v27 = vshll.u32 %v420_v8, 16 }
  0x2f   : > { %v409_v51 = vld [vmem:[#allocation2 + $0x30] sm:$0xf]  ;;  %366 = vst [vmem:[#allocation2 + $0x14] sm:$0x1] %v365_v43  ;;  %v421_v11 = vld [vmem:[#allocation2 + $0x8] sm:$0xf] }
  0x30   : > { %1960 = vmatpush.bf16.msrb.mxu1 %v2834_v31  ;;  %2047 = vmatpush.bf16.msrb.mxu0 %v2858_v35  ;;  %v608_v54 = vsel %vm3120_vm8, %v2325_v42, %v607_v47  ;;  %v410_v58 = vld [vmem:[#allocation2 + $0x38] sm:$0xf]  ;;  %417 = vst [vmem:[#allocation3 + $0xd8] sm:$0xf] %v409_v51  ;;  %v422_v14 = vld [vmem:[#allocation2 + $0xc] sm:$0x1] }
  0x31   : > { %2105 = vmatpush.bf16.msrb.mxu2 %v2874_v44  ;;  %642 = vst [vmem:[#allocation3 + $0x2c] sm:$0xf] %v608_v54  ;;  %v405_v1 = vld [vmem:[#allocation2 + $0x10] sm:$0xf]  ;;  %v453_v28 = vshrl.u32 %v421_v11, 16  ;;  %v456_v29 = vshll.u32 %v421_v11, 16 }
  0x32   : > { %418 = vst [vmem:[#allocation3 + $0xfc] sm:$0xf] %v410_v58  ;;  %v650_v3 = vld [vmem:[#allocation2 + $0x10] sm:$0xf]  ;;  %v406_v10 = vld [vmem:[#allocation2 + $0x18] sm:$0xf] }
  0x33   : > { %v2788_v4 = vld [vmem:[#allocation3 + $0x20] sm:$0xf0]  ;;  %413 = vst [vmem:[#allocation3 + $0x48] sm:$0xf] %v405_v1  ;;  %v570_v7 = vld [vmem:[#allocation2 + $0x10] sm:$0xe] }
  0x34   : > { %1961 = vmatpush.bf16.msrb.mxu1 %v2833_v41  ;;  %2048 = vmatpush.bf16.msrb.mxu0 %v2857_v48  ;;  %v2351_v2 = vor.u32 %v2788_v4, %v2350_v60  ;;  %658 = vst [vmem:[#allocation3 + $0x30] sm:$0xf] %v650_v3  ;;  %v2326_v13 = vrot.slane %v570_v7, 9  ;;  %v572_v16 = vld [vmem:[#allocation2 + $0x18] sm:$0xe]  ;;  %v462_v33 = vshll.u32 %v422_v14, 16 }
  0x35   : > { %414 = vst [vmem:[#allocation3 + $0x6c] sm:$0xf] %v406_v10  ;;  %v2785_v22 = vld [vmem:[#allocation3 + $0xc] sm:$0xf]  ;;  %vm435_vm9 = vsmask.f32 3328 }
  0x36   : > { %1938 = vmatmul.bf16.vlgmr.msra.gmra.mxu0 %v2351_v2  ;;  %372 = vst [vmem:[#allocation2 + $0x1c] sm:$0x1] %v371_v6  ;;  %v571_v15 = vld [vmem:[#allocation2 + $0x14] sm:$0x1]  ;;  %v2873_v35 = vld [vmem:[%s3550_s1 + $0x1a8] sm:$0xff]  ;;  %v323_v36 = vrot.slane %v3111_v57, 4 }
  0x37   : > { %v2458_v20 = vld [vmem:[#allocation3 + $0xd8] sm:$0xf]  ;;  %v611_v23 = vrot.slane %v571_v15, 5  ;;  %vm436_vm10 = vsmask.f32 7440  ;;  %v444_v38 = vrot.slane %v442_v26, 5  ;;  %2106 = vmatpush.bf16.msrb.mxu2 %v2873_v35 }
  0x38   : > { %1962 = vmatpush.bf16.msrb.mxu1 %v2832_v50  ;;  %2049 = vmatpush.bf16.msrb.mxu0 %v2856_v63  ;;  %v2789_v25 = vld [vmem:[#allocation3 + $0x28] sm:$0xf0]  ;;  %v2829_v41 = vld [vmem:[%s3550_s1 + $0x48] sm:$0xff]  ;;  %v2327_v42 = vrot.slane %v572_v16, 9  ;;  %v2854_v43 = vld [vmem:[%s3550_s1 + $0x110] sm:$0xff]  ;;  %v455_v44 = vrot.slane %v453_v28, 4 }
  0x39   : > { %v2359_v30 = vor.u32 %v2789_v25, %v2358_v9  ;;  %v2815_v31 = vld [vmem:[#allocation3 + $0xf8] sm:$0xf0]  ;;  %v612_v32 = vsel %vm3120_vm8, %v2326_v13, %v611_v23  ;;  %v458_v45 = vrot.slane %v456_v29, 5  ;;  %v445_v47 = vor.u32 %v444_v38, %v441_v24  ;;  %v651_v50 = vld [vmem:[#allocation2 + $0x18] sm:$0xf]  ;;  %vm3230_vm11 = vmor %vm435_vm9, %vm436_vm10 }
  0x3a   : > { %v2459_v37 = vor.u32 %v2815_v31, %v2458_v20  ;;  %643 = vst [vmem:[#allocation3 + $0x50] sm:$0xf] %v612_v32  ;;  %v450_v48 = vrot.slane %v448_v27, 5  ;;  %v464_v49 = vrot.slane %v462_v33, 5  ;;  %v652_v51 = vld [vmem:[#allocation2 + $0x20] sm:$0xf] }
  0x3b   : > { %1996 = vmatmul.bf16.vlgmr.msra.gmra.mxu2 %v2359_v30  ;;  %v2360_v39 = vld [vmem:[#allocation3 + $0x2c] sm:$0xf0]  ;;  %v2386_v52 = vld [vmem:[#allocation3 + $0x48] sm:$0xf]  ;;  %v2853_v58 = vld [vmem:[%s3550_s1 + $0x108] sm:$0xff]  ;;  %v459_v60 = vor.u32 %v458_v45, %v455_v44  ;;  %v446_v1 = vrot.slane %v445_v47, 4 }
  0x3c   : > { %1963 = vmatpush.bf16.msrb.mxu1 %v2831_v5  ;;  %2050 = vmatpush.bf16.msrb.mxu0 %v2855_v12  ;;  %v2363_v46 = vor.u32 %v2785_v22, %v2360_v39  ;;  %v2797_v53 = vld [vmem:[#allocation3 + $0x68] sm:$0xf0]  ;;  %659 = vst [vmem:[#allocation3 + $0x54] sm:$0xf] %v651_v50  ;;  %v665_v63 = vld [vmem:[#allocation2 + $0x8] sm:$0xf] }
  0x3d   : > { %1953 = vmatmul.bf16.gmra.mxu1 %v2459_v37  ;;  %v573_v54 = vld [vmem:[#allocation2 + $0x1c] sm:$0x1]  ;;  %660 = vst [vmem:[#allocation3 + $0x78] sm:$0xf] %v652_v51  ;;  %v666_v3 = vld [vmem:[#allocation2 + $0xc] sm:$0x1]  ;;  %v451_v2 = vsel %vm3230_vm11, %v446_v1, %v450_v48  ;;  %v2387_v22 = vor.u32 %v2797_v53, %v2386_v52 }
  0x3e   : > { %2025 = vmatmul.bf16.vlgmr.msra.gmra.mxu3 %v2363_v46  ;;  %v615_v0 = vrot.slane %v573_v54, 5  ;;  %v460_v4 = vrot.slane %v459_v60, 4  ;;  %v667_v5 = vld [vmem:[#allocation2 + $0x10] sm:$0xf]  ;;  %v668_v6 = vld [vmem:[#allocation2 + $0x14] sm:$0x1] }
  0x3f   : > { %v682_v7 = vshrl.u32 %v665_v63, 16  ;;  %v685_v9 = vshll.u32 %v665_v63, 16  ;;  %v691_v10 = vshll.u32 %v666_v3, 16  ;;  %v2882_v11 = vld [vmem:[%s3550_s1 + $0x1f0] sm:$0xff]  ;;  %v376_v12 = vld [vmem:[#allocation2 + $0x24] sm:$0x1] }
  0x40   : > { %1964 = vmatpush.bf16.msrb.mxu1 %v2830_v21  ;;  %2051 = vmatpush.bf16.msrb.mxu0 %v2854_v43  ;;  %v616_v8 = vsel %vm3120_vm8, %v2327_v42, %v615_v0  ;;  %v2828_v13 = vld [vmem:[%s3550_s1 + $0x40] sm:$0xff]  ;;  %v465_v14 = vsel %vm3230_vm11, %v460_v4, %v464_v49  ;;  %v2867_v15 = vld [vmem:[%s3550_s1 + $0x178] sm:$0xff]  ;;  %v696_v20 = vshrl.u32 %v667_v5, 16  ;;  %v377_v21 = vsel %vm3105_vm7, %v299_v34, %v376_v12  ;;  %v382_v28 = vld [vmem:[#allocation2 + $0x2c] sm:$0x1] }
  0x41   : > { %644 = vst [vmem:[#allocation3 + $0x74] sm:$0xf] %v616_v8  ;;  %v684_v16 = vrot.slane %v682_v7, 4  ;;  %v2852_v23 = vld [vmem:[%s3550_s1 + $0x100] sm:$0xff]  ;;  %v687_v24 = vrot.slane %v685_v9, 5  ;;  %v699_v25 = vshll.u32 %v667_v5, 16  ;;  %2134 = vmatpush.bf16.msrb.mxu3 %v2882_v11  ;;  %v383_v33 = vsel %vm3105_vm7, %v307_v40, %v382_v28 }
  0x42   : > { %558 = vst [vmem:[#allocation3 + $0x4] sm:$0xf] %v451_v2  ;;  %v705_v26 = vshll.u32 %v668_v6, 16  ;;  %v698_v27 = vrot.slane %v696_v20, 4  ;;  %v2872_v17 = vld [vmem:[%s3550_s1 + $0x1a0] sm:$0xff]  ;;  %v693_v31 = vrot.slane %v691_v10, 5 }
  0x43   : > { %559 = vst [vmem:[#allocation3 + $0x28] sm:$0xf] %v465_v14  ;;  %v2394_v29 = vld [vmem:[#allocation3 + $0x50] sm:$0xf]  ;;  %v3259_v34 = vld [vmem:[#allocation3 + $0x54] sm:$0xf]  ;;  %v688_v30 = vor.u32 %v687_v24, %v684_v16  ;;  %2107 = vmatpush.bf16.msrb.mxu2 %v2872_v17 }
  0x44   : > { %1965 = vmatpush.bf16.msrb.mxu1 %v2829_v41  ;;  %2052 = vmatpush.bf16.msrb.mxu0 %v2853_v58  ;;  %v701_v32 = vrot.slane %v699_v25, 5  ;;  %378 = vst [vmem:[#allocation2 + $0x24] sm:$0x1] %v377_v21  ;;  %v2866_v35 = vld [vmem:[%s3550_s1 + $0x170] sm:$0xff]  ;;  %v2396_v37 = vld [vmem:[#allocation3 + $0x74] sm:$0xf0] }
  0x45   : > { %384 = vst [vmem:[#allocation2 + $0x2c] sm:$0x1] %v383_v33  ;;  %v574_v38 = vld [vmem:[#allocation2 + $0x20] sm:$0xe]  ;;  %v689_v39 = vrot.slane %v688_v30, 4  ;;  %v707_v42 = vrot.slane %v705_v26, 5  ;;  %v2399_v60 = vor.u32 %v3259_v34, %v2396_v37 }
  0x46   : > { %1943 = vmatmul.bf16.gmra.mxu0 %v2387_v22  ;;  %v702_v41 = vor.u32 %v701_v32, %v698_v27  ;;  %v576_v43 = vld [vmem:[#allocation2 + $0x28] sm:$0xe]  ;;  %v2328_v44 = vrot.slane %v574_v38, 9  ;;  %v423_v45 = vld [vmem:[#allocation2 + $0x10] sm:$0xf]  ;;  %v2871_v47 = vld [vmem:[%s3550_s1 + $0x198] sm:$0xff] }
  0x47   : > { %v2881_v18 = vld [vmem:[%s3550_s1 + $0x1e8] sm:$0xff]  ;;  %v2329_v40 = vrot.slane %v576_v43, 9  ;;  %v424_v46 = vld [vmem:[#allocation2 + $0x14] sm:$0x1]  ;;  %v694_v49 = vsel %vm3230_vm11, %v689_v39, %v693_v31  ;;  %v425_v51 = vld [vmem:[#allocation2 + $0x18] sm:$0xf]  ;;  %2108 = vmatpush.bf16.msrb.mxu2 %v2871_v47 }
  0x48   : > { %1966 = vmatpush.bf16.msrb.mxu1 %v2828_v13  ;;  %2053 = vmatpush.bf16.msrb.mxu0 %v2852_v23  ;;  %v2798_v48 = vld [vmem:[#allocation3 + $0x70] sm:$0xf0]  ;;  %v703_v50 = vrot.slane %v702_v41, 4  ;;  %v467_v52 = vshrl.u32 %v423_v45, 16  ;;  %v2865_v53 = vld [vmem:[%s3550_s1 + $0x168] sm:$0xff]  ;;  %v470_v4 = vshll.u32 %v423_v45, 16 }
  0x49   : > { %2135 = vmatpush.bf16.msrb.mxu3 %v2881_v18  ;;  %v2395_v54 = vor.u32 %v2798_v48, %v2394_v29  ;;  %v2784_v58 = vld [vmem:[#allocation3 + $0x4] sm:$0xf]  ;;  %801 = vst [vmem:[#allocation3 + $0x10] sm:$0xf] %v694_v49  ;;  %v426_v63 = vld [vmem:[#allocation2 + $0x1c] sm:$0x1] }
  0x4a   : > { %v2352_v0 = vld [vmem:[#allocation3 + $0x24] sm:$0xf0]  ;;  %v708_v1 = vsel %vm3230_vm11, %v703_v50, %v707_v42  ;;  %v469_v3 = vrot.slane %v467_v52, 4  ;;  %v476_v5 = vshll.u32 %v424_v46, 16  ;;  %v2880_v6 = vld [vmem:[%s3550_s1 + $0x1e0] sm:$0xff]  ;;  %v481_v2 = vshrl.u32 %v425_v51, 16 }
  0x4b   : > { %2001 = vmatmul.bf16.gmra.mxu2 %v2395_v54  ;;  %v2355_v7 = vor.u32 %v2784_v58, %v2352_v0  ;;  %802 = vst [vmem:[#allocation3 + $0x34] sm:$0xf] %v708_v1  ;;  %v575_v8 = vld [vmem:[#allocation2 + $0x24] sm:$0x1]  ;;  %v484_v9 = vshll.u32 %v425_v51, 16  ;;  %v472_v12 = vrot.slane %v470_v4, 5 }
  0x4c   : > { %2075 = vmatpush.bf16.msra.mxu1 %v2867_v15  ;;  %v577_v10 = vld [vmem:[#allocation2 + $0x2c] sm:$0x1]  ;;  %v619_v11 = vrot.slane %v575_v8, 5  ;;  %v478_v13 = vrot.slane %v476_v5, 5  ;;  %v490_v14 = vshll.u32 %v426_v63, 16  ;;  %v483_v16 = vrot.slane %v481_v2, 4 }
  0x4d   : > { %2136 = vmatpush.bf16.msrb.mxu3 %v2880_v6  ;;  %1967 = vmatmul.bf16.vlgmr.msrb.gmra.mxu1 %v2355_v7  ;;  %v623_v15 = vrot.slane %v577_v10, 5  ;;  %v486_v20 = vrot.slane %v484_v9, 5  ;;  %v653_v21 = vld [vmem:[#allocation2 + $0x28] sm:$0xf]  ;;  %v3288_v22 = vld [vmem:[%s3550_s1 + $0x238] sm:$0xff]  ;;  %v473_v24 = vor.u32 %v472_v12, %v469_v3  ;;  %v2864_v27 = vld [vmem:[%s3550_s1 + $0x160] sm:$0xff] }
  0x4e   : > { %2030 = vmatmul.bf16.gmra.mxu3 %v2399_v60  ;;  %v620_v23 = vsel %vm3120_vm8, %v2328_v44, %v619_v11  ;;  %v492_v25 = vrot.slane %v490_v14, 5  ;;  %v654_v26 = vld [vmem:[#allocation2 + $0x30] sm:$0xf]  ;;  %661 = vst [vmem:[#allocation3 + $0x9c] sm:$0xf] %v653_v21  ;;  %2162 = vmatpush.bf16.msra.mxu0 %v3288_v22  ;;  %v2879_v58 = vld [vmem:[%s3550_s1 + $0x1d8] sm:$0xff] }
  0x4f   : > { %v624_v28 = vsel %vm3120_vm8, %v2329_v40, %v623_v15  ;;  %645 = vst [vmem:[#allocation3 + $0x98] sm:$0xf] %v620_v23  ;;  %v487_v17 = vor.u32 %v486_v20, %v483_v16  ;;  %v669_v29 = vld [vmem:[#allocation2 + $0x18] sm:$0xf]  ;;  %v670_v34 = vld [vmem:[#allocation2 + $0x1c] sm:$0x1] }
  0x50   : > { %2076 = vmatpush.bf16.msra.mxu1 %v2866_v35  ;;  %v2366_v30 = vld [vmem:[#allocation3 + $0x10] sm:$0xf]  ;;  %646 = vst [vmem:[#allocation3 + $0xbc] sm:$0xf] %v624_v28  ;;  %v474_v31 = vrot.slane %v473_v24, 4  ;;  %v710_v32 = vshrl.u32 %v669_v29, 16 }
  0x51   : > { %v488_v33 = vrot.slane %v487_v17, 4  ;;  %662 = vst [vmem:[#allocation3 + $0xc0] sm:$0xf] %v654_v26  ;;  %v671_v35 = vld [vmem:[#allocation2 + $0x20] sm:$0xf]  ;;  %v713_v37 = vshll.u32 %v669_v29, 16  ;;  %2137 = vmatpush.bf16.msrb.mxu3 %v2879_v58 }
  0x52   : > { %v2790_v38 = vld [vmem:[#allocation3 + $0x30] sm:$0xf0]  ;;  %v479_v39 = vsel %vm3230_vm11, %v474_v31, %v478_v13  ;;  %v712_v42 = vrot.slane %v710_v32, 4  ;;  %v719_v43 = vshll.u32 %v670_v34, 16  ;;  %v724_v45 = vshrl.u32 %v671_v35, 16  ;;  %v2870_v51 = vld [vmem:[%s3550_s1 + $0x190] sm:$0xff] }
  0x53   : > { %v672_v41 = vld [vmem:[#allocation2 + $0x24] sm:$0x1]  ;;  %v2367_v44 = vor.u32 %v2790_v38, %v2366_v30  ;;  %v493_v18 = vsel %vm3230_vm11, %v488_v33, %v492_v25  ;;  %560 = vst [vmem:[#allocation3 + $0x4c] sm:$0xf] %v479_v39  ;;  %v715_v40 = vrot.slane %v713_v37, 5  ;;  %v727_v48 = vshll.u32 %v671_v35, 16  ;;  %2109 = vmatpush.bf16.msrb.mxu2 %v2870_v51 }
  0x54   : > { %2077 = vmatpush.bf16.msra.mxu1 %v2865_v53  ;;  %v388_v46 = vld [vmem:[#allocation2 + $0x34] sm:$0x1]  ;;  %561 = vst [vmem:[#allocation3 + $0x70] sm:$0xf] %v493_v18  ;;  %v721_v47 = vrot.slane %v719_v43, 5  ;;  %v733_v49 = vshll.u32 %v672_v41, 16 }
  0x55   : > { %v389_v50 = vsel %vm3105_vm7, %v315_v62, %v388_v46  ;;  %v2803_v52 = vld [vmem:[#allocation3 + $0x9c] sm:$0xf]  ;;  %v716_v53 = vor.u32 %v715_v40, %v712_v42  ;;  %v726_v54 = vrot.slane %v724_v45, 4  ;;  %v729_v63 = vrot.slane %v727_v48, 5  ;;  %v394_v56 = vld [vmem:[#allocation2 + $0x3c] sm:$0x1] }
  0x56   : > { %390 = vst [vmem:[#allocation2 + $0x34] sm:$0x1] %v389_v50  ;;  %2054 = vmatmul.bf16.vlgmr.msrb.gmra.mxu0 %v2367_v44  ;;  %v2430_v60 = vld [vmem:[#allocation3 + $0x98] sm:$0xf]  ;;  %v735_v0 = vrot.slane %v733_v49, 5  ;;  %v395_v3 = vsel %vm3105_vm7, %v323_v36, %v394_v56  ;;  %v3319_v5 = vld [vmem:[%s3550_s1 + $0x230] sm:$0xff] }
  0x57   : > { %v2807_v1 = vld [vmem:[#allocation3 + $0xb8] sm:$0xf0]  ;;  %v717_v62 = vrot.slane %v716_v53, 4  ;;  %v578_v4 = vld [vmem:[#allocation2 + $0x30] sm:$0xe]  ;;  %v730_v8 = vor.u32 %v729_v63, %v726_v54  ;;  %2163 = vmatpush.bf16.msra.mxu0 %v3319_v5  ;;  %v2863_v28 = vld [vmem:[%s3550_s1 + $0x158] sm:$0xff] }
  0x58   : > { %2078 = vmatpush.bf16.msra.mxu1 %v2864_v27  ;;  %v2431_v6 = vor.u32 %v2807_v1, %v2430_v60  ;;  %v2432_v7 = vld [vmem:[#allocation3 + $0xbc] sm:$0xf0]  ;;  %396 = vst [vmem:[#allocation2 + $0x3c] sm:$0x1] %v395_v3  ;;  %v580_v2 = vld [vmem:[#allocation2 + $0x38] sm:$0xe] }
  0x59   : > { %v722_v9 = vsel %vm3230_vm11, %v717_v62, %v721_v47  ;;  %v2330_v10 = vrot.slane %v578_v4, 9  ;;  %v2331_v57 = vrot.slane %v580_v2, 9  ;;  %v427_v36 = vld [vmem:[#allocation2 + $0x20] sm:$0xf]  ;;  %v428_v11 = vld [vmem:[#allocation2 + $0x24] sm:$0x1]  ;;  %v2435_v13 = vor.u32 %v2803_v52, %v2432_v7 }
  0x5a   : > { %v2793_v12 = vld [vmem:[#allocation3 + $0x4c] sm:$0xf]  ;;  %v731_v14 = vrot.slane %v730_v8, 4  ;;  %803 = vst [vmem:[#allocation3 + $0x58] sm:$0xf] %v722_v9  ;;  %v495_v15 = vshrl.u32 %v427_v36, 16 }
  0x5b   : > { %2006 = vmatmul.bf16.gmra.mxu2 %v2431_v6  ;;  %v2388_v16 = vld [vmem:[#allocation3 + $0x6c] sm:$0xf0]  ;;  %v429_v20 = vld [vmem:[#allocation2 + $0x28] sm:$0xf]  ;;  %v430_v21 = vld [vmem:[#allocation2 + $0x2c] sm:$0x1] }
  0x5c   : > { %v2391_v23 = vor.u32 %v2793_v12, %v2388_v16  ;;  %v736_v24 = vsel %vm3230_vm11, %v731_v14, %v735_v0  ;;  %v497_v26 = vrot.slane %v495_v15, 4  ;;  %v498_v27 = vshll.u32 %v427_v36, 16  ;;  %v2869_v17 = vld [vmem:[%s3550_s1 + $0x188] sm:$0xff]  ;;  %v2868_v35 = vld [vmem:[%s3550_s1 + $0x180] sm:$0xff]  ;;  %v267_v37 = vld [vmem:[%s3025_s14 + $0x1c] sm:$0xf]  ;;  %2079 = vmatpush.bf16.msra.mxu1 %v2863_v28  ;;  %s233_s14 = scalar_lea.vmem %s3553_s4, %s3564_s19 }
  0x5d   : > { %v579_v25 = vld [vmem:[#allocation2 + $0x34] sm:$0x1]  ;;  %804 = vst [vmem:[#allocation3 + $0x7c] sm:$0xf] %v736_v24  ;;  %v504_v34 = vshll.u32 %v428_v11, 16  ;;  %v509_v30 = vshrl.u32 %v429_v20, 16  ;;  %2110 = vmatpush.bf16.msrb.mxu2 %v2869_v17 }
  0x5e   : > { %v627_v29 = vrot.slane %v579_v25, 5  ;;  %v512_v31 = vshll.u32 %v429_v20, 16  ;;  %1972 = vmatmul.bf16.gmra.mxu1 %v2391_v23  ;;  %2035 = vmatmul.bf16.gmra.mxu3 %v2435_v13  ;;  %v500_v32 = vrot.slane %v498_v27, 5  ;;  %v518_v33 = vshll.u32 %v430_v21, 16  ;;  %v2878_v38 = vld [vmem:[%s3550_s1 + $0x1d0] sm:$0xff]  ;;  %v3344_v18 = vld [vmem:[%s3550_s1 + $0x228] sm:$0xff] }
  0x5f   : > { %v581_v39 = vld [vmem:[#allocation2 + $0x3c] sm:$0x1]  ;;  %v506_v42 = vrot.slane %v504_v34, 5  ;;  %v511_v43 = vrot.slane %v509_v30, 4  ;;  %v325_v47 = vshrl.u32 %v267_v37, 16  ;;  %2138 = vmatpush.bf16.msrb.mxu3 %v2878_v38  ;;  %v2862_v48 = vld [vmem:[%s3550_s1 + $0x150] sm:$0xff]  ;;  %2164 = vmatpush.bf16.msra.mxu0 %v3344_v18 }
  0x60   : > { %v628_v41 = vsel %vm3120_vm8, %v2330_v10, %v627_v29  ;;  %v514_v44 = vrot.slane %v512_v31, 5  ;;  %v631_v40 = vrot.slane %v581_v39, 5  ;;  %v501_v45 = vor.u32 %v500_v32, %v497_v26  ;;  %v397_v52 = vld [vmem:[#allocation2 + $0x40] sm:$0xf]  ;;  %v2877_v53 = vld [vmem:[%s3550_s1 + $0x1c8] sm:$0xff]  ;;  %2080 = vmatpush.bf16.msra.mxu1 %v2862_v48 }
  0x61   : > { %647 = vst [vmem:[#allocation3 + $0xe0] sm:$0xf] %v628_v41  ;;  %v520_v46 = vrot.slane %v518_v33, 5  ;;  %v2402_v49 = vld [vmem:[#allocation3 + $0x58] sm:$0xf]  ;;  %v328_v51 = vshll.u32 %v267_v37, 16  ;;  %2111 = vmatpush.bf16.msrb.mxu2 %v2868_v35 }
  0x62   : > { %v515_v50 = vor.u32 %v514_v44, %v511_v43  ;;  %v632_v54 = vsel %vm3120_vm8, %v2331_v57, %v631_v40  ;;  %v502_v58 = vrot.slane %v501_v45, 4  ;;  %v3355_v60 = vrot.slane %v325_v47, 7  ;;  %v655_v63 = vld [vmem:[#allocation2 + $0x38] sm:$0xf]  ;;  %v673_v0 = vld [vmem:[#allocation2 + $0x28] sm:$0xf] }
  0x63   : > { %648 = vst [vmem:[#allocation3 + $0x104] sm:$0xf] %v632_v54  ;;  %v674_v1 = vld [vmem:[#allocation2 + $0x2c] sm:$0x1]  ;;  %v738_v62 = vshrl.u32 %v673_v0, 16  ;;  %v741_v7 = vshll.u32 %v673_v0, 16  ;;  %2139 = vmatpush.bf16.msrb.mxu3 %v2877_v53 }
  0x64   : > { %v516_v56 = vrot.slane %v515_v50, 4  ;;  %v2799_v3 = vld [vmem:[#allocation3 + $0x78] sm:$0xf0]  ;;  %v507_v4 = vsel %vm3230_vm11, %v502_v58, %v506_v42  ;;  %v330_v6 = vor.u32 %v328_v51, %v3355_v60  ;;  %663 = vst [vmem:[#allocation3 + $0xe4] sm:$0xf] %v655_v63  ;;  %v747_v12 = vshll.u32 %v674_v1, 16 }
  0x65   : > { %2923 = vmatpush.bf16.msra.mxu2 %v3288_v22  ;;  %v2403_v8 = vor.u32 %v2799_v3, %v2402_v49  ;;  %562 = vst [vmem:[#allocation3 + $0x94] sm:$0xf] %v507_v4  ;;  %v675_v9 = vld [vmem:[#allocation2 + $0x30] sm:$0xf]  ;;  %v676_v10 = vld [vmem:[#allocation2 + $0x34] sm:$0x1] }
  0x66   : > { %v521_v2 = vsel %vm3230_vm11, %v516_v56, %v520_v46  ;;  %v398_v57 = vsel %vm3046_vm2, %v330_v6, %v397_v52  ;;  %v740_v36 = vrot.slane %v738_v62, 4  ;;  %v743_v11 = vrot.slane %v741_v7, 5  ;;  %v2888_v13 = vld [vmem:[%s3550_s1 + $0x220] sm:$0xff]  ;;  %v890_v23 = vld [vmem:[#allocation2 + $0x10] sm:$0xf]  ;;  %v2861_v47 = vld [vmem:[%s3550_s1 + $0x148] sm:$0xff] }
  0x67   : > { %563 = vst [vmem:[#allocation3 + $0xb8] sm:$0xf] %v521_v2  ;;  %2059 = vmatmul.bf16.gmra.mxu0 %v2403_v8  ;;  %v752_v14 = vshrl.u32 %v675_v9, 16  ;;  %v755_v15 = vshll.u32 %v675_v9, 16  ;;  %v749_v20 = vrot.slane %v747_v12, 5  ;;  %v761_v21 = vshll.u32 %v676_v10, 16  ;;  %2081 = vmatpush.bf16.msra.mxu1 %v2861_v47 }
  0x68   : > { %v2466_v22 = vld [vmem:[#allocation3 + $0xe0] sm:$0xf]  ;;  %399 = vst [vmem:[#allocation2 + $0x40] sm:$0xf] %v398_v57  ;;  %v744_v16 = vor.u32 %v743_v11, %v740_v36  ;;  %v891_v24 = vld [vmem:[#allocation2 + $0x18] sm:$0xf]  ;;  %2165 = vmatpush.bf16.msra.mxu0 %v2888_v13 }
  0x69   : > { %2924 = vmatpush.bf16.msra.mxu2 %v3319_v5  ;;  %v754_v19 = vrot.slane %v752_v14, 4  ;;  %v757_v25 = vrot.slane %v755_v15, 5  ;;  %898 = vst [vmem:[#allocation3 + $0x18] sm:$0xf] %v890_v23  ;;  %v431_v26 = vld [vmem:[#allocation2 + $0x30] sm:$0xf] }
  0x6a   : > { %v2816_v27 = vld [vmem:[#allocation3 + $0x100] sm:$0xf0]  ;;  %v745_v28 = vrot.slane %v744_v16, 4  ;;  %899 = vst [vmem:[#allocation3 + $0x3c] sm:$0xf] %v891_v24  ;;  %v331_v29 = vrot.slane %v3355_v60, 4 }
  0x6b   : > { %v2467_v17 = vor.u32 %v2816_v27, %v2466_v22  ;;  %v758_v34 = vor.u32 %v757_v25, %v754_v19  ;;  %v763_v30 = vrot.slane %v761_v21, 5  ;;  %v432_v31 = vld [vmem:[#allocation2 + $0x34] sm:$0x1]  ;;  %v433_v32 = vld [vmem:[#allocation2 + $0x38] sm:$0xf]  ;;  %v523_v5 = vshrl.u32 %v431_v26, 16 }
  0x6c   : > { %v2802_v33 = vld [vmem:[#allocation3 + $0x94] sm:$0xf]  ;;  %v750_v35 = vsel %vm3230_vm11, %v745_v28, %v749_v20  ;;  %v434_v37 = vld [vmem:[#allocation2 + $0x3c] sm:$0x1]  ;;  %v526_v38 = vshll.u32 %v431_v26, 16  ;;  %v532_v42 = vshll.u32 %v432_v31, 16 }
  0x6d   : > { %2925 = vmatpush.bf16.msra.mxu2 %v3344_v18  ;;  %v759_v41 = vrot.slane %v758_v34, 4  ;;  %805 = vst [vmem:[#allocation3 + $0xa0] sm:$0xf] %v750_v35  ;;  %v525_v40 = vrot.slane %v523_v5, 4  ;;  %v537_v46 = vshrl.u32 %v433_v32, 16  ;;  %v540_v49 = vshll.u32 %v433_v32, 16 }
  0x6e   : > { %2011 = vmatmul.bf16.gmra.mxu2 %v2467_v17  ;;  %v2424_v39 = vld [vmem:[#allocation3 + $0xb4] sm:$0xf0]  ;;  %v528_v45 = vrot.slane %v526_v38, 5  ;;  %v546_v18 = vshll.u32 %v434_v37, 16  ;;  %v2876_v50 = vld [vmem:[%s3550_s1 + $0x1c0] sm:$0xff]  ;;  %v534_v52 = vrot.slane %v532_v42, 5 }
  0x6f   : > { %v2427_v43 = vor.u32 %v2802_v33, %v2424_v39  ;;  %v656_v44 = vld [vmem:[#allocation2 + $0x40] sm:$0xf]  ;;  %v764_v48 = vsel %vm3230_vm11, %v759_v41, %v763_v30  ;;  %v539_v53 = vrot.slane %v537_v46, 4  ;;  %v2887_v54 = vld [vmem:[%s3550_s1 + $0x218] sm:$0xff]  ;;  %v542_v58 = vrot.slane %v540_v49, 5  ;;  %2140 = vmatpush.bf16.msrb.mxu3 %v2876_v50  ;;  %v2885_v24 = vld [vmem:[%s3550_s1 + $0x208] sm:$0xff] }
  0x70   : > { %664 = vst [vmem:[#allocation3 + $0x108] sm:$0xf] %v656_v44  ;;  %v529_v51 = vor.u32 %v528_v45, %v525_v40  ;;  %v548_v60 = vrot.slane %v546_v18, 5  ;;  %v400_v63 = vld [vmem:[#allocation2 + $0x44] sm:$0x1]  ;;  %2166 = vmatpush.bf16.msra.mxu0 %v2887_v54 }
  0x71   : > { %1977 = vmatmul.bf16.gmra.mxu1 %v2427_v43  ;;  %806 = vst [vmem:[#allocation3 + $0xc4] sm:$0xf] %v764_v48  ;;  %2926 = vmatpush.bf16.msra.mxu2 %v2888_v13  ;;  %v2812_v0 = vld [vmem:[#allocation3 + $0xe4] sm:$0xf]  ;;  %v401_v1 = vsel %vm3105_vm7, %v331_v29, %v400_v63  ;;  %v677_v62 = vld [vmem:[#allocation2 + $0x38] sm:$0xf]  ;;  %v543_v8 = vor.u32 %v542_v58, %v539_v53 }
  0x72   : > { %v530_v56 = vrot.slane %v529_v51, 4  ;;  %v678_v3 = vld [vmem:[#allocation2 + $0x3c] sm:$0x1]  ;;  %v2860_v4 = vld [vmem:[%s3550_s1 + $0x140] sm:$0xff]  ;;  %v2374_v6 = vld [vmem:[#allocation3 + $0x18] sm:$0xf] }
  0x73   : > { %v2791_v7 = vld [vmem:[#allocation3 + $0x38] sm:$0xf0]  ;;  %402 = vst [vmem:[#allocation2 + $0x44] sm:$0x1] %v401_v1  ;;  %v679_v2 = vld [vmem:[#allocation2 + $0x40] sm:$0xf]  ;;  %2082 = vmatpush.bf16.msra.mxu1 %v2860_v4 }
  0x74   : > { %v766_v9 = vshrl.u32 %v677_v62, 16  ;;  %v769_v10 = vshll.u32 %v677_v62, 16  ;;  %v2438_v57 = vld [vmem:[#allocation3 + $0xa0] sm:$0xf]  ;;  %v535_v36 = vsel %vm3230_vm11, %v530_v56, %v534_v52  ;;  %v775_v55 = vshll.u32 %v678_v3, 16  ;;  %v2884_v49 = vld [vmem:[%s3550_s1 + $0x200] sm:$0xff] }
  0x75   : > { %v780_v11 = vshrl.u32 %v679_v2, 16  ;;  %v783_v12 = vshll.u32 %v679_v2, 16  ;;  %v2886_v13 = vld [vmem:[%s3550_s1 + $0x210] sm:$0xff]  ;;  %2927 = vmatpush.bf16.msra.mxu2 %v2887_v54  ;;  %v544_v22 = vrot.slane %v543_v8, 4  ;;  %564 = vst [vmem:[#allocation3 + $0xdc] sm:$0xf] %v535_v36  ;;  %v2375_v34 = vor.u32 %v2791_v7, %v2374_v6 }
  0x76   : > { %v768_v14 = vrot.slane %v766_v9, 4  ;;  %v771_v15 = vrot.slane %v769_v10, 5  ;;  %v777_v20 = vrot.slane %v775_v55, 5  ;;  %2167 = vmatpush.bf16.msra.mxu0 %v2886_v13  ;;  %v906_v28 = vld [vmem:[#allocation2 + $0x10] sm:$0xf] }
  0x77   : > { %v2468_v16 = vld [vmem:[#allocation3 + $0x104] sm:$0xf0]  ;;  %v782_v21 = vrot.slane %v780_v11, 4  ;;  %v785_v23 = vrot.slane %v783_v12, 5  ;;  %v549_v26 = vsel %vm3230_vm11, %v544_v22, %v548_v60  ;;  %v907_v17 = vld [vmem:[#allocation2 + $0x14] sm:$0x1] }
  0x78   : > { %v2471_v19 = vor.u32 %v2812_v0, %v2468_v16  ;;  %v2808_v25 = vld [vmem:[#allocation3 + $0xc0] sm:$0xf0]  ;;  %v772_v27 = vor.u32 %v771_v15, %v768_v14  ;;  %565 = vst [vmem:[#allocation3 + $0x100] sm:$0xf] %v549_v26  ;;  %v908_v31 = vld [vmem:[#allocation2 + $0x18] sm:$0xf] }
  0x79   : > { %v2439_v29 = vor.u32 %v2808_v25, %v2438_v57  ;;  %v786_v30 = vor.u32 %v785_v23, %v782_v21  ;;  %v909_v32 = vld [vmem:[#allocation2 + $0x1c] sm:$0x1]  ;;  %2928 = vmatpush.bf16.msra.mxu2 %v2886_v13  ;;  %v923_v35 = vshrl.u32 %v906_v28, 16  ;;  %v926_v37 = vshll.u32 %v906_v28, 16  ;;  %v892_v38 = vld [vmem:[#allocation2 + $0x20] sm:$0xf] }
  0x7a   : > { %2040 = vmatmul.bf16.gmra.mxu3 %v2471_v19  ;;  %v773_v33 = vrot.slane %v772_v27, 4  ;;  %v932_v5 = vshll.u32 %v907_v17, 16  ;;  %v680_v39 = vld [vmem:[#allocation2 + $0x44] sm:$0x1]  ;;  %v937_v42 = vshrl.u32 %v908_v31, 16  ;;  %v940_v43 = vshll.u32 %v908_v31, 16  ;;  %2168 = vmatpush.bf16.msra.mxu0 %v2885_v24 }
  0x7b   : > { %2064 = vmatmul.bf16.gmra.mxu0 %v2439_v29  ;;  %v787_v41 = vrot.slane %v786_v30, 4  ;;  %v946_v44 = vshll.u32 %v909_v32, 16  ;;  %v789_v45 = vshll.u32 %v680_v39, 16  ;;  %v925_v46 = vrot.slane %v923_v35, 4  ;;  %v893_v48 = vld [vmem:[#allocation2 + $0x28] sm:$0xf] }
  0x7c   : > { %v778_v40 = vsel %vm3230_vm11, %v773_v33, %v777_v20  ;;  %v928_v47 = vrot.slane %v926_v37, 5  ;;  %v2811_v18 = vld [vmem:[#allocation3 + $0xdc] sm:$0xf]  ;;  %v934_v50 = vrot.slane %v932_v5, 5  ;;  %v939_v51 = vrot.slane %v937_v42, 4 }
  0x7d   : > { %807 = vst [vmem:[#allocation3 + $0xe8] sm:$0xf] %v778_v40  ;;  %2929 = vmatpush.bf16.msra.mxu2 %v2885_v24  ;;  %v791_v52 = vrot.slane %v789_v45, 5  ;;  %v942_v54 = vrot.slane %v940_v43, 5  ;;  %v948_v58 = vrot.slane %v946_v44, 5 }
  0x7e   : > { %2112 = vmatmul.bf16.vlgmr.msrb.gmra.mxu2 %v2375_v34  ;;  %v929_v53 = vor.u32 %v928_v47, %v925_v46  ;;  %900 = vst [vmem:[#allocation3 + $0x60] sm:$0xf] %v892_v38  ;;  %v809_v60 = vld [vmem:[#allocation2 + $0x8] sm:$0xe]  ;;  %v810_v63 = vld [vmem:[#allocation2 + $0xc] sm:$0x1]  ;;  %2169 = vmatpush.bf16.msra.mxu0 %v2884_v49 }
  0x7f   : > { %901 = vst [vmem:[#allocation3 + $0x84] sm:$0xf] %v893_v48  ;;  %v2460_v0 = vld [vmem:[#allocation3 + $0xfc] sm:$0xf0]  ;;  %v792_v56 = vsel %vm3230_vm11, %v787_v41, %v791_v52  ;;  %v943_v62 = vor.u32 %v942_v54, %v939_v51  ;;  %v2332_v4 = vrot.slane %v809_v60, 9  ;;  %v843_v8 = vrot.slane %v810_v63, 5 }
  0x80   : > { %v930_v1 = vrot.slane %v929_v53, 4  ;;  %v811_v3 = vld [vmem:[#allocation2 + $0x10] sm:$0xe]  ;;  %v2463_v6 = vor.u32 %v2811_v18, %v2460_v0  ;;  %808 = vst [vmem:[#allocation3 + $0x10c] sm:$0xf] %v792_v56 }
  0x81   : > { %v812_v7 = vld [vmem:[#allocation2 + $0x14] sm:$0x1]  ;;  %v2333_v2 = vrot.slane %v811_v3, 9  ;;  %2930 = vmatpush.bf16.msra.mxu2 %v2884_v49  ;;  %v944_v10 = vrot.slane %v943_v62, 4  ;;  %v910_v36 = vld [vmem:[#allocation2 + $0x20] sm:$0xf]  ;;  %v844_v11 = vsel %vm3120_vm8, %v2332_v4, %v843_v8 }
  0x82   : > { %v935_v9 = vsel %vm3230_vm11, %v930_v1, %v934_v50  ;;  %v847_v57 = vrot.slane %v812_v7, 5  ;;  %v911_v55 = vld [vmem:[#allocation2 + $0x24] sm:$0x1]  ;;  %1982 = vmatmul.bf16.gmra.mxu1 %v2463_v6  ;;  %v912_v12 = vld [vmem:[#allocation2 + $0x28] sm:$0xf]  ;;  %v951_v16 = vshrl.u32 %v910_v36, 16 }
  0x83   : > { %1042 = vst [vmem:[#allocation3 + $0x1c] sm:$0xf] %v935_v9  ;;  %v913_v13 = vld [vmem:[#allocation2 + $0x2c] sm:$0x1]  ;;  %v949_v14 = vsel %vm3230_vm11, %v944_v10, %v948_v58  ;;  %v954_v20 = vshll.u32 %v910_v36, 16  ;;  %v960_v23 = vshll.u32 %v911_v55, 16 }
  0x84   : > { %v2474_v22 = vld [vmem:[#allocation3 + $0xe8] sm:$0xf]  ;;  %v848_v15 = vsel %vm3120_vm8, %v2333_v2, %v847_v57  ;;  %881 = vst [vmem:[#allocation3 + $0x14] sm:$0xf] %v844_v11  ;;  %v965_v24 = vshrl.u32 %v912_v12, 16  ;;  %v953_v25 = vrot.slane %v951_v16, 4 }
  0x85   : > { %1043 = vst [vmem:[#allocation3 + $0x40] sm:$0xf] %v949_v14  ;;  %v2410_v21 = vld [vmem:[#allocation3 + $0x60] sm:$0xf]  ;;  %v956_v26 = vrot.slane %v954_v20, 5  ;;  %v962_v27 = vrot.slane %v960_v23, 5 }
  0x86   : > { %v2800_v19 = vld [vmem:[#allocation3 + $0x80] sm:$0xf0]  ;;  %882 = vst [vmem:[#allocation3 + $0x38] sm:$0xf] %v848_v15  ;;  %v967_v28 = vrot.slane %v965_v24, 4  ;;  %v968_v17 = vshll.u32 %v912_v12, 16 }
  0x87   : > { %v1050_v29 = vld [vmem:[#allocation2 + $0x10] sm:$0xe]  ;;  %v2817_v34 = vld [vmem:[#allocation3 + $0x108] sm:$0xf0]  ;;  %v957_v30 = vor.u32 %v956_v26, %v953_v25  ;;  %v974_v31 = vshll.u32 %v913_v13, 16  ;;  %v2411_v42 = vor.u32 %v2800_v19, %v2410_v21 }
  0x88   : > { %v1051_v32 = vld [vmem:[#allocation2 + $0x14] sm:$0x1]  ;;  %v2340_v33 = vrot.slane %v1050_v29, 9  ;;  %v2475_v35 = vor.u32 %v2817_v34, %v2474_v22  ;;  %v970_v37 = vrot.slane %v968_v17, 5  ;;  %v1052_v5 = vld [vmem:[#allocation2 + $0x18] sm:$0xe] }
  0x89   : > { %v1053_v38 = vld [vmem:[#allocation2 + $0x1c] sm:$0x1]  ;;  %v1084_v39 = vrot.slane %v1051_v32, 5  ;;  %v958_v43 = vrot.slane %v957_v30, 4  ;;  %v2341_v44 = vrot.slane %v1052_v5, 9  ;;  %v976_v47 = vrot.slane %v974_v31, 5 }
  0x8a   : > { %v2787_v41 = vld [vmem:[#allocation3 + $0x1c] sm:$0xf]  ;;  %v1088_v40 = vrot.slane %v1053_v38, 5  ;;  %v971_v46 = vor.u32 %v970_v37, %v967_v28  ;;  %v894_v49 = vld [vmem:[#allocation2 + $0x30] sm:$0xf] }
  0x8b   : > { %2069 = vmatmul.bf16.gmra.mxu0 %v2475_v35  ;;  %v2786_v45 = vld [vmem:[#allocation3 + $0x14] sm:$0xf]  ;;  %v1085_v48 = vsel %vm3120_vm8, %v2340_v33, %v1084_v39  ;;  %v963_v50 = vsel %vm3230_vm11, %v958_v43, %v962_v27  ;;  %v895_v52 = vld [vmem:[#allocation2 + $0x38] sm:$0xf]  ;;  %v814_v0 = vld [vmem:[#allocation2 + $0x1c] sm:$0x1] }
  0x8c   : > { %v2376_v18 = vld [vmem:[#allocation3 + $0x3c] sm:$0xf0]  ;;  %v1089_v51 = vsel %vm3120_vm8, %v2341_v44, %v1088_v40  ;;  %1122 = vst [vmem:[#allocation3 + $0x20] sm:$0xf] %v1085_v48  ;;  %v813_v53 = vld [vmem:[#allocation2 + $0x18] sm:$0xe] }
  0x8d   : > { %v2379_v54 = vor.u32 %v2787_v41, %v2376_v18  ;;  %v2368_v58 = vld [vmem:[#allocation3 + $0x34] sm:$0xf0]  ;;  %v972_v60 = vrot.slane %v971_v46, 4  ;;  %1044 = vst [vmem:[#allocation3 + $0x64] sm:$0xf] %v963_v50  ;;  %v2334_v63 = vrot.slane %v813_v53, 9 }
  0x8e   : > { %2117 = vmatmul.bf16.gmra.mxu2 %v2411_v42  ;;  %1123 = vst [vmem:[#allocation3 + $0x44] sm:$0xf] %v1089_v51  ;;  %v815_v56 = vld [vmem:[#allocation2 + $0x20] sm:$0xe]  ;;  %v2371_v1 = vor.u32 %v2786_v45, %v2368_v58  ;;  %v816_v3 = vld [vmem:[#allocation2 + $0x24] sm:$0x1] }
  0x8f   : > { %2141 = vmatmul.bf16.vlgmr.msrb.gmra.mxu3 %v2379_v54  ;;  %v977_v62 = vsel %vm3230_vm11, %v972_v60, %v976_v47  ;;  %902 = vst [vmem:[#allocation3 + $0xa8] sm:$0xf] %v894_v49  ;;  %v851_v4 = vrot.slane %v814_v0, 5  ;;  %v2335_v6 = vrot.slane %v815_v56, 9  ;;  %v855_v7 = vrot.slane %v816_v3, 5 }
  0x90   : > { %1045 = vst [vmem:[#allocation3 + $0x88] sm:$0xf] %v977_v62  ;;  %v914_v8 = vld [vmem:[#allocation2 + $0x30] sm:$0xf]  ;;  %v915_v9 = vld [vmem:[#allocation2 + $0x34] sm:$0x1] }
  0x91   : > { %903 = vst [vmem:[#allocation3 + $0xcc] sm:$0xf] %v895_v52  ;;  %v852_v2 = vsel %vm3120_vm8, %v2334_v63, %v851_v4  ;;  %v916_v10 = vld [vmem:[#allocation2 + $0x38] sm:$0xf]  ;;  %v856_v57 = vsel %vm3120_vm8, %v2335_v6, %v855_v7  ;;  %v917_v36 = vld [vmem:[#allocation2 + $0x3c] sm:$0x1] }
  0x92   : > { %883 = vst [vmem:[#allocation3 + $0x5c] sm:$0xf] %v852_v2  ;;  %v979_v55 = vshrl.u32 %v914_v8, 16  ;;  %v982_v11 = vshll.u32 %v914_v8, 16  ;;  %2083 = vmatmul.bf16.vlgmr.msra.gmra.mxu1 %v2371_v1  ;;  %v988_v12 = vshll.u32 %v915_v9, 16  ;;  %v993_v13 = vshrl.u32 %v916_v10, 16 }
  0x93   : > { %884 = vst [vmem:[#allocation3 + $0x80] sm:$0xf] %v856_v57  ;;  %v2382_v22 = vld [vmem:[#allocation3 + $0x20] sm:$0xf]  ;;  %v996_v16 = vshll.u32 %v916_v10, 16  ;;  %v1002_v20 = vshll.u32 %v917_v36, 16 }
  0x94   : > { %v981_v14 = vrot.slane %v979_v55, 4  ;;  %v984_v15 = vrot.slane %v982_v11, 5  ;;  %v995_v23 = vrot.slane %v993_v13, 4  ;;  %v1054_v24 = vld [vmem:[#allocation2 + $0x20] sm:$0xe]  ;;  %v990_v27 = vrot.slane %v988_v12, 5 }
  0x95   : > { %v2792_v21 = vld [vmem:[#allocation3 + $0x40] sm:$0xf0]  ;;  %v998_v28 = vrot.slane %v996_v16, 5  ;;  %v1055_v17 = vld [vmem:[#allocation2 + $0x24] sm:$0x1]  ;;  %v1004_v34 = vrot.slane %v1002_v20, 5 }
  0x96   : > { %v2796_v19 = vld [vmem:[#allocation3 + $0x64] sm:$0xf]  ;;  %v2446_v25 = vld [vmem:[#allocation3 + $0xa8] sm:$0xf]  ;;  %v985_v26 = vor.u32 %v984_v15, %v981_v14  ;;  %v2383_v29 = vor.u32 %v2792_v21, %v2382_v22  ;;  %v1056_v30 = vld [vmem:[#allocation2 + $0x28] sm:$0xe] }
  0x97   : > { %v1057_v31 = vld [vmem:[#allocation2 + $0x2c] sm:$0x1]  ;;  %v2412_v32 = vld [vmem:[#allocation3 + $0x84] sm:$0xf0]  ;;  %v999_v37 = vor.u32 %v998_v28, %v995_v23  ;;  %v2342_v5 = vrot.slane %v1054_v24, 9  ;;  %v1092_v38 = vrot.slane %v1055_v17, 5 }
  0x98   : > { %v2809_v33 = vld [vmem:[#allocation3 + $0xc8] sm:$0xf0]  ;;  %v986_v35 = vrot.slane %v985_v26, 4  ;;  %v2343_v39 = vrot.slane %v1056_v30, 9  ;;  %v1096_v41 = vrot.slane %v1057_v31, 5  ;;  %v2415_v47 = vor.u32 %v2796_v19, %v2412_v32 }
  0x99   : > { %v2447_v42 = vor.u32 %v2809_v33, %v2446_v25  ;;  %v2795_v43 = vld [vmem:[#allocation3 + $0x5c] sm:$0xf]  ;;  %v1000_v45 = vrot.slane %v999_v37, 4  ;;  %v896_v46 = vld [vmem:[#allocation2 + $0x40] sm:$0xf]  ;;  %v1093_v48 = vsel %vm3120_vm8, %v2342_v5, %v1092_v38 }
  0x9a   : > { %v2404_v44 = vld [vmem:[#allocation3 + $0x7c] sm:$0xf0]  ;;  %v991_v40 = vsel %vm3230_vm11, %v986_v35, %v990_v27  ;;  %v1097_v49 = vsel %vm3120_vm8, %v2343_v39, %v1096_v41  ;;  %v897_v18 = vld [vmem:[#allocation2 + $0x48] sm:$0xf]  ;;  %v818_v51 = vld [vmem:[#allocation2 + $0x2c] sm:$0x1] }
  0x9b   : > { %2170 = vmatmul.bf16.vlgmr.msra.gmra.mxu0 %v2383_v29  ;;  %1046 = vst [vmem:[#allocation3 + $0xac] sm:$0xf] %v991_v40  ;;  %v817_v50 = vld [vmem:[#allocation2 + $0x28] sm:$0xe]  ;;  %v1005_v52 = vsel %vm3230_vm11, %v1000_v45, %v1004_v34  ;;  %v819_v53 = vld [vmem:[#allocation2 + $0x30] sm:$0xe]  ;;  %v2407_v62 = vor.u32 %v2795_v43, %v2404_v44 }
  0x9c   : > { %1124 = vst [vmem:[#allocation3 + $0x68] sm:$0xf] %v1093_v48  ;;  %v820_v54 = vld [vmem:[#allocation2 + $0x34] sm:$0x1]  ;;  %v2336_v58 = vrot.slane %v817_v50, 9  ;;  %v859_v60 = vrot.slane %v818_v51, 5 }
  0x9d   : > { %1047 = vst [vmem:[#allocation3 + $0xd0] sm:$0xf] %v1005_v52  ;;  %v2337_v63 = vrot.slane %v819_v53, 9  ;;  %v863_v0 = vrot.slane %v820_v54, 5  ;;  %v918_v56 = vld [vmem:[#allocation2 + $0x40] sm:$0xf] }
  0x9e   : > { %2122 = vmatmul.bf16.gmra.mxu2 %v2447_v42  ;;  %1125 = vst [vmem:[#allocation3 + $0x8c] sm:$0xf] %v1097_v49  ;;  %v919_v1 = vld [vmem:[#allocation2 + $0x44] sm:$0x1]  ;;  %v860_v3 = vsel %vm3120_vm8, %v2336_v58, %v859_v60  ;;  %v920_v6 = vld [vmem:[#allocation2 + $0x48] sm:$0xf] }
  0x9f   : > { %2146 = vmatmul.bf16.gmra.mxu3 %v2415_v47  ;;  %904 = vst [vmem:[#allocation3 + $0xf0] sm:$0xf] %v896_v46  ;;  %v864_v4 = vsel %vm3120_vm8, %v2337_v63, %v863_v0  ;;  %v921_v7 = vld [vmem:[#allocation2 + $0x4c] sm:$0x1]  ;;  %v1007_v8 = vshrl.u32 %v918_v56, 16  ;;  %v1010_v2 = vshll.u32 %v918_v56, 16 }
  0xa0   : > { %905 = vst [vmem:[#allocation3 + $0x114] sm:$0xf] %v897_v18  ;;  %v1016_v9 = vshll.u32 %v919_v1, 16  ;;  %v1021_v10 = vshrl.u32 %v920_v6, 16  ;;  %v1024_v57 = vshll.u32 %v920_v6, 16  ;;  %v1030_v36 = vshll.u32 %v921_v7, 16 }
  0xa1   : > { %885 = vst [vmem:[#allocation3 + $0xa4] sm:$0xf] %v860_v3  ;;  %v1009_v55 = vrot.slane %v1007_v8, 4  ;;  %v1012_v11 = vrot.slane %v1010_v2, 5  ;;  %v1058_v12 = vld [vmem:[#allocation2 + $0x30] sm:$0xe] }
  0xa2   : > { %886 = vst [vmem:[#allocation3 + $0xc8] sm:$0xf] %v864_v4  ;;  %2088 = vmatmul.bf16.gmra.mxu1 %v2407_v62  ;;  %v1023_v22 = vrot.slane %v1021_v10, 4  ;;  %v1026_v14 = vrot.slane %v1024_v57, 5  ;;  %v1018_v16 = vrot.slane %v1016_v9, 5  ;;  %v1032_v20 = vrot.slane %v1030_v36, 5 }
  0xa3   : > { %v2418_v13 = vld [vmem:[#allocation3 + $0x68] sm:$0xf]  ;;  %v1013_v15 = vor.u32 %v1012_v11, %v1009_v55  ;;  %v1059_v21 = vld [vmem:[#allocation2 + $0x34] sm:$0x1]  ;;  %v1061_v25 = vld [vmem:[#allocation2 + $0x3c] sm:$0x1] }
  0xa4   : > { %v1060_v23 = vld [vmem:[#allocation2 + $0x38] sm:$0xe]  ;;  %v1027_v19 = vor.u32 %v1026_v14, %v1023_v22  ;;  %v2344_v26 = vrot.slane %v1058_v12, 9  ;;  %v1100_v27 = vrot.slane %v1059_v21, 5  ;;  %v2805_v28 = vld [vmem:[#allocation3 + $0xac] sm:$0xf] }
  0xa5   : > { %v2801_v24 = vld [vmem:[#allocation3 + $0x88] sm:$0xf0]  ;;  %v1014_v29 = vrot.slane %v1013_v15, 4  ;;  %v2345_v34 = vrot.slane %v1060_v23, 9  ;;  %v1104_v30 = vrot.slane %v1061_v25, 5 }
  0xa6   : > { %v2482_v17 = vld [vmem:[#allocation3 + $0xf0] sm:$0xf]  ;;  %v2419_v31 = vor.u32 %v2801_v24, %v2418_v13  ;;  %v1028_v33 = vrot.slane %v1027_v19, 4  ;;  %v1101_v35 = vsel %vm3120_vm8, %v2344_v26, %v1100_v27  ;;  %v1063_v41 = vld [vmem:[#allocation2 + $0x44] sm:$0x1] }
  0xa7   : > { %v2818_v32 = vld [vmem:[#allocation3 + $0x110] sm:$0xf0]  ;;  %v1062_v37 = vld [vmem:[#allocation2 + $0x40] sm:$0xe]  ;;  %v1019_v38 = vsel %vm3230_vm11, %v1014_v29, %v1018_v16  ;;  %v1105_v39 = vsel %vm3120_vm8, %v2345_v34, %v1104_v30  ;;  %1126 = vst [vmem:[#allocation3 + $0xb0] sm:$0xf] %v1101_v35 }
  0xa8   : > { %v2448_v5 = vld [vmem:[#allocation3 + $0xcc] sm:$0xf0]  ;;  %v3444_v42 = vpop.f32.mrf.mxu1  ;;  %v1033_v43 = vsel %vm3230_vm11, %v1028_v33, %v1032_v20  ;;  %1048 = vst [vmem:[#allocation3 + $0xf4] sm:$0xf] %v1019_v38  ;;  %v1064_v44 = vld [vmem:[#allocation2 + $0x48] sm:$0xe]  ;;  %v2483_v40 = vor.u32 %v2818_v32, %v2482_v17 }
  0xa9   : > { %v2804_v45 = vld [vmem:[#allocation3 + $0xa4] sm:$0xf]  ;;  %v2440_v46 = vld [vmem:[#allocation3 + $0xc4] sm:$0xf0]  ;;  %1049 = vst [vmem:[#allocation3 + $0x118] sm:$0xf] %v1033_v43  ;;  %v2451_v18 = vor.u32 %v2805_v28, %v2448_v5 }
  0xaa   : > { %v1065_v47 = vld [vmem:[#allocation2 + $0x4c] sm:$0x1]  ;;  %v2346_v48 = vrot.slane %v1062_v37, 9  ;;  %v1108_v49 = vrot.slane %v1063_v41, 5  ;;  %1127 = vst [vmem:[#allocation3 + $0xd4] sm:$0xf] %v1105_v39  ;;  %v2443_v62 = vor.u32 %v2804_v45, %v2440_v46 }
  0xab   : > { %2175 = vmatmul.bf16.gmra.mxu0 %v2419_v31  ;;  %v2347_v50 = vrot.slane %v1064_v44, 9  ;;  %v1112_v51 = vrot.slane %v1065_v47, 5  ;;  %v821_v52 = vld [vmem:[#allocation2 + $0x38] sm:$0xe]  ;;  %v822_v53 = vld [vmem:[#allocation2 + $0x3c] sm:$0x1] }
  0xac   : > { %v1109_v59 = vsel %vm3120_vm8, %v2346_v48, %v1108_v49  ;;  %v823_v54 = vld [vmem:[#allocation2 + $0x40] sm:$0xe]  ;;  %v824_v58 = vld [vmem:[#allocation2 + $0x44] sm:$0x1]  ;;  %v2338_v63 = vrot.slane %v821_v52, 9  ;;  %v867_v0 = vrot.slane %v822_v53, 5 }
  0xad   : > { %v1113_v60 = vsel %vm3120_vm8, %v2347_v50, %v1112_v51  ;;  %1128 = vst [vmem:[#allocation3 + $0xf8] sm:$0xf] %v1109_v59  ;;  %v2339_v56 = vrot.slane %v823_v54, 9  ;;  %v871_v1 = vrot.slane %v824_v58, 5 }
  0xae   : > { %2127 = vmatmul.bf16.gmra.mxu2 %v2483_v40  ;;  %1129 = vst [vmem:[#allocation3 + $0x11c] sm:$0xf] %v1113_v60  ;;  %v868_v3 = vsel %vm3120_vm8, %v2338_v63, %v867_v0  ;;  %v2454_v8 = vld [vmem:[#allocation3 + $0xb0] sm:$0xf] }
  0xaf   : > { %2151 = vmatmul.bf16.gmra.mxu3 %v2451_v18  ;;  %v872_v4 = vsel %vm3120_vm8, %v2339_v56, %v871_v1  ;;  %887 = vst [vmem:[#allocation3 + $0xec] sm:$0xf] %v868_v3  ;;  %v2814_v36 = vld [vmem:[#allocation3 + $0xf4] sm:$0xf] }
  0xb0   : > { %v3460_v6 = vpop.f32.mrf.mxu1  ;;  %888 = vst [vmem:[#allocation3 + $0x110] sm:$0xf] %v872_v4  ;;  %v2484_v55 = vld [vmem:[#allocation3 + $0x114] sm:$0xf0] }
  0xb1   : > { %v2810_v2 = vld [vmem:[#allocation3 + $0xd0] sm:$0xf0]  ;;  %v2487_v13 = vor.u32 %v2814_v36, %v2484_v55 }
  0xb2   : > { %2093 = vmatmul.bf16.gmra.mxu1 %v2443_v62  ;;  %v2455_v9 = vor.u32 %v2810_v2, %v2454_v8 }
  0xb3   : > { %v1939_v7 = vpop.f32.mrf.mxu0 }
  0xb4   : > { %v2490_v10 = vld [vmem:[#allocation3 + $0xf8] sm:$0xf] }
  0xb5   : > { %v2819_v57 = vld [vmem:[#allocation3 + $0x118] sm:$0xf0] }
  0xb6   : > { %v2491_v11 = vor.u32 %v2819_v57, %v2490_v10  ;;  %v2813_v61 = vld [vmem:[#allocation3 + $0xec] sm:$0xf] }
  0xb7   : > { %v2476_v14 = vld [vmem:[#allocation3 + $0x10c] sm:$0xf0] }
  0xb8   : > { %v2479_v16 = vor.u32 %v2813_v61, %v2476_v14 }
  0xba   : > { %v1954_v12 = vpop.f32.mrf.mxu1 }
  0xbb   : > { %2180 = vmatmul.bf16.gmra.mxu0 %v2455_v9  ;;  %v1941_v22 = vpop.f32.mrf.mxu0 }
  0xbe   : > { %2185 = vmatmul.bf16.vlgmr.msra.gmra.mxu2 %v2491_v11  ;;  %v1997_v15 = vpop.f32.mrf.mxu2 }
  0xbf   : > { %2156 = vmatmul.bf16.gmra.mxu3 %v2487_v13 }
  0xc1   : > { %v2026_v21 = vpop.f32.mrf.mxu3 }
  0xc2   : > { %v1956_v20 = vpop.f32.mrf.mxu1  ;;  %2098 = vmatmul.bf16.gmra.mxu1 %v2479_v16 }
  0xc3   : > { %v1944_v23 = vpop.f32.mrf.mxu0 }
  0xc6   : > { %v1999_v24 = vpop.f32.mrf.mxu2 }
  0xc9   : > { %v2028_v25 = vpop.f32.mrf.mxu3 }
  0xca   : > { %v1968_v19 = vpop.f32.mrf.mxu1 }
  0xcb   : > { %v1946_v26 = vpop.f32.mrf.mxu0  ;;  %v1969_v27 = vadd.f32 %v1968_v19, %v1939_v7 }
  0xcd   : > { %v1998_v28 = vadd.f32 %v1997_v15, %v1969_v27 }
  0xce   : > { %v2002_v17 = vpop.f32.mrf.mxu2 }
  0xcf   : > { %v2027_v29 = vadd.f32 %v2026_v21, %v1998_v28 }
  0xd1   : > { %v2031_v33 = vpop.f32.mrf.mxu3 }
  0xd2   : > { %v1970_v34 = vpop.f32.mrf.mxu1 }
  0xd3   : > { %v2055_v30 = vpop.f32.mrf.mxu0  ;;  %v1971_v31 = vadd.f32 %v1970_v34, %v1941_v22 }
  0xd4   : > { %v2056_v32 = vadd.f32 %v2055_v30, %v2027_v29 }
  0xd5   : > { %v2000_v35 = vadd.f32 %v1999_v24, %v1971_v31 }
  0xd6   : > { %v2004_v37 = vpop.f32.mrf.mxu2 }
  0xd7   : > { %v2029_v21 = vadd.f32 %v2028_v25, %v2000_v35  ;;  %v3493_v25 = vld [vmem:[%s3552_s3] ss:$0 sm:$0xff] }
  0xd9   : > { %v3462_v44 = vpop.f32.mrf.mxu3 }
  0xdb   : > { %v2057_v5 = vpop.f32.mrf.mxu0  ;;  %v1973_v38 = vpop.f32.mrf.mxu1 }
  0xdc   : > { %v1974_v39 = vadd.f32 %v1973_v38, %v1944_v23  ;;  %v2058_v24 = vadd.f32 %v2057_v5, %v2029_v21 }
  0xde   : > { %v2007_v41 = vpop.f32.mrf.mxu2  ;;  %v2003_v43 = vadd.f32 %v2002_v17, %v1974_v39 }
  0xe0   : > { %v2032_v40 = vadd.f32 %v2031_v33, %v2003_v43 }
  0xe1   : > { %v2036_v50 = vpop.f32.mrf.mxu3 }
  0xe3   : > { %v1975_v45 = vpop.f32.mrf.mxu1 }
  0xe4   : > { %v2060_v46 = vpop.f32.mrf.mxu0  ;;  %v1976_v47 = vadd.f32 %v1975_v45, %v1946_v26 }
  0xe5   : > { %v2061_v48 = vadd.f32 %v2060_v46, %v2032_v40 }
  0xe6   : > { %v2009_v49 = vpop.f32.mrf.mxu2  ;;  %v2005_v18 = vadd.f32 %v2004_v37, %v1976_v47  ;;  %v3501_v37 = vld [vmem:[%s233_s14] ss:$0 sm:$0xff] }
  0xe8   : > { %v2034_v43 = vadd.f32 %v3462_v44, %v2005_v18 }
  0xe9   : > { %v3465_v58 = vpop.f32.mrf.mxu3 }
  0xec   : > { %v2062_v51 = vpop.f32.mrf.mxu0 }
  0xee   : > { %v1978_v52 = vpop.f32.mrf.mxu1 }
  0xef   : > { %v1979_v59 = vadd.f32 %v1978_v52, %v3444_v42 }
  0xf1   : > { %v2012_v53 = vpop.f32.mrf.mxu2  ;;  %v2008_v54 = vadd.f32 %v2007_v41, %v1979_v59 }
  0xf3   : > { %v2037_v60 = vadd.f32 %v2036_v50, %v2008_v54  ;;  %v2063_v50 = vadd.f32 %v2062_v51, %v2034_v43 }
  0xf6   : > { %v1980_v63 = vpop.f32.mrf.mxu1 }
  0xf7   : > { %v1981_v0 = vadd.f32 %v1980_v63, %v3460_v6 }
  0xf8   : > { %v2065_v56 = vpop.f32.mrf.mxu0 }
  0xf9   : > { %v2014_v1 = vpop.f32.mrf.mxu2  ;;  %v3468_v62 = vadd.f32 %v2065_v56, %v2037_v60  ;;  %v3470_v3 = vadd.f32 %v2009_v49, %v1981_v0 }
  0xfd   : > { %v2041_v4 = vpop.f32.mrf.mxu3 }
  0xff   : > { %v1983_v8 = vpop.f32.mrf.mxu1 }
 0x100   : > { %v3472_v7 = vpop.f32.mrf.mxu0  ;;  %v1984_v42 = vadd.f32 %v1983_v8, %v1954_v12 }
 0x101   : > { %v2113_v2 = vpop.f32.mrf.mxu2 }
 0x102   : > { %v2013_v9 = vadd.f32 %v2012_v53, %v1984_v42 }
 0x104   : > { %v3474_v10 = vadd.f32 %v2041_v4, %v2013_v9 }
 0x105   : > { %v3476_v57 = vpop.f32.mrf.mxu3 }
 0x107   : > { %v1985_v6 = vpop.f32.mrf.mxu1 }
 0x108   : > { %v3478_v36 = vpop.f32.mrf.mxu0  ;;  %v1986_v11 = vadd.f32 %v1985_v6, %v1956_v20  ;;  %v3487_v20 = vld [vmem:[%s3551_s2] ss:$0 sm:$0xff] }
 0x109   : > { %v2115_v55 = vpop.f32.mrf.mxu2 }
 0x10a   : > { %v3480_v13 = vadd.f32 %v2014_v1, %v1986_v11  ;;  %v2039_v11 = vadd.f32 %v3465_v58, %v3470_v3 }
 0x10f   : > { %v2084_v61 = vpop.f32.mrf.mxu1 }
 0x110   : > { %v3482_v22 = vpop.f32.mrf.mxu0  ;;  %v2085_v15 = vadd.f32 %v2084_v61, %v2056_v32 }
 0x111   : > { %v2118_v14 = vpop.f32.mrf.mxu2 }
 0x112   : > { %v2142_v16 = vpop.f32.mrf.mxu3  ;;  %v2114_v12 = vadd.f32 %v2113_v2, %v2085_v15 }
 0x114   : > { %v2143_v23 = vadd.f32 %v2142_v16, %v2114_v12  ;;  %v2068_v12 = vadd.f32 %v3472_v7, %v2039_v11 }
 0x117   : > { %v2086_v26 = vpop.f32.mrf.mxu1 }
 0x118   : > { %v2171_v19 = vpop.f32.mrf.mxu0  ;;  %v2087_v17 = vadd.f32 %v2086_v26, %v2058_v24 }
 0x119   : > { %v2120_v27 = vpop.f32.mrf.mxu2  ;;  %v2172_v28 = vadd.f32 %v2171_v19, %v2143_v23 }
 0x11a   : > { %v2144_v29 = vpop.f32.mrf.mxu3  ;;  %v2116_v34 = vadd.f32 %v2115_v55, %v2087_v17 }
 0x11b   : > { %v2195_v30 = vmul.f32 %v3487_v20, %v2172_v28 }
 0x11c   : > { %v2145_v31 = vadd.f32 %v2144_v29, %v2116_v34 }
 0x11d   : > { %v2207_v35 = vadd.f32 %v3493_v25, %v2195_v30 }
 0x11f   : > { %v2089_v33 = vpop.f32.mrf.mxu1  ;;  %v2219_v46 = vadd.f32 %v3501_v37, %v2207_v35 }
 0x120   : > { %v2173_v32 = vpop.f32.mrf.mxu0  ;;  %v2090_v39 = vadd.f32 %v2089_v33, %v2061_v48 }
 0x121   : > { %v2123_v5 = vpop.f32.mrf.mxu2  ;;  %v2174_v38 = vadd.f32 %v2173_v32, %v2145_v31  ;;  %v2227_v54 = vmax.f32 %v2219_v46, 0.0  ;;  %v2071_v31 = vadd.f32 %v3478_v36, %v3474_v10 }
 0x122   : > { %v2147_v41 = vpop.f32.mrf.mxu3  ;;  %v2119_v45 = vadd.f32 %v2118_v14, %v2090_v39  ;;  %v2044_v39 = vadd.f32 %v3476_v57, %v3480_v13 }
 0x123   : > { %v2196_v40 = vmul.f32 %v3487_v20, %v2174_v38 }
 0x124   : > { %v2148_v49 = vadd.f32 %v2147_v41, %v2119_v45  ;;  %v2073_v36 = vadd.f32 %v3482_v22, %v2044_v39 }
 0x125   : > { %v2208_v47 = vadd.f32 %v3493_v25, %v2196_v40 }
 0x127   : > { %v2220_v52 = vadd.f32 %v3501_v37, %v2208_v47  ;;  %v2091_v53 = vpop.f32.mrf.mxu1 }
 0x128   : > { %v2176_v59 = vpop.f32.mrf.mxu0  ;;  %v2092_v0 = vadd.f32 %v2091_v53, %v2063_v50 }
 0x129   : > { %v2228_v60 = vmax.f32 %v2220_v52, 0.0  ;;  %v2125_v48 = vpop.f32.mrf.mxu2  ;;  %v2177_v63 = vadd.f32 %v2176_v59, %v2148_v49 }
 0x12a   : > { %v2149_v44 = vpop.f32.mrf.mxu3  ;;  %v2121_v56 = vadd.f32 %v2120_v27, %v2092_v0 }
 0x12b   : > { %v2895_v18 = vpack.c.bf16 %v2228_v60, %v2227_v54  ;;  %v2197_v51 = vmul.f32 %v3487_v20, %v2177_v63 }
 0x12c   : > { %v2150_v1 = vadd.f32 %v2149_v44, %v2121_v56 }
 0x12d   : > { %2896 = vst [vmem:[%s3513_s28] sm:$0xff] %v2895_v18   ;;  %v2209_v2 = vadd.f32 %v3493_v25, %v2197_v51 }
 0x12f   : > { %v2094_v8 = vpop.f32.mrf.mxu1  ;;  %v2221_v15 = vadd.f32 %v3501_v37, %v2209_v2 }
 0x130   : > { %v2178_v4 = vpop.f32.mrf.mxu0  ;;  %v2095_v6 = vadd.f32 %v2094_v8, %v3468_v62 }
 0x131   : > { %v2128_v42 = vpop.f32.mrf.mxu2  ;;  %v2179_v9 = vadd.f32 %v2178_v4, %v2150_v1  ;;  %v2229_v62 = vmax.f32 %v2221_v15, 0.0 }
 0x132   : > { %v2152_v55 = vpop.f32.mrf.mxu3  ;;  %v2124_v14 = vadd.f32 %v2123_v5, %v2095_v6 }
 0x133   : > { %v2198_v61 = vmul.f32 %v3487_v20, %v2179_v9 }
 0x134   : > { %v2153_v21 = vadd.f32 %v2152_v55, %v2124_v14 }
 0x135   : > { %v2210_v16 = vadd.f32 %v3493_v25, %v2198_v61 }
 0x137   : > { %v2222_v23 = vadd.f32 %v3501_v37, %v2210_v16  ;;  %v2096_v19 = vpop.f32.mrf.mxu1 }
 0x138   : > { %v2181_v24 = vpop.f32.mrf.mxu0  ;;  %v2097_v28 = vadd.f32 %v2096_v19, %v2068_v12 }
 0x139   : > { %v2230_v26 = vmax.f32 %v2222_v23, 0.0  ;;  %v2182_v27 = vadd.f32 %v2181_v24, %v2153_v21  ;;  %v2130_v3 = vpop.f32.mrf.mxu2 }
 0x13a   : > { %v2154_v58 = vpop.f32.mrf.mxu3  ;;  %v2126_v29 = vadd.f32 %v2125_v48, %v2097_v28 }
 0x13b   : > { %v2900_v17 = vpack.c.bf16 %v2230_v26, %v2229_v62  ;;  %v2199_v34 = vmul.f32 %v3487_v20, %v2182_v27 }
 0x13c   : > { %v2155_v30 = vadd.f32 %v2154_v58, %v2126_v29 }
 0x13d   : > { %2912 = vst [vmem:[%s3513_s28 + $0x8] sm:$0xff] %v2900_v17   ;;  %v2211_v33 = vadd.f32 %v3493_v25, %v2199_v34 }
 0x13f   : > { %v2099_v32 = vpop.f32.mrf.mxu1  ;;  %v2223_v45 = vadd.f32 %v3501_v37, %v2211_v33 }
 0x140   : > { %v2183_v7 = vpop.f32.mrf.mxu0  ;;  %v2100_v5 = vadd.f32 %v2099_v32, %v2071_v31 }
 0x141   : > { %v2184_v35 = vadd.f32 %v2183_v7, %v2155_v30  ;;  %v2186_v40 = vpop.f32.mrf.mxu2  ;;  %v2231_v52 = vmax.f32 %v2223_v45, 0.0 }
 0x142   : > { %v2157_v38 = vpop.f32.mrf.mxu3  ;;  %v2129_v43 = vadd.f32 %v2128_v42, %v2100_v5 }
 0x143   : > { %v2200_v41 = vmul.f32 %v3487_v20, %v2184_v35 }
 0x144   : > { %v2158_v10 = vadd.f32 %v2157_v38, %v2129_v43 }
 0x145   : > { %v2212_v46 = vadd.f32 %v3493_v25, %v2200_v41 }
 0x146   : > { %v2187_v49 = vadd.f32 %v2186_v40, %v2158_v10 }
 0x147   : > { %v2224_v47 = vadd.f32 %v3501_v37, %v2212_v46  ;;  %v2101_v50 = vpop.f32.mrf.mxu1 }
 0x148   : > { %v2102_v53 = vadd.f32 %v2101_v50, %v2073_v36  ;;  %v2201_v13 = vmul.f32 %v3487_v20, %v2187_v49 }
 0x149   : > { %v2232_v59 = vmax.f32 %v2224_v47, 0.0  ;;  %v2188_v63 = vpop.f32.mrf.mxu2 }
 0x14a   : > { %v2131_v54 = vadd.f32 %v2130_v3, %v2102_v53  ;;  %v2159_v60 = vpop.f32.mrf.mxu3  ;;  %v2213_v0 = vadd.f32 %v3493_v25, %v2201_v13 }
 0x14b   : > { %v2905_v57 = vpack.c.bf16 %v2232_v59, %v2231_v52 }
 0x14c   : > { %v2160_v48 = vadd.f32 %v2159_v60, %v2131_v54  ;;  %v2225_v18 = vadd.f32 %v3501_v37, %v2213_v0 }
 0x14d   : > { %2913 = vst [vmem:[%s3513_s28 + $0x10] sm:$0xff] %v2905_v57  }
 0x14e   : > { %v2189_v44 = vadd.f32 %v2188_v63, %v2160_v48  ;;  %v2233_v1 = vmax.f32 %v2225_v18, 0.0 }
 0x150   : > { %v2202_v22 = vmul.f32 %v3487_v20, %v2189_v44 }
 0x152   : > { %v2214_v56 = vadd.f32 %v3493_v25, %v2202_v22 }
 0x154   : > { %v2226_v51 = vadd.f32 %v3501_v37, %v2214_v56 }
 0x156   : > { %v2234_v4 = vmax.f32 %v2226_v51, 0.0 }
 0x158   : > { %v2910_v8 = vpack.c.bf16 %v2234_v4, %v2233_v1 }
 0x15a   : > { %2914 = vst [vmem:[%s3513_s28 + $0x18] sm:$0xff] %v2910_v8  }
 0x15b PF: > { %s15_s18 = sadd.s32 1, %s2949_s18  }
 0x15c   : > { %p12_p4 = scmp.ge.s32.totalorder %s15_s18, 4  }
 0x15e   :  { %14 = sbr.rel (!%p12_p4) target bundleno = 1 (0x1), region = 75 }

</bundles_post_ra>
